<compile_context>
chip_gen: v7x
topology: tpu7x:2x2x1
jax: 0.10.0
libtpu: 0.0.40
codegen_flags: <defaults>
</compile_context>

<pallas_src>
import jax
import jax.numpy as jnp
import numpy as np
from jax import lax
from jax.experimental import pallas as pl
from jax.experimental.pallas import tpu as pltpu

NUM_CLASSES = 6
WIDTH = 32
DEPTH = 3
IMG = 16       # small stand-in for 224; spatial reduction 16 -> 2
LANES = 128    # logits padded to a lane-dense width inside the MLP kernel


def _pick_batch_tile(n, max_tile=8):
    for t in range(min(n, max_tile), 0, -1):
        if n % t == 0:
            return t
    return 1


# ---------------------------------------------------------------------------
# Kernel 1: fused 3x3 conv (padding=1) + bias + ReLU + 2x2 max-pool (stride 2)
# One grid step per batch tile; conv = a single im2col bf16 MXU matmul.
# ---------------------------------------------------------------------------
def _conv_relu_pool_kernel(x_ref, w_ref, b_ref, o_ref, xpad_ref):
    # x_ref:    (Bt, H, W, Cin)        input images (f32, VMEM)
    # w_ref:    (9*Cin, Cout)          im2col conv weight (bf16, VMEM)
    # b_ref:    (1, Cout)              bias (f32, VMEM)
    # o_ref:    (Bt, Ho, Wo, Cout)     pooled output (f32, VMEM)
    # xpad_ref: (Bt, H+2, W+2, Cin)    zero-halo scratch (f32, VMEM scratch)
    Bt, H, W, Cin = x_ref.shape
    _, Ho, Wo, Cout = o_ref.shape

    # Build the padding=1 halo in VMEM.  Only the thin border is zeroed each
    # step (cheap); the interior is fully overwritten from x_ref.  This stays
    # correct even when the "parallel" batch axis is split across TensorCores
    # (a one-time program_id==0 init would not run on the second core).
    zrow = jnp.zeros((Bt, 1, W + 2, Cin), xpad_ref.dtype)
    zcol = jnp.zeros((Bt, H + 2, 1, Cin), xpad_ref.dtype)
    xpad_ref[:, pl.ds(0, 1), :, :] = zrow
    xpad_ref[:, pl.ds(H + 1, 1), :, :] = zrow
    xpad_ref[:, :, pl.ds(0, 1), :] = zcol
    xpad_ref[:, :, pl.ds(W + 1, 1), :] = zcol
    xpad_ref[:, pl.ds(1, H), pl.ds(1, W), :] = x_ref[...]

    # im2col: concatenate the 9 contiguously shifted slabs on the lane dim and
    # run ONE deep-K matmul on the MXU (bf16 operands, f32 accumulation).
    slabs = [xpad_ref[:, pl.ds(kh, H), pl.ds(kw, W), :]
             for kh in range(3) for kw in range(3)]
    col = jnp.concatenate(slabs, axis=-1)                       # (Bt,H,W,9Cin)
    col = col.reshape(Bt * H * W, 9 * Cin).astype(jnp.bfloat16)
    acc = jnp.dot(col, w_ref[...], preferred_element_type=jnp.float32)

    # Bias + ReLU (valid before max-pool: per-channel bias, ReLU monotone).
    conv = jnp.maximum(acc + b_ref[...], 0.0)                   # (Bt*H*W, Cout)

    # 2x2 / stride-2 max-pool with reshape + max (VPU); no strided loads.
    conv = conv.reshape(Bt, Ho, 2, W, Cout)
    conv = jnp.max(conv, axis=2)                                # (Bt, Ho, W, Cout)
    conv = conv.reshape(Bt, Ho, Wo, 2, Cout)
    o_ref[...] = jnp.max(conv, axis=3)                          # (Bt, Ho, Wo, Cout)


def conv_relu_pool(x_nhwc, w_col, b):
    # x_nhwc: (N, H, W, Cin) f32 ; w_col: (9*Cin, Cout) bf16 ; b: (Cout,) f32
    N, H, W, Cin = x_nhwc.shape
    Cout = w_col.shape[-1]
    Ho, Wo = H // 2, W // 2
    bt = _pick_batch_tile(N)
    return pl.pallas_call(
        _conv_relu_pool_kernel,
        out_shape=jax.ShapeDtypeStruct((N, Ho, Wo, Cout), jnp.float32),
        grid=(N // bt,),
        in_specs=[
            pl.BlockSpec((bt, H, W, Cin), lambda n: (n, 0, 0, 0)),
            pl.BlockSpec((9 * Cin, Cout), lambda n: (0, 0)),
            pl.BlockSpec((1, Cout), lambda n: (0, 0)),
        ],
        out_specs=pl.BlockSpec((bt, Ho, Wo, Cout), lambda n: (n, 0, 0, 0)),
        scratch_shapes=[pltpu.VMEM((bt, H + 2, W + 2, Cin), jnp.float32)],
        compiler_params=pltpu.CompilerParams(
            dimension_semantics=("parallel",)),
    )(x_nhwc, w_col, b.reshape(1, Cout))


# ---------------------------------------------------------------------------
# Kernel 2: fc1 + ReLU + (dropout = identity at inference) + fc2
# K-tiled over fc1's contraction dim with an f32 VMEM accumulator, so the
# (fc_in, hid) weight streams through VMEM block-by-block.
# ---------------------------------------------------------------------------
def _mlp_kernel(x_ref, w1_ref, b1_ref, w2_ref, b2_ref, o_ref, acc_ref):
    k = pl.program_id(0)

    @pl.when(k == 0)
    def _():
        acc_ref[...] = jnp.zeros_like(acc_ref)

    acc_ref[...] += jnp.dot(x_ref[...].astype(jnp.bfloat16), w1_ref[...],
                            preferred_element_type=jnp.float32)

    @pl.when(k == pl.num_programs(0) - 1)
    def _():
        h = jnp.maximum(acc_ref[...] + b1_ref[...], 0.0)
        # TODO(synk): nn.Dropout(0.5) is the identity in eval/inference mode;
        # the train-mode stochastic mask (pltpu.prng_*) is not applied.
        o_ref[...] = jnp.dot(h.astype(jnp.bfloat16), w2_ref[...],
                             preferred_element_type=jnp.float32) + b2_ref[...]


def mlp(x, w1_t, b1, w2_t, b2, *, block_k=256):
    # x: (Np, fc_in) f32 ; w1_t: (fc_in, hid) bf16 ; w2_t: (hid, Cpad) bf16
    Np, fc_in = x.shape
    hid = w1_t.shape[1]
    cpad = w2_t.shape[1]
    tk = fc_in if fc_in <= block_k else block_k
    assert fc_in % tk == 0 and (tk == fc_in or tk % 128 == 0)
    return pl.pallas_call(
        _mlp_kernel,
        out_shape=jax.ShapeDtypeStruct((Np, cpad), jnp.float32),
        grid=(fc_in // tk,),
        in_specs=[
            pl.BlockSpec((Np, tk), lambda k: (0, k)),
            pl.BlockSpec((tk, hid), lambda k: (k, 0)),
            pl.BlockSpec((1, hid), lambda k: (0, 0)),
            pl.BlockSpec((hid, cpad), lambda k: (0, 0)),
            pl.BlockSpec((1, cpad), lambda k: (0, 0)),
        ],
        out_specs=pl.BlockSpec((Np, cpad), lambda k: (0, 0)),
        scratch_shapes=[pltpu.VMEM((Np, hid), jnp.float32)],
        compiler_params=pltpu.CompilerParams(
            dimension_semantics=("arbitrary",)),
    )(x, w1_t, b1.reshape(1, hid), w2_t, b2.reshape(1, cpad))


# ---------------------------------------------------------------------------
# SimpleCNN(num_classes=6, width=32, depth=3) — deterministic params & forward
# ---------------------------------------------------------------------------
def init_params(key):
    params = {"convs": [], "fc1": None, "fc2": None}
    in_ch = 3
    keys = jax.random.split(key, 2 * DEPTH + 4)
    k = 0
    for i in range(DEPTH):
        out_ch = WIDTH * 2 ** i
        bound = 1.0 / np.sqrt(in_ch * 3 * 3)
        w = jax.random.uniform(keys[k], (out_ch, in_ch, 3, 3), jnp.float32,
                               -bound, bound)
        b = jax.random.uniform(keys[k + 1], (out_ch,), jnp.float32,
                               -bound, bound)
        k += 2
        params["convs"].append((w, b))
        in_ch = out_ch
    spatial = IMG // 2 ** DEPTH
    fc_in = in_ch * spatial * spatial            # 128 * 2 * 2 = 512
    hid = WIDTH * 8                              # 256
    bound = 1.0 / np.sqrt(fc_in)
    params["fc1"] = (jax.random.uniform(keys[k], (hid, fc_in), jnp.float32,
                                        -bound, bound),
                     jax.random.uniform(keys[k + 1], (hid,), jnp.float32,
                                        -bound, bound))
    k += 2
    bound = 1.0 / np.sqrt(hid)
    params["fc2"] = (jax.random.uniform(keys[k], (NUM_CLASSES, hid), jnp.float32,
                                        -bound, bound),
                     jax.random.uniform(keys[k + 1], (NUM_CLASSES,), jnp.float32,
                                        -bound, bound))
    return params


def simple_cnn_forward(x_nchw, params):
    # NCHW (PyTorch) -> NHWC (kernel layout)
    x = jnp.transpose(x_nchw, (0, 2, 3, 1)).astype(jnp.float32)
    for w_oihw, b in params["convs"]:
        cout, cin = w_oihw.shape[0], w_oihw.shape[1]
        # OIHW -> HWIO -> (9*Cin, Cout) im2col weight, bf16 (glue, once/layer)
        w_col = (jnp.transpose(w_oihw, (2, 3, 1, 0))
                 .reshape(9 * cin, cout).astype(jnp.bfloat16))
        x = conv_relu_pool(x, w_col, b)

    N, Hs, Ws, C = x.shape
    # Flatten directly from NHWC (no layout transpose / HBM round trip) and
    # fold PyTorch's NCHW-flatten permutation into fc1's weight instead.
    x_flat = x.reshape(N, Hs * Ws * C)
    (w1, b1), (w2, b2) = params["fc1"], params["fc2"]
    hid = w1.shape[0]
    w1_t = (w1.reshape(hid, C, Hs, Ws)
              .transpose(2, 3, 1, 0)
              .reshape(Hs * Ws * C, hid)
              .astype(jnp.bfloat16))                  # (fc_in, hid), NHWC order

    # Pad batch to >=8 sublanes and classes to 128 lanes (dense MXU/store tiles).
    Np = max(8, ((N + 7) // 8) * 8)
    x_pad = jnp.pad(x_flat, ((0, Np - N), (0, 0)))
    w2_t = jnp.pad(w2.T, ((0, 0), (0, LANES - NUM_CLASSES))).astype(jnp.bfloat16)
    b2_p = jnp.pad(b2, (0, LANES - NUM_CLASSES))

    out = mlp(x_pad, w1_t, b1, w2_t, b2_p)            # (Np, 128)
    return out[:N, :NUM_CLASSES]


def reference_forward(x_nchw, params):
    """Pure-JAX reference mirroring the PyTorch forward (eval mode)."""
    x = x_nchw.astype(jnp.float32)
    for w, b in params["convs"]:
        x = lax.conv_general_dilated(
            x, w, (1, 1), ((1, 1), (1, 1)),
            dimension_numbers=("NCHW", "OIHW", "NCHW"))
        x = jnp.maximum(x + b[None, :, None, None], 0.0)
        x = lax.reduce_window(x, -jnp.inf, lax.max,
                              (1, 1, 2, 2), (1, 1, 2, 2), "VALID")
    x = x.reshape(x.shape[0], -1)
    (w1, b1), (w2, b2) = params["fc1"], params["fc2"]
    x = jnp.maximum(jnp.dot(x, w1.T) + b1, 0.0)
    return jnp.dot(x, w2.T) + b2


if __name__ == "__main__":
    key = jax.random.PRNGKey(0)
    pkey, xkey = jax.random.split(key)
    params = init_params(pkey)
    x = jax.random.normal(xkey, (2, 3, IMG, IMG), jnp.float32)

    out = jax.block_until_ready(jax.jit(simple_cnn_forward)(x, params))
    assert out.shape == (2, NUM_CLASSES), out.shape

    ref = jax.block_until_ready(jax.jit(reference_forward)(x, params))
    # bf16 MXU operands in the kernel -> tolerance relaxed vs the f32 reference.
    np.testing.assert_allclose(np.asarray(out), np.asarray(ref),
                               rtol=2e-2, atol=2e-2)
    print("KERNEL_OK")
</pallas_src>

<mosaic_0001>
module attributes {stable_mosaic.version = 11 : i64} {
  func.func @_conv_relu_pool_kernel(%arg0: i32, %arg1: memref<2x8x8x32xf32, #tpu.memory_space<vmem>>, %arg2: memref<288x64xbf16, #tpu.memory_space<vmem>>, %arg3: memref<1x64xf32, #tpu.memory_space<vmem>>, %arg4: memref<2x4x4x64xf32, #tpu.memory_space<vmem>>, %arg5: memref<2x10x10x32xf32, #tpu.memory_space<vmem>>) attributes {dimension_semantics = [#tpu.dimension_semantics<parallel>], iteration_bounds = array<i64: 1>, scalar_prefetch = 0 : i64, scratch_operands = 1 : i64, tpu.core_type = #tpu.core_type<tc>, window_params = [{transform_indices = @transform_0, window_bounds = array<i64: 2, 8, 8, 32>}, {pipeline_mode = #tpu.pipeline_mode<synchronous>, transform_indices = @transform_1, window_bounds = array<i64: 288, 64>}, {pipeline_mode = #tpu.pipeline_mode<synchronous>, transform_indices = @transform_2, window_bounds = array<i64: 1, 64>}, {transform_indices = @transform_3, window_bounds = array<i64: 2, 4, 4, 64>}]} {
    %cst = arith.constant 0.000000e+00 : f32
    %0 = vector.broadcast %cst : f32 to vector<2x1x10x32xf32>
    %cst_0 = arith.constant 0.000000e+00 : f32
    %1 = vector.broadcast %cst_0 : f32 to vector<2x10x1x32xf32>
    %c0 = arith.constant 0 : index
    %c0_1 = arith.constant 0 : index
    %c0_2 = arith.constant 0 : index
    %c0_3 = arith.constant 0 : index
    %2 = vector.load %arg5[%c0, %c0_1, %c0_2, %c0_3] : memref<2x10x10x32xf32, #tpu.memory_space<vmem>>, vector<2x1x10x32xf32>
    tpu.vector_store %arg5[%c0, %c0_1, %c0_2, %c0_3], %0 {strides = array<i32>} : memref<2x10x10x32xf32, #tpu.memory_space<vmem>>, vector<2x1x10x32xf32>,
    %c0_4 = arith.constant 0 : index
    %c9 = arith.constant 9 : index
    %c0_5 = arith.constant 0 : index
    %c0_6 = arith.constant 0 : index
    %3 = vector.load %arg5[%c0_4, %c9, %c0_5, %c0_6] : memref<2x10x10x32xf32, #tpu.memory_space<vmem>>, vector<2x1x10x32xf32>
    tpu.vector_store %arg5[%c0_4, %c9, %c0_5, %c0_6], %0 {strides = array<i32>} : memref<2x10x10x32xf32, #tpu.memory_space<vmem>>, vector<2x1x10x32xf32>,
    %c0_7 = arith.constant 0 : index
    %c0_8 = arith.constant 0 : index
    %c0_9 = arith.constant 0 : index
    %c0_10 = arith.constant 0 : index
    %4 = vector.load %arg5[%c0_7, %c0_8, %c0_9, %c0_10] : memref<2x10x10x32xf32, #tpu.memory_space<vmem>>, vector<2x10x1x32xf32>
    tpu.vector_store %arg5[%c0_7, %c0_8, %c0_9, %c0_10], %1 {strides = array<i32>} : memref<2x10x10x32xf32, #tpu.memory_space<vmem>>, vector<2x10x1x32xf32>,
    %c0_11 = arith.constant 0 : index
    %c0_12 = arith.constant 0 : index
    %c9_13 = arith.constant 9 : index
    %c0_14 = arith.constant 0 : index
    %5 = vector.load %arg5[%c0_11, %c0_12, %c9_13, %c0_14] : memref<2x10x10x32xf32, #tpu.memory_space<vmem>>, vector<2x10x1x32xf32>
    tpu.vector_store %arg5[%c0_11, %c0_12, %c9_13, %c0_14], %1 {strides = array<i32>} : memref<2x10x10x32xf32, #tpu.memory_space<vmem>>, vector<2x10x1x32xf32>,
    %c0_15 = arith.constant 0 : index
    %c0_16 = arith.constant 0 : index
    %c0_17 = arith.constant 0 : index
    %c0_18 = arith.constant 0 : index
    %6 = vector.load %arg1[%c0_15, %c0_16, %c0_17, %c0_18] : memref<2x8x8x32xf32, #tpu.memory_space<vmem>>, vector<2x8x8x32xf32>
    %c0_19 = arith.constant 0 : index
    %c1 = arith.constant 1 : index
    %c1_20 = arith.constant 1 : index
    %c0_21 = arith.constant 0 : index
    %7 = vector.load %arg5[%c0_19, %c1, %c1_20, %c0_21] : memref<2x10x10x32xf32, #tpu.memory_space<vmem>>, vector<2x8x8x32xf32>
    tpu.vector_store %arg5[%c0_19, %c1, %c1_20, %c0_21], %6 {strides = array<i32>} : memref<2x10x10x32xf32, #tpu.memory_space<vmem>>, vector<2x8x8x32xf32>,
    %c0_22 = arith.constant 0 : index
    %c0_23 = arith.constant 0 : index
    %c0_24 = arith.constant 0 : index
    %c0_25 = arith.constant 0 : index
    %8 = vector.load %arg5[%c0_22, %c0_23, %c0_24, %c0_25] : memref<2x10x10x32xf32, #tpu.memory_space<vmem>>, vector<2x8x8x32xf32>
    %c0_26 = arith.constant 0 : index
    %c0_27 = arith.constant 0 : index
    %c1_28 = arith.constant 1 : index
    %c0_29 = arith.constant 0 : index
    %9 = vector.load %arg5[%c0_26, %c0_27, %c1_28, %c0_29] : memref<2x10x10x32xf32, #tpu.memory_space<vmem>>, vector<2x8x8x32xf32>
    %c0_30 = arith.constant 0 : index
    %c0_31 = arith.constant 0 : index
    %c2 = arith.constant 2 : index
    %c0_32 = arith.constant 0 : index
    %10 = vector.load %arg5[%c0_30, %c0_31, %c2, %c0_32] : memref<2x10x10x32xf32, #tpu.memory_space<vmem>>, vector<2x8x8x32xf32>
    %c0_33 = arith.constant 0 : index
    %c1_34 = arith.constant 1 : index
    %c0_35 = arith.constant 0 : index
    %c0_36 = arith.constant 0 : index
    %11 = vector.load %arg5[%c0_33, %c1_34, %c0_35, %c0_36] : memref<2x10x10x32xf32, #tpu.memory_space<vmem>>, vector<2x8x8x32xf32>
    %c0_37 = arith.constant 0 : index
    %c1_38 = arith.constant 1 : index
    %c1_39 = arith.constant 1 : index
    %c0_40 = arith.constant 0 : index
    %12 = vector.load %arg5[%c0_37, %c1_38, %c1_39, %c0_40] : memref<2x10x10x32xf32, #tpu.memory_space<vmem>>, vector<2x8x8x32xf32>
    %c0_41 = arith.constant 0 : index
    %c1_42 = arith.constant 1 : index
    %c2_43 = arith.constant 2 : index
    %c0_44 = arith.constant 0 : index
    %13 = vector.load %arg5[%c0_41, %c1_42, %c2_43, %c0_44] : memref<2x10x10x32xf32, #tpu.memory_space<vmem>>, vector<2x8x8x32xf32>
    %c0_45 = arith.constant 0 : index
    %c2_46 = arith.constant 2 : index
    %c0_47 = arith.constant 0 : index
    %c0_48 = arith.constant 0 : index
    %14 = vector.load %arg5[%c0_45, %c2_46, %c0_47, %c0_48] : memref<2x10x10x32xf32, #tpu.memory_space<vmem>>, vector<2x8x8x32xf32>
    %c0_49 = arith.constant 0 : index
    %c2_50 = arith.constant 2 : index
    %c1_51 = arith.constant 1 : index
    %c0_52 = arith.constant 0 : index
    %15 = vector.load %arg5[%c0_49, %c2_50, %c1_51, %c0_52] : memref<2x10x10x32xf32, #tpu.memory_space<vmem>>, vector<2x8x8x32xf32>
    %c0_53 = arith.constant 0 : index
    %c2_54 = arith.constant 2 : index
    %c2_55 = arith.constant 2 : index
    %c0_56 = arith.constant 0 : index
    %16 = vector.load %arg5[%c0_53, %c2_54, %c2_55, %c0_56] : memref<2x10x10x32xf32, #tpu.memory_space<vmem>>, vector<2x8x8x32xf32>
    %17 = tpu.concatenate %8, %9, %10, %11, %12, %13, %14, %15, %16 in 3 : vector<2x8x8x32xf32>, vector<2x8x8x32xf32>, vector<2x8x8x32xf32>, vector<2x8x8x32xf32>, vector<2x8x8x32xf32>, vector<2x8x8x32xf32>, vector<2x8x8x32xf32>, vector<2x8x8x32xf32>, vector<2x8x8x32xf32> -> vector<2x8x8x288xf32>
    %18 = vector.shape_cast %17 : vector<2x8x8x288xf32> to vector<128x288xf32>
    %19 = arith.truncf %18 : vector<128x288xf32> to vector<128x288xbf16>
    %c0_57 = arith.constant 0 : index
    %c0_58 = arith.constant 0 : index
    %20 = vector.load %arg2[%c0_57, %c0_58] : memref<288x64xbf16, #tpu.memory_space<vmem>>, vector<288x64xbf16>
    %cst_59 = arith.constant dense<0.000000e+00> : vector<128x64xf32>
    %21 = tpu.matmul %19, %20, %cst_59 {dimension_numbers = #tpu.dot_dimension_numbers<[1], [0], [0], [1], [0, 0, 1, 1], [], []>} : vector<128x288xbf16>, vector<288x64xbf16>, vector<128x64xf32> -> vector<128x64xf32>
    %c0_60 = arith.constant 0 : index
    %c0_61 = arith.constant 0 : index
    %22 = vector.load %arg3[%c0_60, %c0_61] : memref<1x64xf32, #tpu.memory_space<vmem>>, vector<1x64xf32>
    %23 = vector.broadcast %22 : vector<1x64xf32> to vector<128x64xf32>
    %24 = arith.addf %21, %23 : vector<128x64xf32>
    %cst_62 = arith.constant 0.000000e+00 : f32
    %25 = vector.broadcast %cst_62 : f32 to vector<128x64xf32>
    %26 = arith.maximumf %24, %25 : vector<128x64xf32>
    %27 = vector.shape_cast %26 : vector<128x64xf32> to vector<2x4x2x8x64xf32>
    %cst_63 = arith.constant dense<0xFF800000> : vector<2x4x8x64xf32>
    %28 = vector.multi_reduction <maximumf>, %27, %cst_63 [2] : vector<2x4x2x8x64xf32> to vector<2x4x8x64xf32>
    %29 = vector.shape_cast %28 : vector<2x4x8x64xf32> to vector<2x4x4x2x64xf32>
    %cst_64 = arith.constant dense<0xFF800000> : vector<2x4x4x64xf32>
    %30 = vector.multi_reduction <maximumf>, %29, %cst_64 [3] : vector<2x4x4x2x64xf32> to vector<2x4x4x64xf32>
    %c0_65 = arith.constant 0 : index
    %c0_66 = arith.constant 0 : index
    %c0_67 = arith.constant 0 : index
    %c0_68 = arith.constant 0 : index
    %31 = vector.load %arg4[%c0_65, %c0_66, %c0_67, %c0_68] : memref<2x4x4x64xf32, #tpu.memory_space<vmem>>, vector<2x4x4x64xf32>
    tpu.vector_store %arg4[%c0_65, %c0_66, %c0_67, %c0_68], %30 {strides = array<i32>} : memref<2x4x4x64xf32, #tpu.memory_space<vmem>>, vector<2x4x4x64xf32>,
    return
  }
  func.func @transform_0(%arg0: i32) -> (i32, i32, i32, i32) {
    %c0_i32 = arith.constant 0 : i32
    %c0_i32_0 = arith.constant 0 : i32
    %c0_i32_1 = arith.constant 0 : i32
    %c0_i32_2 = arith.constant 0 : i32
    return %arg0, %c0_i32, %c0_i32_0, %c0_i32_1 : i32, i32, i32, i32
  }
  func.func @transform_1(%arg0: i32) -> (i32, i32) {
    %c0_i32 = arith.constant 0 : i32
    %c0_i32_0 = arith.constant 0 : i32
    %c0_i32_1 = arith.constant 0 : i32
    return %c0_i32, %c0_i32_0 : i32, i32
  }
  func.func @transform_2(%arg0: i32) -> (i32, i32) {
    %c0_i32 = arith.constant 0 : i32
    %c0_i32_0 = arith.constant 0 : i32
    %c0_i32_1 = arith.constant 0 : i32
    return %c0_i32, %c0_i32_0 : i32, i32
  }
  func.func @transform_3(%arg0: i32) -> (i32, i32, i32, i32) {
    %c0_i32 = arith.constant 0 : i32
    %c0_i32_0 = arith.constant 0 : i32
    %c0_i32_1 = arith.constant 0 : i32
    %c0_i32_2 = arith.constant 0 : i32
    return %arg0, %c0_i32, %c0_i32_0, %c0_i32_1 : i32, i32, i32, i32
  }
}

module attributes {stable_mosaic.version = 11 : i64} {
  func.func @_conv_relu_pool_kernel(%arg0: i32, %arg1: memref<2x16x16x3xf32, #tpu.memory_space<vmem>>, %arg2: memref<27x32xbf16, #tpu.memory_space<vmem>>, %arg3: memref<1x32xf32, #tpu.memory_space<vmem>>, %arg4: memref<2x8x8x32xf32, #tpu.memory_space<vmem>>, %arg5: memref<2x18x18x3xf32, #tpu.memory_space<vmem>>) attributes {dimension_semantics = [#tpu.dimension_semantics<parallel>], iteration_bounds = array<i64: 1>, scalar_prefetch = 0 : i64, scratch_operands = 1 : i64, tpu.core_type = #tpu.core_type<tc>, window_params = [{transform_indices = @transform_0, window_bounds = array<i64: 2, 16, 16, 3>}, {pipeline_mode = #tpu.pipeline_mode<synchronous>, transform_indices = @transform_1, window_bounds = array<i64: 27, 32>}, {pipeline_mode = #tpu.pipeline_mode<synchronous>, transform_indices = @transform_2, window_bounds = array<i64: 1, 32>}, {transform_indices = @transform_3, window_bounds = array<i64: 2, 8, 8, 32>}]} {
    %cst = arith.constant 0.000000e+00 : f32
    %0 = vector.broadcast %cst : f32 to vector<2x1x18x3xf32>
    %cst_0 = arith.constant 0.000000e+00 : f32
    %1 = vector.broadcast %cst_0 : f32 to vector<2x18x1x3xf32>
    %c0 = arith.constant 0 : index
    %c0_1 = arith.constant 0 : index
    %c0_2 = arith.constant 0 : index
    %c0_3 = arith.constant 0 : index
    %2 = vector.load %arg5[%c0, %c0_1, %c0_2, %c0_3] : memref<2x18x18x3xf32, #tpu.memory_space<vmem>>, vector<2x1x18x3xf32>
    tpu.vector_store %arg5[%c0, %c0_1, %c0_2, %c0_3], %0 {strides = array<i32>} : memref<2x18x18x3xf32, #tpu.memory_space<vmem>>, vector<2x1x18x3xf32>,
    %c0_4 = arith.constant 0 : index
    %c17 = arith.constant 17 : index
    %c0_5 = arith.constant 0 : index
    %c0_6 = arith.constant 0 : index
    %3 = vector.load %arg5[%c0_4, %c17, %c0_5, %c0_6] : memref<2x18x18x3xf32, #tpu.memory_space<vmem>>, vector<2x1x18x3xf32>
    tpu.vector_store %arg5[%c0_4, %c17, %c0_5, %c0_6], %0 {strides = array<i32>} : memref<2x18x18x3xf32, #tpu.memory_space<vmem>>, vector<2x1x18x3xf32>,
    %c0_7 = arith.constant 0 : index
    %c0_8 = arith.constant 0 : index
    %c0_9 = arith.constant 0 : index
    %c0_10 = arith.constant 0 : index
    %4 = vector.load %arg5[%c0_7, %c0_8, %c0_9, %c0_10] : memref<2x18x18x3xf32, #tpu.memory_space<vmem>>, vector<2x18x1x3xf32>
    tpu.vector_store %arg5[%c0_7, %c0_8, %c0_9, %c0_10], %1 {strides = array<i32>} : memref<2x18x18x3xf32, #tpu.memory_space<vmem>>, vector<2x18x1x3xf32>,
    %c0_11 = arith.constant 0 : index
    %c0_12 = arith.constant 0 : index
    %c17_13 = arith.constant 17 : index
    %c0_14 = arith.constant 0 : index
    %5 = vector.load %arg5[%c0_11, %c0_12, %c17_13, %c0_14] : memref<2x18x18x3xf32, #tpu.memory_space<vmem>>, vector<2x18x1x3xf32>
    tpu.vector_store %arg5[%c0_11, %c0_12, %c17_13, %c0_14], %1 {strides = array<i32>} : memref<2x18x18x3xf32, #tpu.memory_space<vmem>>, vector<2x18x1x3xf32>,
    %c0_15 = arith.constant 0 : index
    %c0_16 = arith.constant 0 : index
    %c0_17 = arith.constant 0 : index
    %c0_18 = arith.constant 0 : index
    %6 = vector.load %arg1[%c0_15, %c0_16, %c0_17, %c0_18] : memref<2x16x16x3xf32, #tpu.memory_space<vmem>>, vector<2x16x16x3xf32>
    %c0_19 = arith.constant 0 : index
    %c1 = arith.constant 1 : index
    %c1_20 = arith.constant 1 : index
    %c0_21 = arith.constant 0 : index
    %7 = vector.load %arg5[%c0_19, %c1, %c1_20, %c0_21] : memref<2x18x18x3xf32, #tpu.memory_space<vmem>>, vector<2x16x16x3xf32>
    tpu.vector_store %arg5[%c0_19, %c1, %c1_20, %c0_21], %6 {strides = array<i32>} : memref<2x18x18x3xf32, #tpu.memory_space<vmem>>, vector<2x16x16x3xf32>,
    %c0_22 = arith.constant 0 : index
    %c0_23 = arith.constant 0 : index
    %c0_24 = arith.constant 0 : index
    %c0_25 = arith.constant 0 : index
    %8 = vector.load %arg5[%c0_22, %c0_23, %c0_24, %c0_25] : memref<2x18x18x3xf32, #tpu.memory_space<vmem>>, vector<2x16x16x3xf32>
    %c0_26 = arith.constant 0 : index
    %c0_27 = arith.constant 0 : index
    %c1_28 = arith.constant 1 : index
    %c0_29 = arith.constant 0 : index
    %9 = vector.load %arg5[%c0_26, %c0_27, %c1_28, %c0_29] : memref<2x18x18x3xf32, #tpu.memory_space<vmem>>, vector<2x16x16x3xf32>
    %c0_30 = arith.constant 0 : index
    %c0_31 = arith.constant 0 : index
    %c2 = arith.constant 2 : index
    %c0_32 = arith.constant 0 : index
    %10 = vector.load %arg5[%c0_30, %c0_31, %c2, %c0_32] : memref<2x18x18x3xf32, #tpu.memory_space<vmem>>, vector<2x16x16x3xf32>
    %c0_33 = arith.constant 0 : index
    %c1_34 = arith.constant 1 : index
    %c0_35 = arith.constant 0 : index
    %c0_36 = arith.constant 0 : index
    %11 = vector.load %arg5[%c0_33, %c1_34, %c0_35, %c0_36] : memref<2x18x18x3xf32, #tpu.memory_space<vmem>>, vector<2x16x16x3xf32>
    %c0_37 = arith.constant 0 : index
    %c1_38 = arith.constant 1 : index
    %c1_39 = arith.constant 1 : index
    %c0_40 = arith.constant 0 : index
    %12 = vector.load %arg5[%c0_37, %c1_38, %c1_39, %c0_40] : memref<2x18x18x3xf32, #tpu.memory_space<vmem>>, vector<2x16x16x3xf32>
    %c0_41 = arith.constant 0 : index
    %c1_42 = arith.constant 1 : index
    %c2_43 = arith.constant 2 : index
    %c0_44 = arith.constant 0 : index
    %13 = vector.load %arg5[%c0_41, %c1_42, %c2_43, %c0_44] : memref<2x18x18x3xf32, #tpu.memory_space<vmem>>, vector<2x16x16x3xf32>
    %c0_45 = arith.constant 0 : index
    %c2_46 = arith.constant 2 : index
    %c0_47 = arith.constant 0 : index
    %c0_48 = arith.constant 0 : index
    %14 = vector.load %arg5[%c0_45, %c2_46, %c0_47, %c0_48] : memref<2x18x18x3xf32, #tpu.memory_space<vmem>>, vector<2x16x16x3xf32>
    %c0_49 = arith.constant 0 : index
    %c2_50 = arith.constant 2 : index
    %c1_51 = arith.constant 1 : index
    %c0_52 = arith.constant 0 : index
    %15 = vector.load %arg5[%c0_49, %c2_50, %c1_51, %c0_52] : memref<2x18x18x3xf32, #tpu.memory_space<vmem>>, vector<2x16x16x3xf32>
    %c0_53 = arith.constant 0 : index
    %c2_54 = arith.constant 2 : index
    %c2_55 = arith.constant 2 : index
    %c0_56 = arith.constant 0 : index
    %16 = vector.load %arg5[%c0_53, %c2_54, %c2_55, %c0_56] : memref<2x18x18x3xf32, #tpu.memory_space<vmem>>, vector<2x16x16x3xf32>
    %17 = tpu.concatenate %8, %9, %10, %11, %12, %13, %14, %15, %16 in 3 : vector<2x16x16x3xf32>, vector<2x16x16x3xf32>, vector<2x16x16x3xf32>, vector<2x16x16x3xf32>, vector<2x16x16x3xf32>, vector<2x16x16x3xf32>, vector<2x16x16x3xf32>, vector<2x16x16x3xf32>, vector<2x16x16x3xf32> -> vector<2x16x16x27xf32>
    %18 = vector.shape_cast %17 : vector<2x16x16x27xf32> to vector<512x27xf32>
    %19 = arith.truncf %18 : vector<512x27xf32> to vector<512x27xbf16>
    %c0_57 = arith.constant 0 : index
    %c0_58 = arith.constant 0 : index
    %20 = vector.load %arg2[%c0_57, %c0_58] : memref<27x32xbf16, #tpu.memory_space<vmem>>, vector<27x32xbf16>
    %cst_59 = arith.constant dense<0.000000e+00> : vector<512x32xf32>
    %21 = tpu.matmul %19, %20, %cst_59 {dimension_numbers = #tpu.dot_dimension_numbers<[1], [0], [0], [1], [0, 0, 1, 1], [], []>} : vector<512x27xbf16>, vector<27x32xbf16>, vector<512x32xf32> -> vector<512x32xf32>
    %c0_60 = arith.constant 0 : index
    %c0_61 = arith.constant 0 : index
    %22 = vector.load %arg3[%c0_60, %c0_61] : memref<1x32xf32, #tpu.memory_space<vmem>>, vector<1x32xf32>
    %23 = vector.broadcast %22 : vector<1x32xf32> to vector<512x32xf32>
    %24 = arith.addf %21, %23 : vector<512x32xf32>
    %cst_62 = arith.constant 0.000000e+00 : f32
    %25 = vector.broadcast %cst_62 : f32 to vector<512x32xf32>
    %26 = arith.maximumf %24, %25 : vector<512x32xf32>
    %27 = vector.shape_cast %26 : vector<512x32xf32> to vector<2x8x2x16x32xf32>
    %cst_63 = arith.constant dense<0xFF800000> : vector<2x8x16x32xf32>
    %28 = vector.multi_reduction <maximumf>, %27, %cst_63 [2] : vector<2x8x2x16x32xf32> to vector<2x8x16x32xf32>
    %29 = vector.shape_cast %28 : vector<2x8x16x32xf32> to vector<2x8x8x2x32xf32>
    %cst_64 = arith.constant dense<0xFF800000> : vector<2x8x8x32xf32>
    %30 = vector.multi_reduction <maximumf>, %29, %cst_64 [3] : vector<2x8x8x2x32xf32> to vector<2x8x8x32xf32>
    %c0_65 = arith.constant 0 : index
    %c0_66 = arith.constant 0 : index
    %c0_67 = arith.constant 0 : index
    %c0_68 = arith.constant 0 : index
    %31 = vector.load %arg4[%c0_65, %c0_66, %c0_67, %c0_68] : memref<2x8x8x32xf32, #tpu.memory_space<vmem>>, vector<2x8x8x32xf32>
    tpu.vector_store %arg4[%c0_65, %c0_66, %c0_67, %c0_68], %30 {strides = array<i32>} : memref<2x8x8x32xf32, #tpu.memory_space<vmem>>, vector<2x8x8x32xf32>,
    return
  }
  func.func @transform_0(%arg0: i32) -> (i32, i32, i32, i32) {
    %c0_i32 = arith.constant 0 : i32
    %c0_i32_0 = arith.constant 0 : i32
    %c0_i32_1 = arith.constant 0 : i32
    %c0_i32_2 = arith.constant 0 : i32
    return %arg0, %c0_i32, %c0_i32_0, %c0_i32_1 : i32, i32, i32, i32
  }
  func.func @transform_1(%arg0: i32) -> (i32, i32) {
    %c0_i32 = arith.constant 0 : i32
    %c0_i32_0 = arith.constant 0 : i32
    %c0_i32_1 = arith.constant 0 : i32
    return %c0_i32, %c0_i32_0 : i32, i32
  }
  func.func @transform_2(%arg0: i32) -> (i32, i32) {
    %c0_i32 = arith.constant 0 : i32
    %c0_i32_0 = arith.constant 0 : i32
    %c0_i32_1 = arith.constant 0 : i32
    return %c0_i32, %c0_i32_0 : i32, i32
  }
  func.func @transform_3(%arg0: i32) -> (i32, i32, i32, i32) {
    %c0_i32 = arith.constant 0 : i32
    %c0_i32_0 = arith.constant 0 : i32
    %c0_i32_1 = arith.constant 0 : i32
    %c0_i32_2 = arith.constant 0 : i32
    return %arg0, %c0_i32, %c0_i32_0, %c0_i32_1 : i32, i32, i32, i32
  }
}

module attributes {stable_mosaic.version = 11 : i64} {
  func.func @_conv_relu_pool_kernel(%arg0: i32, %arg1: memref<2x4x4x64xf32, #tpu.memory_space<vmem>>, %arg2: memref<576x128xbf16, #tpu.memory_space<vmem>>, %arg3: memref<1x128xf32, #tpu.memory_space<vmem>>, %arg4: memref<2x2x2x128xf32, #tpu.memory_space<vmem>>, %arg5: memref<2x6x6x64xf32, #tpu.memory_space<vmem>>) attributes {dimension_semantics = [#tpu.dimension_semantics<parallel>], iteration_bounds = array<i64: 1>, scalar_prefetch = 0 : i64, scratch_operands = 1 : i64, tpu.core_type = #tpu.core_type<tc>, window_params = [{transform_indices = @transform_0, window_bounds = array<i64: 2, 4, 4, 64>}, {pipeline_mode = #tpu.pipeline_mode<synchronous>, transform_indices = @transform_1, window_bounds = array<i64: 576, 128>}, {pipeline_mode = #tpu.pipeline_mode<synchronous>, transform_indices = @transform_2, window_bounds = array<i64: 1, 128>}, {transform_indices = @transform_3, window_bounds = array<i64: 2, 2, 2, 128>}]} {
    %cst = arith.constant 0.000000e+00 : f32
    %0 = vector.broadcast %cst : f32 to vector<2x1x6x64xf32>
    %cst_0 = arith.constant 0.000000e+00 : f32
    %1 = vector.broadcast %cst_0 : f32 to vector<2x6x1x64xf32>
    %c0 = arith.constant 0 : index
    %c0_1 = arith.constant 0 : index
    %c0_2 = arith.constant 0 : index
    %c0_3 = arith.constant 0 : index
    %2 = vector.load %arg5[%c0, %c0_1, %c0_2, %c0_3] : memref<2x6x6x64xf32, #tpu.memory_space<vmem>>, vector<2x1x6x64xf32>
    tpu.vector_store %arg5[%c0, %c0_1, %c0_2, %c0_3], %0 {strides = array<i32>} : memref<2x6x6x64xf32, #tpu.memory_space<vmem>>, vector<2x1x6x64xf32>,
    %c0_4 = arith.constant 0 : index
    %c5 = arith.constant 5 : index
    %c0_5 = arith.constant 0 : index
    %c0_6 = arith.constant 0 : index
    %3 = vector.load %arg5[%c0_4, %c5, %c0_5, %c0_6] : memref<2x6x6x64xf32, #tpu.memory_space<vmem>>, vector<2x1x6x64xf32>
    tpu.vector_store %arg5[%c0_4, %c5, %c0_5, %c0_6], %0 {strides = array<i32>} : memref<2x6x6x64xf32, #tpu.memory_space<vmem>>, vector<2x1x6x64xf32>,
    %c0_7 = arith.constant 0 : index
    %c0_8 = arith.constant 0 : index
    %c0_9 = arith.constant 0 : index
    %c0_10 = arith.constant 0 : index
    %4 = vector.load %arg5[%c0_7, %c0_8, %c0_9, %c0_10] : memref<2x6x6x64xf32, #tpu.memory_space<vmem>>, vector<2x6x1x64xf32>
    tpu.vector_store %arg5[%c0_7, %c0_8, %c0_9, %c0_10], %1 {strides = array<i32>} : memref<2x6x6x64xf32, #tpu.memory_space<vmem>>, vector<2x6x1x64xf32>,
    %c0_11 = arith.constant 0 : index
    %c0_12 = arith.constant 0 : index
    %c5_13 = arith.constant 5 : index
    %c0_14 = arith.constant 0 : index
    %5 = vector.load %arg5[%c0_11, %c0_12, %c5_13, %c0_14] : memref<2x6x6x64xf32, #tpu.memory_space<vmem>>, vector<2x6x1x64xf32>
    tpu.vector_store %arg5[%c0_11, %c0_12, %c5_13, %c0_14], %1 {strides = array<i32>} : memref<2x6x6x64xf32, #tpu.memory_space<vmem>>, vector<2x6x1x64xf32>,
    %c0_15 = arith.constant 0 : index
    %c0_16 = arith.constant 0 : index
    %c0_17 = arith.constant 0 : index
    %c0_18 = arith.constant 0 : index
    %6 = vector.load %arg1[%c0_15, %c0_16, %c0_17, %c0_18] : memref<2x4x4x64xf32, #tpu.memory_space<vmem>>, vector<2x4x4x64xf32>
    %c0_19 = arith.constant 0 : index
    %c1 = arith.constant 1 : index
    %c1_20 = arith.constant 1 : index
    %c0_21 = arith.constant 0 : index
    %7 = vector.load %arg5[%c0_19, %c1, %c1_20, %c0_21] : memref<2x6x6x64xf32, #tpu.memory_space<vmem>>, vector<2x4x4x64xf32>
    tpu.vector_store %arg5[%c0_19, %c1, %c1_20, %c0_21], %6 {strides = array<i32>} : memref<2x6x6x64xf32, #tpu.memory_space<vmem>>, vector<2x4x4x64xf32>,
    %c0_22 = arith.constant 0 : index
    %c0_23 = arith.constant 0 : index
    %c0_24 = arith.constant 0 : index
    %c0_25 = arith.constant 0 : index
    %8 = vector.load %arg5[%c0_22, %c0_23, %c0_24, %c0_25] : memref<2x6x6x64xf32, #tpu.memory_space<vmem>>, vector<2x4x4x64xf32>
    %c0_26 = arith.constant 0 : index
    %c0_27 = arith.constant 0 : index
    %c1_28 = arith.constant 1 : index
    %c0_29 = arith.constant 0 : index
    %9 = vector.load %arg5[%c0_26, %c0_27, %c1_28, %c0_29] : memref<2x6x6x64xf32, #tpu.memory_space<vmem>>, vector<2x4x4x64xf32>
    %c0_30 = arith.constant 0 : index
    %c0_31 = arith.constant 0 : index
    %c2 = arith.constant 2 : index
    %c0_32 = arith.constant 0 : index
    %10 = vector.load %arg5[%c0_30, %c0_31, %c2, %c0_32] : memref<2x6x6x64xf32, #tpu.memory_space<vmem>>, vector<2x4x4x64xf32>
    %c0_33 = arith.constant 0 : index
    %c1_34 = arith.constant 1 : index
    %c0_35 = arith.constant 0 : index
    %c0_36 = arith.constant 0 : index
    %11 = vector.load %arg5[%c0_33, %c1_34, %c0_35, %c0_36] : memref<2x6x6x64xf32, #tpu.memory_space<vmem>>, vector<2x4x4x64xf32>
    %c0_37 = arith.constant 0 : index
    %c1_38 = arith.constant 1 : index
    %c1_39 = arith.constant 1 : index
    %c0_40 = arith.constant 0 : index
    %12 = vector.load %arg5[%c0_37, %c1_38, %c1_39, %c0_40] : memref<2x6x6x64xf32, #tpu.memory_space<vmem>>, vector<2x4x4x64xf32>
    %c0_41 = arith.constant 0 : index
    %c1_42 = arith.constant 1 : index
    %c2_43 = arith.constant 2 : index
    %c0_44 = arith.constant 0 : index
    %13 = vector.load %arg5[%c0_41, %c1_42, %c2_43, %c0_44] : memref<2x6x6x64xf32, #tpu.memory_space<vmem>>, vector<2x4x4x64xf32>
    %c0_45 = arith.constant 0 : index
    %c2_46 = arith.constant 2 : index
    %c0_47 = arith.constant 0 : index
    %c0_48 = arith.constant 0 : index
    %14 = vector.load %arg5[%c0_45, %c2_46, %c0_47, %c0_48] : memref<2x6x6x64xf32, #tpu.memory_space<vmem>>, vector<2x4x4x64xf32>
    %c0_49 = arith.constant 0 : index
    %c2_50 = arith.constant 2 : index
    %c1_51 = arith.constant 1 : index
    %c0_52 = arith.constant 0 : index
    %15 = vector.load %arg5[%c0_49, %c2_50, %c1_51, %c0_52] : memref<2x6x6x64xf32, #tpu.memory_space<vmem>>, vector<2x4x4x64xf32>
    %c0_53 = arith.constant 0 : index
    %c2_54 = arith.constant 2 : index
    %c2_55 = arith.constant 2 : index
    %c0_56 = arith.constant 0 : index
    %16 = vector.load %arg5[%c0_53, %c2_54, %c2_55, %c0_56] : memref<2x6x6x64xf32, #tpu.memory_space<vmem>>, vector<2x4x4x64xf32>
    %17 = tpu.concatenate %8, %9, %10, %11, %12, %13, %14, %15, %16 in 3 : vector<2x4x4x64xf32>, vector<2x4x4x64xf32>, vector<2x4x4x64xf32>, vector<2x4x4x64xf32>, vector<2x4x4x64xf32>, vector<2x4x4x64xf32>, vector<2x4x4x64xf32>, vector<2x4x4x64xf32>, vector<2x4x4x64xf32> -> vector<2x4x4x576xf32>
    %18 = vector.shape_cast %17 : vector<2x4x4x576xf32> to vector<32x576xf32>
    %19 = arith.truncf %18 : vector<32x576xf32> to vector<32x576xbf16>
    %c0_57 = arith.constant 0 : index
    %c0_58 = arith.constant 0 : index
    %20 = vector.load %arg2[%c0_57, %c0_58] : memref<576x128xbf16, #tpu.memory_space<vmem>>, vector<576x128xbf16>
    %cst_59 = arith.constant dense<0.000000e+00> : vector<32x128xf32>
    %21 = tpu.matmul %19, %20, %cst_59 {dimension_numbers = #tpu.dot_dimension_numbers<[1], [0], [0], [1], [0, 0, 1, 1], [], []>} : vector<32x576xbf16>, vector<576x128xbf16>, vector<32x128xf32> -> vector<32x128xf32>
    %c0_60 = arith.constant 0 : index
    %c0_61 = arith.constant 0 : index
    %22 = vector.load %arg3[%c0_60, %c0_61] : memref<1x128xf32, #tpu.memory_space<vmem>>, vector<1x128xf32>
    %23 = vector.broadcast %22 : vector<1x128xf32> to vector<32x128xf32>
    %24 = arith.addf %21, %23 : vector<32x128xf32>
    %cst_62 = arith.constant 0.000000e+00 : f32
    %25 = vector.broadcast %cst_62 : f32 to vector<32x128xf32>
    %26 = arith.maximumf %24, %25 : vector<32x128xf32>
    %27 = vector.shape_cast %26 : vector<32x128xf32> to vector<2x2x2x4x128xf32>
    %cst_63 = arith.constant dense<0xFF800000> : vector<2x2x4x128xf32>
    %28 = vector.multi_reduction <maximumf>, %27, %cst_63 [2] : vector<2x2x2x4x128xf32> to vector<2x2x4x128xf32>
    %29 = vector.shape_cast %28 : vector<2x2x4x128xf32> to vector<2x2x2x2x128xf32>
    %cst_64 = arith.constant dense<0xFF800000> : vector<2x2x2x128xf32>
    %30 = vector.multi_reduction <maximumf>, %29, %cst_64 [3] : vector<2x2x2x2x128xf32> to vector<2x2x2x128xf32>
    %c0_65 = arith.constant 0 : index
    %c0_66 = arith.constant 0 : index
    %c0_67 = arith.constant 0 : index
    %c0_68 = arith.constant 0 : index
    %31 = vector.load %arg4[%c0_65, %c0_66, %c0_67, %c0_68] : memref<2x2x2x128xf32, #tpu.memory_space<vmem>>, vector<2x2x2x128xf32>
    tpu.vector_store %arg4[%c0_65, %c0_66, %c0_67, %c0_68], %30 {strides = array<i32>} : memref<2x2x2x128xf32, #tpu.memory_space<vmem>>, vector<2x2x2x128xf32>,
    return
  }
  func.func @transform_0(%arg0: i32) -> (i32, i32, i32, i32) {
    %c0_i32 = arith.constant 0 : i32
    %c0_i32_0 = arith.constant 0 : i32
    %c0_i32_1 = arith.constant 0 : i32
    %c0_i32_2 = arith.constant 0 : i32
    return %arg0, %c0_i32, %c0_i32_0, %c0_i32_1 : i32, i32, i32, i32
  }
  func.func @transform_1(%arg0: i32) -> (i32, i32) {
    %c0_i32 = arith.constant 0 : i32
    %c0_i32_0 = arith.constant 0 : i32
    %c0_i32_1 = arith.constant 0 : i32
    return %c0_i32, %c0_i32_0 : i32, i32
  }
  func.func @transform_2(%arg0: i32) -> (i32, i32) {
    %c0_i32 = arith.constant 0 : i32
    %c0_i32_0 = arith.constant 0 : i32
    %c0_i32_1 = arith.constant 0 : i32
    return %c0_i32, %c0_i32_0 : i32, i32
  }
  func.func @transform_3(%arg0: i32) -> (i32, i32, i32, i32) {
    %c0_i32 = arith.constant 0 : i32
    %c0_i32_0 = arith.constant 0 : i32
    %c0_i32_1 = arith.constant 0 : i32
    %c0_i32_2 = arith.constant 0 : i32
    return %arg0, %c0_i32, %c0_i32_0, %c0_i32_1 : i32, i32, i32, i32
  }
}

module attributes {stable_mosaic.version = 11 : i64} {
  func.func @_mlp_kernel(%arg0: i32, %arg1: memref<8x256xf32, #tpu.memory_space<vmem>>, %arg2: memref<256x256xbf16, #tpu.memory_space<vmem>>, %arg3: memref<1x256xf32, #tpu.memory_space<vmem>>, %arg4: memref<256x128xbf16, #tpu.memory_space<vmem>>, %arg5: memref<1x128xf32, #tpu.memory_space<vmem>>, %arg6: memref<8x128xf32, #tpu.memory_space<vmem>>, %arg7: memref<8x256xf32, #tpu.memory_space<vmem>>) attributes {dimension_semantics = [#tpu.dimension_semantics<arbitrary>], iteration_bounds = array<i64: 2>, scalar_prefetch = 0 : i64, scratch_operands = 1 : i64, tpu.core_type = #tpu.core_type<tc>, window_params = [{transform_indices = @transform_0, window_bounds = array<i64: 8, 256>}, {transform_indices = @transform_1, window_bounds = array<i64: 256, 256>}, {pipeline_mode = #tpu.pipeline_mode<synchronous>, transform_indices = @transform_2, window_bounds = array<i64: 1, 256>}, {pipeline_mode = #tpu.pipeline_mode<synchronous>, transform_indices = @transform_3, window_bounds = array<i64: 256, 128>}, {pipeline_mode = #tpu.pipeline_mode<synchronous>, transform_indices = @transform_4, window_bounds = array<i64: 1, 128>}, {pipeline_mode = #tpu.pipeline_mode<synchronous>, transform_indices = @transform_5, window_bounds = array<i64: 8, 128>}]} {
    %c0_i32 = arith.constant 0 : i32
    %0 = arith.cmpi eq, %arg0, %c0_i32 : i32
    %1 = arith.extui %0 : i1 to i32
    %c0_i32_0 = arith.constant 0 : i32
    %2 = arith.cmpi ne, %1, %c0_i32_0 : i32
    scf.if %2 {
      %cst_9 = arith.constant 0.000000e+00 : f32
      %13 = vector.broadcast %cst_9 : f32 to vector<8x256xf32>
      %c0_10 = arith.constant 0 : index
      %c0_11 = arith.constant 0 : index
      %14 = vector.load %arg7[%c0_10, %c0_11] : memref<8x256xf32, #tpu.memory_space<vmem>>, vector<8x256xf32>
      tpu.vector_store %arg7[%c0_10, %c0_11], %13 {strides = array<i32>} : memref<8x256xf32, #tpu.memory_space<vmem>>, vector<8x256xf32>,
    } else {
    }
    %c0 = arith.constant 0 : index
    %c0_1 = arith.constant 0 : index
    %3 = vector.load %arg7[%c0, %c0_1] : memref<8x256xf32, #tpu.memory_space<vmem>>, vector<8x256xf32>
    %c0_2 = arith.constant 0 : index
    %c0_3 = arith.constant 0 : index
    %4 = vector.load %arg1[%c0_2, %c0_3] : memref<8x256xf32, #tpu.memory_space<vmem>>, vector<8x256xf32>
    %5 = arith.truncf %4 : vector<8x256xf32> to vector<8x256xbf16>
    %c0_4 = arith.constant 0 : index
    %c0_5 = arith.constant 0 : index
    %6 = vector.load %arg2[%c0_4, %c0_5] : memref<256x256xbf16, #tpu.memory_space<vmem>>, vector<256x256xbf16>
    %cst = arith.constant dense<0.000000e+00> : vector<8x256xf32>
    %7 = tpu.matmul %5, %6, %cst {dimension_numbers = #tpu.dot_dimension_numbers<[1], [0], [0], [1], [0, 0, 1, 1], [], []>} : vector<8x256xbf16>, vector<256x256xbf16>, vector<8x256xf32> -> vector<8x256xf32>
    %8 = arith.addf %3, %7 : vector<8x256xf32>
    %c0_6 = arith.constant 0 : index
    %c0_7 = arith.constant 0 : index
    %9 = vector.load %arg7[%c0_6, %c0_7] : memref<8x256xf32, #tpu.memory_space<vmem>>, vector<8x256xf32>
    tpu.vector_store %arg7[%c0_6, %c0_7], %8 {strides = array<i32>} : memref<8x256xf32, #tpu.memory_space<vmem>>, vector<8x256xf32>,
    %c1_i32 = arith.constant 1 : i32
    %10 = arith.cmpi eq, %arg0, %c1_i32 : i32
    %11 = arith.extui %10 : i1 to i32
    %c0_i32_8 = arith.constant 0 : i32
    %12 = arith.cmpi ne, %11, %c0_i32_8 : i32
    scf.if %12 {
      %c0_9 = arith.constant 0 : index
      %c0_10 = arith.constant 0 : index
      %13 = vector.load %arg7[%c0_9, %c0_10] : memref<8x256xf32, #tpu.memory_space<vmem>>, vector<8x256xf32>
      %c0_11 = arith.constant 0 : index
      %c0_12 = arith.constant 0 : index
      %14 = vector.load %arg3[%c0_11, %c0_12] : memref<1x256xf32, #tpu.memory_space<vmem>>, vector<1x256xf32>
      %15 = vector.broadcast %14 : vector<1x256xf32> to vector<8x256xf32>
      %16 = arith.addf %13, %15 : vector<8x256xf32>
      %cst_13 = arith.constant 0.000000e+00 : f32
      %17 = vector.broadcast %cst_13 : f32 to vector<8x256xf32>
      %18 = arith.maximumf %16, %17 : vector<8x256xf32>
      %19 = arith.truncf %18 : vector<8x256xf32> to vector<8x256xbf16>
      %c0_14 = arith.constant 0 : index
      %c0_15 = arith.constant 0 : index
      %20 = vector.load %arg4[%c0_14, %c0_15] : memref<256x128xbf16, #tpu.memory_space<vmem>>, vector<256x128xbf16>
      %cst_16 = arith.constant dense<0.000000e+00> : vector<8x128xf32>
      %21 = tpu.matmul %19, %20, %cst_16 {dimension_numbers = #tpu.dot_dimension_numbers<[1], [0], [0], [1], [0, 0, 1, 1], [], []>} : vector<8x256xbf16>, vector<256x128xbf16>, vector<8x128xf32> -> vector<8x128xf32>
      %c0_17 = arith.constant 0 : index
      %c0_18 = arith.constant 0 : index
      %22 = vector.load %arg5[%c0_17, %c0_18] : memref<1x128xf32, #tpu.memory_space<vmem>>, vector<1x128xf32>
      %23 = vector.broadcast %22 : vector<1x128xf32> to vector<8x128xf32>
      %24 = arith.addf %21, %23 : vector<8x128xf32>
      %c0_19 = arith.constant 0 : index
      %c0_20 = arith.constant 0 : index
      %25 = vector.load %arg6[%c0_19, %c0_20] : memref<8x128xf32, #tpu.memory_space<vmem>>, vector<8x128xf32>
      tpu.vector_store %arg6[%c0_19, %c0_20], %24 {strides = array<i32>} : memref<8x128xf32, #tpu.memory_space<vmem>>, vector<8x128xf32>,
    } else {
    }
    return
  }
  func.func @transform_0(%arg0: i32) -> (i32, i32) {
    %c0_i32 = arith.constant 0 : i32
    %c0_i32_0 = arith.constant 0 : i32
    return %c0_i32, %arg0 : i32, i32
  }
  func.func @transform_1(%arg0: i32) -> (i32, i32) {
    %c0_i32 = arith.constant 0 : i32
    %c0_i32_0 = arith.constant 0 : i32
    return %arg0, %c0_i32 : i32, i32
  }
  func.func @transform_2(%arg0: i32) -> (i32, i32) {
    %c0_i32 = arith.constant 0 : i32
    %c0_i32_0 = arith.constant 0 : i32
    %c0_i32_1 = arith.constant 0 : i32
    return %c0_i32, %c0_i32_0 : i32, i32
  }
  func.func @transform_3(%arg0: i32) -> (i32, i32) {
    %c0_i32 = arith.constant 0 : i32
    %c0_i32_0 = arith.constant 0 : i32
    %c0_i32_1 = arith.constant 0 : i32
    return %c0_i32, %c0_i32_0 : i32, i32
  }
  func.func @transform_4(%arg0: i32) -> (i32, i32) {
    %c0_i32 = arith.constant 0 : i32
    %c0_i32_0 = arith.constant 0 : i32
    %c0_i32_1 = arith.constant 0 : i32
    return %c0_i32, %c0_i32_0 : i32, i32
  }
  func.func @transform_5(%arg0: i32) -> (i32, i32) {
    %c0_i32 = arith.constant 0 : i32
    %c0_i32_0 = arith.constant 0 : i32
    %c0_i32_1 = arith.constant 0 : i32
    return %c0_i32, %c0_i32_0 : i32, i32
  }
}

</mosaic_0001>

<bundles_post_ra>
// kernel: simple_cnn_forward.5
= control target key start
LH: loop header
LB: loop body
LE: loop exit
PB: predicated region body
PF: predicated region fallthrough
CT: control target
= control target key end

     0   :  { %vm15_vm0 = vcmask 261120   ;;  %vm26_vm1 = vcmask 253952   ;;  %vm17_vm2 = vcmask 254976   ;;  %v2041_v0 = vmov 0.0   ;;  %s2043_s19 = smov 32   ;;  %s2044_s20 = smov 96   ;;  %s2798_s0 = inlined_call_operand.vmem [shape: f32[2,8,8,32], index: 0, kind: input, shape index: {}]   ;;  %s2799_s1 = inlined_call_operand.vmem [shape: bf16[288,64], index: 1, kind: input, shape index: {}]   ;;  %s2800_s2 = inlined_call_operand.vmem [shape: f32[1,64], index: 2, kind: input, shape index: {}]   ;;  %s2801_s3 = inlined_call_operand.vmem [shape: f32[2,4,4,64], index: 3, kind: output, shape index: {}]  }
   0x1   :  { %29 = vst.msk [vmem:[#allocation2 + $0x20] sm:$0x1] %vm26_vm1, %v2041_v0  ;;  %30 = vst.msk [vmem:[#allocation2 + $0x30] sm:$0x1] %vm26_vm1, %v2041_v0  ;;  %v68_v1 = vld [vmem:[%s2798_s0 + $0x8] sm:$0xff]  ;;  %v69_v2 = vld [vmem:[%s2798_s0 + $0x10] sm:$0xff] }
   0x2   :  { %16 = vst.msk [vmem:[#allocation2] sm:$0xff] %vm15_vm0, %v2041_v0  ;;  %19 = vst.msk [vmem:[#allocation2 + $0xa0] sm:$0xff] %vm15_vm0, %v2041_v0  ;;  %v67_v3 = vld [vmem:[%s2798_s0] sm:$0xff]  ;;  %v78_v4 = vld [vmem:[%s2798_s0 + $0x58] sm:$0xff]  ;;  %vm645_vm3 = vcmask 523264   ;;  %vm662_vm4 = vcmask 785408  }
   0x3   :  { %22 = vst.msk [vmem:[#allocation2 + $0x90] sm:$0xff] %vm15_vm0, %v2041_v0  ;;  %24 = vst.msk [vmem:[#allocation2 + $0x130] sm:$0xff] %vm15_vm0, %v2041_v0  ;;  %v79_v5 = vld [vmem:[%s2798_s0 + $0x60] sm:$0xff]  ;;  %v80_v6 = vld [vmem:[%s2798_s0 + $0x68] sm:$0xff]  ;;  %vm1336_vm5 = vcmask 517120   ;;  %vm1593_vm6 = vcmask 1041409  }
   0x4   :  { %28 = vst.msk [vmem:[#allocation2 + $0x10] sm:$0x1] %vm26_vm1, %v2041_v0  ;;  %31 = vst.msk [vmem:[#allocation2 + $0x40] sm:$0x1] %vm26_vm1, %v2041_v0  ;;  %v81_v7 = vld [vmem:[%s2798_s0 + $0x70] sm:$0xff]  ;;  %v70_v8 = vld [vmem:[%s2798_s0 + $0x18] sm:$0xff] }
   0x5   :  { %32 = vst.msk [vmem:[#allocation2 + $0x50] sm:$0x1] %vm26_vm1, %v2041_v0  ;;  %33 = vst.msk [vmem:[#allocation2 + $0x60] sm:$0x1] %vm26_vm1, %v2041_v0  ;;  %v71_v9 = vld [vmem:[%s2798_s0 + $0x20] sm:$0xff]  ;;  %v82_v10 = vld [vmem:[%s2798_s0 + $0x78] sm:$0xff] }
   0x6   :  { %34 = vst.msk [vmem:[#allocation2 + $0x70] sm:$0x1] %vm26_vm1, %v2041_v0  ;;  %35 = vst.msk [vmem:[#allocation2 + $0x80] sm:$0x1] %vm26_vm1, %v2041_v0  ;;  %v72_v11 = vld [vmem:[%s2798_s0 + $0x28] sm:$0xff]  ;;  %v73_v12 = vld [vmem:[%s2798_s0 + $0x30] sm:$0xff] }
   0x7   :  { %38 = vst.msk [vmem:[#allocation2 + $0xb0] sm:$0x1] %vm26_vm1, %v2041_v0  ;;  %39 = vst.msk [vmem:[#allocation2 + $0xc0] sm:$0x1] %vm26_vm1, %v2041_v0  ;;  %v74_v13 = vld [vmem:[%s2798_s0 + $0x38] sm:$0xff]  ;;  %v75_v14 = vld [vmem:[%s2798_s0 + $0x40] sm:$0xff] }
   0x8   :  { %40 = vst.msk [vmem:[#allocation2 + $0xd0] sm:$0x1] %vm26_vm1, %v2041_v0  ;;  %41 = vst.msk [vmem:[#allocation2 + $0xe0] sm:$0x1] %vm26_vm1, %v2041_v0  ;;  %v76_v15 = vld [vmem:[%s2798_s0 + $0x48] sm:$0xff]  ;;  %v77_v16 = vld [vmem:[%s2798_s0 + $0x50] sm:$0xff] }
   0x9   :  { %42 = vst.msk [vmem:[#allocation2 + $0xf0] sm:$0x1] %vm26_vm1, %v2041_v0  ;;  %43 = vst.msk [vmem:[#allocation2 + $0x100] sm:$0x1] %vm26_vm1, %v2041_v0  ;;  %v2023_v17 = vld [vmem:[%s2799_s1 + $0x40] sm:$0xff]   ;;  %s2042_s0 = smov 64  }
   0xa   :  { %44 = vst.msk [vmem:[#allocation2 + $0x110] sm:$0x1] %vm26_vm1, %v2041_v0  ;;  %45 = vst.msk [vmem:[#allocation2 + $0x120] sm:$0x1] %vm26_vm1, %v2041_v0  ;;  %1668 = vmatprep.subr.bf16.mxu0 %v2023_v17  ;;  %1762 = vmatprep.subr.bf16.mxu1 %v2023_v17  ;;  %v2024_v48 = vld [vmem:[%s2799_s1] sm:$0xff]   ;;  %v2025_v49 = vld [vmem:[%s2799_s1 + $0x48] sm:$0xff]  }
   0xb   :  { %48 = vst.msk [vmem:[#allocation2 + $0x19] sm:$0x1] %vm26_vm1, %v2041_v0  ;;  %49 = vst.msk [vmem:[#allocation2 + $0x29] sm:$0x1] %vm26_vm1, %v2041_v0  ;;  %1669 = vmatpush3.bf16.msra.mxu0 %v2024_v48  ;;  %v2026_v52 = vld [vmem:[%s2799_s1 + $0x8] sm:$0xff]   ;;  %v2027_v54 = vld [vmem:[%s2799_s1 + $0x50] sm:$0xff]   ;;  %1770 = vmatpush3.bf16.msra.mxu1 %v2024_v48 }
   0xc   :  { %50 = vst.msk [vmem:[#allocation2 + $0x39] sm:$0x1] %vm26_vm1, %v2041_v0  ;;  %51 = vst.msk [vmem:[#allocation2 + $0x49] sm:$0x1] %vm26_vm1, %v2041_v0  ;;  %1670 = vmatprep.subr.bf16.mxu0 %v2025_v49  ;;  %1763 = vmatprep.subr.bf16.mxu1 %v2025_v49  ;;  %v2028_v57 = vld [vmem:[%s2799_s1 + $0x10] sm:$0xff]   ;;  %v2029_v59 = vld [vmem:[%s2799_s1 + $0x58] sm:$0xff]  }
   0xd   :  { %52 = vst.msk [vmem:[#allocation2 + $0x59] sm:$0x1] %vm26_vm1, %v2041_v0  ;;  %53 = vst.msk [vmem:[#allocation2 + $0x69] sm:$0x1] %vm26_vm1, %v2041_v0  ;;  %v2030_v63 = vld [vmem:[%s2799_s1 + $0x18] sm:$0xff]   ;;  %vm1595_vm7 = vcmask 1042434  }
   0xe   :  { %54 = vst.msk [vmem:[#allocation2 + $0x79] sm:$0x1] %vm26_vm1, %v2041_v0  ;;  %55 = vst.msk [vmem:[#allocation2 + $0x89] sm:$0x1] %vm26_vm1, %v2041_v0  ;;  %v2037_v17 = vld [vmem:[%s2799_s1 + $0x78] sm:$0xff]   ;;  %vm1597_vm8 = vcmask 1043459  }
   0xf   :  { %58 = vst.msk [vmem:[#allocation2 + $0xb9] sm:$0x1] %vm26_vm1, %v2041_v0  ;;  %59 = vst.msk [vmem:[#allocation2 + $0xc9] sm:$0x1] %vm26_vm1, %v2041_v0  ;;  %1671 = vmatpush3.bf16.msra.mxu0 %v2026_v52  ;;  %1771 = vmatpush3.bf16.msra.mxu1 %v2026_v52  ;;  %vm1628_vm9 = vcmask 519168  }
  0x10   :  { %60 = vst.msk [vmem:[#allocation2 + $0xd9] sm:$0x1] %vm26_vm1, %v2041_v0  ;;  %61 = vst.msk [vmem:[#allocation2 + $0xe9] sm:$0x1] %vm26_vm1, %v2041_v0  ;;  %1672 = vmatprep.subr.bf16.mxu0 %v2027_v54  ;;  %1764 = vmatprep.subr.bf16.mxu1 %v2027_v54 }
  0x11   :  { %62 = vst.msk [vmem:[#allocation2 + $0xf9] sm:$0x1] %vm26_vm1, %v2041_v0  ;;  %63 = vst.msk [vmem:[#allocation2 + $0x109] sm:$0x1] %vm26_vm1, %v2041_v0 }
  0x12   :  { %64 = vst.msk [vmem:[#allocation2 + $0x119] sm:$0x1] %vm26_vm1, %v2041_v0  ;;  %65 = vst.msk [vmem:[#allocation2 + $0x129] sm:$0x1] %vm26_vm1, %v2041_v0 }
  0x13   :  { %18 = vst.msk [vmem:[#allocation2 + $0x8] sm:$0x3] %vm17_vm2, %v2041_v0  ;;  %20 = vst.msk [vmem:[#allocation2 + $0xa8] sm:$0x3] %vm17_vm2, %v2041_v0  ;;  %1673 = vmatpush3.bf16.msra.mxu0 %v2028_v57  ;;  %1772 = vmatpush3.bf16.msra.mxu1 %v2028_v57 }
  0x14   :  { %23 = vst.msk [vmem:[#allocation2 + $0x98] sm:$0x3] %vm17_vm2, %v2041_v0  ;;  %25 = vst.msk [vmem:[#allocation2 + $0x138] sm:$0x3] %vm17_vm2, %v2041_v0  ;;  %1674 = vmatprep.subr.bf16.mxu0 %v2029_v59  ;;  %1765 = vmatprep.subr.bf16.mxu1 %v2029_v59 }
  0x15   :  { %85 = vst.msk [vmem:[#allocation2 + $0x21] sm:$0xff] %vm15_vm0, %v68_v1  ;;  %86 = vst.msk [vmem:[#allocation2 + $0x31] sm:$0xff] %vm15_vm0, %v69_v2  ;;  %v2031_v1 = vld [vmem:[%s2799_s1 + $0x60] sm:$0xff]  }
  0x16   :  { %84 = vst.msk [vmem:[#allocation2 + $0x11] sm:$0xff] %vm15_vm0, %v67_v3  ;;  %95 = vst.msk [vmem:[#allocation2 + $0xe1] sm:$0xff] %vm15_vm0, %v78_v4 }
  0x17   :  { %27 = vst.msk [vmem:[#allocation2] sm:$0x1] %vm26_vm1, %v2041_v0  ;;  %36 = vst.msk [vmem:[#allocation2 + $0x90] sm:$0x1] %vm26_vm1, %v2041_v0  ;;  %1675 = vmatpush3.bf16.msra.mxu0 %v2030_v63  ;;  %1773 = vmatpush3.bf16.msra.mxu1 %v2030_v63 }
  0x18   :  { %37 = vst.msk [vmem:[#allocation2 + $0xa0] sm:$0x1] %vm26_vm1, %v2041_v0  ;;  %46 = vst.msk [vmem:[#allocation2 + $0x130] sm:$0x1] %vm26_vm1, %v2041_v0  ;;  %1676 = vmatprep.subr.bf16.mxu0 %v2031_v1  ;;  %1766 = vmatprep.subr.bf16.mxu1 %v2031_v1 }
  0x19   :  { %47 = vst.msk [vmem:[#allocation2 + $0x9] sm:$0x1] %vm26_vm1, %v2041_v0  ;;  %56 = vst.msk [vmem:[#allocation2 + $0x99] sm:$0x1] %vm26_vm1, %v2041_v0 }
  0x1a   :  { %57 = vst.msk [vmem:[#allocation2 + $0xa9] sm:$0x1] %vm26_vm1, %v2041_v0  ;;  %66 = vst.msk [vmem:[#allocation2 + $0x139] sm:$0x1] %vm26_vm1, %v2041_v0  ;;  %v116_v18 = vld [vmem:[#allocation2 + $0x1] sm:$0xff] }
  0x1b   :  { %96 = vst.msk [vmem:[#allocation2 + $0xf1] sm:$0xff] %vm15_vm0, %v79_v5  ;;  %97 = vst.msk [vmem:[#allocation2 + $0x101] sm:$0xff] %vm15_vm0, %v80_v6  ;;  %v2032_v5 = vld [vmem:[%s2799_s1 + $0x20] sm:$0xff]  }
  0x1c   :  { %98 = vst.msk [vmem:[#allocation2 + $0x111] sm:$0xff] %vm15_vm0, %v81_v7  ;;  %87 = vst.msk [vmem:[#allocation2 + $0x41] sm:$0xff] %vm15_vm0, %v70_v8  ;;  %v2181_v19 = vld [vmem:[#allocation2 + $0x20] sm:$0xff]  ;;  %v2183_v20 = vld [vmem:[#allocation2 + $0x30] sm:$0xff]  ;;  %1677 = vmatpush3.bf16.msra.mxu0 %v2032_v5  ;;  %1774 = vmatpush3.bf16.msra.mxu1 %v2032_v5 }
  0x1d   :  { %88 = vst.msk [vmem:[#allocation2 + $0x51] sm:$0xff] %vm15_vm0, %v71_v9  ;;  %99 = vst.msk [vmem:[#allocation2 + $0x121] sm:$0xff] %vm15_vm0, %v82_v10  ;;  %v180_v21 = vld [vmem:[#allocation2 + $0x12] sm:$0xff]  ;;  %v1793_v22 = vpack.i.bf16 %v2183_v20, %v2181_v19  ;;  %v2187_v23 = vld [vmem:[#allocation2 + $0x22] sm:$0xff] }
  0x1e   :  { %89 = vst.msk [vmem:[#allocation2 + $0x61] sm:$0xff] %vm15_vm0, %v72_v11  ;;  %90 = vst.msk [vmem:[#allocation2 + $0x71] sm:$0xff] %vm15_vm0, %v73_v12  ;;  %v2189_v25 = vld [vmem:[#allocation2 + $0x11] sm:$0xff]  ;;  %v1783_v26 = vpack.i.bf16 %v2187_v23, %v180_v21  ;;  %v2197_v30 = vld [vmem:[#allocation2 + $0x21] sm:$0xff] }
  0x1f   :  { %91 = vst.msk [vmem:[#allocation2 + $0x81] sm:$0xff] %vm15_vm0, %v74_v13  ;;  %92 = vst.msk [vmem:[#allocation2 + $0xb1] sm:$0xff] %vm15_vm0, %v75_v14  ;;  %1794 = vrot.lane.b32.xlu1 %v1793_v22, %s2042_s0  ;;  %v1788_v28 = vpack.i.bf16 %v2189_v25, %v116_v18  ;;  %v2195_v29 = vld [vmem:[#allocation2 + $0x10] sm:$0xff]  ;;  %v128_v34 = vld [vmem:[#allocation2 + $0xe1] sm:$0xff] }
  0x20   :  { %93 = vst.msk [vmem:[#allocation2 + $0xc1] sm:$0xff] %vm15_vm0, %v76_v15  ;;  %94 = vst.msk [vmem:[#allocation2 + $0xd1] sm:$0xff] %vm15_vm0, %v77_v16  ;;  %v132_v24 = vld [vmem:[#allocation2 + $0x2] sm:$0xff]  ;;  %1784 = vrot.lane.b32.xlu0 %v1783_v26, %s2043_s19  ;;  %v2199_v31 = vld [vmem:[#allocation2 + $0x31] sm:$0xff]  ;;  %v1808_v32 = vpack.i.bf16 %v2181_v19, %v2195_v29 }
  0x21   :  { %v1798_v27 = vpack.i.bf16 %v180_v21, %v132_v24  ;;  %v1803_v33 = vpack.i.bf16 %v2199_v31, %v2197_v30  ;;  %v2217_v40 = vld [vmem:[#allocation2 + $0xe2] sm:$0xff]  ;;  %v2244_v51 = vld [vmem:[#allocation2 + $0x32] sm:$0xff] }
  0x22   :  { %v2207_v35 = vld [vmem:[#allocation2 + $0xf1] sm:$0xff]  ;;  %v2209_v37 = vld [vmem:[#allocation2 + $0x102] sm:$0xff]  ;;  %v1858_v61 = vpack.i.bf16 %v2244_v51, %v2187_v23 }
  0x23   :  { %1799 = vrot.lane.b32.xlu1 %v1798_v27, %s2042_s0  ;;  %v192_v36 = vld [vmem:[#allocation2 + $0xf2] sm:$0xff]  ;;  %v2213_v38 = vpack.i.bf16 %v2207_v35, %v128_v34  ;;  %v2219_v41 = vld [vmem:[#allocation2 + $0x100] sm:$0xff]  ;;  %v2033_v7 = vld [vmem:[%s2799_s1 + $0x68] sm:$0xff]  }
  0x24   :  { %1789 = vrot.lane.b32.xlu0 %v1788_v28, %s2043_s19  ;;  %v1813_v39 = vpack.i.bf16 %v2209_v37, %v192_v36  ;;  %v2221_v42 = vld [vmem:[#allocation2 + $0x110] sm:$0xff]  ;;  %v1828_v43 = vpack.i.bf16 %v192_v36, %v2217_v40  ;;  %v2231_v46 = vld [vmem:[#allocation2 + $0x101] sm:$0xff]  ;;  %1678 = vmatprep.subr.bf16.mxu0 %v2033_v7  ;;  %v2038_v24 = vld [vmem:[%s2799_s1 + $0x38] sm:$0xff]  }
  0x25   :  { %v1823_v44 = vpack.i.bf16 %v2221_v42, %v2219_v41  ;;  %v2229_v45 = vld [vmem:[#allocation2 + $0xf0] sm:$0xff]  ;;  %v2255_v55 = vld [vmem:[#allocation2 + $0x42] sm:$0xff]  ;;  %1767 = vmatprep.subr.bf16.mxu1 %v2033_v7 }
  0x26   :  { %v2233_v47 = vld [vmem:[#allocation2 + $0x111] sm:$0xff]  ;;  %v1838_v50 = vpack.i.bf16 %v2219_v41, %v2229_v45  ;;  %v2258_v56 = vld [vmem:[#allocation2 + $0x40] sm:$0xff]  ;;  %v1843_v58 = vpack.i.bf16 %v2255_v55, %v2244_v51  ;;  %v2034_v9 = vld [vmem:[%s2799_s1 + $0x28] sm:$0xff]  }
  0x27   :  { %1809 = vrot.lane.b32.xlu1 %v1808_v32, %s2044_s20  ;;  %v1833_v53 = vpack.i.bf16 %v2233_v47, %v2231_v46  ;;  %v2269_v60 = vld [vmem:[#allocation2 + $0x50] sm:$0xff]  ;;  %v2274_v62 = vld [vmem:[#allocation2 + $0x41] sm:$0xff]  ;;  %v1868_v3 = vpack.i.bf16 %v2258_v56, %v2183_v20  ;;  %1679 = vmatpush3.bf16.msra.mxu0 %v2034_v9 }
  0x28   :  { %1804 = vrot.lane.b32.xlu0 %v1803_v33, %s2044_s20  ;;  %v1853_v0 = vpack.i.bf16 %v2269_v60, %v2258_v56  ;;  %v2285_v2 = vld [vmem:[#allocation2 + $0x51] sm:$0xff]  ;;  %v2301_v8 = vld [vmem:[#allocation2 + $0x122] sm:$0xff]  ;;  %1775 = vmatpush3.bf16.msra.mxu1 %v2034_v9 }
  0x29   :  { %v2290_v4 = vld [vmem:[#allocation2 + $0x112] sm:$0xff]  ;;  %v1863_v6 = vpack.i.bf16 %v2285_v2, %v2274_v62  ;;  %v211_v12 = vld [vmem:[#allocation2 + $0x120] sm:$0xff] }
  0x2a   :  { %v1873_v10 = vpack.i.bf16 %v2301_v8, %v2290_v4  ;;  %v2035_v11 = vld [vmem:[%s2799_s1 + $0x70] sm:$0xff]   ;;  %v1888_v14 = vpack.i.bf16 %v2290_v4, %v2209_v37  ;;  %v2323_v18 = vld [vmem:[#allocation2 + $0x121] sm:$0xff]  ;;  %v1898_v22 = vpack.i.bf16 %v211_v12, %v2221_v42 }
  0x2b   :  { %1819 = vrot.lane.b32.xlu1 %v2213_v38, %s2043_s19  ;;  %v212_v13 = vld [vmem:[#allocation2 + $0x130] sm:$0xff]  ;;  %1680 = vmatprep.subr.bf16.mxu0 %v2035_v11  ;;  %v2334_v28 = vld [vmem:[#allocation2 + $0x62] sm:$0xff] }
  0x2c   :  { %1814 = vrot.lane.b32.xlu0 %v1813_v39, %s2043_s19  ;;  %v2036_v15 = vld [vmem:[%s2799_s1 + $0x30] sm:$0xff]   ;;  %v1883_v16 = vpack.i.bf16 %v212_v13, %v211_v12  ;;  %1768 = vmatprep.subr.bf16.mxu1 %v2035_v11  ;;  %v2339_v32 = vld [vmem:[%s2799_s1 + $0x80] sm:$0xff]  }
  0x2d   :  { %v228_v21 = vld [vmem:[#allocation2 + $0x131] sm:$0xff]  ;;  %1681 = vmatpush3.bf16.msra.mxu0 %v2036_v15  ;;  %1776 = vmatpush3.bf16.msra.mxu1 %v2036_v15  ;;  %v2349_v37 = vld [vmem:[#allocation2 + $0x60] sm:$0xff] }
  0x2e   :  { %v1893_v26 = vpack.i.bf16 %v228_v21, %v2323_v18  ;;  %1682 = vmatprep.subr.bf16.mxu0 %v2037_v17  ;;  %v2332_v27 = vld [vmem:[#allocation2 + $0x52] sm:$0xff]  ;;  %1769 = vmatprep.subr.bf16.mxu1 %v2037_v17  ;;  %v2360_v48 = vld [vmem:[#allocation2 + $0x61] sm:$0xff] }
  0x2f   :  { %1829 = vrot.lane.b32.xlu1 %v1828_v43, %s2042_s0  ;;  %v732_v34 = vpack.c.bf16 %v2332_v27, %v2255_v55  ;;  %v1903_v36 = vpack.i.bf16 %v2334_v28, %v2332_v27  ;;  %v2351_v39 = vld [vmem:[#allocation2 + $0x70] sm:$0xff]  ;;  %v1918_v43 = vpack.i.bf16 %v2332_v27, %v2255_v55  ;;  %v2374_v57 = vld [vmem:[#allocation2 + $0x82] sm:$0xff] }
  0x30   :  { %1824 = vrot.lane.b32.xlu0 %v1823_v44, %s2042_s0  ;;  %v1913_v44 = vpack.i.bf16 %v2351_v39, %v2349_v37  ;;  %v2362_v49 = vld [vmem:[#allocation2 + $0x71] sm:$0xff]  ;;  %v203_v59 = vld [vmem:[#allocation2 + $0x80] sm:$0xff] }
  0x31   :  { %1683 = vmatpush3.bf16.msra.mxu0 %v2038_v24  ;;  %1777 = vmatpush3.bf16.msra.mxu1 %v2038_v24  ;;  %v1923_v54 = vpack.i.bf16 %v2362_v49, %v2360_v48  ;;  %v2380_v63 = vld [vmem:[#allocation2 + $0xc2] sm:$0xff]  ;;  %v220_v7 = vld [vmem:[#allocation2 + $0x91] sm:$0xff]  ;;  %v1958_v9 = vpack.i.bf16 %v203_v59, %v2351_v39 }
  0x32   :  { %1742 = vmatprep.subr.bf16.mxu1 %v2339_v32  ;;  %v124_v11 = vld [vmem:[#allocation2 + $0xa1] sm:$0xff]  ;;  %v2396_v12 = vld [vmem:[#allocation2 + $0xb1] sm:$0xff] }
  0x33   :  { %1839 = vrot.lane.b32.xlu1 %v1838_v50, %s2044_s20  ;;  %v2364_v50 = vld [vmem:[#allocation2 + $0x72] sm:$0xff]  ;;  %v2402_v17 = vld [vmem:[#allocation2 + $0xc0] sm:$0xff] }
  0x34   :  { %1834 = vrot.lane.b32.xlu0 %v1833_v53, %s2044_s20  ;;  %v188_v13 = vld [vmem:[#allocation2 + $0xb2] sm:$0xff] }
  0x35   :  { %v1963_v15 = vpack.i.bf16 %v2380_v63, %v188_v13  ;;  %v2404_v21 = vld [vmem:[#allocation2 + $0xd0] sm:$0xff] }
  0x36   :  { %v1973_v24 = vpack.i.bf16 %v2404_v21, %v2402_v17 }
  0x37   :  { %1849 = vrot.lane.b32.xlu1 %v1803_v33, %s2043_s19  ;;  %v729_v33 = vpack.c.bf16 %v2244_v51, %v2187_v23 }
  0x38   :  { %1844 = vrot.lane.b32.xlu0 %v1843_v58, %s2043_s19  ;;  %v1933_v58 = vpack.i.bf16 %v2374_v57, %v2364_v50 }
  0x3b   :  { %1859 = vrot.lane.b32.xlu1 %v1858_v61, %s2042_s0  ;;  %v204_v61 = vld [vmem:[#allocation2 + $0x90] sm:$0xff] }
  0x3c   :  { %1854 = vrot.lane.b32.xlu0 %v1853_v0, %s2042_s0  ;;  %v2382_v0 = vld [vmem:[#allocation2 + $0xd2] sm:$0xff]  ;;  %v1943_v5 = vpack.i.bf16 %v204_v61, %v203_v59 }
  0x3d   :  { %v2008_v59 = vpack.i.bf16 %v2382_v0, %v2380_v63 }
  0x3f   :  { %1869 = vrot.lane.b32.xlu1 %v1868_v3, %s2044_s20  ;;  %v1948_v3 = vpack.i.bf16 %v2364_v50, %v2334_v28 }
  0x40   :  { %1864 = vrot.lane.b32.xlu0 %v1863_v6, %s2044_s20 }
  0x43   :  { %1879 = vrot.lane.b32.xlu1 %v1833_v53, %s2043_s19  ;;  %v1928_v53 = vpack.i.bf16 %v2349_v37, %v2269_v60 }
  0x44   :  { %1874 = vrot.lane.b32.xlu0 %v1873_v10, %s2043_s19 }
  0x47   :  { %1889 = vrot.lane.b32.xlu1 %v1888_v14, %s2042_s0  ;;  %v1968_v14 = vpack.i.bf16 %v2396_v12, %v124_v11  ;;  %v100_v11 = vld [vmem:[#allocation2] sm:$0xff] }
  0x48   :  { %1884 = vrot.lane.b32.xlu0 %v1883_v16, %s2042_s0  ;;  %v140_v16 = vld [vmem:[#allocation2 + $0xa2] sm:$0xff] }
  0x4b   :  { %1899 = vrot.lane.b32.xlu1 %v1898_v22, %s2044_s20  ;;  %v1978_v22 = vpack.i.bf16 %v188_v13, %v140_v16 }
  0x4c   :  { %1894 = vrot.lane.b32.xlu0 %v1893_v26, %s2044_s20  ;;  %v2410_v26 = vld [vmem:[#allocation2 + $0xb0] sm:$0xff] }
  0x4f   :  { %1909 = vrot.lane.b32.xlu1 %v1863_v6, %s2043_s19  ;;  %v2390_v6 = vld [vmem:[#allocation2 + $0x81] sm:$0xff] }
  0x50   :  { %1904 = vrot.lane.b32.xlu0 %v1903_v36, %s2043_s19  ;;  %v1953_v10 = vpack.i.bf16 %v220_v7, %v2390_v6  ;;  %v2412_v36 = vld [vmem:[#allocation2 + $0xc1] sm:$0xff] }
  0x53   :  { %1919 = vrot.lane.b32.xlu1 %v1918_v43, %s2042_s0  ;;  %v2414_v43 = vld [vmem:[#allocation2 + $0xd1] sm:$0xff] }
  0x54   :  { %1914 = vrot.lane.b32.xlu0 %v1913_v44, %s2042_s0  ;;  %v1988_v44 = vpack.i.bf16 %v2402_v17, %v2410_v26 }
  0x57   :  { %1929 = vrot.lane.b32.xlu1 %v1928_v53, %s2044_s20  ;;  %v1983_v53 = vpack.i.bf16 %v2414_v43, %v2412_v36 }
  0x58   :  { %1924 = vrot.lane.b32.xlu0 %v1923_v54, %s2044_s20 }
  0x5b   :  { %1939 = vrot.lane.b32.xlu1 %v1923_v54, %s2043_s19  ;;  %v1993_v54 = vpack.i.bf16 %v2217_v40, %v2382_v0 }
  0x5c   :  { %1934 = vrot.lane.b32.xlu0 %v1933_v58, %s2043_s19  ;;  %v207_v58 = vld [vmem:[#allocation2 + $0xe0] sm:$0xff] }
  0x5d   :  { %v2003_v61 = vpack.i.bf16 %v2229_v45, %v207_v58 }
  0x5f   :  { %1949 = vrot.lane.b32.xlu1 %v1948_v3, %s2042_s0  ;;  %v2018_v3 = vpack.i.bf16 %v207_v58, %v2404_v21 }
  0x60   :  { %1944 = vrot.lane.b32.xlu0 %v1943_v5, %s2042_s0 }
  0x63   :  { %1959 = vrot.lane.b32.xlu1 %v1958_v9, %s2044_s20 }
  0x64   :  { %1954 = vrot.lane.b32.xlu0 %v1953_v10, %s2044_s20 }
  0x67   :  { %1969 = vrot.lane.b32.xlu1 %v1968_v14, %s2043_s19 }
  0x68   :  { %1964 = vrot.lane.b32.xlu0 %v1963_v15, %s2043_s19 }
  0x6b   :  { %1979 = vrot.lane.b32.xlu1 %v1978_v22, %s2042_s0 }
  0x6c   :  { %1974 = vrot.lane.b32.xlu0 %v1973_v24, %s2042_s0 }
  0x6f   :  { %1989 = vrot.lane.b32.xlu1 %v1988_v44, %s2044_s20 }
  0x70   :  { %1984 = vrot.lane.b32.xlu0 %v1983_v53, %s2044_s20 }
  0x73   :  { %1999 = vrot.lane.b32.xlu1 %v1983_v53, %s2043_s19 }
  0x74   :  { %1994 = vrot.lane.b32.xlu0 %v1993_v54, %s2043_s19 }
  0x77   :  { %2009 = vrot.lane.b32.xlu1 %v2008_v59, %s2042_s0 }
  0x78   :  { %2004 = vrot.lane.b32.xlu0 %v2003_v61, %s2042_s0 }
  0x7b   :  { %2019 = vrot.lane.b32.xlu1 %v2018_v3, %s2044_s20 }
  0x7c   :  { %2014 = vrot.lane.b32.xlu0 %v2213_v38, %s2044_s20 }
  0x91   :  { %v1795_v40 = vpop.permute.xlu1 %1794 }
  0x92   :  { %v1785_v5 = vpop.permute.xlu0 %1784  ;;  %v1797_v24 = vunpack.i.h.bf16 %v1795_v40  ;;  %v1796_v44 = vunpack.i.l.bf16 %v1795_v40 }
  0x93   :  { %v1787_v7 = vunpack.i.h.bf16 %v1785_v5  ;;  %v1786_v9 = vunpack.i.l.bf16 %v1785_v5 }
  0x95   :  { %v1800_v10 = vpop.permute.xlu1 %1799  ;;  %v679_v59 = vsel %vm15_vm0, %v2189_v25, %v1786_v9  ;;  %v680_v61 = vsel %vm15_vm0, %v2197_v30, %v1787_v7 }
  0x96   :  { %v1790_v13 = vpop.permute.xlu0 %1789  ;;  %v1802_v14 = vunpack.i.h.bf16 %v1800_v10  ;;  %v1801_v15 = vunpack.i.l.bf16 %v1800_v10 }
  0x97   :  { %v1792_v16 = vunpack.i.h.bf16 %v1790_v13  ;;  %v1791_v22 = vunpack.i.l.bf16 %v1790_v13 }
  0x99   :  { %v629_v53 = vsel %vm15_vm0, %v100_v11, %v1791_v22  ;;  %v630_v38 = vsel %vm15_vm0, %v2195_v29, %v1792_v16  ;;  %v1810_v54 = vpop.permute.xlu1 %1809  ;;  %v695_v11 = vsel %vm645_vm3, %v679_v59, %v1796_v44  ;;  %v696_v29 = vsel %vm645_vm3, %v680_v61, %v1797_v24 }
  0x9a   :  { %v1812_v3 = vunpack.i.h.bf16 %v1810_v54  ;;  %v1811_v5 = vunpack.i.l.bf16 %v1810_v54  ;;  %v1805_v10 = vpop.permute.xlu0 %1804  ;;  %v646_v40 = vsel %vm645_vm3, %v629_v53, %v1801_v15  ;;  %v647_v52 = vsel %vm645_vm3, %v630_v38, %v1802_v14 }
  0x9b   :  { %v1807_v13 = vunpack.i.h.bf16 %v1805_v10  ;;  %v1806_v1 = vunpack.i.l.bf16 %v1805_v10 }
  0x9c   :  { %v663_v16 = vsel %vm662_vm4, %v646_v40, %v1811_v5  ;;  %v664_v25 = vsel %vm662_vm4, %v647_v52, %v1812_v3 }
  0x9d   :  { %v1820_v9 = vpop.permute.xlu1 %1819  ;;  %v711_v30 = vsel %vm662_vm4, %v695_v11, %v1806_v1  ;;  %v712_v7 = vsel %vm662_vm4, %v696_v29, %v1807_v13  ;;  %v727_v22 = vpack.c.bf16 %v664_v25, %v663_v16 }
  0x9e   :  { %v1815_v54 = vpop.permute.xlu0 %1814  ;;  %v728_v10 = vpack.c.bf16 %v712_v7, %v711_v30  ;;  %v1822_v15 = vunpack.i.h.bf16 %v1820_v9  ;;  %v1821_v53 = vunpack.i.l.bf16 %v1820_v9 }
  0x9f   :  { %v1817_v44 = vunpack.i.h.bf16 %v1815_v54  ;;  %v1816_v38 = vunpack.i.l.bf16 %v1815_v54 }
  0xa0   :  { %958 = vmatprep.mubr.bf16.mxu0 %v728_v10  ;;  %v642_v1 = vsel %vm15_vm0, %v2229_v45, %v1822_v15  ;;  %v641_v3 = vsel %vm15_vm0, %v207_v58, %v1821_v53 }
  0xa1   :  { %959 = vmatmul.mubr.bf16.vlgmr.msra.gmra.mrb[0].mxu0 %v727_v22  ;;  %v1830_v14 = vpop.permute.xlu1 %1829  ;;  %v691_v16 = vsel %vm15_vm0, %v2207_v35, %v1816_v38  ;;  %v692_v25 = vsel %vm15_vm0, %v2231_v46, %v1817_v44  ;;  %v2040_v38 = vld [vmem:[%s2799_s1 + $0x88] sm:$0xff]  }
  0xa2   :  { %v1825_v24 = vpop.permute.xlu0 %1824  ;;  %v1832_v59 = vunpack.i.h.bf16 %v1830_v14  ;;  %v1831_v61 = vunpack.i.l.bf16 %v1830_v14 }
  0xa3   :  { %v1827_v5 = vunpack.i.h.bf16 %v1825_v24  ;;  %v1826_v52 = vunpack.i.l.bf16 %v1825_v24 }
  0xa4   :  { %v658_v9 = vsel %vm645_vm3, %v641_v3, %v1831_v61  ;;  %v659_v30 = vsel %vm645_vm3, %v642_v1, %v1832_v59 }
  0xa5   :  { %v1840_v13 = vpop.permute.xlu1 %1839  ;;  %v707_v45 = vsel %vm645_vm3, %v691_v16, %v1826_v52  ;;  %v708_v58 = vsel %vm645_vm3, %v692_v25, %v1827_v5 }
  0xa6   :  { %v1842_v40 = vunpack.i.h.bf16 %v1840_v13  ;;  %v1841_v11 = vunpack.i.l.bf16 %v1840_v13  ;;  %v1835_v29 = vpop.permute.xlu0 %1834 }
  0xa7   :  { %v1837_v7 = vunpack.i.h.bf16 %v1835_v29  ;;  %v1836_v22 = vunpack.i.l.bf16 %v1835_v29 }
  0xa8   :  { %v675_v54 = vsel %vm662_vm4, %v658_v9, %v1841_v11  ;;  %v676_v10 = vsel %vm662_vm4, %v659_v30, %v1842_v40 }
  0xa9   :  { %v1850_v15 = vpop.permute.xlu1 %1849  ;;  %v723_v35 = vsel %vm662_vm4, %v707_v45, %v1836_v22  ;;  %v724_v53 = vsel %vm662_vm4, %v708_v58, %v1837_v7  ;;  %v745_v46 = vpack.c.bf16 %v676_v10, %v675_v54 }
  0xaa   :  { %v1845_v14 = vpop.permute.xlu0 %1844  ;;  %v746_v44 = vpack.c.bf16 %v724_v53, %v723_v35  ;;  %v1852_v24 = vunpack.i.h.bf16 %v1850_v15  ;;  %v1851_v59 = vunpack.i.l.bf16 %v1850_v15 }
  0xab   :  { %v1847_v5 = vunpack.i.h.bf16 %v1845_v14  ;;  %v1846_v52 = vunpack.i.l.bf16 %v1845_v14 }
  0xac   :  { %1006 = vmatprep.mubr.bf16.mxu1 %v746_v44  ;;  %v632_v29 = vsel %vm15_vm0, %v2183_v20, %v1852_v24  ;;  %v631_v16 = vsel %vm15_vm0, %v2181_v19, %v1851_v59 }
  0xad   :  { %1007 = vmatmul.mubr.bf16.vlgmr.msra.gmra.mrb[0].mxu1 %v745_v46  ;;  %v1860_v61 = vpop.permute.xlu1 %1859  ;;  %v682_v9 = vsel %vm15_vm0, %v2274_v62, %v1847_v5  ;;  %v681_v30 = vsel %vm15_vm0, %v2199_v31, %v1846_v52 }
  0xae   :  { %v1855_v1 = vpop.permute.xlu0 %1854  ;;  %1743 = vmatpush3.bf16.msra.mxu1 %v2339_v32  ;;  %v1862_v3 = vunpack.i.h.bf16 %v1860_v61  ;;  %v1861_v13 = vunpack.i.l.bf16 %v1860_v61 }
  0xaf   :  { %1744 = vmatprep.subr.bf16.mxu1 %v2040_v38  ;;  %v1857_v40 = vunpack.i.h.bf16 %v1855_v1  ;;  %v1856_v11 = vunpack.i.l.bf16 %v1855_v1 }
  0xb0   :  { %v648_v45 = vsel %vm645_vm3, %v631_v16, %v1861_v13  ;;  %v649_v58 = vsel %vm645_vm3, %v632_v29, %v1862_v3 }
  0xb1   :  { %v1870_v25 = vpop.permute.xlu1 %1869  ;;  %v697_v10 = vsel %vm645_vm3, %v681_v30, %v1856_v11  ;;  %v698_v19 = vsel %vm645_vm3, %v682_v9, %v1857_v40 }
  0xb2   :  { %v1872_v7 = vunpack.i.h.bf16 %v1870_v25  ;;  %v1871_v32 = vunpack.i.l.bf16 %v1870_v25  ;;  %v1865_v22 = vpop.permute.xlu0 %1864  ;;  %1745 = vmatpush3.bf16.msra.mxu1 %v2040_v38 }
  0xb3   :  { %v1867_v54 = vunpack.i.h.bf16 %v1865_v22  ;;  %v1866_v20 = vunpack.i.l.bf16 %v1865_v22 }
  0xb4   :  { %v665_v15 = vsel %vm662_vm4, %v648_v45, %v1871_v32  ;;  %v666_v62 = vsel %vm662_vm4, %v649_v58, %v1872_v7 }
  0xb5   :  { %v1880_v35 = vpop.permute.xlu1 %1879  ;;  %v713_v31 = vsel %vm662_vm4, %v697_v10, %v1866_v20  ;;  %v714_v53 = vsel %vm662_vm4, %v698_v19, %v1867_v54  ;;  %v730_v46 = vpack.c.bf16 %v666_v62, %v665_v15 }
  0xb6   :  { %v1875_v14 = vpop.permute.xlu0 %1874  ;;  %v731_v44 = vpack.c.bf16 %v714_v53, %v713_v31  ;;  %v1882_v38 = vunpack.i.h.bf16 %v1880_v35  ;;  %v1881_v24 = vunpack.i.l.bf16 %v1880_v35 }
  0xb7   :  { %v1877_v61 = vunpack.i.h.bf16 %v1875_v14  ;;  %v1876_v5 = vunpack.i.l.bf16 %v1875_v14 }
  0xb8   :  { %966 = vmatprep.mubr.bf16.mxu0 %v731_v44  ;;  %v644_v11 = vsel %vm15_vm0, %v2221_v42, %v1882_v38  ;;  %v643_v29 = vsel %vm15_vm0, %v2219_v41, %v1881_v24 }
  0xb9   :  { %967 = vmatmul.mubr.bf16.gmra.mrb[4].mxu0 %v730_v46  ;;  %v1890_v59 = vpop.permute.xlu1 %1889  ;;  %v694_v25 = vsel %vm15_vm0, %v2323_v18, %v1877_v61  ;;  %v693_v9 = vsel %vm15_vm0, %v2233_v47, %v1876_v5 }
  0xba   :  { %v1885_v52 = vpop.permute.xlu0 %1884  ;;  %v1892_v1 = vunpack.i.h.bf16 %v1890_v59  ;;  %v1891_v3 = vunpack.i.l.bf16 %v1890_v59 }
  0xbb   :  { %v1887_v13 = vunpack.i.h.bf16 %v1885_v52  ;;  %v1886_v40 = vunpack.i.l.bf16 %v1885_v52 }
  0xbc   :  { %v660_v22 = vsel %vm645_vm3, %v643_v29, %v1891_v3  ;;  %v661_v45 = vsel %vm645_vm3, %v644_v11, %v1892_v1 }
  0xbd   :  { %v1900_v16 = vpop.permute.xlu1 %1899  ;;  %v709_v42 = vsel %vm645_vm3, %v693_v9, %v1886_v40  ;;  %v710_v41 = vsel %vm645_vm3, %v694_v25, %v1887_v13 }
  0xbe   :  { %v1902_v30 = vunpack.i.h.bf16 %v1900_v16  ;;  %v1901_v7 = vunpack.i.l.bf16 %v1900_v16  ;;  %v1895_v32 = vpop.permute.xlu0 %1894 }
  0xbf   :  { %v1897_v58 = vunpack.i.h.bf16 %v1895_v32  ;;  %v1896_v54 = vunpack.i.l.bf16 %v1895_v32 }
  0xc0   :  { %v677_v20 = vsel %vm662_vm4, %v660_v22, %v1901_v7  ;;  %v678_v18 = vsel %vm662_vm4, %v661_v45, %v1902_v30 }
  0xc1   :  { %v1910_v10 = vpop.permute.xlu1 %1909  ;;  %v725_v47 = vsel %vm662_vm4, %v709_v42, %v1896_v54  ;;  %v726_v19 = vsel %vm662_vm4, %v710_v41, %v1897_v58  ;;  %v748_v15 = vpack.c.bf16 %v678_v18, %v677_v20  ;;  %v2802_v58 = vpack.c.bf16 %v2364_v50, %v2334_v28  ;;  %v236_v54 = vld [vmem:[#allocation2 + $0x92] sm:$0xff] }
  0xc2   :  { %v1905_v62 = vpop.permute.xlu0 %1904  ;;  %v749_v35 = vpack.c.bf16 %v726_v19, %v725_v47  ;;  %v1912_v31 = vunpack.i.h.bf16 %v1910_v10  ;;  %v1911_v53 = vunpack.i.l.bf16 %v1910_v10  ;;  %v738_v27 = vpack.c.bf16 %v236_v54, %v2374_v57 }
  0xc3   :  { %v1907_v14 = vunpack.i.h.bf16 %v1905_v62  ;;  %v1906_v44 = vunpack.i.l.bf16 %v1905_v62 }
  0xc4   :  { %1014 = vmatprep.mubr.bf16.mxu1 %v749_v35  ;;  %v634_v52 = vsel %vm15_vm0, %v2269_v60, %v1912_v31  ;;  %v633_v1 = vsel %vm15_vm0, %v2258_v56, %v1911_v53 }
  0xc5   :  { %1015 = vmatmul.mubr.bf16.gmra.mrb[4].mxu1 %v748_v15  ;;  %v1920_v46 = vpop.permute.xlu1 %1919  ;;  %v684_v13 = vsel %vm15_vm0, %v2360_v48, %v1907_v14  ;;  %v683_v40 = vsel %vm15_vm0, %v2285_v2, %v1906_v44  ;;  %v2803_v14 = vpack.c.bf16 %v2382_v0, %v2380_v63  ;;  %v240_v44 = vld [vmem:[#allocation2 + $0xf2] sm:$0xff] }
  0xc6   :  { %v1915_v38 = vpop.permute.xlu0 %1914  ;;  %1746 = vmatprep.mubr.msk.bf16.mxu1 %vm15_vm0, %v729_v33  ;;  %v1922_v24 = vunpack.i.h.bf16 %v1920_v46  ;;  %v1921_v59 = vunpack.i.l.bf16 %v1920_v46 }
  0xc7   :  { %v1917_v61 = vunpack.i.h.bf16 %v1915_v38  ;;  %v1916_v5 = vunpack.i.l.bf16 %v1915_v38 }
  0xc8   :  { %v650_v11 = vsel %vm645_vm3, %v633_v1, %v1921_v59  ;;  %v651_v29 = vsel %vm645_vm3, %v634_v52, %v1922_v24 }
  0xc9   :  { %v1930_v3 = vpop.permute.xlu1 %1929  ;;  %v699_v60 = vsel %vm645_vm3, %v683_v40, %v1916_v5  ;;  %v700_v56 = vsel %vm645_vm3, %v684_v13, %v1917_v61 }
  0xca   :  { %v1932_v23 = vunpack.i.h.bf16 %v1930_v3  ;;  %v1931_v51 = vunpack.i.l.bf16 %v1930_v3  ;;  %v1925_v33 = vpop.permute.xlu0 %1924 }
  0xcb   :  { %v1927_v16 = vunpack.i.h.bf16 %v1925_v33  ;;  %v1926_v25 = vunpack.i.l.bf16 %v1925_v33 }
  0xcc   :  { %v667_v9 = vsel %vm662_vm4, %v650_v11, %v1931_v51  ;;  %v668_v48 = vsel %vm662_vm4, %v651_v29, %v1932_v23 }
  0xcd   :  { %1747 = vmatmul.mubr.msk.bf16.vlgmr.msra.gmra.mrb[8].mxu1 %vm15_vm0, %v732_v34  ;;  %v1940_v2 = vpop.permute.xlu1 %1939  ;;  %v715_v30 = vsel %vm662_vm4, %v699_v60, %v1926_v25  ;;  %v716_v7 = vsel %vm662_vm4, %v700_v56, %v1927_v16  ;;  %v733_v32 = vpack.c.bf16 %v668_v48, %v667_v9  ;;  %v108_v16 = vld [vmem:[#allocation2 + $0xa0] sm:$0xff]  ;;  %v244_v9 = vld [vmem:[#allocation2 + $0x132] sm:$0xff] }
  0xce   :  { %v1935_v22 = vpop.permute.xlu0 %1934  ;;  %v734_v45 = vpack.c.bf16 %v716_v7, %v715_v30  ;;  %1750 = vmatprep.mubr.msk.bf16.mxu1 %vm15_vm0, %v2802_v58  ;;  %v1942_v42 = vunpack.i.h.bf16 %v1940_v2  ;;  %v1941_v41 = vunpack.i.l.bf16 %v1940_v2 }
  0xcf   :  { %v1937_v34 = vunpack.i.h.bf16 %v1935_v22  ;;  %v1936_v20 = vunpack.i.l.bf16 %v1935_v22 }
  0xd0   :  { %974 = vmatprep.mubr.bf16.mxu0 %v734_v45  ;;  %v636_v28 = vsel %vm15_vm0, %v2351_v39, %v1942_v42  ;;  %v635_v50 = vsel %vm15_vm0, %v2349_v37, %v1941_v41  ;;  %v239_v39 = vld [vmem:[#allocation2 + $0xe2] sm:$0xff]  ;;  %v750_v45 = vpack.c.bf16 %v244_v9, %v2301_v8 }
  0xd1   :  { %975 = vmatmul.mubr.bf16.gmra.mrb[8].mxu0 %v733_v32  ;;  %v1950_v55 = vpop.permute.xlu1 %1949  ;;  %v686_v35 = vsel %vm15_vm0, %v2390_v6, %v1937_v34  ;;  %v685_v57 = vsel %vm15_vm0, %v2362_v49, %v1936_v20  ;;  %v241_v6 = vld [vmem:[#allocation2 + $0x102] sm:$0xff]  ;;  %v744_v13 = vpack.c.bf16 %v240_v44, %v239_v39 }
  0xd2   :  { %v1945_v18 = vpop.permute.xlu0 %1944  ;;  %v1952_v10 = vunpack.i.h.bf16 %v1950_v55  ;;  %v1951_v47 = vunpack.i.l.bf16 %v1950_v55  ;;  %v747_v51 = vpack.c.bf16 %v2290_v4, %v241_v6 }
  0xd3   :  { %v1947_v19 = vunpack.i.h.bf16 %v1945_v18  ;;  %v1946_v15 = vunpack.i.l.bf16 %v1945_v18 }
  0xd4   :  { %v652_v37 = vsel %vm645_vm3, %v635_v50, %v1951_v47  ;;  %v653_v38 = vsel %vm645_vm3, %v636_v28, %v1952_v10 }
  0xd5   :  { %1751 = vmatmul.mubr.msk.bf16.gmra.mrb[12].mxu1 %vm15_vm0, %v738_v27  ;;  %v1960_v62 = vpop.permute.xlu1 %1959  ;;  %v701_v61 = vsel %vm645_vm3, %v685_v57, %v1946_v15  ;;  %v702_v49 = vsel %vm645_vm3, %v686_v35, %v1947_v19 }
  0xd6   :  { %v1962_v31 = vunpack.i.h.bf16 %v1960_v62  ;;  %v1961_v53 = vunpack.i.l.bf16 %v1960_v62  ;;  %v1955_v46 = vpop.permute.xlu0 %1954  ;;  %1754 = vmatprep.mubr.msk.bf16.mxu1 %vm15_vm0, %v2803_v14  ;;  %v175_v14 = vld [vmem:[#allocation2 + $0xe1] sm:$0xff] }
  0xd7   :  { %v1957_v24 = vunpack.i.h.bf16 %v1955_v46  ;;  %v1956_v59 = vunpack.i.l.bf16 %v1955_v46 }
  0xd8   :  { %v669_v5 = vsel %vm662_vm4, %v652_v37, %v1961_v53  ;;  %v670_v52 = vsel %vm662_vm4, %v653_v38, %v1962_v31 }
  0xd9   :  { %v1970_v63 = vpop.permute.xlu1 %1969  ;;  %v717_v0 = vsel %vm662_vm4, %v701_v61, %v1956_v59  ;;  %v718_v1 = vsel %vm662_vm4, %v702_v49, %v1957_v24  ;;  %v736_v3 = vpack.c.bf16 %v670_v52, %v669_v5 }
  0xda   :  { %v1965_v40 = vpop.permute.xlu0 %1964  ;;  %v737_v23 = vpack.c.bf16 %v718_v1, %v717_v0  ;;  %v1972_v33 = vunpack.i.h.bf16 %v1970_v63  ;;  %v1971_v11 = vunpack.i.l.bf16 %v1970_v63 }
  0xdb   :  { %v1967_v25 = vunpack.i.h.bf16 %v1965_v40  ;;  %v1966_v60 = vunpack.i.l.bf16 %v1965_v40 }
  0xdc   :  { %982 = vmatprep.mubr.bf16.mxu0 %v737_v23  ;;  %v638_v4 = vsel %vm15_vm0, %v2410_v26, %v1972_v33  ;;  %v637_v32 = vsel %vm15_vm0, %v108_v16, %v1971_v11 }
  0xdd   :  { %983 = vmatmul.mubr.bf16.gmra.mrb[12].mxu0 %v736_v3  ;;  %1755 = vmatmul.mubr.msk.bf16.gmra.mrb[16].mxu1 %vm15_vm0, %v744_v13  ;;  %v1980_v29 = vpop.permute.xlu1 %1979  ;;  %v688_v58 = vsel %vm15_vm0, %v2412_v36, %v1967_v25  ;;  %v687_v54 = vsel %vm15_vm0, %v2396_v12, %v1966_v60 }
  0xde   :  { %v1975_v56 = vpop.permute.xlu0 %1974  ;;  %1758 = vmatprep.mubr.msk.bf16.mxu1 %vm15_vm0, %v747_v51  ;;  %v1982_v48 = vunpack.i.h.bf16 %v1980_v29  ;;  %v1981_v2 = vunpack.i.l.bf16 %v1980_v29 }
  0xdf   :  { %v1977_v30 = vunpack.i.h.bf16 %v1975_v56  ;;  %v1976_v7 = vunpack.i.l.bf16 %v1975_v56 }
  0xe0   :  { %v654_v27 = vsel %vm645_vm3, %v637_v32, %v1981_v2  ;;  %v655_v34 = vsel %vm645_vm3, %v638_v4, %v1982_v48 }
  0xe1   :  { %v1990_v22 = vpop.permute.xlu1 %1989  ;;  %v703_v18 = vsel %vm645_vm3, %v687_v54, %v1976_v7  ;;  %v704_v10 = vsel %vm645_vm3, %v688_v58, %v1977_v30 }
  0xe2   :  { %v1992_v42 = vunpack.i.h.bf16 %v1990_v22  ;;  %v1991_v41 = vunpack.i.l.bf16 %v1990_v22  ;;  %v1985_v55 = vpop.permute.xlu0 %1984 }
  0xe3   :  { %v1987_v20 = vunpack.i.h.bf16 %v1985_v55  ;;  %v1986_v26 = vunpack.i.l.bf16 %v1985_v55 }
  0xe4   :  { %v671_v8 = vsel %vm662_vm4, %v654_v27, %v1991_v41  ;;  %v672_v36 = vsel %vm662_vm4, %v655_v34, %v1992_v42 }
  0xe5   :  { %1759 = vmatmul.mubr.msk.bf16.gmra.mrb[20].mxu1 %vm15_vm0, %v750_v45  ;;  %v2000_v12 = vpop.permute.xlu1 %1999  ;;  %v719_v47 = vsel %vm662_vm4, %v703_v18, %v1986_v26  ;;  %v720_v19 = vsel %vm662_vm4, %v704_v10, %v1987_v20  ;;  %v739_v15 = vpack.c.bf16 %v672_v36, %v671_v8  ;;  %v2591_v10 = vld [vmem:[%s2800_s2] ss:$0 sm:$0xff]  ;;  %v2045_v8 = vmov 1983009808  }
  0xe6   :  { %v1995_v28 = vpop.permute.xlu0 %1994  ;;  %v740_v50 = vpack.c.bf16 %v720_v19, %v719_v47  ;;  %v2002_v62 = vunpack.i.h.bf16 %v2000_v12  ;;  %v2001_v35 = vunpack.i.l.bf16 %v2000_v12  ;;  %v1170_v36 = vunpack.c.l.s4 %v2045_v8 }
  0xe7   :  { %v1997_v31 = vunpack.i.h.bf16 %v1995_v28  ;;  %v1996_v53 = vunpack.i.l.bf16 %v1995_v28  ;;  %v1172_v12 = vlaneseq }
  0xe8   :  { %990 = vmatprep.mubr.bf16.mxu0 %v740_v50  ;;  %v640_v24 = vsel %vm15_vm0, %v2404_v21, %v2002_v62  ;;  %v639_v59 = vsel %vm15_vm0, %v2402_v17, %v2001_v35 }
  0xe9   :  { %991 = vmatmul.mubr.bf16.gmra.mrb[16].mxu0 %v739_v15  ;;  %v2010_v57 = vpop.permute.xlu1 %2009  ;;  %v690_v61 = vsel %vm15_vm0, %v175_v14, %v1997_v31  ;;  %v689_v49 = vsel %vm15_vm0, %v2414_v43, %v1996_v53  ;;  %v1171_v31 = vunpack.c.0.s8 %v1170_v36  ;;  %v1173_v53 = vshrl.u32 %v1172_v12, 7 }
  0xea   :  { %v2005_v46 = vpop.permute.xlu0 %2004  ;;  %v2012_v39 = vunpack.i.h.bf16 %v2010_v57  ;;  %v2011_v44 = vunpack.i.l.bf16 %v2010_v57 }
  0xeb   :  { %v2007_v37 = vunpack.i.h.bf16 %v2005_v46  ;;  %v2006_v38 = vunpack.i.l.bf16 %v2005_v46 }
  0xec   :  { %v656_v0 = vsel %vm645_vm3, %v639_v59, %v2011_v44  ;;  %v657_v1 = vsel %vm645_vm3, %v640_v24, %v2012_v39 }
  0xed   :  { %v2020_v6 = vpop.permute.xlu1 %2019  ;;  %v705_v21 = vsel %vm645_vm3, %v689_v49, %v2006_v38  ;;  %v706_v40 = vsel %vm645_vm3, %v690_v61, %v2007_v37  ;;  %v2597_v61 = vsub.s32 %v1171_v31, %v1173_v53 }
  0xee   :  { %v2022_v5 = vunpack.i.h.bf16 %v2020_v6  ;;  %v2021_v52 = vunpack.i.l.bf16 %v2020_v6  ;;  %v2015_v63 = vpop.permute.xlu0 %2014 }
  0xef   :  { %v2017_v3 = vunpack.i.h.bf16 %v2015_v63  ;;  %v2016_v13 = vunpack.i.l.bf16 %v2015_v63 }
  0xf0   :  { %v673_v17 = vsel %vm662_vm4, %v656_v0, %v2021_v52  ;;  %v674_v23 = vsel %vm662_vm4, %v657_v1, %v2022_v5 }
  0xf1   :  { %v721_v51 = vsel %vm662_vm4, %v705_v21, %v2016_v13  ;;  %v722_v43 = vsel %vm662_vm4, %v706_v40, %v2017_v3  ;;  %v742_v33 = vpack.c.bf16 %v674_v23, %v673_v17 }
  0xf2   :  { %v743_v11 = vpack.c.bf16 %v722_v43, %v721_v51 }
  0xf4   :  { %998 = vmatprep.mubr.bf16.mxu0 %v743_v11 }
  0xf5   :  { %999 = vmatmul.mubr.bf16.gmra.mrb[20].mxu0 %v742_v33 }
 0x174   :  { %v1684_v29 = vpop.f32.mrb[0].mxu0 }
 0x175   :  { %v1685_v16 = vpop.f32.mrb[1].mxu0 }
 0x176   :  { %v1686_v25 = vadd.f32 %v1685_v16, %v1684_v29  ;;  %v1687_v60 = vpop.f32.mrb[2].mxu0 }
 0x177   :  { %v1688_v56 = vpop.f32.mrb[3].mxu0 }
 0x178   :  { %v1689_v9 = vadd.f32 %v1688_v56, %v1687_v60  ;;  %v961_v15 = vadd.f32 %v1686_v25, %v2591_v10 }
 0x17a   :  { %v964_v46 = vadd.f32 %v1689_v9, %v2591_v10 }
 0x180   :  { %v1720_v48 = vpop.f32.mrb[0].mxu1 }
 0x181   :  { %v1721_v2 = vpop.f32.mrb[1].mxu1 }
 0x182   :  { %v1722_v30 = vadd.f32 %v1721_v2, %v1720_v48  ;;  %v1723_v7 = vpop.f32.mrb[2].mxu1 }
 0x183   :  { %v1724_v4 = vpop.f32.mrb[3].mxu1 }
 0x184   :  { %v1725_v32 = vadd.f32 %v1724_v4, %v1723_v7  ;;  %v2607_v33 = vadd.f32 %v1722_v30, %v2591_v10 }
 0x186   :  { %v2610_v11 = vadd.f32 %v1725_v32, %v2591_v10 }
 0x18c   :  { %v1690_v22 = vpop.f32.mrb[4].mxu0 }
 0x18d   :  { %v1691_v45 = vpop.f32.mrb[5].mxu0 }
 0x18e   :  { %v1692_v58 = vadd.f32 %v1691_v45, %v1690_v22  ;;  %v1693_v54 = vpop.f32.mrb[6].mxu0 }
 0x18f   :  { %v1694_v42 = vpop.f32.mrb[7].mxu0 }
 0x190   :  { %v1695_v41 = vadd.f32 %v1694_v42, %v1693_v54  ;;  %v969_v47 = vadd.f32 %v1692_v58, %v2591_v10 }
 0x192   :  { %v972_v62 = vadd.f32 %v1695_v41, %v2591_v10 }
 0x198   :  { %v1726_v55 = vpop.f32.mrb[4].mxu1 }
 0x199   :  { %v1727_v27 = vpop.f32.mrb[5].mxu1 }
 0x19a   :  { %v1728_v34 = vadd.f32 %v1727_v27, %v1726_v55  ;;  %v1729_v20 = vpop.f32.mrb[6].mxu1 }
 0x19b   :  { %v1730_v26 = vpop.f32.mrb[7].mxu1 }
 0x19c   :  { %v1731_v18 = vadd.f32 %v1730_v26, %v1729_v20  ;;  %v2618_v56 = vadd.f32 %v1728_v34, %v2591_v10 }
 0x19e   :  { %v2627_v7 = vadd.f32 %v1731_v18, %v2591_v10 }
 0x1a0   :  { %v1748_v19 = vpop.f32.mrb[8].mxu1 }
 0x1a1   :  { %v1066_v28 = vadd.f32 %v1748_v19, %v969_v47  ;;  %v1057_v50 = vpop.f32.mrb[9].mxu1 }
 0x1a2   :  { %v1058_v35 = vadd.f32 %v1057_v50, %v961_v15  ;;  %v1749_v57 = vpop.f32.mrb[10].mxu1 }
 0x1a3   :  { %v1122_v14 = vmax.f32 %v1066_v28, 0.0  ;;  %v1069_v39 = vadd.f32 %v1749_v57, %v972_v62  ;;  %v1060_v44 = vpop.f32.mrb[11].mxu1 }
 0x1a4   :  { %v1120_v37 = vmax.f32 %v1058_v35, 0.0  ;;  %v1061_v38 = vadd.f32 %v1060_v44, %v964_v46  ;;  %v1696_v24 = vpop.f32.mrb[8].mxu0 }
 0x1a5   :  { %v1123_v59 = vmax.f32 %v1069_v39, 0.0  ;;  %v1697_v6 = vpop.f32.mrb[9].mxu0  ;;  %v1139_v63 = vsel %vm645_vm3, %v1122_v14, -inf }
 0x1a6   :  { %v1121_v49 = vmax.f32 %v1061_v38, 0.0  ;;  %v1698_v5 = vadd.f32 %v1697_v6, %v1696_v24  ;;  %v1699_v52 = vpop.f32.mrb[10].mxu0  ;;  %v1136_v0 = vsel %vm645_vm3, %v1120_v37, -inf }
 0x1a7   :  { %v1140_v1 = vsel %vm645_vm3, %v1123_v59, -inf  ;;  %v1700_v3 = vpop.f32.mrb[11].mxu0 }
 0x1a8   :  { %v1141_v13 = vmax.f32 %v1139_v63, %v1140_v1  ;;  %v1137_v21 = vsel %vm645_vm3, %v1121_v49, -inf  ;;  %v1701_v40 = vadd.f32 %v1700_v3, %v1699_v52  ;;  %v2603_v17 = vpop.f32.mrb[12].mxu1  ;;  %v977_v23 = vadd.f32 %v1698_v5, %v2591_v10 }
 0x1a9   :  { %v1138_v51 = vmax.f32 %v1136_v0, %v1137_v21  ;;  %v1073_v43 = vpop.f32.mrb[13].mxu1 }
 0x1aa   :  { %v1185_v29 = vcombine.high %v1141_v13, %v1141_v13  ;;  %v1192_v16 = vrot.slane %v1141_v13, %v2597_v61  ;;  %v2613_v25 = vadd.f32 %v1073_v43, %v977_v23  ;;  %v2615_v60 = vpop.f32.mrb[14].mxu1  ;;  %v2622_v2 = vadd.f32 %v1701_v40, %v2591_v10 }
 0x1ab   :  { %v1168_v9 = vcombine.high %v1138_v51, %v1138_v51  ;;  %v1175_v48 = vrot.slane %v1138_v51, %v2597_v61  ;;  %v2624_v30 = vpop.f32.mrb[15].mxu1 }
 0x1ac   :  { %v1199_v4 = vrot.slane %v1185_v29, %v2597_v61  ;;  %v1200_v32 = vcombine.high %v1192_v16, %v1192_v16  ;;  %v1365_v22 = vsel %vm1336_vm5, %v1192_v16, -inf  ;;  %v1124_v45 = vmax.f32 %v2613_v25, 0.0 }
 0x1ad   :  { %v1366_v58 = vrot.slane %v1365_v22, 4  ;;  %v1182_v54 = vrot.slane %v1168_v9, %v2597_v61  ;;  %v1183_v42 = vcombine.high %v1175_v48, %v1175_v48  ;;  %v1337_v41 = vsel %vm1336_vm5, %v1175_v48, -inf }
 0x1ae   :  { %v1201_v55 = vcombine.high %v1199_v4, %v1199_v4  ;;  %v1372_v27 = vsel %vm1336_vm5, %v1200_v32, -inf  ;;  %v1379_v34 = vsel %vm1336_vm5, %v1199_v4, -inf  ;;  %v1338_v20 = vrot.slane %v1337_v41, 4 }
 0x1af   :  { %v1367_v26 = vmax.f32 %v1365_v22, %v1366_v58  ;;  %v1373_v18 = vrot.slane %v1372_v27, 4  ;;  %v1380_v8 = vrot.slane %v1379_v34, 4  ;;  %v1184_v36 = vcombine.high %v1182_v54, %v1182_v54 }
 0x1b0   :  { %v1386_v12 = vsel %vm1336_vm5, %v1201_v55, -inf  ;;  %v1339_v47 = vmax.f32 %v1337_v41, %v1338_v20  ;;  %v1344_v19 = vsel %vm1336_vm5, %v1183_v42, -inf  ;;  %v1351_v15 = vsel %vm1336_vm5, %v1182_v54, -inf  ;;  %v1702_v28 = vpop.f32.mrb[12].mxu0  ;;  %v2639_v50 = vpop.f32.mrb[16].mxu1 }
 0x1b1   :  { %v1368_v62 = vrot.slane %v1367_v26, 2  ;;  %v1374_v35 = vmax.f32 %v1372_v27, %v1373_v18  ;;  %v1381_v57 = vmax.f32 %v1379_v34, %v1380_v8  ;;  %v1387_v31 = vrot.slane %v1386_v12, 4  ;;  %v1703_v53 = vpop.f32.mrb[13].mxu0  ;;  %v2641_v46 = vpop.f32.mrb[17].mxu1 }
 0x1b2   :  { %v1340_v14 = vrot.slane %v1339_v47, 2  ;;  %v1345_v39 = vrot.slane %v1344_v19, 4  ;;  %v1352_v44 = vrot.slane %v1351_v15, 4  ;;  %v1358_v37 = vsel %vm1336_vm5, %v1184_v36, -inf  ;;  %v1705_v38 = vpop.f32.mrb[14].mxu0  ;;  %v2644_v24 = vpop.f32.mrb[18].mxu1 }
 0x1b3   :  { %v1369_v59 = vmax.f32 %v1367_v26, %v1368_v62  ;;  %v1375_v6 = vrot.slane %v1374_v35, 2  ;;  %v1382_v49 = vrot.slane %v1381_v57, 2  ;;  %v1388_v5 = vmax.f32 %v1386_v12, %v1387_v31  ;;  %v1706_v52 = vpop.f32.mrb[15].mxu0  ;;  %v2646_v63 = vpop.f32.mrb[19].mxu1 }
 0x1b4   :  { %v1341_v0 = vmax.f32 %v1339_v47, %v1340_v14  ;;  %v1346_v1 = vmax.f32 %v1344_v19, %v1345_v39  ;;  %v1353_v3 = vmax.f32 %v1351_v15, %v1352_v44  ;;  %v1359_v13 = vrot.slane %v1358_v37, 4 }
 0x1b5   :  { %v1370_v21 = vrot.slane %v1369_v59, 1  ;;  %v1376_v40 = vmax.f32 %v1374_v35, %v1375_v6  ;;  %v1383_v23 = vmax.f32 %v1381_v57, %v1382_v49  ;;  %v1389_v51 = vrot.slane %v1388_v5, 2 }
 0x1b6   :  { %v1342_v43 = vrot.slane %v1341_v0, 1  ;;  %v1347_v29 = vrot.slane %v1346_v1, 2  ;;  %v1354_v16 = vrot.slane %v1353_v3, 2  ;;  %v1360_v9 = vmax.f32 %v1358_v37, %v1359_v13 }
 0x1b7   :  { %v1371_v48 = vmax.f32 %v1369_v59, %v1370_v21  ;;  %v1377_v4 = vrot.slane %v1376_v40, 1  ;;  %v1384_v32 = vrot.slane %v1383_v23, 1  ;;  %v1390_v22 = vmax.f32 %v1388_v5, %v1389_v51 }
 0x1b8   :  { %v1343_v58 = vmax.f32 %v1341_v0, %v1342_v43  ;;  %v1348_v54 = vmax.f32 %v1346_v1, %v1347_v29  ;;  %v1355_v42 = vmax.f32 %v1353_v3, %v1354_v16  ;;  %v1361_v41 = vrot.slane %v1360_v9, 2  ;;  %v1760_v55 = vpop.f32.mrb[20].mxu1 }
 0x1b9   :  { %v1378_v27 = vmax.f32 %v1376_v40, %v1377_v4  ;;  %v1385_v34 = vmax.f32 %v1383_v23, %v1384_v32  ;;  %v1391_v20 = vrot.slane %v1390_v22, 1  ;;  %v1142_v26 = vsel %vm645_vm3, %v1124_v45, -inf  ;;  %v1105_v18 = vpop.f32.mrb[21].mxu1 }
 0x1ba   :  { %v1349_v8 = vrot.slane %v1348_v54, 1  ;;  %v1356_v36 = vrot.slane %v1355_v42, 1  ;;  %v1362_v12 = vmax.f32 %v1360_v9, %v1361_v41  ;;  %v1077_v47 = vadd.f32 %v2624_v30, %v2622_v2  ;;  %v1761_v19 = vpop.f32.mrb[22].mxu1 }
 0x1bb   :  { %v1392_v15 = vmax.f32 %v1390_v22, %v1391_v20  ;;  %v1599_v62 = vsel %vm1593_vm6, %v1378_v27, %v1371_v48  ;;  %v1704_v35 = vadd.f32 %v1703_v53, %v1702_v28  ;;  %v1707_v57 = vadd.f32 %v1706_v52, %v1705_v38  ;;  %v1108_v31 = vpop.f32.mrb[23].mxu1 }
 0x1bc   :  { %v1600_v14 = vsel %vm1595_vm7, %v1385_v34, %v1599_v62  ;;  %v1350_v39 = vmax.f32 %v1348_v54, %v1349_v8  ;;  %v1357_v25 = vmax.f32 %v1355_v42, %v1356_v36  ;;  %v1363_v44 = vrot.slane %v1362_v12, 1  ;;  %v1708_v45 = vpop.f32.mrb[16].mxu0 }
 0x1bd   :  { %v1601_v37 = vsel %vm1597_vm8, %v1392_v15, %v1600_v14  ;;  %v1125_v59 = vmax.f32 %v1077_v47, 0.0  ;;  %v985_v6 = vadd.f32 %v1704_v35, %v2591_v10  ;;  %v988_v2 = vadd.f32 %v1707_v57, %v2591_v10  ;;  %v1709_v30 = vpop.f32.mrb[17].mxu0 }
 0x1be   :  { %1630 = vst.msk [vmem:[%s2801_s3 + $0x4] sm:$0xf] %vm1628_vm9, %v1601_v37  ;;  %v1364_v28 = vmax.f32 %v1362_v12, %v1363_v44  ;;  %v1594_v53 = vsel %vm1593_vm6, %v1350_v39, %v1343_v58  ;;  %v1114_v38 = vadd.f32 %v1760_v55, %v2618_v56  ;;  %v1106_v49 = vadd.f32 %v1105_v18, %v2607_v33  ;;  %v2665_v5 = vpop.f32.mrb[18].mxu0 }
 0x1bf   :  { %v1596_v52 = vsel %vm1595_vm7, %v1357_v25, %v1594_v53  ;;  %v1143_v0 = vsel %vm645_vm3, %v1125_v59, -inf  ;;  %v1082_v1 = vadd.f32 %v2603_v17, %v985_v6  ;;  %v1085_v3 = vadd.f32 %v2615_v60, %v988_v2  ;;  %v2671_v13 = vpop.f32.mrb[19].mxu0 }
 0x1c0   :  { %v1598_v21 = vsel %vm1597_vm8, %v1364_v28, %v1596_v52  ;;  %v1144_v40 = vmax.f32 %v1142_v26, %v1143_v0  ;;  %v1134_v23 = vmax.f32 %v1114_v38, 0.0  ;;  %v1132_v51 = vmax.f32 %v1106_v49, 0.0 }
 0x1c1   :  { %1629 = vst.msk [vmem:[%s2801_s3] sm:$0xf] %vm1628_vm9, %v1598_v21  ;;  %v1126_v33 = vmax.f32 %v1082_v1, 0.0  ;;  %v1127_v56 = vmax.f32 %v1085_v3, 0.0  ;;  %v1117_v43 = vadd.f32 %v1761_v19, %v2627_v7  ;;  %v1109_v17 = vadd.f32 %v1108_v31, %v2610_v11 }
 0x1c2   :  { %v1202_v29 = vcombine.high %v1144_v40, %v1144_v40  ;;  %v1209_v60 = vrot.slane %v1144_v40, %v2597_v61  ;;  %v1157_v16 = vsel %vm645_vm3, %v1134_v23, -inf  ;;  %v1154_v9 = vsel %vm645_vm3, %v1132_v51, -inf }
 0x1c3   :  { %v1145_v48 = vsel %vm645_vm3, %v1126_v33, -inf  ;;  %v1146_v4 = vsel %vm645_vm3, %v1127_v56, -inf  ;;  %v1135_v32 = vmax.f32 %v1117_v43, 0.0  ;;  %v1133_v22 = vmax.f32 %v1109_v17, 0.0 }
 0x1c4   :  { %v1216_v58 = vrot.slane %v1202_v29, %v2597_v61  ;;  %v1217_v54 = vcombine.high %v1209_v60, %v1209_v60  ;;  %v1393_v7 = vsel %vm1336_vm5, %v1209_v60, -inf  ;;  %v1147_v42 = vmax.f32 %v1145_v48, %v1146_v4 }
 0x1c5   :  { %v1394_v11 = vrot.slane %v1393_v7, 4  ;;  %v1158_v41 = vsel %vm645_vm3, %v1135_v32, -inf  ;;  %v1155_v55 = vsel %vm645_vm3, %v1133_v22, -inf  ;;  %v2689_v27 = vadd.f32 %v1709_v30, %v1708_v45 }
 0x1c6   :  { %v1218_v34 = vcombine.high %v1216_v58, %v1216_v58  ;;  %v1400_v20 = vsel %vm1336_vm5, %v1217_v54, -inf  ;;  %v1407_v26 = vsel %vm1336_vm5, %v1216_v58, -inf  ;;  %v1219_v18 = vcombine.high %v1147_v42, %v1147_v42 }
 0x1c7   :  { %v1395_v8 = vmax.f32 %v1393_v7, %v1394_v11  ;;  %v1401_v36 = vrot.slane %v1400_v20, 4  ;;  %v1408_v12 = vrot.slane %v1407_v26, 4  ;;  %v1226_v47 = vrot.slane %v1147_v42, %v2597_v61 }
 0x1c8   :  { %v1414_v19 = vsel %vm1336_vm5, %v1218_v34, -inf  ;;  %v1233_v15 = vrot.slane %v1219_v18, %v2597_v61  ;;  %v1159_v62 = vmax.f32 %v1157_v16, %v1158_v41  ;;  %v2696_v35 = vmax.f32 %v1154_v9, %v1155_v55  ;;  %v2698_v57 = vpop.f32.mrb[20].mxu0 }
 0x1c9   :  { %v1396_v31 = vrot.slane %v1395_v8, 2  ;;  %v1402_v14 = vmax.f32 %v1400_v20, %v1401_v36  ;;  %v1409_v39 = vmax.f32 %v1407_v26, %v1408_v12  ;;  %v1415_v25 = vrot.slane %v1414_v19, 4  ;;  %v2700_v44 = vpop.f32.mrb[21].mxu0 }
 0x1ca   :  { %v1234_v45 = vcombine.high %v1226_v47, %v1226_v47  ;;  %v1235_v37 = vcombine.high %v1233_v15, %v1233_v15  ;;  %v1421_v59 = vsel %vm1336_vm5, %v1226_v47, -inf  ;;  %v1435_v6 = vsel %vm1336_vm5, %v1233_v15, -inf  ;;  %v2704_v2 = vpop.f32.mrb[22].mxu0 }
 0x1cb   :  { %v1397_v30 = vmax.f32 %v1395_v8, %v1396_v31  ;;  %v1403_v28 = vrot.slane %v1402_v14, 2  ;;  %v1410_v53 = vrot.slane %v1409_v39, 2  ;;  %v1416_v38 = vmax.f32 %v1414_v19, %v1415_v25  ;;  %v2706_v49 = vpop.f32.mrb[23].mxu0 }
 0x1cc   :  { %v1422_v52 = vrot.slane %v1421_v59, 4  ;;  %v1428_v0 = vsel %vm1336_vm5, %v1234_v45, -inf  ;;  %v1436_v1 = vrot.slane %v1435_v6, 4  ;;  %v1442_v3 = vsel %vm1336_vm5, %v1235_v37, -inf }
 0x1cd   :  { %v1398_v21 = vrot.slane %v1397_v30, 1  ;;  %v1404_v40 = vmax.f32 %v1402_v14, %v1403_v28  ;;  %v1411_v23 = vmax.f32 %v1409_v39, %v1410_v53  ;;  %v1417_v51 = vrot.slane %v1416_v38, 2 }
 0x1ce   :  { %v1423_v33 = vmax.f32 %v1421_v59, %v1422_v52  ;;  %v1429_v56 = vrot.slane %v1428_v0, 4  ;;  %v1437_v43 = vmax.f32 %v1435_v6, %v1436_v1  ;;  %v1443_v17 = vrot.slane %v1442_v3, 4 }
 0x1cf   :  { %v1399_v29 = vmax.f32 %v1397_v30, %v1398_v21  ;;  %v1405_v60 = vrot.slane %v1404_v40, 1  ;;  %v1412_v16 = vrot.slane %v1411_v23, 1  ;;  %v1418_v9 = vmax.f32 %v1416_v38, %v1417_v51 }
 0x1d0   :  { %v1424_v48 = vrot.slane %v1423_v33, 2  ;;  %v1430_v4 = vmax.f32 %v1428_v0, %v1429_v56  ;;  %v1438_v32 = vrot.slane %v1437_v43, 2  ;;  %v1444_v22 = vmax.f32 %v1442_v3, %v1443_v17 }
 0x1d1   :  { %v1406_v58 = vmax.f32 %v1404_v40, %v1405_v60  ;;  %v1413_v54 = vmax.f32 %v1411_v23, %v1412_v16  ;;  %v1419_v7 = vrot.slane %v1418_v9, 1  ;;  %v1287_v42 = vcombine.high %v1159_v62, %v1159_v62 }
 0x1d2   :  { %v1425_v11 = vmax.f32 %v1423_v33, %v1424_v48  ;;  %v1431_v41 = vrot.slane %v1430_v4, 2  ;;  %v1439_v55 = vmax.f32 %v1437_v43, %v1438_v32  ;;  %v1445_v34 = vrot.slane %v1444_v22, 2 }
 0x1d3   :  { %v1420_v20 = vmax.f32 %v1418_v9, %v1419_v7  ;;  %v1602_v26 = vsel %vm1593_vm6, %v1406_v58, %v1399_v29  ;;  %v1294_v18 = vrot.slane %v1159_v62, %v2597_v61  ;;  %v1301_v8 = vrot.slane %v1287_v42, %v2597_v61 }
 0x1d4   :  { %v1603_v36 = vsel %vm1595_vm7, %v1413_v54, %v1602_v26  ;;  %v1426_v12 = vrot.slane %v1425_v11, 1  ;;  %v1432_v47 = vmax.f32 %v1430_v4, %v1431_v41  ;;  %v1440_v19 = vrot.slane %v1439_v55, 1 }
 0x1d5   :  { %v1604_v15 = vsel %vm1597_vm8, %v1420_v20, %v1603_v36  ;;  %v1446_v31 = vmax.f32 %v1444_v22, %v1445_v34  ;;  %v1302_v14 = vcombine.high %v1294_v18, %v1294_v18  ;;  %v1303_v39 = vcombine.high %v1301_v8, %v1301_v8 }
 0x1d6   :  { %1631 = vst.msk [vmem:[%s2801_s3 + $0x8] sm:$0xf] %vm1628_vm9, %v1604_v15  ;;  %v1427_v25 = vmax.f32 %v1425_v11, %v1426_v12  ;;  %v1433_v45 = vrot.slane %v1432_v47, 1  ;;  %v1441_v62 = vmax.f32 %v1439_v55, %v1440_v19  ;;  %v1533_v37 = vsel %vm1336_vm5, %v1294_v18, -inf }
 0x1d7   :  { %v1447_v59 = vrot.slane %v1446_v31, 1  ;;  %v1534_v6 = vrot.slane %v1533_v37, 4  ;;  %v1540_v30 = vsel %vm1336_vm5, %v1302_v14, -inf  ;;  %v1547_v28 = vsel %vm1336_vm5, %v1301_v8, -inf }
 0x1d8   :  { %v1434_v53 = vmax.f32 %v1432_v47, %v1433_v45  ;;  %v1541_v38 = vrot.slane %v1540_v30, 4  ;;  %v1548_v52 = vrot.slane %v1547_v28, 4  ;;  %v1554_v0 = vsel %vm1336_vm5, %v1303_v39, -inf }
 0x1d9   :  { %v1448_v1 = vmax.f32 %v1446_v31, %v1447_v59  ;;  %v1535_v3 = vmax.f32 %v1533_v37, %v1534_v6  ;;  %v1555_v21 = vrot.slane %v1554_v0, 4  ;;  %v1270_v40 = vcombine.high %v2696_v35, %v2696_v35 }
 0x1da   :  { %v1605_v23 = vsel %vm1593_vm6, %v1434_v53, %v1427_v25  ;;  %v1542_v51 = vmax.f32 %v1540_v30, %v1541_v38  ;;  %v1549_v33 = vmax.f32 %v1547_v28, %v1548_v52  ;;  %v1277_v56 = vrot.slane %v2696_v35, %v2597_v61 }
 0x1db   :  { %v1606_v43 = vsel %vm1595_vm7, %v1441_v62, %v1605_v23  ;;  %v1536_v17 = vrot.slane %v1535_v3, 2  ;;  %v1556_v29 = vmax.f32 %v1554_v0, %v1555_v21  ;;  %v1284_v60 = vrot.slane %v1270_v40, %v2597_v61 }
 0x1dc   :  { %v1607_v16 = vsel %vm1597_vm8, %v1448_v1, %v1606_v43  ;;  %v1543_v9 = vrot.slane %v1542_v51, 2  ;;  %v1550_v48 = vrot.slane %v1549_v33, 2  ;;  %v1285_v4 = vcombine.high %v1277_v56, %v1277_v56 }
 0x1dd   :  { %1632 = vst.msk [vmem:[%s2801_s3 + $0xc] sm:$0xf] %vm1628_vm9, %v1607_v16  ;;  %v1537_v32 = vmax.f32 %v1535_v3, %v1536_v17  ;;  %v1557_v22 = vrot.slane %v1556_v29, 2  ;;  %v1286_v58 = vcombine.high %v1284_v60, %v1284_v60  ;;  %v1505_v35 = vsel %vm1336_vm5, %v1277_v56, -inf }
 0x1de   :  { %v1544_v54 = vmax.f32 %v1542_v51, %v1543_v9  ;;  %v1551_v7 = vmax.f32 %v1549_v33, %v1550_v48  ;;  %v1506_v42 = vrot.slane %v1505_v35, 4  ;;  %v1512_v11 = vsel %vm1336_vm5, %v1285_v4, -inf }
 0x1df   :  { %v1538_v41 = vrot.slane %v1537_v32, 1  ;;  %v1558_v55 = vmax.f32 %v1556_v29, %v1557_v22  ;;  %v1513_v34 = vrot.slane %v1512_v11, 4  ;;  %v1519_v20 = vsel %vm1336_vm5, %v1284_v60, -inf }
 0x1e0   :  { %v1545_v26 = vrot.slane %v1544_v54, 1  ;;  %v1552_v18 = vrot.slane %v1551_v7, 1  ;;  %v1507_v8 = vmax.f32 %v1505_v35, %v1506_v42  ;;  %v1520_v36 = vrot.slane %v1519_v20, 4 }
 0x1e1   :  { %v1539_v12 = vmax.f32 %v1537_v32, %v1538_v41  ;;  %v1559_v47 = vrot.slane %v1558_v55, 1  ;;  %v1514_v19 = vmax.f32 %v1512_v11, %v1513_v34  ;;  %v1526_v15 = vsel %vm1336_vm5, %v1286_v58, -inf }
 0x1e2   :  { %v1546_v31 = vmax.f32 %v1544_v54, %v1545_v26  ;;  %v1553_v14 = vmax.f32 %v1551_v7, %v1552_v18  ;;  %v1508_v39 = vrot.slane %v1507_v8, 2  ;;  %v1521_v25 = vmax.f32 %v1519_v20, %v1520_v36 }
 0x1e3   :  { %v1560_v45 = vmax.f32 %v1558_v55, %v1559_v47  ;;  %v1515_v62 = vrot.slane %v1514_v19, 2  ;;  %v1527_v37 = vrot.slane %v1526_v15, 4  ;;  %v993_v59 = vadd.f32 %v2689_v27, %v2591_v10 }
 0x1e4   :  { %v1617_v6 = vsel %vm1593_vm6, %v1546_v31, %v1539_v12  ;;  %v1509_v30 = vmax.f32 %v1507_v8, %v1508_v39  ;;  %v1522_v28 = vrot.slane %v1521_v25, 2  ;;  %v1713_v53 = vadd.f32 %v2671_v13, %v2665_v5 }
 0x1e5   :  { %v1618_v38 = vsel %vm1595_vm7, %v1553_v14, %v1617_v6  ;;  %v1516_v52 = vmax.f32 %v1514_v19, %v1515_v62  ;;  %v1528_v0 = vmax.f32 %v1526_v15, %v1527_v37  ;;  %v1090_v1 = vadd.f32 %v2641_v46, %v993_v59 }
 0x1e6   :  { %v1619_v3 = vsel %vm1597_vm8, %v1560_v45, %v1618_v38  ;;  %v1510_v21 = vrot.slane %v1509_v30, 1  ;;  %v1523_v40 = vmax.f32 %v1521_v25, %v1522_v28  ;;  %v996_v23 = vadd.f32 %v1713_v53, %v2591_v10 }
 0x1e7   :  { %1636 = vst.msk [vmem:[%s2801_s3 + $0x1c] sm:$0xf] %vm1628_vm9, %v1619_v3  ;;  %v1517_v27 = vrot.slane %v1516_v52, 1  ;;  %v1529_v51 = vrot.slane %v1528_v0, 2  ;;  %v1716_v5 = vadd.f32 %v2700_v44, %v2698_v57  ;;  %v1128_v33 = vmax.f32 %v1090_v1, 0.0 }
 0x1e8   :  { %v1524_v13 = vrot.slane %v1523_v40, 1  ;;  %v1093_v46 = vadd.f32 %v2646_v63, %v996_v23  ;;  %v1719_v56 = vadd.f32 %v2706_v49, %v2704_v2  ;;  %v1511_v43 = vmax.f32 %v1509_v30, %v1510_v21 }
 0x1e9   :  { %v1518_v17 = vmax.f32 %v1516_v52, %v1517_v27  ;;  %v1530_v29 = vmax.f32 %v1528_v0, %v1529_v51  ;;  %v1001_v60 = vadd.f32 %v1716_v5, %v2591_v10  ;;  %v1148_v63 = vsel %vm645_vm3, %v1128_v33, -inf }
 0x1ea   :  { %v1525_v16 = vmax.f32 %v1523_v40, %v1524_v13  ;;  %v1129_v9 = vmax.f32 %v1093_v46, 0.0  ;;  %v1004_v48 = vadd.f32 %v1719_v56, %v2591_v10 }
 0x1eb   :  { %v1531_v4 = vrot.slane %v1530_v29, 1  ;;  %v1614_v32 = vsel %vm1593_vm6, %v1518_v17, %v1511_v43  ;;  %v1098_v57 = vadd.f32 %v2639_v50, %v1001_v60 }
 0x1ec   :  { %v1615_v44 = vsel %vm1595_vm7, %v1525_v16, %v1614_v32  ;;  %v1149_v2 = vsel %vm645_vm3, %v1129_v9, -inf  ;;  %v1101_v49 = vadd.f32 %v2644_v24, %v1004_v48 }
 0x1ed   :  { %v1532_v22 = vmax.f32 %v1530_v29, %v1531_v4  ;;  %v1150_v58 = vmax.f32 %v1148_v63, %v1149_v2  ;;  %v1130_v35 = vmax.f32 %v1098_v57, 0.0 }
 0x1ee   :  { %v1131_v54 = vmax.f32 %v1101_v49, 0.0 }
 0x1ef   :  { %v1616_v7 = vsel %vm1597_vm8, %v1532_v22, %v1615_v44  ;;  %v1236_v10 = vcombine.high %v1150_v58, %v1150_v58  ;;  %v1243_v42 = vrot.slane %v1150_v58, %v2597_v61  ;;  %v1151_v50 = vsel %vm645_vm3, %v1130_v35, -inf }
 0x1f0   :  { %1635 = vst.msk [vmem:[%s2801_s3 + $0x18] sm:$0xf] %vm1628_vm9, %v1616_v7  ;;  %v1152_v11 = vsel %vm645_vm3, %v1131_v54, -inf }
 0x1f1   :  { %v1250_v24 = vrot.slane %v1236_v10, %v2597_v61  ;;  %v1251_v41 = vcombine.high %v1243_v42, %v1243_v42  ;;  %v1449_v55 = vsel %vm1336_vm5, %v1243_v42, -inf  ;;  %v1153_v34 = vmax.f32 %v1151_v50, %v1152_v11 }
 0x1f2   :  { %v1450_v20 = vrot.slane %v1449_v55, 4 }
 0x1f3   :  { %v1252_v26 = vcombine.high %v1250_v24, %v1250_v24  ;;  %v1456_v18 = vsel %vm1336_vm5, %v1251_v41, -inf  ;;  %v1463_v8 = vsel %vm1336_vm5, %v1250_v24, -inf  ;;  %v1253_v36 = vcombine.high %v1153_v34, %v1153_v34 }
 0x1f4   :  { %v1451_v12 = vmax.f32 %v1449_v55, %v1450_v20  ;;  %v1457_v47 = vrot.slane %v1456_v18, 4  ;;  %v1464_v19 = vrot.slane %v1463_v8, 4  ;;  %v1260_v15 = vrot.slane %v1153_v34, %v2597_v61 }
 0x1f5   :  { %v1470_v31 = vsel %vm1336_vm5, %v1252_v26, -inf  ;;  %v1267_v14 = vrot.slane %v1253_v36, %v2597_v61 }
 0x1f6   :  { %v1452_v39 = vrot.slane %v1451_v12, 2  ;;  %v1458_v25 = vmax.f32 %v1456_v18, %v1457_v47  ;;  %v1465_v45 = vmax.f32 %v1463_v8, %v1464_v19  ;;  %v1471_v62 = vrot.slane %v1470_v31, 4 }
 0x1f7   :  { %v1268_v37 = vcombine.high %v1260_v15, %v1260_v15  ;;  %v1269_v59 = vcombine.high %v1267_v14, %v1267_v14  ;;  %v1477_v6 = vsel %vm1336_vm5, %v1260_v15, -inf  ;;  %v1491_v30 = vsel %vm1336_vm5, %v1267_v14, -inf }
 0x1f8   :  { %v1453_v28 = vmax.f32 %v1451_v12, %v1452_v39  ;;  %v1459_v53 = vrot.slane %v1458_v25, 2  ;;  %v1466_v38 = vrot.slane %v1465_v45, 2  ;;  %v1472_v52 = vmax.f32 %v1470_v31, %v1471_v62 }
 0x1f9   :  { %v1478_v0 = vrot.slane %v1477_v6, 4  ;;  %v1484_v1 = vsel %vm1336_vm5, %v1268_v37, -inf  ;;  %v1492_v3 = vrot.slane %v1491_v30, 4  ;;  %v1498_v61 = vsel %vm1336_vm5, %v1269_v59, -inf }
 0x1fa   :  { %v1454_v21 = vrot.slane %v1453_v28, 1  ;;  %v1460_v40 = vmax.f32 %v1458_v25, %v1459_v53  ;;  %v1467_v23 = vmax.f32 %v1465_v45, %v1466_v38  ;;  %v1473_v27 = vrot.slane %v1472_v52, 2 }
 0x1fb   :  { %v1479_v51 = vmax.f32 %v1477_v6, %v1478_v0  ;;  %v1485_v5 = vrot.slane %v1484_v1, 4  ;;  %v1493_v13 = vmax.f32 %v1491_v30, %v1492_v3  ;;  %v1499_v33 = vrot.slane %v1498_v61, 4 }
 0x1fc   :  { %v1461_v46 = vrot.slane %v1460_v40, 1  ;;  %v1468_v56 = vrot.slane %v1467_v23, 1  ;;  %v1474_v43 = vmax.f32 %v1472_v52, %v1473_v27  ;;  %v1455_v9 = vmax.f32 %v1453_v28, %v1454_v21 }
 0x1fd   :  { %v1480_v17 = vrot.slane %v1479_v51, 2  ;;  %v1486_v29 = vmax.f32 %v1484_v1, %v1485_v5  ;;  %v1494_v60 = vrot.slane %v1493_v13, 2  ;;  %v1500_v16 = vmax.f32 %v1498_v61, %v1499_v33 }
 0x1fe   :  { %v1462_v48 = vmax.f32 %v1460_v40, %v1461_v46  ;;  %v1469_v4 = vmax.f32 %v1467_v23, %v1468_v56  ;;  %v1475_v32 = vrot.slane %v1474_v43, 1 }
 0x1ff   :  { %v1481_v57 = vmax.f32 %v1479_v51, %v1480_v17  ;;  %v1487_v44 = vrot.slane %v1486_v29, 2  ;;  %v1495_v63 = vmax.f32 %v1493_v13, %v1494_v60  ;;  %v1501_v2 = vrot.slane %v1500_v16, 2 }
 0x200   :  { %v1476_v49 = vmax.f32 %v1474_v43, %v1475_v32  ;;  %v1608_v22 = vsel %vm1593_vm6, %v1462_v48, %v1455_v9 }
 0x201   :  { %v1609_v58 = vsel %vm1595_vm7, %v1469_v4, %v1608_v22  ;;  %v1482_v35 = vrot.slane %v1481_v57, 1  ;;  %v1488_v54 = vmax.f32 %v1486_v29, %v1487_v44  ;;  %v1496_v7 = vrot.slane %v1495_v63, 1 }
 0x202   :  { %v1610_v10 = vsel %vm1597_vm8, %v1476_v49, %v1609_v58  ;;  %v1502_v42 = vmax.f32 %v1500_v16, %v1501_v2 }
 0x203   :  { %1633 = vst.msk [vmem:[%s2801_s3 + $0x10] sm:$0xf] %vm1628_vm9, %v1610_v10  ;;  %v1489_v50 = vrot.slane %v1488_v54, 1  ;;  %v1497_v11 = vmax.f32 %v1495_v63, %v1496_v7  ;;  %v1483_v41 = vmax.f32 %v1481_v57, %v1482_v35 }
 0x204   :  { %v1503_v24 = vrot.slane %v1502_v42, 1 }
 0x205   :  { %v1490_v55 = vmax.f32 %v1488_v54, %v1489_v50 }
 0x206   :  { %v1504_v34 = vmax.f32 %v1502_v42, %v1503_v24 }
 0x207   :  { %v1611_v20 = vsel %vm1593_vm6, %v1490_v55, %v1483_v41 }
 0x208   :  { %v1612_v26 = vsel %vm1595_vm7, %v1497_v11, %v1611_v20 }
 0x209   :  { %v1613_v18 = vsel %vm1597_vm8, %v1504_v34, %v1612_v26 }
 0x20a   :  { %1634 = vst.msk [vmem:[%s2801_s3 + $0x14] sm:$0xf] %vm1628_vm9, %v1613_v18 }

// kernel: simple_cnn_forward.6
= control target key start
LH: loop header
LB: loop body
LE: loop exit
PB: predicated region body
PF: predicated region fallthrough
CT: control target
= control target key end

     0   :  { %vm15_vm0 = vcmask 521216   ;;  %vm21_vm1 = vcmask 516096   ;;  %vm55_vm2 = vcmask 519168   ;;  %v1179_v0 = vmov 0.0   ;;  %s1180_s8 = smov 64   ;;  %s1477_s0 = inlined_call_operand.vmem [shape: f32[2,4,4,64], index: 0, kind: input, shape index: {}]   ;;  %s1478_s1 = inlined_call_operand.vmem [shape: bf16[576,128], index: 1, kind: input, shape index: {}]   ;;  %s1479_s2 = inlined_call_operand.vmem [shape: f32[1,128], index: 2, kind: input, shape index: {}]   ;;  %s1480_s3 = inlined_call_operand.vmem [shape: f32[2,2,2,128], index: 3, kind: output, shape index: {}]  }
   0x1   :  { %16 = vst.msk [vmem:[#allocation2] sm:$0x3f] %vm15_vm0, %v1179_v0  ;;  %17 = vst.msk [vmem:[#allocation2 + $0x30] sm:$0x3f] %vm15_vm0, %v1179_v0  ;;  %v48_v1 = vld [vmem:[%s1477_s0 + $0x8] sm:$0xf] }
   0x2   :  { %19 = vst.msk [vmem:[#allocation2 + $0x28] sm:$0x3f] %vm15_vm0, %v1179_v0  ;;  %20 = vst.msk [vmem:[#allocation2 + $0x58] sm:$0x3f] %vm15_vm0, %v1179_v0  ;;  %v46_v2 = vld [vmem:[%s1477_s0] sm:$0xf] }
   0x3   :  { %25 = vst.msk [vmem:[#allocation2 + $0x18] sm:$0x1] %vm21_vm1, %v1179_v0  ;;  %23 = vst.msk [vmem:[#allocation2 + $0x8] sm:$0x1] %vm21_vm1, %v1179_v0  ;;  %v49_v3 = vld [vmem:[%s1477_s0 + $0xc] sm:$0xf] }
   0x4   :  { %24 = vst.msk [vmem:[#allocation2 + $0x10] sm:$0x1] %vm21_vm1, %v1179_v0  ;;  %26 = vst.msk [vmem:[#allocation2 + $0x20] sm:$0x1] %vm21_vm1, %v1179_v0  ;;  %v47_v4 = vld [vmem:[%s1477_s0 + $0x4] sm:$0xf] }
   0x5   :  { %29 = vst.msk [vmem:[#allocation2 + $0x38] sm:$0x1] %vm21_vm1, %v1179_v0  ;;  %30 = vst.msk [vmem:[#allocation2 + $0x40] sm:$0x1] %vm21_vm1, %v1179_v0  ;;  %v50_v5 = vld [vmem:[%s1477_s0 + $0x10] sm:$0xf] }
   0x6   :  { %31 = vst.msk [vmem:[#allocation2 + $0x48] sm:$0x1] %vm21_vm1, %v1179_v0  ;;  %32 = vst.msk [vmem:[#allocation2 + $0x50] sm:$0x1] %vm21_vm1, %v1179_v0  ;;  %v51_v6 = vld [vmem:[%s1477_s0 + $0x14] sm:$0xf] }
   0x7   :  { %35 = vst.msk [vmem:[#allocation2 + $0xd] sm:$0x1] %vm21_vm1, %v1179_v0  ;;  %36 = vst.msk [vmem:[#allocation2 + $0x15] sm:$0x1] %vm21_vm1, %v1179_v0  ;;  %v52_v7 = vld [vmem:[%s1477_s0 + $0x18] sm:$0xf] }
   0x8   :  { %37 = vst.msk [vmem:[#allocation2 + $0x1d] sm:$0x1] %vm21_vm1, %v1179_v0  ;;  %38 = vst.msk [vmem:[#allocation2 + $0x25] sm:$0x1] %vm21_vm1, %v1179_v0  ;;  %v53_v8 = vld [vmem:[%s1477_s0 + $0x1c] sm:$0xf] }
   0x9   :  { %41 = vst.msk [vmem:[#allocation2 + $0x3d] sm:$0x1] %vm21_vm1, %v1179_v0  ;;  %42 = vst.msk [vmem:[#allocation2 + $0x45] sm:$0x1] %vm21_vm1, %v1179_v0  ;;  %v1139_v9 = vld [vmem:[%s1478_s1 + $0x40] sm:$0xff]   ;;  %v1141_v11 = vld [vmem:[%s1478_s1 + $0x48] sm:$0xff]  }
   0xa   :  { %43 = vst.msk [vmem:[#allocation2 + $0x4d] sm:$0x1] %vm21_vm1, %v1179_v0  ;;  %44 = vst.msk [vmem:[#allocation2 + $0x55] sm:$0x1] %vm21_vm1, %v1179_v0  ;;  %v1140_v10 = vld [vmem:[%s1478_s1] sm:$0xff]   ;;  %1062 = vmatprep.subr.bf16.mxu0 %v1139_v9  ;;  %v1142_v12 = vld [vmem:[%s1478_s1 + $0x8] sm:$0xff]  }
   0xb   :  { %58 = vst.msk [vmem:[#allocation2 + $0x19] sm:$0xf] %vm55_vm2, %v48_v1  ;;  %56 = vst.msk [vmem:[#allocation2 + $0x9] sm:$0xf] %vm55_vm2, %v46_v2  ;;  %1063 = vmatpush3.bf16.msra.mxu0 %v1140_v10  ;;  %v72_v13 = vld [vmem:[#allocation2 + $0x1] sm:$0xf] }
   0xc   :  { %22 = vst.msk [vmem:[#allocation2] sm:$0x1] %vm21_vm1, %v1179_v0  ;;  %27 = vst.msk [vmem:[#allocation2 + $0x28] sm:$0x1] %vm21_vm1, %v1179_v0  ;;  %1064 = vmatprep.subr.bf16.mxu0 %v1141_v11  ;;  %145 = vrot.lane.b32.xlu0 %v72_v13, %s1180_s8  ;;  %v1143_v21 = vld [vmem:[%s1478_s1 + $0x50] sm:$0xff]   ;;  %v1145_v24 = vld [vmem:[%s1478_s1 + $0x58] sm:$0xff]  }
   0xd   :  { %28 = vst.msk [vmem:[#allocation2 + $0x30] sm:$0x1] %vm21_vm1, %v1179_v0  ;;  %33 = vst.msk [vmem:[#allocation2 + $0x58] sm:$0x1] %vm21_vm1, %v1179_v0  ;;  %v1144_v22 = vld [vmem:[%s1478_s1 + $0x10] sm:$0xff]   ;;  %v1146_v26 = vld [vmem:[%s1478_s1 + $0x18] sm:$0xff]  }
   0xe   :  { %34 = vst.msk [vmem:[#allocation2 + $0x5] sm:$0x1] %vm21_vm1, %v1179_v0  ;;  %39 = vst.msk [vmem:[#allocation2 + $0x2d] sm:$0x1] %vm21_vm1, %v1179_v0  ;;  %v1147_v27 = vld [vmem:[%s1478_s1 + $0x60] sm:$0xff]   ;;  %v1151_v34 = vld [vmem:[%s1478_s1 + $0x68] sm:$0xff]  }
   0xf   :  { %40 = vst.msk [vmem:[#allocation2 + $0x35] sm:$0x1] %vm21_vm1, %v1179_v0  ;;  %45 = vst.msk [vmem:[#allocation2 + $0x5d] sm:$0x1] %vm21_vm1, %v1179_v0  ;;  %1065 = vmatpush3.bf16.msra.mxu0 %v1142_v12  ;;  %v1148_v29 = vld [vmem:[%s1478_s1 + $0xc0] sm:$0xff]   ;;  %v1152_v35 = vld [vmem:[%s1478_s1 + $0xc8] sm:$0xff]  }
  0x10   :  { %59 = vst.msk [vmem:[#allocation2 + $0x21] sm:$0xf] %vm55_vm2, %v49_v3  ;;  %57 = vst.msk [vmem:[#allocation2 + $0x11] sm:$0xf] %vm55_vm2, %v47_v4  ;;  %1066 = vmatprep.subr.bf16.mxu0 %v1143_v21  ;;  %v1149_v30 = vld [vmem:[%s1478_s1 + $0x20] sm:$0xff]   ;;  %1090 = vmatprep.subr.bf16.mxu1 %v1148_v29  ;;  %v1153_v36 = vld [vmem:[%s1478_s1 + $0x28] sm:$0xff]  }
  0x11   :  { %60 = vst.msk [vmem:[#allocation2 + $0x39] sm:$0xf] %vm55_vm2, %v50_v5  ;;  %61 = vst.msk [vmem:[#allocation2 + $0x41] sm:$0xf] %vm55_vm2, %v51_v6  ;;  %v1150_v31 = vld [vmem:[%s1478_s1 + $0x80] sm:$0xff]   ;;  %v1154_v38 = vld [vmem:[%s1478_s1 + $0x88] sm:$0xff]  }
  0x12   :  { %62 = vst.msk [vmem:[#allocation2 + $0x49] sm:$0xf] %vm55_vm2, %v52_v7  ;;  %63 = vst.msk [vmem:[#allocation2 + $0x51] sm:$0xf] %vm55_vm2, %v53_v8  ;;  %v90_v14 = vld [vmem:[#allocation2 + $0x18] sm:$0xf]  ;;  %1091 = vmatpush3.bf16.msra.mxu1 %v1150_v31 }
  0x13   :  { %181 = vrot.lane.b32.xlu1 %v90_v14, %s1180_s8  ;;  %v88_v15 = vld [vmem:[#allocation2 + $0x8] sm:$0xf]  ;;  %v75_v20 = vld [vmem:[#allocation2 + $0x19] sm:$0xf]  ;;  %1067 = vmatpush3.bf16.msra.mxu0 %v1144_v22  ;;  %v1155_v41 = vld [vmem:[%s1478_s1 + $0x70] sm:$0xff]   ;;  %vm265_vm3 = vcmask 523264  }
  0x14   :  { %177 = vrot.lane.b32.xlu0 %v88_v15, %s1180_s8  ;;  %v73_v18 = vld [vmem:[#allocation2 + $0x9] sm:$0xf]  ;;  %v122_v25 = vld [vmem:[#allocation2 + $0x19] sm:$0xf]  ;;  %1068 = vmatprep.subr.bf16.mxu0 %v1145_v24  ;;  %v1156_v42 = vld [vmem:[%s1478_s1 + $0xd0] sm:$0xff]   ;;  %vm868_vm4 = vcmask 1043456  }
  0x15   :  { %v124_v32 = vld [vmem:[#allocation2 + $0x29] sm:$0xf]  ;;  %1092 = vmatprep.subr.bf16.mxu1 %v1152_v35  ;;  %v106_v39 = vld [vmem:[#allocation2 + $0x1a] sm:$0xf]  ;;  %v1157_v43 = vld [vmem:[%s1478_s1 + $0x30] sm:$0xff]   ;;  %vm925_vm5 = vcmask 1041408  }
  0x16   :  { %v104_v33 = vld [vmem:[#allocation2 + $0xa] sm:$0xf]  ;;  %1093 = vmatpush3.bf16.msra.mxu1 %v1154_v38  ;;  %v1158_v45 = vld [vmem:[%s1478_s1 + $0x90] sm:$0xff]   ;;  %v1159_v47 = vld [vmem:[%s1478_s1 + $0x78] sm:$0xff]   ;;  %vm990_vm6 = vcmask 1041409  }
  0x17   :  { %v91_v16 = vld [vmem:[#allocation2 + $0x20] sm:$0xf]  ;;  %v89_v17 = vld [vmem:[#allocation2 + $0x10] sm:$0xf]  ;;  %1069 = vmatpush3.bf16.msra.mxu0 %v1146_v26  ;;  %1094 = vmatprep.subr.bf16.mxu1 %v1156_v42  ;;  %v1160_v48 = vld [vmem:[%s1478_s1 + $0xd8] sm:$0xff]  }
  0x18   :  { %183 = vrot.lane.b32.xlu1 %v91_v16, %s1180_s8  ;;  %179 = vrot.lane.b32.xlu0 %v89_v17, %s1180_s8  ;;  %v74_v19 = vld [vmem:[#allocation2 + $0x11] sm:$0xf]  ;;  %v123_v28 = vld [vmem:[#allocation2 + $0x21] sm:$0xf]  ;;  %v92_v44 = vld [vmem:[#allocation2 + $0x38] sm:$0xf] }
  0x19   :  { %v121_v23 = vld [vmem:[#allocation2 + $0x11] sm:$0xf]  ;;  %1070 = vmatprep.subr.bf16.mxu0 %v1147_v27  ;;  %v107_v40 = vld [vmem:[#allocation2 + $0x22] sm:$0xf]  ;;  %v1161_v49 = vld [vmem:[%s1478_s1 + $0x38] sm:$0xff]  }
  0x1a   :  { %v105_v37 = vld [vmem:[#allocation2 + $0x12] sm:$0xf]  ;;  %v93_v46 = vld [vmem:[#allocation2 + $0x40] sm:$0xf]  ;;  %1095 = vmatpush3.bf16.msra.mxu1 %v1158_v45  ;;  %v1162_v50 = vld [vmem:[%s1478_s1 + $0x98] sm:$0xff]  }
  0x1b   :  { %1071 = vmatpush3.bf16.msra.mxu0 %v1149_v30  ;;  %1096 = vmatprep.subr.bf16.mxu1 %v1160_v48  ;;  %v94_v51 = vld [vmem:[#allocation2 + $0x48] sm:$0xf]  ;;  %v1163_v52 = vld [vmem:[%s1478_s1 + $0xe0] sm:$0xff]   ;;  %v95_v53 = vld [vmem:[#allocation2 + $0x50] sm:$0xf] }
  0x1c   :  { %147 = vrot.lane.b32.xlu1 %v73_v18, %s1180_s8  ;;  %149 = vrot.lane.b32.xlu0 %v74_v19, %s1180_s8  ;;  %v1164_v54 = vld [vmem:[%s1478_s1 + $0xa0] sm:$0xff]   ;;  %v1165_v55 = vld [vmem:[%s1478_s1 + $0xe8] sm:$0xff]   ;;  %v76_v56 = vld [vmem:[#allocation2 + $0x31] sm:$0xf] }
  0x1d   :  { %1072 = vmatprep.subr.bf16.mxu0 %v1151_v34  ;;  %v77_v57 = vld [vmem:[#allocation2 + $0x39] sm:$0xf]  ;;  %v1166_v58 = vld [vmem:[%s1478_s1 + $0xa8] sm:$0xff]   ;;  %v1167_v59 = vld [vmem:[%s1478_s1 + $0xf0] sm:$0xff]  }
  0x1e   :  { %1097 = vmatpush3.bf16.msra.mxu1 %v1162_v50  ;;  %v78_v60 = vld [vmem:[#allocation2 + $0x41] sm:$0xf]  ;;  %v79_v61 = vld [vmem:[#allocation2 + $0x49] sm:$0xf]  ;;  %v1168_v62 = vld [vmem:[%s1478_s1 + $0xb0] sm:$0xff]  }
  0x1f   :  { %1073 = vmatpush3.bf16.msra.mxu0 %v1153_v36  ;;  %1098 = vmatprep.subr.bf16.mxu1 %v1163_v52  ;;  %v1169_v63 = vld [vmem:[%s1478_s1 + $0xf8] sm:$0xff]   ;;  %v125_v0 = vld [vmem:[#allocation2 + $0x41] sm:$0xf]  ;;  %v126_v1 = vld [vmem:[#allocation2 + $0x49] sm:$0xf] }
  0x20   :  { %151 = vrot.lane.b32.xlu1 %v75_v20, %s1180_s8  ;;  %241 = vrot.lane.b32.xlu0 %v121_v23, %s1180_s8  ;;  %v1378_v2 = vld [vmem:[%s1478_s1 + $0x100] sm:$0xff]   ;;  %v1170_v3 = vld [vmem:[%s1478_s1 + $0xb8] sm:$0xff]   ;;  %v127_v4 = vld [vmem:[#allocation2 + $0x51] sm:$0xf] }
  0x21   :  { %1074 = vmatprep.subr.bf16.mxu0 %v1155_v41  ;;  %v128_v5 = vld [vmem:[#allocation2 + $0x59] sm:$0xf]  ;;  %v109_v7 = vld [vmem:[#allocation2 + $0x42] sm:$0xf]  ;;  %v110_v8 = vld [vmem:[#allocation2 + $0x4a] sm:$0xf] }
  0x22   :  { %1099 = vmatpush3.bf16.msra.mxu1 %v1164_v54  ;;  %v108_v6 = vld [vmem:[#allocation2 + $0x3a] sm:$0xf]  ;;  %v111_v9 = vld [vmem:[#allocation2 + $0x52] sm:$0xf]  ;;  %v80_v16 = vld [vmem:[#allocation2 + $0x2] sm:$0xf] }
  0x23   :  { %1075 = vmatpush3.bf16.msra.mxu0 %v1157_v43  ;;  %1100 = vmatprep.subr.bf16.mxu1 %v1165_v55  ;;  %v83_v13 = vld [vmem:[#allocation2 + $0x1a] sm:$0xf]  ;;  %v82_v15 = vld [vmem:[#allocation2 + $0x12] sm:$0xf]  ;;  %v81_v17 = vld [vmem:[#allocation2 + $0xa] sm:$0xf] }
  0x24   :  { %243 = vrot.lane.b32.xlu1 %v122_v25, %s1180_s8  ;;  %245 = vrot.lane.b32.xlu0 %v123_v28, %s1180_s8  ;;  %v65_v24 = vld [vmem:[#allocation2 + $0x8] sm:$0xf]  ;;  %v66_v25 = vld [vmem:[#allocation2 + $0x10] sm:$0xf]  ;;  %v64_v28 = vld [vmem:[#allocation2] sm:$0xf] }
  0x25   :  { %1076 = vmatprep.subr.bf16.mxu0 %v1159_v47  ;;  %v67_v29 = vld [vmem:[#allocation2 + $0x18] sm:$0xf]  ;;  %v115_v45 = vld [vmem:[#allocation2 + $0x20] sm:$0xf]  ;;  %v1173_v52 = vld [vmem:[%s1478_s1 + $0x110] sm:$0xff]  }
  0x26   :  { %1101 = vmatpush3.bf16.msra.mxu1 %v1166_v58  ;;  %v114_v41 = vld [vmem:[#allocation2 + $0x18] sm:$0xf]  ;;  %v97_v58 = vld [vmem:[#allocation2 + $0x11] sm:$0xf] }
  0x27   :  { %1077 = vmatpush3.bf16.msra.mxu0 %v1161_v49  ;;  %1102 = vmatprep.subr.bf16.mxu1 %v1167_v59 }
  0x28   :  { %247 = vrot.lane.b32.xlu1 %v124_v32, %s1180_s8  ;;  %209 = vrot.lane.b32.xlu0 %v104_v33, %s1180_s8 }
  0x29   :  { %1124 = vmatprep.subr.bf16.mxu0 %v1378_v2 }
  0x2a   :  { %1103 = vmatpush3.bf16.msra.mxu1 %v1168_v62  ;;  %v98_v62 = vld [vmem:[#allocation2 + $0x19] sm:$0xf] }
  0x2b   :  { %1104 = vmatprep.subr.bf16.mxu1 %v1169_v63  ;;  %v99_v63 = vld [vmem:[#allocation2 + $0x21] sm:$0xf] }
  0x2c   :  { %211 = vrot.lane.b32.xlu1 %v105_v37, %s1180_s8  ;;  %213 = vrot.lane.b32.xlu0 %v106_v39, %s1180_s8 }
  0x2e   :  { %1105 = vmatpush3.bf16.msra.mxu1 %v1170_v3 }
  0x30   :  { %215 = vrot.lane.b32.xlu1 %v107_v40, %s1180_s8  ;;  %185 = vrot.lane.b32.xlu0 %v92_v44, %s1180_s8  ;;  %v113_v40 = vld [vmem:[#allocation2 + $0x10] sm:$0xf]  ;;  %v1172_v44 = vld [vmem:[%s1478_s1 + $0x108] sm:$0xff]  }
  0x34   :  { %187 = vrot.lane.b32.xlu1 %v93_v46, %s1180_s8  ;;  %189 = vrot.lane.b32.xlu0 %v94_v51, %s1180_s8  ;;  %v116_v46 = vld [vmem:[#allocation2 + $0x28] sm:$0xf] }
  0x38   :  { %191 = vrot.lane.b32.xlu1 %v95_v53, %s1180_s8  ;;  %153 = vrot.lane.b32.xlu0 %v76_v56, %s1180_s8 }
  0x3c   :  { %155 = vrot.lane.b32.xlu1 %v77_v57, %s1180_s8  ;;  %157 = vrot.lane.b32.xlu0 %v78_v60, %s1180_s8  ;;  %v96_v57 = vld [vmem:[#allocation2 + $0x9] sm:$0xf] }
  0x40   :  { %159 = vrot.lane.b32.xlu1 %v79_v61, %s1180_s8  ;;  %249 = vrot.lane.b32.xlu0 %v125_v0, %s1180_s8  ;;  %v1174_v61 = vld [vmem:[%s1478_s1 + $0x118] sm:$0xff]  }
  0x44   :  { %251 = vrot.lane.b32.xlu1 %v126_v1, %s1180_s8  ;;  %253 = vrot.lane.b32.xlu0 %v127_v4, %s1180_s8 }
  0x48   :  { %255 = vrot.lane.b32.xlu1 %v128_v5, %s1180_s8  ;;  %217 = vrot.lane.b32.xlu0 %v108_v6, %s1180_s8 }
  0x4c   :  { %219 = vrot.lane.b32.xlu1 %v109_v7, %s1180_s8  ;;  %221 = vrot.lane.b32.xlu0 %v110_v8, %s1180_s8 }
  0x50   :  { %223 = vrot.lane.b32.xlu1 %v111_v9, %s1180_s8  ;;  %v84_v9 = vld [vmem:[#allocation2 + $0x32] sm:$0xf] }
  0x7e   :  { %v146_v10 = vpop.permute.xlu0 %145 }
  0x7f   :  { %v266_v35 = vsel %vm265_vm3, %v64_v28, %v146_v10  ;;  %v85_v10 = vld [vmem:[#allocation2 + $0x3a] sm:$0xf]  ;;  %v70_v28 = vld [vmem:[#allocation2 + $0x40] sm:$0xf] }
  0x85   :  { %v182_v11 = vpop.permute.xlu1 %181 }
  0x86   :  { %v178_v12 = vpop.permute.xlu0 %177  ;;  %v276_v20 = vsel %vm265_vm3, %v82_v15, %v182_v11 }
  0x87   :  { %v274_v21 = vsel %vm265_vm3, %v80_v16, %v178_v12 }
  0x8a   :  { %v184_v14 = vpop.permute.xlu1 %183  ;;  %v180_v19 = vpop.permute.xlu0 %179 }
  0x8b   :  { %v277_v18 = vsel %vm265_vm3, %v83_v13, %v184_v14  ;;  %v275_v22 = vsel %vm265_vm3, %v81_v17, %v180_v19  ;;  %v86_v13 = vld [vmem:[#allocation2 + $0x42] sm:$0xf]  ;;  %v87_v14 = vld [vmem:[#allocation2 + $0x4a] sm:$0xf] }
  0x8c   :  { %v1008_v26 = vcombine.low %v274_v21, %v275_v22  ;;  %v1012_v27 = vcombine.low %v276_v20, %v277_v18 }
  0x8e   :  { %v148_v23 = vpop.permute.xlu1 %147  ;;  %v150_v31 = vpop.permute.xlu0 %149  ;;  %v395_v32 = vpack.c.bf16 %v1012_v27, %v1008_v26 }
  0x8f   :  { %v267_v30 = vsel %vm265_vm3, %v65_v24, %v148_v23  ;;  %v268_v33 = vsel %vm265_vm3, %v66_v25, %v150_v31  ;;  %v68_v24 = vld [vmem:[#allocation2 + $0x30] sm:$0xf]  ;;  %v69_v25 = vld [vmem:[#allocation2 + $0x38] sm:$0xf] }
  0x90   :  { %737 = vmatprep.mubr.bf16.mxu0 %v395_v32  ;;  %v1007_v37 = vcombine.low %v266_v35, %v267_v30 }
  0x92   :  { %v152_v34 = vpop.permute.xlu1 %151  ;;  %v242_v39 = vpop.permute.xlu0 %241 }
  0x93   :  { %v269_v36 = vsel %vm265_vm3, %v67_v29, %v152_v34  ;;  %v290_v47 = vsel %vm265_vm3, %v113_v40, %v242_v39  ;;  %v71_v29 = vld [vmem:[#allocation2 + $0x48] sm:$0xf] }
  0x94   :  { %v1011_v38 = vcombine.low %v268_v33, %v269_v36  ;;  %v1175_v33 = vld [vmem:[#allocation2 + $0x12] ss:$8 sps:$4 sm:$0xff]   ;;  %v1176_v34 = vld [vmem:[#allocation2 + $0x22] ss:$8 sps:$4 sm:$0xff]  }
  0x96   :  { %v244_v42 = vpop.permute.xlu1 %243  ;;  %v394_v43 = vpack.c.bf16 %v1011_v38, %v1007_v37  ;;  %v246_v49 = vpop.permute.xlu0 %245 }
  0x97   :  { %v291_v48 = vsel %vm265_vm3, %v114_v41, %v244_v42  ;;  %v292_v50 = vsel %vm265_vm3, %v115_v45, %v246_v49  ;;  %v398_v41 = vpack.c.bf16 %v1176_v34, %v1175_v33  ;;  %v117_v42 = vld [vmem:[#allocation2 + $0x40] sm:$0xf]  ;;  %v1178_v49 = vld [vmem:[#allocation2 + $0x52] ss:$8 sps:$4 sm:$0xff]   ;;  %v1181_v34 = vmov 1983009808  }
  0x98   :  { %738 = vmatmul.mubr.bf16.vlgmr.msra.gmra.mrb[0].mxu0 %v394_v43  ;;  %v1010_v54 = vcombine.low %v290_v47, %v291_v48  ;;  %v118_v43 = vld [vmem:[#allocation2 + $0x48] sm:$0xf]  ;;  %v120_v47 = vld [vmem:[#allocation2 + $0x58] sm:$0xf] }
  0x99   :  { %1125 = vmatpush3.bf16.msra.mxu0 %v1378_v2  ;;  %v1177_v48 = vld [vmem:[#allocation2 + $0x42] ss:$8 sps:$4 sm:$0xff]  }
  0x9a   :  { %v248_v51 = vpop.permute.xlu1 %247  ;;  %1126 = vmatprep.subr.bf16.mxu0 %v1172_v44  ;;  %v210_v56 = vpop.permute.xlu0 %209 }
  0x9b   :  { %v293_v53 = vsel %vm265_vm3, %v116_v46, %v248_v51  ;;  %v282_v0 = vsel %vm265_vm3, %v96_v57, %v210_v56  ;;  %v119_v46 = vld [vmem:[#allocation2 + $0x50] sm:$0xf] }
  0x9c   :  { %v1014_v55 = vcombine.low %v292_v50, %v293_v53 }
  0x9d   :  { %1127 = vmatpush3.bf16.msra.mxu0 %v1172_v44 }
  0x9e   :  { %v212_v59 = vpop.permute.xlu1 %211  ;;  %v397_v60 = vpack.c.bf16 %v1014_v55, %v1010_v54  ;;  %1128 = vmatprep.subr.bf16.mxu0 %v1173_v52  ;;  %v214_v2 = vpop.permute.xlu0 %213 }
  0x9f   :  { %v283_v1 = vsel %vm265_vm3, %v97_v58, %v212_v59  ;;  %v284_v3 = vsel %vm265_vm3, %v98_v62, %v214_v2  ;;  %v403_v58 = vpack.c.bf16 %v1178_v49, %v1177_v48 }
  0xa0   :  { %786 = vmatprep.mubr.bf16.mxu1 %v397_v60  ;;  %v1009_v6 = vcombine.low %v282_v0, %v283_v1  ;;  %v100_v60 = vld [vmem:[#allocation2 + $0x39] sm:$0xf]  ;;  %v102_v0 = vld [vmem:[#allocation2 + $0x49] sm:$0xf]  ;;  %v103_v1 = vld [vmem:[#allocation2 + $0x51] sm:$0xf] }
  0xa1   :  { %1129 = vmatpush3.bf16.msra.mxu0 %v1173_v52 }
  0xa2   :  { %v216_v4 = vpop.permute.xlu1 %215  ;;  %1130 = vmatprep.subr.bf16.mxu0 %v1174_v61  ;;  %v186_v8 = vpop.permute.xlu0 %185 }
  0xa3   :  { %v285_v5 = vsel %vm265_vm3, %v99_v63, %v216_v4  ;;  %v278_v15 = vsel %vm265_vm3, %v84_v9, %v186_v8 }
  0xa4   :  { %v1013_v7 = vcombine.low %v284_v3, %v285_v5 }
  0xa5   :  { %1131 = vmatpush3.bf16.msra.mxu0 %v1174_v61  ;;  %v101_v61 = vld [vmem:[#allocation2 + $0x41] sm:$0xf] }
  0xa6   :  { %v188_v11 = vpop.permute.xlu1 %187  ;;  %v396_v12 = vpack.c.bf16 %v1013_v7, %v1009_v6  ;;  %v190_v17 = vpop.permute.xlu0 %189 }
  0xa7   :  { %v279_v16 = vsel %vm265_vm3, %v85_v10, %v188_v11  ;;  %v280_v18 = vsel %vm265_vm3, %v86_v13, %v190_v17  ;;  %v1023_v17 = vld [vmem:[%s1479_s2] ss:$0 sm:$0xff] }
  0xa8   :  { %787 = vmatmul.mubr.bf16.vlgmr.msra.gmra.mrb[0].mxu1 %v396_v12  ;;  %v1016_v21 = vcombine.low %v278_v15, %v279_v16 }
  0xaa   :  { %v192_v19 = vpop.permute.xlu1 %191  ;;  %v154_v23 = vpop.permute.xlu0 %153 }
  0xab   :  { %v281_v20 = vsel %vm265_vm3, %v87_v14, %v192_v19  ;;  %v270_v30 = vsel %vm265_vm3, %v68_v24, %v154_v23 }
  0xac   :  { %v1020_v22 = vcombine.low %v280_v18, %v281_v20 }
  0xae   :  { %v156_v26 = vpop.permute.xlu1 %155  ;;  %v400_v27 = vpack.c.bf16 %v1020_v22, %v1016_v21  ;;  %v158_v32 = vpop.permute.xlu0 %157 }
  0xaf   :  { %v271_v31 = vsel %vm265_vm3, %v69_v25, %v156_v26  ;;  %v272_v35 = vsel %vm265_vm3, %v70_v28, %v158_v32 }
  0xb0   :  { %745 = vmatprep.mubr.bf16.mxu0 %v400_v27  ;;  %v1015_v38 = vcombine.low %v270_v30, %v271_v31 }
  0xb2   :  { %v160_v36 = vpop.permute.xlu1 %159  ;;  %v250_v40 = vpop.permute.xlu0 %249 }
  0xb3   :  { %v273_v37 = vsel %vm265_vm3, %v71_v29, %v160_v36  ;;  %v294_v50 = vsel %vm265_vm3, %v117_v42, %v250_v40  ;;  %v888_v36 = vlaneseq }
  0xb4   :  { %v1019_v39 = vcombine.low %v272_v35, %v273_v37  ;;  %v886_v35 = vunpack.c.l.s4 %v1181_v34 }
  0xb5   :  { %v889_v42 = vshrl.u32 %v888_v36, 7 }
  0xb6   :  { %v252_v44 = vpop.permute.xlu1 %251  ;;  %v399_v45 = vpack.c.bf16 %v1019_v39, %v1015_v38  ;;  %v254_v52 = vpop.permute.xlu0 %253 }
  0xb7   :  { %v295_v51 = vsel %vm265_vm3, %v118_v43, %v252_v44  ;;  %v296_v53 = vsel %vm265_vm3, %v119_v46, %v254_v52 }
  0xb8   :  { %746 = vmatmul.mubr.bf16.gmra.mrb[4].mxu0 %v399_v45  ;;  %v1018_v56 = vcombine.low %v294_v50, %v295_v51 }
  0xb9   :  { %1132 = vmatprep.mubr.msk.bf16.mxu0 %vm265_vm3, %v398_v41  ;;  %v887_v41 = vunpack.c.0.s8 %v886_v35 }
  0xba   :  { %v256_v54 = vpop.permute.xlu1 %255  ;;  %v218_v59 = vpop.permute.xlu0 %217 }
  0xbb   :  { %v297_v55 = vsel %vm265_vm3, %v120_v47, %v256_v54  ;;  %v286_v2 = vsel %vm265_vm3, %v100_v60, %v218_v59  ;;  %v1439_v48 = vsub.s32 %v887_v41, %v889_v42 }
  0xbc   :  { %v1022_v57 = vcombine.low %v296_v53, %v297_v55 }
  0xbe   :  { %v220_v62 = vpop.permute.xlu1 %219  ;;  %v402_v63 = vpack.c.bf16 %v1022_v57, %v1018_v56  ;;  %v222_v4 = vpop.permute.xlu0 %221 }
  0xbf   :  { %v287_v3 = vsel %vm265_vm3, %v101_v61, %v220_v62  ;;  %v288_v5 = vsel %vm265_vm3, %v102_v0, %v222_v4 }
  0xc0   :  { %794 = vmatprep.mubr.bf16.mxu1 %v402_v63  ;;  %1133 = vmatmul.mubr.msk.bf16.vlgmr.msra.gmra.mrb[8].mxu0 %vm265_vm3, %v403_v58  ;;  %v1017_v8 = vcombine.low %v286_v2, %v287_v3 }
  0xc2   :  { %v224_v6 = vpop.permute.xlu1 %223 }
  0xc3   :  { %v289_v7 = vsel %vm265_vm3, %v103_v1, %v224_v6 }
  0xc4   :  { %v1021_v9 = vcombine.low %v288_v5, %v289_v7 }
  0xc6   :  { %v401_v10 = vpack.c.bf16 %v1021_v9, %v1017_v8 }
  0xc8   :  { %795 = vmatmul.mubr.bf16.gmra.mrb[4].mxu1 %v401_v10 }
 0x16b   :  { %v1078_v11 = vpop.f32.mrb[0].mxu0 }
 0x16c   :  { %v1079_v12 = vpop.f32.mrb[1].mxu0 }
 0x16d   :  { %v1080_v13 = vadd.f32 %v1079_v12, %v1078_v11  ;;  %v1081_v14 = vpop.f32.mrb[2].mxu0 }
 0x16e   :  { %v1082_v15 = vpop.f32.mrb[3].mxu0 }
 0x16f   :  { %v1083_v16 = vadd.f32 %v1082_v15, %v1081_v14  ;;  %v740_v20 = vadd.f32 %v1080_v13, %v1023_v17 }
 0x171   :  { %v743_v24 = vadd.f32 %v1083_v16, %v1023_v17 }
 0x17b   :  { %v1106_v18 = vpop.f32.mrb[0].mxu1 }
 0x17c   :  { %v1107_v19 = vpop.f32.mrb[1].mxu1 }
 0x17d   :  { %v1108_v21 = vadd.f32 %v1107_v19, %v1106_v18  ;;  %v1109_v22 = vpop.f32.mrb[2].mxu1 }
 0x17e   :  { %v1110_v23 = vpop.f32.mrb[3].mxu1 }
 0x17f   :  { %v1111_v25 = vadd.f32 %v1110_v23, %v1109_v22  ;;  %v789_v26 = vadd.f32 %v1108_v21, %v740_v20 }
 0x181   :  { %v792_v27 = vadd.f32 %v1111_v25, %v743_v24 }
 0x18b   :  { %v1084_v28 = vpop.f32.mrb[4].mxu0 }
 0x18c   :  { %v1085_v29 = vpop.f32.mrb[5].mxu0 }
 0x18d   :  { %v1086_v30 = vadd.f32 %v1085_v29, %v1084_v28  ;;  %v1087_v31 = vpop.f32.mrb[6].mxu0 }
 0x18e   :  { %v1088_v32 = vpop.f32.mrb[7].mxu0 }
 0x18f   :  { %v1089_v33 = vadd.f32 %v1088_v32, %v1087_v31  ;;  %v748_v55 = vadd.f32 %v1086_v30, %v1023_v17 }
 0x191   :  { %v751_v63 = vadd.f32 %v1089_v33, %v1023_v17 }
 0x193   :  { %v1134_v37 = vpop.f32.mrb[8].mxu0 }
 0x194   :  { %v837_v38 = vpop.f32.mrb[9].mxu0 }
 0x195   :  { %v838_v39 = vadd.f32 %v837_v38, %v789_v26  ;;  %v1135_v40 = vpop.f32.mrb[10].mxu0 }
 0x196   :  { %v840_v43 = vpop.f32.mrb[11].mxu0 }
 0x197   :  { %v852_v44 = vmax.f32 %v838_v39, 0.0  ;;  %v841_v45 = vadd.f32 %v840_v43, %v792_v27 }
 0x199   :  { %v860_v46 = vcombine.high %v852_v44, %v852_v44  ;;  %v853_v47 = vmax.f32 %v841_v45, 0.0  ;;  %v869_v49 = vsel %vm868_vm4, %v852_v44, -inf }
 0x19b   :  { %v870_v50 = vsel %vm868_vm4, %v860_v46, -inf  ;;  %v861_v51 = vcombine.high %v853_v47, %v853_v47  ;;  %v1112_v52 = vpop.f32.mrb[4].mxu1  ;;  %v872_v56 = vsel %vm868_vm4, %v853_v47, -inf }
 0x19c   :  { %v871_v53 = vmax.f32 %v869_v49, %v870_v50  ;;  %v1113_v54 = vpop.f32.mrb[5].mxu1 }
 0x19d   :  { %v873_v57 = vsel %vm868_vm4, %v861_v51, -inf  ;;  %v1114_v58 = vadd.f32 %v1113_v54, %v1112_v52  ;;  %v1115_v59 = vpop.f32.mrb[6].mxu1 }
 0x19e   :  { %v891_v60 = vrot.slane %v871_v53, %v1439_v48  ;;  %v874_v61 = vmax.f32 %v872_v56, %v873_v57  ;;  %v1116_v62 = vpop.f32.mrb[7].mxu1 }
 0x19f   :  { %v797_v0 = vadd.f32 %v1114_v58, %v748_v55  ;;  %v1117_v1 = vadd.f32 %v1116_v62, %v1115_v59 }
 0x1a0   :  { %v892_v2 = vcombine.high %v891_v60, %v891_v60  ;;  %v926_v3 = vsel %vm925_vm5, %v891_v60, -inf  ;;  %v899_v4 = vrot.slane %v874_v61, %v1439_v48 }
 0x1a1   :  { %v927_v5 = vrot.slane %v926_v3, 4  ;;  %v846_v6 = vadd.f32 %v1134_v37, %v797_v0  ;;  %v800_v7 = vadd.f32 %v1117_v1, %v751_v63 }
 0x1a2   :  { %v933_v8 = vsel %vm925_vm5, %v892_v2, -inf  ;;  %v900_v9 = vcombine.high %v899_v4, %v899_v4  ;;  %v940_v10 = vsel %vm925_vm5, %v899_v4, -inf }
 0x1a3   :  { %v928_v11 = vmax.f32 %v926_v3, %v927_v5  ;;  %v934_v12 = vrot.slane %v933_v8, 4  ;;  %v941_v13 = vrot.slane %v940_v10, 4  ;;  %v854_v14 = vmax.f32 %v846_v6, 0.0 }
 0x1a4   :  { %v947_v15 = vsel %vm925_vm5, %v900_v9, -inf  ;;  %v849_v16 = vadd.f32 %v1135_v40, %v800_v7 }
 0x1a5   :  { %v929_v17 = vrot.slane %v928_v11, 2  ;;  %v935_v18 = vmax.f32 %v933_v8, %v934_v12  ;;  %v942_v19 = vmax.f32 %v940_v10, %v941_v13  ;;  %v948_v20 = vrot.slane %v947_v15, 4 }
 0x1a6   :  { %v862_v21 = vcombine.high %v854_v14, %v854_v14  ;;  %v855_v22 = vmax.f32 %v849_v16, 0.0  ;;  %v875_v27 = vsel %vm868_vm4, %v854_v14, -inf }
 0x1a7   :  { %v930_v23 = vmax.f32 %v928_v11, %v929_v17  ;;  %v936_v24 = vrot.slane %v935_v18, 2  ;;  %v943_v25 = vrot.slane %v942_v19, 2  ;;  %v949_v26 = vmax.f32 %v947_v15, %v948_v20 }
 0x1a8   :  { %v876_v28 = vsel %vm868_vm4, %v862_v21, -inf  ;;  %v863_v29 = vcombine.high %v855_v22, %v855_v22  ;;  %v878_v39 = vsel %vm868_vm4, %v855_v22, -inf }
 0x1a9   :  { %v931_v30 = vrot.slane %v930_v23, 1  ;;  %v937_v31 = vmax.f32 %v935_v18, %v936_v24  ;;  %v944_v32 = vmax.f32 %v942_v19, %v943_v25  ;;  %v950_v33 = vrot.slane %v949_v26, 2 }
 0x1aa   :  { %v877_v34 = vmax.f32 %v875_v27, %v876_v28  ;;  %v879_v35 = vsel %vm868_vm4, %v863_v29, -inf }
 0x1ab   :  { %v938_v36 = vrot.slane %v937_v31, 1  ;;  %v945_v37 = vrot.slane %v944_v32, 1  ;;  %v951_v38 = vmax.f32 %v949_v26, %v950_v33  ;;  %v880_v41 = vmax.f32 %v878_v39, %v879_v35 }
 0x1ac   :  { %v907_v40 = vrot.slane %v877_v34, %v1439_v48  ;;  %v932_v42 = vmax.f32 %v930_v23, %v931_v30 }
 0x1ad   :  { %v939_v43 = vmax.f32 %v937_v31, %v938_v36  ;;  %v952_v44 = vrot.slane %v951_v38, 1  ;;  %v915_v47 = vrot.slane %v880_v41, %v1439_v48  ;;  %v946_v50 = vmax.f32 %v944_v32, %v945_v37 }
 0x1ae   :  { %v908_v45 = vcombine.high %v907_v40, %v907_v40  ;;  %v954_v46 = vsel %vm925_vm5, %v907_v40, -inf }
 0x1af   :  { %v991_v49 = vsel %vm990_vm6, %v939_v43, %v932_v42  ;;  %v953_v51 = vmax.f32 %v951_v38, %v952_v44  ;;  %v955_v52 = vrot.slane %v954_v46, 4  ;;  %v916_v54 = vcombine.high %v915_v47, %v915_v47 }
 0x1b0   :  { %999 = vst [vmem:[%s1480_s3] sm:$0x3] %v991_v49  ;;  %v961_v53 = vsel %vm925_vm5, %v908_v45, -inf  ;;  %v968_v55 = vsel %vm925_vm5, %v915_v47, -inf }
 0x1b1   :  { %v992_v56 = vsel %vm990_vm6, %v953_v51, %v946_v50  ;;  %v956_v57 = vmax.f32 %v954_v46, %v955_v52  ;;  %v962_v58 = vrot.slane %v961_v53, 4  ;;  %v969_v59 = vrot.slane %v968_v55, 4 }
 0x1b2   :  { %1000 = vst [vmem:[%s1480_s3 + $0x2] sm:$0x3] %v992_v56  ;;  %v975_v48 = vsel %vm925_vm5, %v916_v54, -inf }
 0x1b3   :  { %v957_v60 = vrot.slane %v956_v57, 2  ;;  %v963_v61 = vmax.f32 %v961_v53, %v962_v58  ;;  %v970_v62 = vmax.f32 %v968_v55, %v969_v59  ;;  %v976_v63 = vrot.slane %v975_v48, 4 }
 0x1b5   :  { %v958_v0 = vmax.f32 %v956_v57, %v957_v60  ;;  %v964_v1 = vrot.slane %v963_v61, 2  ;;  %v971_v2 = vrot.slane %v970_v62, 2  ;;  %v977_v3 = vmax.f32 %v975_v48, %v976_v63 }
 0x1b7   :  { %v959_v4 = vrot.slane %v958_v0, 1  ;;  %v965_v5 = vmax.f32 %v963_v61, %v964_v1  ;;  %v972_v6 = vmax.f32 %v970_v62, %v971_v2  ;;  %v978_v7 = vrot.slane %v977_v3, 2 }
 0x1b9   :  { %v966_v8 = vrot.slane %v965_v5, 1  ;;  %v973_v9 = vrot.slane %v972_v6, 1  ;;  %v979_v10 = vmax.f32 %v977_v3, %v978_v7  ;;  %v960_v11 = vmax.f32 %v958_v0, %v959_v4 }
 0x1bb   :  { %v967_v12 = vmax.f32 %v965_v5, %v966_v8  ;;  %v980_v13 = vrot.slane %v979_v10, 1  ;;  %v974_v15 = vmax.f32 %v972_v6, %v973_v9 }
 0x1bd   :  { %v993_v14 = vsel %vm990_vm6, %v967_v12, %v960_v11  ;;  %v981_v16 = vmax.f32 %v979_v10, %v980_v13 }
 0x1be   :  { %1001 = vst [vmem:[%s1480_s3 + $0x4] sm:$0x3] %v993_v14 }
 0x1bf   :  { %v994_v17 = vsel %vm990_vm6, %v981_v16, %v974_v15 }
 0x1c0   :  { %1002 = vst [vmem:[%s1480_s3 + $0x6] sm:$0x3] %v994_v17 }

// kernel: simple_cnn_forward.7
= control target key start
LH: loop header
LB: loop body
LE: loop exit
PB: predicated region body
PF: predicated region fallthrough
CT: control target
= control target key end

     0   :  { %s924_s18 = smov 0   ;;  %s1042_s0 = inlined_call_operand.vmem [shape: f32[8,512], index: 0, kind: input, shape index: {}]   ;;  %s1043_s1 = inlined_call_operand.vmem [shape: bf16[512,256], index: 1, kind: input, shape index: {}]   ;;  %s1044_s2 = inlined_call_operand.vmem [shape: f32[1,256], index: 2, kind: input, shape index: {}]   ;;  %s1045_s3 = inlined_call_operand.vmem [shape: bf16[256,128], index: 3, kind: input, shape index: {}]   ;;  %s1046_s4 = inlined_call_operand.vmem [shape: f32[1,128], index: 4, kind: input, shape index: {}]   ;;  %s1047_s5 = inlined_call_operand.vmem [shape: f32[8,128], index: 5, kind: output, shape index: {}]  }
   0x1 LB: > { %s930_s19 = sadd.s32 4294967295, %s891_s18   ;;  %p730_p0 = scmp.ge.s32.totalorder %s891_s18, 1  ;;  %s891_s18 = sphi %s924_s18, %s15_s18  }
   0x2   : > { %p195_p1 = scmp.lt.s32.totalorder %s891_s18, 3 }
   0x4   : > { %p196_p2 = pnand %p730_p0, %p195_p1 }
   0x5   : > { %s731_s20 = sshll.u32 (!%p196_p2), %s930_s19, 1  ;;  %s733_s21 = sshll.u32 (!%p196_p2), %s930_s19, 5 }
   0x6   : > { %199 = sbr.rel (%p196_p2) target bundleno = 536 (0x218), region = 40  ;;  %p225_p3 = scmp.lt.s32.totalorder (!%p196_p2), %s731_s20, 3 }
   0x7   : > { %p231_p4 = scmp.lt.s32.totalorder (!%p196_p2), %s733_s21, 63  ;;  %p736_p5 = scmp.ne.s32.totalorder (!%p196_p2), %s930_s19, 0 }
   0xd   : > { %s1049_s20 = smov (!%p225_p3, %s731_s20), 3  ;;  %s1051_s21 = smov (!%p231_p4, %s733_s21), 63 }
   0xe   : > { %s732_s22 = sshll.u32 %s1049_s20, 3  ;;  %s789_s26 = sshll.u32 %s1051_s21, 3  ;;  %v893_v0 = vmov (!%p736_p5), 0.0  }
   0xf   : > { %s939_s25 = scalar_lea.vmem %s1042_s0, %s732_s22  ;;  %s944_s29 = scalar_lea.vmem %s1043_s1, %s789_s26  ;;  %242 = vst [vmem:[#allocation2] sm:$0xff] (!%p736_p5), %v893_v0  ;;  %243 = vst [vmem:[#allocation2 + $0x8] sm:$0xff] (!%p736_p5), %v893_v0 }
  0x10   : > { %241 = sbr.rel (%p736_p5) target bundleno = 23 (0x17), region = 44 }
  0x17 PF: > { %v821_v1 = vld [vmem:[%s944_s29 + $0x4] ss:$8 sps:$4 sm:$0xff]   ;;  %v823_v2 = vld [vmem:[%s944_s29] ss:$8 sps:$4 sm:$0xff]   ;;  %v824_v3 = vld [vmem:[%s944_s29 + $0x14] ss:$8 sps:$4 sm:$0xff]  }
  0x18   : > { %442 = vmatprep.subr.bf16.mxu0 %v821_v1  ;;  %v826_v4 = vld [vmem:[%s944_s29 + $0x10] ss:$8 sps:$4 sm:$0xff]   ;;  %v827_v5 = vld [vmem:[%s944_s29 + $0x24] ss:$8 sps:$4 sm:$0xff]   ;;  %v829_v6 = vld [vmem:[%s944_s29 + $0x20] ss:$8 sps:$4 sm:$0xff]  }
  0x19   : > { %443 = vmatpush1.bf16.msra.mxu0 %v823_v2  ;;  %v830_v7 = vld [vmem:[%s944_s29 + $0x34] ss:$8 sps:$4 sm:$0xff]   ;;  %v832_v8 = vld [vmem:[%s944_s29 + $0x30] ss:$8 sps:$4 sm:$0xff]   ;;  %v833_v9 = vld [vmem:[%s944_s29 + $0x44] ss:$8 sps:$4 sm:$0xff]  }
  0x1a   : > { %444 = vmatprep.subr.bf16.mxu0 %v824_v3  ;;  %v835_v10 = vld [vmem:[%s944_s29 + $0x40] ss:$8 sps:$4 sm:$0xff]   ;;  %v836_v11 = vld [vmem:[%s944_s29 + $0x54] ss:$8 sps:$4 sm:$0xff]   ;;  %v838_v12 = vld [vmem:[%s944_s29 + $0x50] ss:$8 sps:$4 sm:$0xff]  }
  0x1b   : > { %v839_v13 = vld [vmem:[%s944_s29 + $0x64] ss:$8 sps:$4 sm:$0xff]   ;;  %v841_v16 = vld [vmem:[%s944_s29 + $0x60] ss:$8 sps:$4 sm:$0xff]   ;;  %v842_v17 = vld [vmem:[%s944_s29 + $0x74] ss:$8 sps:$4 sm:$0xff]  }
  0x1c   : > { %v247_v14 = vld [vmem:[%s939_s25 + $0x8] sm:$0xff]  ;;  %v844_v18 = vld [vmem:[%s944_s29 + $0x70] ss:$8 sps:$4 sm:$0xff]   ;;  %v848_v21 = vld [vmem:[%s944_s29 + $0x94] ss:$8 sps:$4 sm:$0xff]   ;;  %p769_p6 = scmp.ne.s32.totalorder %s930_s19, 1 }
  0x1d   : > { %445 = vmatpush1.bf16.msra.mxu0 %v826_v4  ;;  %v249_v15 = vpack.c.bf16 %v247_v14, %v247_v14  ;;  %v845_v19 = vld [vmem:[%s944_s29 + $0x84] ss:$8 sps:$4 sm:$0xff]   ;;  %v847_v20 = vld [vmem:[%s944_s29 + $0x80] ss:$8 sps:$4 sm:$0xff]   ;;  %v850_v22 = vld [vmem:[%s944_s29 + $0x90] ss:$8 sps:$4 sm:$0xff]   ;;  %v495_v50 = vlaneseq (!%p769_p6) }
  0x1e   : > { %446 = vmatprep.subr.bf16.mxu0 %v827_v5  ;;  %v851_v23 = vld [vmem:[%s944_s29 + $0xa4] ss:$8 sps:$4 sm:$0xff]   ;;  %v853_v24 = vld [vmem:[%s944_s29 + $0xa0] ss:$8 sps:$4 sm:$0xff]   ;;  %v854_v25 = vld [vmem:[%s944_s29 + $0xb4] ss:$8 sps:$4 sm:$0xff]  }
  0x1f   : > { %474 = vmatprep.mubr.bf16.mxu0 %v249_v15  ;;  %v856_v26 = vld [vmem:[%s944_s29 + $0xb0] ss:$8 sps:$4 sm:$0xff]   ;;  %v857_v27 = vld [vmem:[%s944_s29 + $0xc4] ss:$8 sps:$4 sm:$0xff]   ;;  %v859_v28 = vld [vmem:[%s944_s29 + $0xc0] ss:$8 sps:$4 sm:$0xff]  }
  0x20   : > { %v860_v29 = vld [vmem:[%s944_s29 + $0xd4] ss:$8 sps:$4 sm:$0xff]   ;;  %v862_v30 = vld [vmem:[%s944_s29 + $0xd0] ss:$8 sps:$4 sm:$0xff]   ;;  %v863_v31 = vld [vmem:[%s944_s29 + $0xe4] ss:$8 sps:$4 sm:$0xff]  }
  0x21   : > { %447 = vmatpush1.bf16.msra.mxu0 %v829_v6  ;;  %v865_v32 = vld [vmem:[%s944_s29 + $0xe0] ss:$8 sps:$4 sm:$0xff]   ;;  %v866_v33 = vld [vmem:[%s944_s29 + $0xf4] ss:$8 sps:$4 sm:$0xff]   ;;  %v868_v34 = vld [vmem:[%s944_s29 + $0xf0] ss:$8 sps:$4 sm:$0xff]  }
  0x22   : > { %448 = vmatprep.subr.bf16.mxu0 %v830_v7  ;;  %v246_v35 = vld [vmem:[%s939_s25] sm:$0xff]  ;;  %v245_v38 = vld [vmem:[#allocation2 + $0x8] sm:$0xff]  ;;  %v873_v49 = vld [vmem:[%s1045_s3 + $0x50] sm:$0xff] (!%p769_p6)   ;;  %v496_v53 = vshrl.u32 (!%p769_p6), %v495_v50, 7 }
  0x23   : > { %v248_v36 = vpack.c.bf16 %v246_v35, %v246_v35  ;;  %v244_v37 = vld [vmem:[#allocation2] sm:$0xff]  ;;  %v871_v47 = vld [vmem:[%s1045_s3 + $0x48] sm:$0xff] (!%p769_p6)   ;;  %v874_v51 = vld [vmem:[%s1045_s3 + $0x10] sm:$0xff] (!%p769_p6)  }
  0x24   : > { %v869_v45 = vld [vmem:[%s1045_s3 + $0x40] sm:$0xff] (!%p769_p6)   ;;  %v872_v48 = vld [vmem:[%s1045_s3 + $0x8] sm:$0xff] (!%p769_p6)   ;;  %v875_v52 = vld [vmem:[%s1045_s3 + $0x58] sm:$0xff] (!%p769_p6)   ;;  %v501_v56 = vsub.s32 (!%p769_p6), 1, %v496_v53  ;;  %v497_v57 = vsub.s32 (!%p769_p6), 0, %v496_v53 }
  0x25   : > { %449 = vmatpush1.bf16.msra.mxu0 %v832_v8  ;;  %v870_v46 = vld [vmem:[%s1045_s3] sm:$0xff] (!%p769_p6)   ;;  %v876_v54 = vld [vmem:[%s1045_s3 + $0x18] sm:$0xff] (!%p769_p6)   ;;  %v879_v59 = vld [vmem:[%s1045_s3 + $0x68] sm:$0xff] (!%p769_p6)  }
  0x26   : > { %450 = vmatprep.subr.bf16.mxu0 %v833_v9  ;;  %v877_v55 = vld [vmem:[%s1045_s3 + $0x60] sm:$0xff] (!%p769_p6)   ;;  %v880_v0 = vld [vmem:[%s1045_s3 + $0x28] sm:$0xff] (!%p769_p6)   ;;  %v881_v3 = vld [vmem:[%s1045_s3 + $0x70] sm:$0xff] (!%p769_p6)  }
  0x27   : > { %v878_v58 = vld [vmem:[%s1045_s3 + $0x20] sm:$0xff] (!%p769_p6)   ;;  %v882_v6 = vld [vmem:[%s1045_s3 + $0x30] sm:$0xff] (!%p769_p6)   ;;  %v883_v8 = vld [vmem:[%s1045_s3 + $0x78] sm:$0xff] (!%p769_p6)  }
  0x28   : > { %v493_v61 = vld [vmem:[%s1044_s2] sm:$0x3] (!%p769_p6) }
  0x29   : > { %451 = vmatpush1.bf16.msra.mxu0 %v835_v10  ;;  %v502_v62 = vrot.slane (!%p769_p6), %v493_v61, %v501_v56  ;;  %v498_v63 = vrot.slane (!%p769_p6), %v493_v61, %v497_v57  ;;  %v884_v10 = vld [vmem:[%s1045_s3 + $0x38] sm:$0xff] (!%p769_p6)  }
  0x2a   : > { %452 = vmatprep.subr.bf16.mxu0 %v836_v11 }
  0x2d   : > { %453 = vmatpush1.bf16.msra.mxu0 %v838_v12 }
  0x2e   : > { %454 = vmatprep.subr.bf16.mxu0 %v839_v13  ;;  %v770_v13 = vld [vmem:[%s1046_s4] ss:$0 sm:$0xff] (!%p769_p6) }
  0x31   : > { %455 = vmatpush1.bf16.msra.mxu0 %v841_v16 }
  0x32   : > { %456 = vmatprep.subr.bf16.mxu0 %v842_v17 }
  0x35   : > { %457 = vmatpush1.bf16.msra.mxu0 %v844_v18 }
  0x36   : > { %458 = vmatprep.subr.bf16.mxu0 %v845_v19 }
  0x39   : > { %459 = vmatpush1.bf16.msra.mxu0 %v847_v20 }
  0x3a   : > { %460 = vmatprep.subr.bf16.mxu0 %v848_v21 }
  0x3d   : > { %461 = vmatpush1.bf16.msra.mxu0 %v850_v22 }
  0x3e   : > { %462 = vmatprep.subr.bf16.mxu0 %v851_v23 }
  0x41   : > { %463 = vmatpush1.bf16.msra.mxu0 %v853_v24 }
  0x42   : > { %464 = vmatprep.subr.bf16.mxu0 %v854_v25 }
  0x45   : > { %465 = vmatpush1.bf16.msra.mxu0 %v856_v26 }
  0x46   : > { %466 = vmatprep.subr.bf16.mxu0 %v857_v27 }
  0x49   : > { %467 = vmatpush1.bf16.msra.mxu0 %v859_v28 }
  0x4a   : > { %468 = vmatprep.subr.bf16.mxu0 %v860_v29 }
  0x4d   : > { %469 = vmatpush1.bf16.msra.mxu0 %v862_v30 }
  0x4e   : > { %470 = vmatprep.subr.bf16.mxu0 %v863_v31 }
  0x51   : > { %471 = vmatpush1.bf16.msra.mxu0 %v865_v32 }
  0x52   : > { %472 = vmatprep.subr.bf16.mxu0 %v866_v33 }
  0x55   : > { %473 = vmatpush1.bf16.msra.mxu0 %v868_v34 }
  0x56   : > { %790 = vmatprep.subr.bf16.mxu0 (!%p769_p6), %v869_v45 }
  0x58   : > { %475 = vmatmul.mubr.bf16.vlgmr.msra.gmra.mrb[0].mxu0 %v248_v36 }
  0x59   : > { %791 = vmatpush3.bf16.msra.mxu0 (!%p769_p6), %v870_v46 }
  0x5a   : > { %792 = vmatprep.subr.bf16.mxu0 (!%p769_p6), %v871_v47 }
  0x5d   : > { %793 = vmatpush3.bf16.msra.mxu0 (!%p769_p6), %v872_v48 }
  0x5e   : > { %794 = vmatprep.subr.bf16.mxu0 (!%p769_p6), %v873_v49 }
  0x61   : > { %795 = vmatpush3.bf16.msra.mxu0 (!%p769_p6), %v874_v51 }
  0x62   : > { %796 = vmatprep.subr.bf16.mxu0 (!%p769_p6), %v875_v52 }
  0x65   : > { %797 = vmatpush3.bf16.msra.mxu0 (!%p769_p6), %v876_v54 }
  0x66   : > { %798 = vmatprep.subr.bf16.mxu0 (!%p769_p6), %v877_v55 }
  0x69   : > { %799 = vmatpush3.bf16.msra.mxu0 (!%p769_p6), %v878_v58 }
  0x6a   : > { %800 = vmatprep.subr.bf16.mxu0 (!%p769_p6), %v879_v59 }
  0x6d   : > { %801 = vmatpush3.bf16.msra.mxu0 (!%p769_p6), %v880_v0 }
  0x6e   : > { %802 = vmatprep.subr.bf16.mxu0 (!%p769_p6), %v881_v3 }
  0x71   : > { %803 = vmatpush3.bf16.msra.mxu0 (!%p769_p6), %v882_v6 }
  0x72   : > { %804 = vmatprep.subr.bf16.mxu0 (!%p769_p6), %v883_v8 }
  0x75   : > { %805 = vmatpush3.bf16.msra.mxu0 (!%p769_p6), %v884_v10 }
 0x129   : > { %490 = sbr.rel (%p769_p6) target bundleno = 536 (0x218), region = 48 }
 0x12b   : > { %v476_v39 = vpop.f32.mrb[0].mxu0 }
 0x12c   : > { %v483_v40 = vadd.f32 %v476_v39, %v244_v37  ;;  %v478_v41 = vpop.f32.mrb[1].mxu0 }
 0x12d   : > { %v484_v42 = vadd.f32 %v478_v41, %v245_v38  ;;  %v480_v43 = vpop.f32.mrb[2].mxu0 }
 0x12e   : > { %485 = vst [vmem:[#allocation2] sm:$0xff] %v483_v40  ;;  %v481_v44 = vpop.f32.mrb[3].mxu0 }
 0x12f   : > { %486 = vst [vmem:[#allocation2 + $0x8] sm:$0xff] %v484_v42 }
 0x135   : > { %v491_v2 = vld [vmem:[#allocation2] sm:$0xff] }
 0x136   : > { %v492_v60 = vld [vmem:[#allocation2 + $0x8] sm:$0xff]  ;;  %v505_v5 = vadd.f32 %v498_v63, %v491_v2 }
 0x137   : > { %v506_v1 = vadd.f32 %v502_v62, %v492_v60 }
 0x138   : > { %v507_v9 = vmax.f32 %v505_v5, 0.0 }
 0x139   : > { %v508_v4 = vmax.f32 %v506_v1, 0.0 }
 0x13a   : > { %v509_v11 = vpack.c.bf16 %v507_v9, %v507_v9 }
 0x13b   : > { %v510_v7 = vpack.c.bf16 %v508_v4, %v508_v4 }
 0x13d   : > { %678 = vmatprep.mubr.bf16.mxu0 %v510_v7 }
 0x13e   : > { %679 = vmatmul.mubr.bf16.vlgmr.msra.gmra.mrb[0].mxu0 %v509_v11 }
 0x211   : > { %v806_v12 = vpop.f32.mrb[0].mxu0 }
 0x212   : > { %v807_v14 = vpop.f32.mrb[1].mxu0 }
 0x213   : > { %v808_v15 = vadd.f32 %v807_v14, %v806_v12  ;;  %v809_v16 = vpop.f32.mrb[2].mxu0 }
 0x214   : > { %v810_v17 = vpop.f32.mrb[3].mxu0 }
 0x215   : > { %v681_v18 = vadd.f32 %v808_v15, %v770_v13 }
 0x217   : > { %686 = vst [vmem:[%s1047_s5] sm:$0xff] %v681_v18 }
 0x218 PF: > { %s15_s18 = sadd.s32 1, %s891_s18  }
 0x219   : > { %p12_p7 = scmp.ge.s32.totalorder %s15_s18, 4  }
 0x21b   :  { %14 = sbr.rel (!%p12_p7) target bundleno = 1 (0x1), region = 77 }

// kernel: simple_cnn_forward.4
= control target key start
LH: loop header
LB: loop body
LE: loop exit
PB: predicated region body
PF: predicated region fallthrough
CT: control target
= control target key end

     0   :  { %vm15_vm0 = vcmask 23552   ;;  %vm18_vm1 = vcmask 17408   ;;  %vm30_vm2 = vcmask 16384   ;;  %v7326_v0 = vmov 0.0   ;;  %s7327_s29 = smov 3   ;;  %s7328_s27 = smov 6   ;;  %s11156_s0 = inlined_call_operand.vmem [shape: f32[2,16,16,3], index: 0, kind: input, shape index: {}]   ;;  %s11157_s1 = inlined_call_operand.vmem [shape: bf16[27,32], index: 1, kind: input, shape index: {}]   ;;  %s11158_s2 = inlined_call_operand.vmem [shape: f32[1,32], index: 2, kind: input, shape index: {}]   ;;  %s11159_s3 = inlined_call_operand.vmem [shape: f32[2,8,8,32], index: 3, kind: output, shape index: {}]  }
   0x1   :  { %16 = vst.msk [vmem:[#allocation2] sm:$0xff] %vm15_vm0, %v7326_v0  ;;  %17 = vst.msk [vmem:[#allocation2 + $0x8] sm:$0xff] %vm15_vm0, %v7326_v0  ;;  %v105_v1 = vld [vmem:[%s11156_s0 + $0x10] sm:$0xff]  ;;  %v106_v2 = vld [vmem:[%s11156_s0 + $0x18] sm:$0xff]  ;;  %s7330_s9 = smov 12   ;;  %vm2921_vm3 = vcmask 48128  }
   0x2   :  { %19 = vst.msk [vmem:[#allocation2 + $0x10] sm:$0x3] %vm18_vm1, %v7326_v0  ;;  %22 = vst.msk [vmem:[#allocation2 + $0x1c0] sm:$0x3] %vm18_vm1, %v7326_v0  ;;  %v103_v3 = vld [vmem:[%s11156_s0] sm:$0xff]  ;;  %v104_v4 = vld [vmem:[%s11156_s0 + $0x8] sm:$0xff] }
   0x3   :  { %20 = vst.msk [vmem:[#allocation2 + $0x1b0] sm:$0xff] %vm15_vm0, %v7326_v0  ;;  %21 = vst.msk [vmem:[#allocation2 + $0x1b8] sm:$0xff] %vm15_vm0, %v7326_v0  ;;  %v107_v5 = vld [vmem:[%s11156_s0 + $0x20] sm:$0xff]  ;;  %v108_v6 = vld [vmem:[%s11156_s0 + $0x28] sm:$0xff]  ;;  %vm2986_vm4 = vcmask 72704   ;;  %s7331_s10 = smov 15  }
   0x4   :  { %24 = vst.msk [vmem:[#allocation2 + $0x198] sm:$0xff] %vm15_vm0, %v7326_v0  ;;  %25 = vst.msk [vmem:[#allocation2 + $0x1a0] sm:$0xff] %vm15_vm0, %v7326_v0  ;;  %v109_v7 = vld [vmem:[%s11156_s0 + $0x30] sm:$0xff]  ;;  %v110_v8 = vld [vmem:[%s11156_s0 + $0x38] sm:$0xff]  ;;  %vm3051_vm5 = vcmask 97280   ;;  %s7332_s11 = smov 18  }
   0x5   :  { %26 = vst.msk [vmem:[#allocation2 + $0x1a8] sm:$0x3] %vm18_vm1, %v7326_v0  ;;  %29 = vst.msk [vmem:[#allocation2 + $0x358] sm:$0x3] %vm18_vm1, %v7326_v0  ;;  %v111_v9 = vld [vmem:[%s11156_s0 + $0x40] sm:$0xff]  ;;  %v112_v10 = vld [vmem:[%s11156_s0 + $0x48] sm:$0xff] }
   0x6   :  { %27 = vst.msk [vmem:[#allocation2 + $0x348] sm:$0xff] %vm15_vm0, %v7326_v0  ;;  %28 = vst.msk [vmem:[#allocation2 + $0x350] sm:$0xff] %vm15_vm0, %v7326_v0  ;;  %v113_v11 = vld [vmem:[%s11156_s0 + $0x50] sm:$0xff]  ;;  %v114_v12 = vld [vmem:[%s11156_s0 + $0x58] sm:$0xff]  ;;  %vm3527_vm6 = vcmask 1044480   ;;  %vm3528_vm7 = vcmask 1045504  }
   0x7   :  { %32 = vst.msk [vmem:[#allocation2 + $0x18] sm:$0x1] %vm30_vm2, %v7326_v0  ;;  %33 = vst.msk [vmem:[#allocation2 + $0x30] sm:$0x1] %vm30_vm2, %v7326_v0  ;;  %v115_v13 = vld [vmem:[%s11156_s0 + $0x60] sm:$0xff]  ;;  %v116_v14 = vld [vmem:[%s11156_s0 + $0x68] sm:$0xff] }
   0x8   :  { %34 = vst.msk [vmem:[#allocation2 + $0x48] sm:$0x1] %vm30_vm2, %v7326_v0  ;;  %35 = vst.msk [vmem:[#allocation2 + $0x60] sm:$0x1] %vm30_vm2, %v7326_v0  ;;  %v117_v15 = vld [vmem:[%s11156_s0 + $0x70] sm:$0xff]  ;;  %v118_v16 = vld [vmem:[%s11156_s0 + $0x78] sm:$0xff] }
   0x9   :  { %36 = vst.msk [vmem:[#allocation2 + $0x78] sm:$0x1] %vm30_vm2, %v7326_v0  ;;  %37 = vst.msk [vmem:[#allocation2 + $0x90] sm:$0x1] %vm30_vm2, %v7326_v0  ;;  %v119_v17 = vld [vmem:[%s11156_s0 + $0x80] sm:$0xff]  ;;  %v120_v18 = vld [vmem:[%s11156_s0 + $0x88] sm:$0xff] }
   0xa   :  { %38 = vst.msk [vmem:[#allocation2 + $0xa8] sm:$0x1] %vm30_vm2, %v7326_v0  ;;  %39 = vst.msk [vmem:[#allocation2 + $0xc0] sm:$0x1] %vm30_vm2, %v7326_v0  ;;  %v121_v19 = vld [vmem:[%s11156_s0 + $0x90] sm:$0xff]  ;;  %v122_v20 = vld [vmem:[%s11156_s0 + $0x98] sm:$0xff] }
   0xb   :  { %40 = vst.msk [vmem:[#allocation2 + $0xd8] sm:$0x1] %vm30_vm2, %v7326_v0  ;;  %41 = vst.msk [vmem:[#allocation2 + $0xf0] sm:$0x1] %vm30_vm2, %v7326_v0  ;;  %v123_v21 = vld [vmem:[%s11156_s0 + $0xa0] sm:$0xff]  ;;  %v297_v23 = vld [vmem:[#allocation2 + $0x9] sm:$0xff] }
   0xc   :  { %42 = vst.msk [vmem:[#allocation2 + $0x108] sm:$0x1] %vm30_vm2, %v7326_v0  ;;  %43 = vst.msk [vmem:[#allocation2 + $0x120] sm:$0x1] %vm30_vm2, %v7326_v0  ;;  %v296_v22 = vld [vmem:[#allocation2 + $0x1] sm:$0xff]  ;;  %v125_v45 = vld [vmem:[%s11156_s0 + $0xb0] sm:$0xff] }
   0xd   :  { %44 = vst.msk [vmem:[#allocation2 + $0x138] sm:$0x1] %vm30_vm2, %v7326_v0  ;;  %45 = vst.msk [vmem:[#allocation2 + $0x150] sm:$0x1] %vm30_vm2, %v7326_v0  ;;  %v124_v24 = vld [vmem:[%s11156_s0 + $0xa8] sm:$0xff]  ;;  %v6020_v25 = vpack.i.bf16 %v297_v23, %v296_v22  ;;  %v126_v46 = vld [vmem:[%s11156_s0 + $0xb8] sm:$0xff] }
   0xe   :  { %46 = vst.msk [vmem:[#allocation2 + $0x168] sm:$0x1] %vm30_vm2, %v7326_v0  ;;  %47 = vst.msk [vmem:[#allocation2 + $0x180] sm:$0x1] %vm30_vm2, %v7326_v0  ;;  %v127_v47 = vld [vmem:[%s11156_s0 + $0xc0] sm:$0xff]  ;;  %v128_v48 = vld [vmem:[%s11156_s0 + $0xc8] sm:$0xff] }
   0xf   :  { %50 = vst.msk [vmem:[#allocation2 + $0x1c8] sm:$0x1] %vm30_vm2, %v7326_v0  ;;  %51 = vst.msk [vmem:[#allocation2 + $0x1e0] sm:$0x1] %vm30_vm2, %v7326_v0  ;;  %6021 = vrot.lane.b32.xlu0 %v6020_v25, %s7327_s29  ;;  %v129_v49 = vld [vmem:[%s11156_s0 + $0xd0] sm:$0xff]  ;;  %v130_v52 = vld [vmem:[%s11156_s0 + $0xd8] sm:$0xff] }
  0x10   :  { %52 = vst.msk [vmem:[#allocation2 + $0x1f8] sm:$0x1] %vm30_vm2, %v7326_v0  ;;  %53 = vst.msk [vmem:[#allocation2 + $0x210] sm:$0x1] %vm30_vm2, %v7326_v0  ;;  %v131_v53 = vld [vmem:[%s11156_s0 + $0xe0] sm:$0xff]  ;;  %v132_v54 = vld [vmem:[%s11156_s0 + $0xe8] sm:$0xff] }
  0x11   :  { %54 = vst.msk [vmem:[#allocation2 + $0x228] sm:$0x1] %vm30_vm2, %v7326_v0  ;;  %55 = vst.msk [vmem:[#allocation2 + $0x240] sm:$0x1] %vm30_vm2, %v7326_v0  ;;  %v135_v58 = vld [vmem:[%s11156_s0 + $0x100] sm:$0xff]  ;;  %v136_v60 = vld [vmem:[%s11156_s0 + $0x108] sm:$0xff] }
  0x12   :  { %56 = vst.msk [vmem:[#allocation2 + $0x258] sm:$0x1] %vm30_vm2, %v7326_v0  ;;  %57 = vst.msk [vmem:[#allocation2 + $0x270] sm:$0x1] %vm30_vm2, %v7326_v0  ;;  %v137_v61 = vld [vmem:[%s11156_s0 + $0x110] sm:$0xff]  ;;  %v138_v62 = vld [vmem:[%s11156_s0 + $0x118] sm:$0xff] }
  0x13   :  { %58 = vst.msk [vmem:[#allocation2 + $0x288] sm:$0x1] %vm30_vm2, %v7326_v0  ;;  %59 = vst.msk [vmem:[#allocation2 + $0x2a0] sm:$0x1] %vm30_vm2, %v7326_v0  ;;  %v139_v63 = vld [vmem:[%s11156_s0 + $0x120] sm:$0xff]  ;;  %s7335_s16 = smov 24  }
  0x14   :  { %60 = vst.msk [vmem:[#allocation2 + $0x2b8] sm:$0x1] %vm30_vm2, %v7326_v0  ;;  %61 = vst.msk [vmem:[#allocation2 + $0x2d0] sm:$0x1] %vm30_vm2, %v7326_v0  ;;  %vm3116_vm8 = vcmask 121856   ;;  %vm3181_vm9 = vcmask 146432  }
  0x15   :  { %62 = vst.msk [vmem:[#allocation2 + $0x2e8] sm:$0x1] %vm30_vm2, %v7326_v0  ;;  %63 = vst.msk [vmem:[#allocation2 + $0x300] sm:$0x1] %vm30_vm2, %v7326_v0  ;;  %vm3246_vm10 = vcmask 171008   ;;  %vm3311_vm11 = vcmask 195584  }
  0x16   :  { %64 = vst.msk [vmem:[#allocation2 + $0x318] sm:$0x1] %vm30_vm2, %v7326_v0  ;;  %65 = vst.msk [vmem:[#allocation2 + $0x330] sm:$0x1] %vm30_vm2, %v7326_v0  ;;  %vm3430_vm12 = vcmask 220160   ;;  %vm3887_vm13 = vcmask 261120  }
  0x17   :  { %68 = vst.msk [vmem:[#allocation2 + $0x29] sm:$0x1] %vm30_vm2, %v7326_v0  ;;  %69 = vst.msk [vmem:[#allocation2 + $0x41] sm:$0x1] %vm30_vm2, %v7326_v0  ;;  %vm4688_vm14 = vcmask 254976   ;;  %vm5713_vm15 = vcmask 1041409  }
  0x18   :  { %70 = vst.msk [vmem:[#allocation2 + $0x59] sm:$0x1] %vm30_vm2, %v7326_v0  ;;  %71 = vst.msk [vmem:[#allocation2 + $0x71] sm:$0x1] %vm30_vm2, %v7326_v0  ;;  %vm5717_vm1 = vcmask 1043459  }
  0x19   :  { %72 = vst.msk [vmem:[#allocation2 + $0x89] sm:$0x1] %vm30_vm2, %v7326_v0  ;;  %73 = vst.msk [vmem:[#allocation2 + $0xa1] sm:$0x1] %vm30_vm2, %v7326_v0 }
  0x1a   :  { %74 = vst.msk [vmem:[#allocation2 + $0xb9] sm:$0x1] %vm30_vm2, %v7326_v0  ;;  %75 = vst.msk [vmem:[#allocation2 + $0xd1] sm:$0x1] %vm30_vm2, %v7326_v0 }
  0x1b   :  { %76 = vst.msk [vmem:[#allocation2 + $0xe9] sm:$0x1] %vm30_vm2, %v7326_v0  ;;  %77 = vst.msk [vmem:[#allocation2 + $0x101] sm:$0x1] %vm30_vm2, %v7326_v0 }
  0x1c   :  { %78 = vst.msk [vmem:[#allocation2 + $0x119] sm:$0x1] %vm30_vm2, %v7326_v0  ;;  %79 = vst.msk [vmem:[#allocation2 + $0x131] sm:$0x1] %vm30_vm2, %v7326_v0 }
  0x1d   :  { %80 = vst.msk [vmem:[#allocation2 + $0x149] sm:$0x1] %vm30_vm2, %v7326_v0  ;;  %81 = vst.msk [vmem:[#allocation2 + $0x161] sm:$0x1] %vm30_vm2, %v7326_v0 }
  0x1e   :  { %82 = vst.msk [vmem:[#allocation2 + $0x179] sm:$0x1] %vm30_vm2, %v7326_v0  ;;  %83 = vst.msk [vmem:[#allocation2 + $0x191] sm:$0x1] %vm30_vm2, %v7326_v0 }
  0x1f   :  { %86 = vst.msk [vmem:[#allocation2 + $0x1d9] sm:$0x1] %vm30_vm2, %v7326_v0  ;;  %87 = vst.msk [vmem:[#allocation2 + $0x1f1] sm:$0x1] %vm30_vm2, %v7326_v0 }
  0x20   :  { %88 = vst.msk [vmem:[#allocation2 + $0x209] sm:$0x1] %vm30_vm2, %v7326_v0  ;;  %89 = vst.msk [vmem:[#allocation2 + $0x221] sm:$0x1] %vm30_vm2, %v7326_v0 }
  0x21   :  { %90 = vst.msk [vmem:[#allocation2 + $0x239] sm:$0x1] %vm30_vm2, %v7326_v0  ;;  %91 = vst.msk [vmem:[#allocation2 + $0x251] sm:$0x1] %vm30_vm2, %v7326_v0 }
  0x22   :  { %92 = vst.msk [vmem:[#allocation2 + $0x269] sm:$0x1] %vm30_vm2, %v7326_v0  ;;  %93 = vst.msk [vmem:[#allocation2 + $0x281] sm:$0x1] %vm30_vm2, %v7326_v0 }
  0x23   :  { %94 = vst.msk [vmem:[#allocation2 + $0x299] sm:$0x1] %vm30_vm2, %v7326_v0  ;;  %95 = vst.msk [vmem:[#allocation2 + $0x2b1] sm:$0x1] %vm30_vm2, %v7326_v0 }
  0x24   :  { %96 = vst.msk [vmem:[#allocation2 + $0x2c9] sm:$0x1] %vm30_vm2, %v7326_v0  ;;  %97 = vst.msk [vmem:[#allocation2 + $0x2e1] sm:$0x1] %vm30_vm2, %v7326_v0 }
  0x25   :  { %98 = vst.msk [vmem:[#allocation2 + $0x2f9] sm:$0x1] %vm30_vm2, %v7326_v0  ;;  %99 = vst.msk [vmem:[#allocation2 + $0x311] sm:$0x1] %vm30_vm2, %v7326_v0 }
  0x26   :  { %100 = vst.msk [vmem:[#allocation2 + $0x329] sm:$0x1] %vm30_vm2, %v7326_v0  ;;  %101 = vst.msk [vmem:[#allocation2 + $0x341] sm:$0x1] %vm30_vm2, %v7326_v0 }
  0x27   :  { %67 = vst.msk [vmem:[#allocation2 + $0x11] sm:$0x1] %vm30_vm2, %v7326_v0  ;;  %31 = vst.msk [vmem:[#allocation2] sm:$0x1] %vm30_vm2, %v7326_v0 }
  0x28   :  { %170 = vst.msk [vmem:[#allocation2 + $0x31] sm:$0xff] %vm15_vm0, %v105_v1  ;;  %171 = vst.msk [vmem:[#allocation2 + $0x39] sm:$0xff] %vm15_vm0, %v106_v2  ;;  %v141_v1 = vld [vmem:[%s11156_s0 + $0x130] sm:$0xff]  ;;  %v142_v2 = vld [vmem:[%s11156_s0 + $0x138] sm:$0xff] }
  0x29   :  { %48 = vst.msk [vmem:[#allocation2 + $0x198] sm:$0x1] %vm30_vm2, %v7326_v0  ;;  %49 = vst.msk [vmem:[#allocation2 + $0x1b0] sm:$0x1] %vm30_vm2, %v7326_v0 }
  0x2a   :  { %66 = vst.msk [vmem:[#allocation2 + $0x348] sm:$0x1] %vm30_vm2, %v7326_v0  ;;  %84 = vst.msk [vmem:[#allocation2 + $0x1a9] sm:$0x1] %vm30_vm2, %v7326_v0 }
  0x2b   :  { %85 = vst.msk [vmem:[#allocation2 + $0x1c1] sm:$0x1] %vm30_vm2, %v7326_v0  ;;  %102 = vst.msk [vmem:[#allocation2 + $0x359] sm:$0x1] %vm30_vm2, %v7326_v0  ;;  %v140_v0 = vld [vmem:[%s11156_s0 + $0x128] sm:$0xff]  ;;  %vm5719_vm2 = vcmask 1044484  }
  0x2c   :  { %168 = vst.msk [vmem:[#allocation2 + $0x19] sm:$0xff] %vm15_vm0, %v103_v3  ;;  %169 = vst.msk [vmem:[#allocation2 + $0x21] sm:$0xff] %vm15_vm0, %v104_v4  ;;  %v143_v3 = vld [vmem:[%s11156_s0 + $0x140] sm:$0xff]  ;;  %v144_v4 = vld [vmem:[%s11156_s0 + $0x148] sm:$0xff] }
  0x2d   :  { %172 = vst.msk [vmem:[#allocation2 + $0x49] sm:$0xff] %vm15_vm0, %v107_v5  ;;  %173 = vst.msk [vmem:[#allocation2 + $0x51] sm:$0xff] %vm15_vm0, %v108_v6  ;;  %v145_v6 = vld [vmem:[%s11156_s0 + $0x150] sm:$0xff] }
  0x2e   :  { %174 = vst.msk [vmem:[#allocation2 + $0x61] sm:$0xff] %vm15_vm0, %v109_v7  ;;  %175 = vst.msk [vmem:[#allocation2 + $0x69] sm:$0xff] %vm15_vm0, %v110_v8  ;;  %v146_v7 = vld [vmem:[%s11156_s0 + $0x158] sm:$0xff]  ;;  %v147_v8 = vld [vmem:[%s11156_s0 + $0x160] sm:$0xff] }
  0x2f   :  { %176 = vst.msk [vmem:[#allocation2 + $0x79] sm:$0xff] %vm15_vm0, %v111_v9  ;;  %177 = vst.msk [vmem:[#allocation2 + $0x81] sm:$0xff] %vm15_vm0, %v112_v10  ;;  %v300_v26 = vld [vmem:[#allocation2 + $0x31] sm:$0xff]  ;;  %v301_v27 = vld [vmem:[#allocation2 + $0x39] sm:$0xff] }
  0x30   :  { %178 = vst.msk [vmem:[#allocation2 + $0x91] sm:$0xff] %vm15_vm0, %v113_v11  ;;  %179 = vst.msk [vmem:[#allocation2 + $0x99] sm:$0xff] %vm15_vm0, %v114_v12  ;;  %v6030_v29 = vpack.i.bf16 %v301_v27, %v300_v26  ;;  %v148_v12 = vld [vmem:[%s11156_s0 + $0x168] sm:$0xff] }
  0x31   :  { %180 = vst.msk [vmem:[#allocation2 + $0xa9] sm:$0xff] %vm15_vm0, %v115_v13  ;;  %181 = vst.msk [vmem:[#allocation2 + $0xb1] sm:$0xff] %vm15_vm0, %v116_v14 }
  0x32   :  { %182 = vst.msk [vmem:[#allocation2 + $0xc1] sm:$0xff] %vm15_vm0, %v117_v15  ;;  %183 = vst.msk [vmem:[#allocation2 + $0xc9] sm:$0xff] %vm15_vm0, %v118_v16  ;;  %6031 = vrot.lane.b32.xlu1 %v6030_v29, %s7327_s29  ;;  %v149_v16 = vld [vmem:[%s11156_s0 + $0x170] sm:$0xff]  ;;  %v151_v29 = vld [vmem:[%s11156_s0 + $0x180] sm:$0xff] }
  0x33   :  { %184 = vst.msk [vmem:[#allocation2 + $0xd9] sm:$0xff] %vm15_vm0, %v119_v17  ;;  %185 = vst.msk [vmem:[#allocation2 + $0xe1] sm:$0xff] %vm15_vm0, %v120_v18  ;;  %v298_v28 = vld [vmem:[#allocation2 + $0x19] sm:$0xff]  ;;  %v299_v30 = vld [vmem:[#allocation2 + $0x21] sm:$0xff] }
  0x34   :  { %186 = vst.msk [vmem:[#allocation2 + $0xf1] sm:$0xff] %vm15_vm0, %v121_v19  ;;  %187 = vst.msk [vmem:[#allocation2 + $0xf9] sm:$0xff] %vm15_vm0, %v122_v20  ;;  %v302_v31 = vld [vmem:[#allocation2 + $0x49] sm:$0xff]  ;;  %v303_v32 = vld [vmem:[#allocation2 + $0x51] sm:$0xff]  ;;  %v6025_v33 = vpack.i.bf16 %v299_v30, %v298_v28 }
  0x35   :  { %188 = vst.msk [vmem:[#allocation2 + $0x109] sm:$0xff] %vm15_vm0, %v123_v21  ;;  %189 = vst.msk [vmem:[#allocation2 + $0x111] sm:$0xff] %vm15_vm0, %v124_v24  ;;  %v6035_v34 = vpack.i.bf16 %v303_v32, %v302_v31  ;;  %v304_v35 = vld [vmem:[#allocation2 + $0x61] sm:$0xff]  ;;  %v305_v36 = vld [vmem:[#allocation2 + $0x69] sm:$0xff] }
  0x36   :  { %v306_v37 = vld [vmem:[#allocation2 + $0x79] sm:$0xff]  ;;  %v307_v38 = vld [vmem:[#allocation2 + $0x81] sm:$0xff]  ;;  %6026 = vrot.lane.b32.xlu0 %v6025_v33, %s7327_s29  ;;  %v6040_v39 = vpack.i.bf16 %v305_v36, %v304_v35  ;;  %190 = vst.msk [vmem:[#allocation2 + $0x121] sm:$0xff] %vm15_vm0, %v125_v45  ;;  %191 = vst.msk [vmem:[#allocation2 + $0x129] sm:$0xff] %vm15_vm0, %v126_v46 }
  0x37   :  { %v308_v40 = vld [vmem:[#allocation2 + $0x91] sm:$0xff]  ;;  %v309_v41 = vld [vmem:[#allocation2 + $0x99] sm:$0xff]  ;;  %6036 = vrot.lane.b32.xlu1 %v6035_v34, %s7327_s29  ;;  %v6045_v43 = vpack.i.bf16 %v307_v38, %v306_v37  ;;  %192 = vst.msk [vmem:[#allocation2 + $0x139] sm:$0xff] %vm15_vm0, %v127_v47  ;;  %193 = vst.msk [vmem:[#allocation2 + $0x141] sm:$0xff] %vm15_vm0, %v128_v48 }
  0x38   :  { %v310_v42 = vld [vmem:[#allocation2 + $0xa9] sm:$0xff]  ;;  %v311_v44 = vld [vmem:[#allocation2 + $0xb1] sm:$0xff]  ;;  %194 = vst.msk [vmem:[#allocation2 + $0x151] sm:$0xff] %vm15_vm0, %v129_v49  ;;  %v6050_v55 = vpack.i.bf16 %v309_v41, %v308_v40  ;;  %195 = vst.msk [vmem:[#allocation2 + $0x159] sm:$0xff] %vm15_vm0, %v130_v52 }
  0x39   :  { %v312_v50 = vld [vmem:[#allocation2 + $0xc1] sm:$0xff]  ;;  %v313_v51 = vld [vmem:[#allocation2 + $0xc9] sm:$0xff]  ;;  %196 = vst.msk [vmem:[#allocation2 + $0x169] sm:$0xff] %vm15_vm0, %v131_v53  ;;  %197 = vst.msk [vmem:[#allocation2 + $0x171] sm:$0xff] %vm15_vm0, %v132_v54  ;;  %v6055_v59 = vpack.i.bf16 %v311_v44, %v310_v42 }
  0x3a   :  { %6041 = vrot.lane.b32.xlu0 %v6040_v39, %s7327_s29  ;;  %v314_v56 = vld [vmem:[#allocation2 + $0xd9] sm:$0xff]  ;;  %v315_v57 = vld [vmem:[#allocation2 + $0xe1] sm:$0xff]  ;;  %200 = vst.msk [vmem:[#allocation2 + $0x1c9] sm:$0xff] %vm15_vm0, %v135_v58  ;;  %201 = vst.msk [vmem:[#allocation2 + $0x1d1] sm:$0xff] %vm15_vm0, %v136_v60  ;;  %v6060_v5 = vpack.i.bf16 %v313_v51, %v312_v50 }
  0x3b   :  { %6046 = vrot.lane.b32.xlu1 %v6045_v43, %s7327_s29  ;;  %202 = vst.msk [vmem:[#allocation2 + $0x1e1] sm:$0xff] %vm15_vm0, %v137_v61  ;;  %203 = vst.msk [vmem:[#allocation2 + $0x1e9] sm:$0xff] %vm15_vm0, %v138_v62  ;;  %v6065_v9 = vpack.i.bf16 %v315_v57, %v314_v56  ;;  %v316_v10 = vld [vmem:[#allocation2 + $0xf1] sm:$0xff]  ;;  %v317_v11 = vld [vmem:[#allocation2 + $0xf9] sm:$0xff] }
  0x3c   :  { %204 = vst.msk [vmem:[#allocation2 + $0x1f9] sm:$0xff] %vm15_vm0, %v139_v63  ;;  %205 = vst.msk [vmem:[#allocation2 + $0x201] sm:$0xff] %vm15_vm0, %v140_v0  ;;  %v318_v13 = vld [vmem:[#allocation2 + $0x109] sm:$0xff]  ;;  %v319_v14 = vld [vmem:[#allocation2 + $0x111] sm:$0xff]  ;;  %v6070_v15 = vpack.i.bf16 %v317_v11, %v316_v10 }
  0x3d   :  { %206 = vst.msk [vmem:[#allocation2 + $0x211] sm:$0xff] %vm15_vm0, %v141_v1  ;;  %207 = vst.msk [vmem:[#allocation2 + $0x219] sm:$0xff] %vm15_vm0, %v142_v2  ;;  %v150_v17 = vld [vmem:[%s11156_s0 + $0x178] sm:$0xff]  ;;  %v6075_v18 = vpack.i.bf16 %v319_v14, %v318_v13  ;;  %v320_v19 = vld [vmem:[#allocation2 + $0x121] sm:$0xff] }
  0x3e   :  { %6051 = vrot.lane.b32.xlu0 %v6050_v55, %s7327_s29  ;;  %208 = vst.msk [vmem:[#allocation2 + $0x229] sm:$0xff] %vm15_vm0, %v143_v3  ;;  %209 = vst.msk [vmem:[#allocation2 + $0x231] sm:$0xff] %vm15_vm0, %v144_v4  ;;  %v321_v20 = vld [vmem:[#allocation2 + $0x129] sm:$0xff]  ;;  %v322_v21 = vld [vmem:[#allocation2 + $0x139] sm:$0xff] }
  0x3f   :  { %6056 = vrot.lane.b32.xlu1 %v6055_v59, %s7327_s29  ;;  %210 = vst.msk [vmem:[#allocation2 + $0x241] sm:$0xff] %vm15_vm0, %v145_v6  ;;  %211 = vst.msk [vmem:[#allocation2 + $0x249] sm:$0xff] %vm15_vm0, %v146_v7  ;;  %v323_v22 = vld [vmem:[#allocation2 + $0x141] sm:$0xff]  ;;  %v6080_v23 = vpack.i.bf16 %v321_v20, %v320_v19  ;;  %v324_v24 = vld [vmem:[#allocation2 + $0x151] sm:$0xff] }
  0x40   :  { %212 = vst.msk [vmem:[#allocation2 + $0x259] sm:$0xff] %vm15_vm0, %v147_v8  ;;  %213 = vst.msk [vmem:[#allocation2 + $0x261] sm:$0xff] %vm15_vm0, %v148_v12  ;;  %v325_v25 = vld [vmem:[#allocation2 + $0x159] sm:$0xff]  ;;  %v326_v26 = vld [vmem:[#allocation2 + $0x169] sm:$0xff]  ;;  %v6085_v27 = vpack.i.bf16 %v323_v22, %v322_v21 }
  0x41   :  { %214 = vst.msk [vmem:[#allocation2 + $0x271] sm:$0xff] %vm15_vm0, %v149_v16  ;;  %215 = vst.msk [vmem:[#allocation2 + $0x279] sm:$0xff] %vm15_vm0, %v150_v17  ;;  %v327_v28 = vld [vmem:[#allocation2 + $0x171] sm:$0xff]  ;;  %v152_v30 = vld [vmem:[%s11156_s0 + $0x188] sm:$0xff]  ;;  %v6090_v38 = vpack.i.bf16 %v325_v25, %v324_v24 }
  0x42   :  { %6061 = vrot.lane.b32.xlu0 %v6060_v5, %s7327_s29  ;;  %216 = vst.msk [vmem:[#allocation2 + $0x289] sm:$0xff] %vm15_vm0, %v151_v29  ;;  %217 = vst.msk [vmem:[#allocation2 + $0x291] sm:$0xff] %vm15_vm0, %v152_v30  ;;  %v153_v31 = vld [vmem:[%s11156_s0 + $0x190] sm:$0xff]  ;;  %v154_v32 = vld [vmem:[%s11156_s0 + $0x198] sm:$0xff]  ;;  %v6095_v42 = vpack.i.bf16 %v327_v28, %v326_v26 }
  0x43   :  { %6066 = vrot.lane.b32.xlu1 %v6065_v9, %s7327_s29  ;;  %v155_v33 = vld [vmem:[%s11156_s0 + $0x1a0] sm:$0xff]  ;;  %v328_v34 = vld [vmem:[#allocation2 + $0x1b1] sm:$0xff]  ;;  %218 = vst.msk [vmem:[#allocation2 + $0x2a1] sm:$0xff] %vm15_vm0, %v153_v31  ;;  %219 = vst.msk [vmem:[#allocation2 + $0x2a9] sm:$0xff] %vm15_vm0, %v154_v32 }
  0x44   :  { %v156_v35 = vld [vmem:[%s11156_s0 + $0x1a8] sm:$0xff]  ;;  %220 = vst.msk [vmem:[#allocation2 + $0x2b9] sm:$0xff] %vm15_vm0, %v155_v33  ;;  %v157_v36 = vld [vmem:[%s11156_s0 + $0x1b0] sm:$0xff]  ;;  %v158_v37 = vld [vmem:[%s11156_s0 + $0x1b8] sm:$0xff] }
  0x45   :  { %v329_v39 = vld [vmem:[#allocation2 + $0x1b9] sm:$0xff]  ;;  %v330_v40 = vld [vmem:[#allocation2 + $0x1c9] sm:$0xff]  ;;  %221 = vst.msk [vmem:[#allocation2 + $0x2c1] sm:$0xff] %vm15_vm0, %v156_v35  ;;  %222 = vst.msk [vmem:[#allocation2 + $0x2d1] sm:$0xff] %vm15_vm0, %v157_v36 }
  0x46   :  { %6071 = vrot.lane.b32.xlu0 %v6070_v15, %s7327_s29  ;;  %223 = vst.msk [vmem:[#allocation2 + $0x2d9] sm:$0xff] %vm15_vm0, %v158_v37  ;;  %v159_v41 = vld [vmem:[%s11156_s0 + $0x1c0] sm:$0xff]  ;;  %v160_v43 = vld [vmem:[%s11156_s0 + $0x1c8] sm:$0xff]  ;;  %v161_v44 = vld [vmem:[%s11156_s0 + $0x1d0] sm:$0xff]  ;;  %v6100_v49 = vpack.i.bf16 %v329_v39, %v328_v34 }
  0x47   :  { %6076 = vrot.lane.b32.xlu1 %v6075_v18, %s7327_s29  ;;  %224 = vst.msk [vmem:[#allocation2 + $0x2e9] sm:$0xff] %vm15_vm0, %v159_v41  ;;  %v162_v45 = vld [vmem:[%s11156_s0 + $0x1d8] sm:$0xff]  ;;  %225 = vst.msk [vmem:[#allocation2 + $0x2f1] sm:$0xff] %vm15_vm0, %v160_v43  ;;  %v163_v47 = vld [vmem:[%s11156_s0 + $0x1e0] sm:$0xff] }
  0x48   :  { %v331_v46 = vld [vmem:[#allocation2 + $0x1d1] sm:$0xff]  ;;  %226 = vst.msk [vmem:[#allocation2 + $0x301] sm:$0xff] %vm15_vm0, %v161_v44  ;;  %227 = vst.msk [vmem:[#allocation2 + $0x309] sm:$0xff] %vm15_vm0, %v162_v45  ;;  %v164_v48 = vld [vmem:[%s11156_s0 + $0x1e8] sm:$0xff] }
  0x49   :  { %228 = vst.msk [vmem:[#allocation2 + $0x319] sm:$0xff] %vm15_vm0, %v163_v47  ;;  %229 = vst.msk [vmem:[#allocation2 + $0x321] sm:$0xff] %vm15_vm0, %v164_v48  ;;  %v6105_v50 = vpack.i.bf16 %v331_v46, %v330_v40  ;;  %v332_v51 = vld [vmem:[#allocation2 + $0x1e1] sm:$0xff]  ;;  %v333_v52 = vld [vmem:[#allocation2 + $0x1e9] sm:$0xff] }
  0x4a   :  { %6081 = vrot.lane.b32.xlu0 %v6080_v23, %s7327_s29  ;;  %v334_v53 = vld [vmem:[#allocation2 + $0x1f9] sm:$0xff]  ;;  %v335_v54 = vld [vmem:[#allocation2 + $0x201] sm:$0xff]  ;;  %v6110_v55 = vpack.i.bf16 %v333_v52, %v332_v51  ;;  %v336_v57 = vld [vmem:[#allocation2 + $0x211] sm:$0xff] }
  0x4b   :  { %6086 = vrot.lane.b32.xlu1 %v6085_v27, %s7327_s29  ;;  %v6115_v56 = vpack.i.bf16 %v335_v54, %v334_v53  ;;  %v337_v58 = vld [vmem:[#allocation2 + $0x219] sm:$0xff]  ;;  %v338_v59 = vld [vmem:[#allocation2 + $0x229] sm:$0xff]  ;;  %v339_v60 = vld [vmem:[#allocation2 + $0x231] sm:$0xff] }
  0x4c   :  { %v6120_v61 = vpack.i.bf16 %v337_v58, %v336_v57  ;;  %v6125_v62 = vpack.i.bf16 %v339_v60, %v338_v59  ;;  %v340_v63 = vld [vmem:[#allocation2 + $0x241] sm:$0xff]  ;;  %v341_v0 = vld [vmem:[#allocation2 + $0x249] sm:$0xff]  ;;  %v342_v1 = vld [vmem:[#allocation2 + $0x259] sm:$0xff] }
  0x4d   :  { %v343_v2 = vld [vmem:[#allocation2 + $0x261] sm:$0xff]  ;;  %v6130_v3 = vpack.i.bf16 %v341_v0, %v340_v63  ;;  %v344_v5 = vld [vmem:[#allocation2 + $0x271] sm:$0xff]  ;;  %v345_v6 = vld [vmem:[#allocation2 + $0x279] sm:$0xff] }
  0x4e   :  { %6091 = vrot.lane.b32.xlu0 %v6090_v38, %s7327_s29  ;;  %v6135_v4 = vpack.i.bf16 %v343_v2, %v342_v1  ;;  %v346_v7 = vld [vmem:[#allocation2 + $0x289] sm:$0xff]  ;;  %v347_v8 = vld [vmem:[#allocation2 + $0x291] sm:$0xff]  ;;  %v6140_v9 = vpack.i.bf16 %v345_v6, %v344_v5  ;;  %v348_v11 = vld [vmem:[#allocation2 + $0x2a1] sm:$0xff] }
  0x4f   :  { %6096 = vrot.lane.b32.xlu1 %v6095_v42, %s7327_s29  ;;  %v6145_v10 = vpack.i.bf16 %v347_v8, %v346_v7  ;;  %v349_v12 = vld [vmem:[#allocation2 + $0x2a9] sm:$0xff]  ;;  %v350_v13 = vld [vmem:[#allocation2 + $0x2b9] sm:$0xff]  ;;  %v351_v14 = vld [vmem:[#allocation2 + $0x2c1] sm:$0xff] }
  0x50   :  { %v6150_v15 = vpack.i.bf16 %v349_v12, %v348_v11  ;;  %v6155_v16 = vpack.i.bf16 %v351_v14, %v350_v13  ;;  %v352_v17 = vld [vmem:[#allocation2 + $0x2d1] sm:$0xff]  ;;  %v353_v18 = vld [vmem:[#allocation2 + $0x2d9] sm:$0xff]  ;;  %v354_v19 = vld [vmem:[#allocation2 + $0x2e9] sm:$0xff] }
  0x51   :  { %v355_v20 = vld [vmem:[#allocation2 + $0x2f1] sm:$0xff]  ;;  %v6160_v21 = vpack.i.bf16 %v353_v18, %v352_v17  ;;  %v356_v23 = vld [vmem:[#allocation2 + $0x301] sm:$0xff]  ;;  %v357_v24 = vld [vmem:[#allocation2 + $0x309] sm:$0xff] }
  0x52   :  { %6101 = vrot.lane.b32.xlu0 %v6100_v49, %s7327_s29  ;;  %v6165_v22 = vpack.i.bf16 %v355_v20, %v354_v19  ;;  %v358_v25 = vld [vmem:[#allocation2 + $0x319] sm:$0xff]  ;;  %v359_v26 = vld [vmem:[#allocation2 + $0x321] sm:$0xff]  ;;  %v6170_v27 = vpack.i.bf16 %v357_v24, %v356_v23  ;;  %v361_v30 = vld [vmem:[#allocation2 + $0xa] sm:$0xff] }
  0x53   :  { %6106 = vrot.lane.b32.xlu1 %v6105_v50, %s7327_s29  ;;  %v6175_v28 = vpack.i.bf16 %v359_v26, %v358_v25  ;;  %v360_v29 = vld [vmem:[#allocation2 + $0x2] sm:$0xff]  ;;  %v362_v31 = vld [vmem:[#allocation2 + $0x1a] sm:$0xff]  ;;  %v364_v35 = vld [vmem:[#allocation2 + $0x32] sm:$0xff] }
  0x54   :  { %v363_v32 = vld [vmem:[#allocation2 + $0x22] sm:$0xff]  ;;  %v6180_v33 = vpack.i.bf16 %v361_v30, %v360_v29  ;;  %v365_v36 = vld [vmem:[#allocation2 + $0x3a] sm:$0xff]  ;;  %v366_v37 = vld [vmem:[#allocation2 + $0x4a] sm:$0xff] }
  0x55   :  { %v6185_v34 = vpack.i.bf16 %v363_v32, %v362_v31  ;;  %v367_v38 = vld [vmem:[#allocation2 + $0x52] sm:$0xff]  ;;  %v6190_v39 = vpack.i.bf16 %v365_v36, %v364_v35  ;;  %v368_v41 = vld [vmem:[#allocation2 + $0x62] sm:$0xff]  ;;  %v369_v42 = vld [vmem:[#allocation2 + $0x6a] sm:$0xff] }
  0x56   :  { %6111 = vrot.lane.b32.xlu0 %v6110_v55, %s7327_s29  ;;  %v6195_v40 = vpack.i.bf16 %v367_v38, %v366_v37  ;;  %v370_v43 = vld [vmem:[#allocation2 + $0x7a] sm:$0xff]  ;;  %v371_v44 = vld [vmem:[#allocation2 + $0x82] sm:$0xff]  ;;  %v133_v45 = vld [vmem:[%s11156_s0 + $0xf0] sm:$0xff]  ;;  %v6200_v47 = vpack.i.bf16 %v369_v42, %v368_v41 }
  0x57   :  { %6116 = vrot.lane.b32.xlu1 %v6115_v56, %s7327_s29  ;;  %v134_v46 = vld [vmem:[%s11156_s0 + $0xf8] sm:$0xff]  ;;  %198 = vst.msk [vmem:[#allocation2 + $0x181] sm:$0xff] %vm15_vm0, %v133_v45  ;;  %v6205_v48 = vpack.i.bf16 %v371_v44, %v370_v43  ;;  %v374_v51 = vld [vmem:[#allocation2 + $0xaa] sm:$0xff]  ;;  %v376_v55 = vld [vmem:[#allocation2 + $0xc2] sm:$0xff] }
  0x58   :  { %199 = vst.msk [vmem:[#allocation2 + $0x189] sm:$0xff] %vm15_vm0, %v134_v46  ;;  %v372_v49 = vld [vmem:[#allocation2 + $0x92] sm:$0xff]  ;;  %v373_v50 = vld [vmem:[#allocation2 + $0x9a] sm:$0xff]  ;;  %v377_v56 = vld [vmem:[#allocation2 + $0xca] sm:$0xff] }
  0x59   :  { %v375_v52 = vld [vmem:[#allocation2 + $0xb2] sm:$0xff]  ;;  %v6210_v53 = vpack.i.bf16 %v373_v50, %v372_v49  ;;  %v378_v57 = vld [vmem:[#allocation2 + $0xda] sm:$0xff]  ;;  %v379_v58 = vld [vmem:[#allocation2 + $0xe2] sm:$0xff] }
  0x5a   :  { %6121 = vrot.lane.b32.xlu0 %v6120_v61, %s7327_s29  ;;  %v6215_v54 = vpack.i.bf16 %v375_v52, %v374_v51  ;;  %v165_v59 = vld [vmem:[%s11156_s0 + $0x1f0] sm:$0xff]  ;;  %v166_v60 = vld [vmem:[%s11156_s0 + $0x1f8] sm:$0xff]  ;;  %v6220_v61 = vpack.i.bf16 %v377_v56, %v376_v55  ;;  %v384_v5 = vld [vmem:[#allocation2 + $0x122] sm:$0xff]  ;;  %s7329_s0 = smov 9  }
  0x5b   :  { %6126 = vrot.lane.b32.xlu1 %v6125_v62, %s7327_s29  ;;  %230 = vst.msk [vmem:[#allocation2 + $0x331] sm:$0xff] %vm15_vm0, %v165_v59  ;;  %231 = vst.msk [vmem:[#allocation2 + $0x339] sm:$0xff] %vm15_vm0, %v166_v60  ;;  %v6225_v62 = vpack.i.bf16 %v379_v58, %v378_v57  ;;  %v380_v63 = vld [vmem:[#allocation2 + $0xf2] sm:$0xff]  ;;  %v381_v0 = vld [vmem:[#allocation2 + $0xfa] sm:$0xff] }
  0x5c   :  { %v382_v1 = vld [vmem:[#allocation2 + $0x10a] sm:$0xff]  ;;  %v383_v2 = vld [vmem:[#allocation2 + $0x112] sm:$0xff]  ;;  %v386_v7 = vld [vmem:[#allocation2 + $0x13a] sm:$0xff] }
  0x5d   :  { %v385_v6 = vld [vmem:[#allocation2 + $0x12a] sm:$0xff]  ;;  %v387_v8 = vld [vmem:[#allocation2 + $0x142] sm:$0xff]  ;;  %v388_v11 = vld [vmem:[#allocation2 + $0x152] sm:$0xff] }
  0x5e   :  { %6131 = vrot.lane.b32.xlu0 %v6130_v3, %s7327_s29  ;;  %v6230_v3 = vpack.i.bf16 %v381_v0, %v380_v63  ;;  %v389_v12 = vld [vmem:[#allocation2 + $0x15a] sm:$0xff]  ;;  %v390_v13 = vld [vmem:[#allocation2 + $0x16a] sm:$0xff]  ;;  %v391_v14 = vld [vmem:[#allocation2 + $0x172] sm:$0xff] }
  0x5f   :  { %6136 = vrot.lane.b32.xlu1 %v6135_v4, %s7327_s29  ;;  %v6235_v4 = vpack.i.bf16 %v383_v2, %v382_v1  ;;  %v392_v17 = vld [vmem:[#allocation2 + $0x1b2] sm:$0xff]  ;;  %v393_v18 = vld [vmem:[#allocation2 + $0x1ba] sm:$0xff]  ;;  %v394_v19 = vld [vmem:[#allocation2 + $0x1ca] sm:$0xff] }
  0x60   :  { %v395_v20 = vld [vmem:[#allocation2 + $0x1d2] sm:$0xff]  ;;  %v396_v23 = vld [vmem:[#allocation2 + $0x1e2] sm:$0xff]  ;;  %v397_v24 = vld [vmem:[#allocation2 + $0x1ea] sm:$0xff] }
  0x61   :  { %v398_v25 = vld [vmem:[#allocation2 + $0x1fa] sm:$0xff]  ;;  %v399_v26 = vld [vmem:[#allocation2 + $0x202] sm:$0xff]  ;;  %v400_v29 = vld [vmem:[#allocation2 + $0x212] sm:$0xff] }
  0x62   :  { %6141 = vrot.lane.b32.xlu0 %v6140_v9, %s7327_s29  ;;  %v6240_v9 = vpack.i.bf16 %v385_v6, %v384_v5  ;;  %v401_v30 = vld [vmem:[#allocation2 + $0x21a] sm:$0xff]  ;;  %v402_v31 = vld [vmem:[#allocation2 + $0x22a] sm:$0xff]  ;;  %v403_v32 = vld [vmem:[#allocation2 + $0x232] sm:$0xff] }
  0x63   :  { %6146 = vrot.lane.b32.xlu1 %v6145_v10, %s7327_s29  ;;  %v6245_v10 = vpack.i.bf16 %v387_v8, %v386_v7  ;;  %v404_v35 = vld [vmem:[#allocation2 + $0x242] sm:$0xff]  ;;  %v405_v36 = vld [vmem:[#allocation2 + $0x24a] sm:$0xff]  ;;  %v406_v37 = vld [vmem:[#allocation2 + $0x25a] sm:$0xff] }
  0x64   :  { %v407_v38 = vld [vmem:[#allocation2 + $0x262] sm:$0xff]  ;;  %v408_v41 = vld [vmem:[#allocation2 + $0x272] sm:$0xff]  ;;  %v409_v42 = vld [vmem:[#allocation2 + $0x27a] sm:$0xff] }
  0x65   :  { %v410_v43 = vld [vmem:[#allocation2 + $0x28a] sm:$0xff]  ;;  %v411_v44 = vld [vmem:[#allocation2 + $0x292] sm:$0xff]  ;;  %v6300_v45 = vpack.i.bf16 %v409_v42, %v408_v41  ;;  %v414_v49 = vld [vmem:[#allocation2 + $0x2ba] sm:$0xff] }
  0x66   :  { %6151 = vrot.lane.b32.xlu0 %v6150_v15, %s7327_s29  ;;  %v6250_v15 = vpack.i.bf16 %v389_v12, %v388_v11  ;;  %v6305_v46 = vpack.i.bf16 %v411_v44, %v410_v43  ;;  %v415_v50 = vld [vmem:[#allocation2 + $0x2c2] sm:$0xff]  ;;  %v418_v56 = vld [vmem:[#allocation2 + $0x2ea] sm:$0xff]  ;;  %v419_v57 = vld [vmem:[#allocation2 + $0x2f2] sm:$0xff] }
  0x67   :  { %6156 = vrot.lane.b32.xlu1 %v6155_v16, %s7327_s29  ;;  %v6255_v16 = vpack.i.bf16 %v391_v14, %v390_v13  ;;  %v6315_v52 = vpack.i.bf16 %v415_v50, %v414_v49  ;;  %v6325_v60 = vpack.i.bf16 %v419_v57, %v418_v56  ;;  %v422_v0 = vld [vmem:[#allocation2 + $0x31a] sm:$0xff]  ;;  %v423_v1 = vld [vmem:[#allocation2 + $0x322] sm:$0xff]  ;;  %v7897_v41 = vld [vmem:[#allocation2 + $0xf0] sm:$0xff] }
  0x68   :  { %v234_v6 = vld [vmem:[#allocation2 + $0x18] sm:$0xff]  ;;  %v235_v7 = vld [vmem:[#allocation2 + $0x20] sm:$0xff]  ;;  %v238_v14 = vld [vmem:[#allocation2 + $0x48] sm:$0xff] }
  0x69   :  { %v6340_v11 = vpack.i.bf16 %v235_v7, %v234_v6  ;;  %v7899_v42 = vld [vmem:[#allocation2 + $0xf8] sm:$0xff]  ;;  %v7915_v49 = vld [vmem:[#allocation2 + $0x120] sm:$0xff]  ;;  %v7917_v50 = vld [vmem:[#allocation2 + $0x128] sm:$0xff] }
  0x6a   :  { %6161 = vrot.lane.b32.xlu0 %v6160_v21, %s7327_s29  ;;  %v6260_v21 = vpack.i.bf16 %v393_v18, %v392_v17  ;;  %v240_v17 = vld [vmem:[#allocation2 + $0x60] sm:$0xff]  ;;  %v241_v18 = vld [vmem:[#allocation2 + $0x68] sm:$0xff]  ;;  %v6385_v44 = vpack.i.bf16 %v7899_v42, %v7897_v41  ;;  %v7947_v6 = vld [vmem:[#allocation2 + $0x170] sm:$0xff] }
  0x6b   :  { %6166 = vrot.lane.b32.xlu1 %v6165_v22, %s7327_s29  ;;  %v6265_v22 = vpack.i.bf16 %v395_v20, %v394_v19  ;;  %v6355_v20 = vpack.i.bf16 %v241_v18, %v240_v17  ;;  %v7929_v56 = vld [vmem:[#allocation2 + $0x140] sm:$0xff]  ;;  %v269_v18 = vld [vmem:[#allocation2 + $0x1e8] sm:$0xff] }
  0x6c   :  { %v268_v17 = vld [vmem:[#allocation2 + $0x1e0] sm:$0xff] }
  0x6e   :  { %6171 = vrot.lane.b32.xlu0 %v6170_v27, %s7327_s29  ;;  %v6270_v27 = vpack.i.bf16 %v397_v24, %v396_v23  ;;  %v243_v23 = vld [vmem:[#allocation2 + $0x80] sm:$0xff] }
  0x6f   :  { %6176 = vrot.lane.b32.xlu1 %v6175_v28, %s7327_s29  ;;  %v6275_v28 = vpack.i.bf16 %v399_v26, %v398_v25  ;;  %v7863_v25 = vld [vmem:[#allocation2 + $0x90] sm:$0xff]  ;;  %v7865_v26 = vld [vmem:[#allocation2 + $0x98] sm:$0xff] }
  0x72   :  { %6181 = vrot.lane.b32.xlu0 %v6180_v33, %s7328_s27  ;;  %v6280_v33 = vpack.i.bf16 %v401_v30, %v400_v29  ;;  %v7873_v30 = vld [vmem:[#allocation2 + $0xa8] sm:$0xff] }
  0x73   :  { %6186 = vrot.lane.b32.xlu1 %v6185_v34, %s7328_s27  ;;  %v6285_v34 = vpack.i.bf16 %v403_v32, %v402_v31  ;;  %v7875_v31 = vld [vmem:[#allocation2 + $0xb0] sm:$0xff] }
  0x76   :  { %6191 = vrot.lane.b32.xlu0 %v6190_v39, %s7328_s27  ;;  %v6290_v39 = vpack.i.bf16 %v405_v36, %v404_v35  ;;  %v6370_v35 = vpack.i.bf16 %v7875_v31, %v7873_v30 }
  0x77   :  { %6196 = vrot.lane.b32.xlu1 %v6195_v40, %s7328_s27  ;;  %v6295_v40 = vpack.i.bf16 %v407_v38, %v406_v37  ;;  %v7891_v38 = vld [vmem:[#allocation2 + $0xd8] sm:$0xff] }
  0x7a   :  { %6201 = vrot.lane.b32.xlu0 %v6200_v47, %s7328_s27  ;;  %v412_v47 = vld [vmem:[#allocation2 + $0x2a2] sm:$0xff] }
  0x7b   :  { %6206 = vrot.lane.b32.xlu1 %v6205_v48, %s7328_s27  ;;  %v413_v48 = vld [vmem:[#allocation2 + $0x2aa] sm:$0xff] }
  0x7c   :  { %v6310_v51 = vpack.i.bf16 %v413_v48, %v412_v47  ;;  %v7911_v47 = vld [vmem:[#allocation2 + $0x110] sm:$0xff] }
  0x7e   :  { %6211 = vrot.lane.b32.xlu0 %v6210_v53, %s7328_s27  ;;  %v416_v53 = vld [vmem:[#allocation2 + $0x2d2] sm:$0xff] }
  0x7f   :  { %6216 = vrot.lane.b32.xlu1 %v6215_v54, %s7328_s27  ;;  %v417_v54 = vld [vmem:[#allocation2 + $0x2da] sm:$0xff] }
  0x80   :  { %v6320_v59 = vpack.i.bf16 %v417_v54, %v416_v53  ;;  %v7927_v54 = vld [vmem:[#allocation2 + $0x138] sm:$0xff] }
  0x81   :  { %v7835_v55 = vpop.permute.xlu0 %6021 }
  0x82   :  { %6221 = vrot.lane.b32.xlu0 %v6220_v61, %s7328_s27  ;;  %11276 = vst [vmem:[#allocation3_spill] sm:$0xff] %v7835_v55  ;;  %v420_v61 = vld [vmem:[#allocation2 + $0x302] sm:$0xff] }
  0x83   :  { %6226 = vrot.lane.b32.xlu1 %v6225_v62, %s7328_s27  ;;  %v421_v62 = vld [vmem:[#allocation2 + $0x30a] sm:$0xff] }
  0x84   :  { %v8043_v55 = vld [vmem:[#allocation2 + $0x308] sm:$0xff] }
  0x85   :  { %11317 = vst [vmem:[#allocation44_spill] sm:$0xff] %v8043_v55 }
  0x86   :  { %6231 = vrot.lane.b32.xlu0 %v6230_v3, %s7328_s27  ;;  %v6330_v3 = vpack.i.bf16 %v421_v62, %v420_v61  ;;  %v6400_v61 = vpack.i.bf16 %v7929_v56, %v7927_v54 }
  0x87   :  { %6236 = vrot.lane.b32.xlu1 %v6235_v4, %s7328_s27  ;;  %v6335_v4 = vpack.i.bf16 %v423_v1, %v422_v0  ;;  %v454_v1 = vld [vmem:[#allocation2 + $0x180] sm:$0xff] }
  0x8a   :  { %6241 = vrot.lane.b32.xlu0 %v6240_v9, %s7328_s27  ;;  %v236_v9 = vld [vmem:[#allocation2 + $0x30] sm:$0xff] }
  0x8b   :  { %6246 = vrot.lane.b32.xlu1 %v6245_v10, %s7328_s27  ;;  %v237_v10 = vld [vmem:[#allocation2 + $0x38] sm:$0xff] }
  0x8c   :  { %v6345_v12 = vpack.i.bf16 %v237_v10, %v236_v9 }
  0x8e   :  { %6251 = vrot.lane.b32.xlu0 %v6250_v15, %s7328_s27  ;;  %v239_v15 = vld [vmem:[#allocation2 + $0x50] sm:$0xff] }
  0x8f   :  { %6256 = vrot.lane.b32.xlu1 %v6255_v16, %s7328_s27  ;;  %v6350_v19 = vpack.i.bf16 %v239_v15, %v238_v14  ;;  %v267_v14 = vld [vmem:[#allocation2 + $0x1d0] sm:$0xff] }
  0x92   :  { %6261 = vrot.lane.b32.xlu0 %v6260_v21, %s7328_s27 }
  0x93   :  { %6266 = vrot.lane.b32.xlu1 %v6265_v22, %s7328_s27  ;;  %v242_v22 = vld [vmem:[#allocation2 + $0x78] sm:$0xff] }
  0x96   :  { %6271 = vrot.lane.b32.xlu0 %v6270_v27, %s7328_s27  ;;  %v6360_v27 = vpack.i.bf16 %v243_v23, %v242_v22  ;;  %v270_v23 = vld [vmem:[#allocation2 + $0x1f8] sm:$0xff] }
  0x97   :  { %6276 = vrot.lane.b32.xlu1 %v6275_v28, %s7328_s27  ;;  %v6365_v28 = vpack.i.bf16 %v7865_v26, %v7863_v25 }
  0x9a   :  { %6281 = vrot.lane.b32.xlu0 %v6280_v33, %s7328_s27  ;;  %v7879_v33 = vld [vmem:[#allocation2 + $0xc0] sm:$0xff] }
  0x9b   :  { %6286 = vrot.lane.b32.xlu1 %v6285_v34, %s7328_s27  ;;  %v7881_v34 = vld [vmem:[#allocation2 + $0xc8] sm:$0xff] }
  0x9c   :  { %v6375_v36 = vpack.i.bf16 %v7881_v34, %v7879_v33 }
  0x9e   :  { %6291 = vrot.lane.b32.xlu0 %v6290_v39, %s7328_s27  ;;  %v7893_v39 = vld [vmem:[#allocation2 + $0xe0] sm:$0xff] }
  0x9f   :  { %6296 = vrot.lane.b32.xlu1 %v6295_v40, %s7328_s27  ;;  %v6380_v43 = vpack.i.bf16 %v7893_v39, %v7891_v38 }
  0xa2   :  { %6301 = vrot.lane.b32.xlu0 %v6300_v45, %s7328_s27 }
  0xa3   :  { %6306 = vrot.lane.b32.xlu1 %v6305_v46, %s7328_s27  ;;  %v7909_v46 = vld [vmem:[#allocation2 + $0x108] sm:$0xff] }
  0xa4   :  { %v7837_v58 = vpop.permute.xlu1 %6031 }
  0xa5   :  { %11277 = vst [vmem:[#allocation4_spill] sm:$0xff] %v7837_v58  ;;  %v8041_v58 = vld [vmem:[#allocation2 + $0x300] sm:$0xff] }
  0xa6   :  { %6311 = vrot.lane.b32.xlu0 %v6310_v51, %s7328_s27  ;;  %v6390_v51 = vpack.i.bf16 %v7911_v47, %v7909_v46  ;;  %11316 = vst [vmem:[#allocation43_spill] sm:$0xff] %v8041_v58 }
  0xa7   :  { %6316 = vrot.lane.b32.xlu1 %v6315_v52, %s7328_s27  ;;  %v6395_v52 = vpack.i.bf16 %v7917_v50, %v7915_v49 }
  0xa8   :  { %v7841_v63 = vpop.permute.xlu0 %6026 }
  0xa9   :  { %11278 = vst [vmem:[#allocation5_spill] sm:$0xff] %v7841_v63  ;;  %v7843_v2 = vpop.permute.xlu1 %6036 }
  0xaa   :  { %11279 = vst [vmem:[#allocation6_spill] sm:$0xff] %v7843_v2  ;;  %6321 = vrot.lane.b32.xlu0 %v6320_v59, %s7328_s27  ;;  %v7933_v59 = vld [vmem:[#allocation2 + $0x150] sm:$0xff] }
  0xab   :  { %6326 = vrot.lane.b32.xlu1 %v6325_v60, %s7328_s27  ;;  %v7935_v60 = vld [vmem:[#allocation2 + $0x158] sm:$0xff]  ;;  %v8037_v2 = vld [vmem:[#allocation2 + $0x2f0] sm:$0xff] }
  0xac   :  { %v7847_v5 = vpop.permute.xlu0 %6041  ;;  %v6405_v62 = vpack.i.bf16 %v7935_v60, %v7933_v59  ;;  %11314 = vst [vmem:[#allocation41_spill] sm:$0xff] %v8037_v2 }
  0xad   :  { %11280 = vst [vmem:[#allocation7_spill] sm:$0xff] %v7847_v5  ;;  %v7849_v8 = vpop.permute.xlu1 %6046  ;;  %v8035_v5 = vld [vmem:[#allocation2 + $0x2e8] sm:$0xff] }
  0xae   :  { %11281 = vst [vmem:[#allocation8_spill] sm:$0xff] %v7849_v8  ;;  %6331 = vrot.lane.b32.xlu0 %v6330_v3, %s7328_s27  ;;  %v455_v3 = vld [vmem:[#allocation2 + $0x188] sm:$0xff]  ;;  %11313 = vst [vmem:[#allocation40_spill] sm:$0xff] %v8035_v5 }
  0xaf   :  { %6336 = vrot.lane.b32.xlu1 %v6335_v4, %s7328_s27  ;;  %v7945_v4 = vld [vmem:[#allocation2 + $0x168] sm:$0xff]  ;;  %v6415_v10 = vpack.i.bf16 %v455_v3, %v454_v1  ;;  %v7971_v1 = vld [vmem:[#allocation2 + $0x240] sm:$0xff] }
  0xb0   :  { %v7853_v13 = vpop.permute.xlu0 %6051  ;;  %v6410_v9 = vpack.i.bf16 %v7947_v6, %v7945_v4  ;;  %11292 = vst [vmem:[#allocation19_spill] sm:$0xff] %v7971_v1  ;;  %v7973_v3 = vld [vmem:[#allocation2 + $0x248] sm:$0xff] }
  0xb1   :  { %v7855_v16 = vpop.permute.xlu1 %6056  ;;  %11293 = vst [vmem:[#allocation20_spill] sm:$0xff] %v7973_v3 }
  0xb2   :  { %6341 = vrot.lane.b32.xlu0 %v6340_v11, %s7329_s0 }
  0xb3   :  { %6346 = vrot.lane.b32.xlu1 %v6345_v12, %s7329_s0  ;;  %v266_v12 = vld [vmem:[#allocation2 + $0x1c8] sm:$0xff] }
  0xb4   :  { %v7859_v21 = vpop.permute.xlu0 %6061 }
  0xb5   :  { %v7861_v24 = vpop.permute.xlu1 %6066 }
  0xb6   :  { %6351 = vrot.lane.b32.xlu0 %v6350_v19, %s7329_s0  ;;  %v6420_v19 = vpack.i.bf16 %v267_v14, %v266_v12  ;;  %v7981_v14 = vld [vmem:[#allocation2 + $0x258] sm:$0xff] }
  0xb7   :  { %6356 = vrot.lane.b32.xlu1 %v6355_v20, %s7329_s0  ;;  %v6425_v20 = vpack.i.bf16 %v269_v18, %v268_v17  ;;  %11295 = vst [vmem:[#allocation22_spill] sm:$0xff] %v7981_v14  ;;  %v7983_v17 = vld [vmem:[#allocation2 + $0x260] sm:$0xff] }
  0xb8   :  { %v7871_v29 = vpop.permute.xlu0 %6071  ;;  %11296 = vst [vmem:[#allocation23_spill] sm:$0xff] %v7983_v17 }
  0xb9   :  { %v7877_v32 = vpop.permute.xlu1 %6076 }
  0xba   :  { %6361 = vrot.lane.b32.xlu0 %v6360_v27, %s7329_s0  ;;  %v271_v27 = vld [vmem:[#allocation2 + $0x200] sm:$0xff] }
  0xbb   :  { %6366 = vrot.lane.b32.xlu1 %v6365_v28, %s7329_s0 }
  0xbc   :  { %v7889_v37 = vpop.permute.xlu0 %6081 }
  0xbd   :  { %v7895_v40 = vpop.permute.xlu1 %6086 }
  0xbe   :  { %6371 = vrot.lane.b32.xlu0 %v6370_v35, %s7329_s0  ;;  %v272_v35 = vld [vmem:[#allocation2 + $0x210] sm:$0xff] }
  0xbf   :  { %6376 = vrot.lane.b32.xlu1 %v6375_v36, %s7329_s0  ;;  %v273_v36 = vld [vmem:[#allocation2 + $0x218] sm:$0xff] }
  0xc0   :  { %v7907_v45 = vpop.permute.xlu0 %6091 }
  0xc1   :  { %v7913_v48 = vpop.permute.xlu1 %6096 }
  0xc2   :  { %6381 = vrot.lane.b32.xlu0 %v6380_v43, %s7329_s0  ;;  %v6430_v43 = vpack.i.bf16 %v271_v27, %v270_v23  ;;  %v6450_v23 = vpack.i.bf16 %v7983_v17, %v7981_v14  ;;  %v8141_v14 = vld [vmem:[#allocation2 + $0x2d9] sm:$0xff] }
  0xc3   :  { %6386 = vrot.lane.b32.xlu1 %v6385_v44, %s7329_s0  ;;  %v6435_v44 = vpack.i.bf16 %v273_v36, %v272_v35  ;;  %v7999_v36 = vld [vmem:[#allocation2 + $0x288] sm:$0xff] }
  0xc4   :  { %v7925_v53 = vpop.permute.xlu0 %6101  ;;  %11301 = vst [vmem:[#allocation28_spill] sm:$0xff] %v7999_v36 }
  0xc5   :  { %11282 = vst [vmem:[#allocation9_spill] sm:$0xff] %v7925_v53  ;;  %v7931_v57 = vpop.permute.xlu1 %6106  ;;  %v8025_v53 = vld [vmem:[#allocation2 + $0x2d8] sm:$0xff] }
  0xc6   :  { %11283 = vst [vmem:[#allocation10_spill] sm:$0xff] %v7931_v57  ;;  %6391 = vrot.lane.b32.xlu0 %v6390_v51, %s7329_s0  ;;  %v8023_v57 = vld [vmem:[#allocation2 + $0x2d0] sm:$0xff]  ;;  %11311 = vst [vmem:[#allocation38_spill] sm:$0xff] %v8025_v53 }
  0xc7   :  { %6396 = vrot.lane.b32.xlu1 %v6395_v52, %s7329_s0  ;;  %v274_v52 = vld [vmem:[#allocation2 + $0x228] sm:$0xff]  ;;  %11310 = vst [vmem:[#allocation37_spill] sm:$0xff] %v8023_v57 }
  0xc8   :  { %v7943_v0 = vpop.permute.xlu0 %6111 }
  0xc9   :  { %11284 = vst [vmem:[#allocation11_spill] sm:$0xff] %v7943_v0  ;;  %v7949_v7 = vpop.permute.xlu1 %6116 }
  0xca   :  { %11285 = vst [vmem:[#allocation12_spill] sm:$0xff] %v7949_v7  ;;  %6401 = vrot.lane.b32.xlu0 %v6400_v61, %s7329_s0  ;;  %v275_v61 = vld [vmem:[#allocation2 + $0x230] sm:$0xff]  ;;  %v8019_v7 = vld [vmem:[#allocation2 + $0x2c0] sm:$0xff] }
  0xcb   :  { %6406 = vrot.lane.b32.xlu1 %v6405_v62, %s7329_s0  ;;  %11308 = vst [vmem:[#allocation35_spill] sm:$0xff] %v8019_v7 }
  0xcc   :  { %v7955_v11 = vpop.permute.xlu0 %6121 }
  0xcd   :  { %11286 = vst [vmem:[#allocation13_spill] sm:$0xff] %v7955_v11  ;;  %v7957_v15 = vpop.permute.xlu1 %6126  ;;  %v8017_v11 = vld [vmem:[#allocation2 + $0x2b8] sm:$0xff] }
  0xce   :  { %11287 = vst [vmem:[#allocation14_spill] sm:$0xff] %v7957_v15  ;;  %6411 = vrot.lane.b32.xlu0 %v6410_v9, %s7329_s0  ;;  %v6440_v9 = vpack.i.bf16 %v275_v61, %v274_v52  ;;  %v8005_v52 = vld [vmem:[#allocation2 + $0x2a0] sm:$0xff]  ;;  %v8007_v61 = vld [vmem:[#allocation2 + $0x2a8] sm:$0xff]  ;;  %11307 = vst [vmem:[#allocation34_spill] sm:$0xff] %v8017_v11 }
  0xcf   :  { %6416 = vrot.lane.b32.xlu1 %v6415_v10, %s7329_s0  ;;  %v6445_v10 = vpack.i.bf16 %v7973_v3, %v7971_v1  ;;  %11304 = vst [vmem:[#allocation31_spill] sm:$0xff] %v8005_v52  ;;  %11305 = vst [vmem:[#allocation32_spill] sm:$0xff] %v8007_v61  ;;  %v8159_v1 = vld [vmem:[#allocation2 + $0x331] sm:$0xff]  ;;  %v8163_v3 = vld [vmem:[#allocation2 + $0x1a] sm:$0xff] }
  0xd0   :  { %v7961_v22 = vpop.permute.xlu0 %6131 }
  0xd1   :  { %11288 = vst [vmem:[#allocation15_spill] sm:$0xff] %v7961_v22  ;;  %v7963_v28 = vpop.permute.xlu1 %6136  ;;  %v8171_v22 = vld [vmem:[#allocation2 + $0x22] sm:$0xff] }
  0xd2   :  { %11289 = vst [vmem:[#allocation16_spill] sm:$0xff] %v7963_v28  ;;  %6421 = vrot.lane.b32.xlu0 %v6420_v19, %s7329_s0  ;;  %v7987_v19 = vld [vmem:[#allocation2 + $0x270] sm:$0xff] }
  0xd3   :  { %6426 = vrot.lane.b32.xlu1 %v6425_v20, %s7329_s0  ;;  %11298 = vst [vmem:[#allocation25_spill] sm:$0xff] %v7987_v19  ;;  %v7989_v20 = vld [vmem:[#allocation2 + $0x278] sm:$0xff] }
  0xd4   :  { %v7967_v51 = vpop.permute.xlu0 %6141  ;;  %11299 = vst [vmem:[#allocation26_spill] sm:$0xff] %v7989_v20  ;;  %v6455_v27 = vpack.i.bf16 %v7989_v20, %v7987_v19  ;;  %v508_v19 = vld [vmem:[#allocation2 + $0x109] sm:$0xff] }
  0xd5   :  { %11290 = vst [vmem:[#allocation17_spill] sm:$0xff] %v7967_v51  ;;  %v7969_v62 = vpop.permute.xlu1 %6146  ;;  %v6054_v51 = vunpack.i.h.bf16 %v7853_v13 }
  0xd6   :  { %11291 = vst [vmem:[#allocation18_spill] sm:$0xff] %v7969_v62  ;;  %6431 = vrot.lane.b32.xlu0 %v6430_v43, %s7329_s0  ;;  %v8001_v43 = vld [vmem:[#allocation2 + $0x290] sm:$0xff] }
  0xd7   :  { %6436 = vrot.lane.b32.xlu1 %v6435_v44, %s7329_s0  ;;  %11302 = vst [vmem:[#allocation29_spill] sm:$0xff] %v8001_v43  ;;  %v516_v62 = vld [vmem:[#allocation2 + $0x169] sm:$0xff] }
  0xd8   :  { %v7979_v12 = vpop.permute.xlu0 %6151 }
  0xd9   :  { %11294 = vst [vmem:[#allocation21_spill] sm:$0xff] %v7979_v12  ;;  %v7985_v18 = vpop.permute.xlu1 %6156 }
  0xda   :  { %11297 = vst [vmem:[#allocation24_spill] sm:$0xff] %v7985_v18  ;;  %6441 = vrot.lane.b32.xlu0 %v6440_v9, %s7329_s0  ;;  %v6460_v9 = vpack.i.bf16 %v8001_v43, %v7999_v36  ;;  %v500_v36 = vld [vmem:[#allocation2 + $0xa9] sm:$0xff]  ;;  %v512_v18 = vld [vmem:[#allocation2 + $0x139] sm:$0xff] }
  0xdb   :  { %6446 = vrot.lane.b32.xlu1 %v6445_v10, %s7329_s0  ;;  %v6465_v10 = vpack.i.bf16 %v8007_v61, %v8005_v52  ;;  %v492_v52 = vld [vmem:[#allocation2 + $0x49] sm:$0xff] }
  0xdc   :  { %v7997_v35 = vpop.permute.xlu0 %6161 }
  0xdd   :  { %11300 = vst [vmem:[#allocation27_spill] sm:$0xff] %v7997_v35  ;;  %v8003_v44 = vpop.permute.xlu1 %6166 }
  0xde   :  { %11303 = vst [vmem:[#allocation30_spill] sm:$0xff] %v8003_v44  ;;  %6451 = vrot.lane.b32.xlu0 %v6450_v23, %s7329_s0  ;;  %v6470_v23 = vpack.i.bf16 %v8019_v7, %v8017_v11  ;;  %v490_v7 = vld [vmem:[#allocation2 + $0x31] sm:$0xff]  ;;  %v504_v44 = vld [vmem:[#allocation2 + $0xd9] sm:$0xff] }
  0xdf   :  { %6456 = vrot.lane.b32.xlu1 %v6455_v27, %s7329_s0  ;;  %v6475_v27 = vpack.i.bf16 %v8025_v53, %v8023_v57  ;;  %v487_v57 = vld [vmem:[#allocation2 + $0x338] sm:$0xff] }
  0xe0   :  { %v8015_v15 = vpop.permute.xlu0 %6171  ;;  %v294_v53 = vld [vmem:[#allocation2 + $0x318] sm:$0xff] }
  0xe1   :  { %11306 = vst [vmem:[#allocation33_spill] sm:$0xff] %v8015_v15  ;;  %v8021_v0 = vpop.permute.xlu1 %6176 }
  0xe2   :  { %11309 = vst [vmem:[#allocation36_spill] sm:$0xff] %v8021_v0  ;;  %6461 = vrot.lane.b32.xlu0 %v6460_v9, %s7329_s0  ;;  %v6480_v9 = vpack.i.bf16 %v8037_v2, %v8035_v5  ;;  %v486_v0 = vld [vmem:[#allocation2 + $0x330] sm:$0xff]  ;;  %v488_v5 = vld [vmem:[#allocation2 + $0x19] sm:$0xff]  ;;  %v489_v2 = vld [vmem:[#allocation2 + $0x21] sm:$0xff] }
  0xe3   :  { %6466 = vrot.lane.b32.xlu1 %v6465_v10, %s7329_s0  ;;  %v6485_v10 = vpack.i.bf16 %v8043_v55, %v8041_v58  ;;  %v491_v58 = vld [vmem:[#allocation2 + $0x39] sm:$0xff] }
  0xe4   :  { %v8033_v8 = vpop.permute.xlu0 %6181 }
  0xe5   :  { %11312 = vst [vmem:[#allocation39_spill] sm:$0xff] %v8033_v8  ;;  %v8039_v63 = vpop.permute.xlu1 %6186 }
  0xe6   :  { %11315 = vst [vmem:[#allocation42_spill] sm:$0xff] %v8039_v63  ;;  %6471 = vrot.lane.b32.xlu0 %v6470_v23, %s7329_s0  ;;  %v295_v63 = vld [vmem:[#allocation2 + $0x320] sm:$0xff]  ;;  %v6495_v23 = vpack.i.bf16 %v487_v57, %v486_v0  ;;  %v495_v57 = vld [vmem:[#allocation2 + $0x69] sm:$0xff] }
  0xe7   :  { %6476 = vrot.lane.b32.xlu1 %v6475_v27, %s7329_s0  ;;  %v6490_v11 = vpack.i.bf16 %v295_v63, %v294_v53  ;;  %v494_v53 = vld [vmem:[#allocation2 + $0x61] sm:$0xff] }
  0xe8   :  { %v8051_v8 = vpop.permute.xlu0 %6191 }
  0xe9   :  { %11318 = vst [vmem:[#allocation45_spill] sm:$0xff] %v8051_v8  ;;  %v8053_v15 = vpop.permute.xlu1 %6196  ;;  %v6500_v8 = vpack.i.bf16 %v489_v2, %v488_v5  ;;  %v497_v2 = vld [vmem:[#allocation2 + $0x81] sm:$0xff] }
  0xea   :  { %11319 = vst [vmem:[#allocation46_spill] sm:$0xff] %v8053_v15  ;;  %6481 = vrot.lane.b32.xlu0 %v6480_v9, %s7329_s0  ;;  %v6505_v15 = vpack.i.bf16 %v491_v58, %v490_v7  ;;  %v493_v9 = vld [vmem:[#allocation2 + $0x51] sm:$0xff]  ;;  %v499_v7 = vld [vmem:[#allocation2 + $0x99] sm:$0xff] }
  0xeb   :  { %6486 = vrot.lane.b32.xlu1 %v6485_v10, %s7329_s0  ;;  %v6510_v10 = vpack.i.bf16 %v493_v9, %v492_v52  ;;  %v498_v58 = vld [vmem:[#allocation2 + $0x91] sm:$0xff]  ;;  %v503_v9 = vld [vmem:[#allocation2 + $0xc9] sm:$0xff] }
  0xec   :  { %v8057_v27 = vpop.permute.xlu0 %6201  ;;  %v6525_v61 = vpack.i.bf16 %v499_v7, %v498_v58 }
  0xed   :  { %11320 = vst [vmem:[#allocation47_spill] sm:$0xff] %v8057_v27  ;;  %v8059_v55 = vpop.permute.xlu1 %6206 }
  0xee   :  { %11321 = vst [vmem:[#allocation48_spill] sm:$0xff] %v8059_v55  ;;  %6491 = vrot.lane.b32.xlu0 %v6490_v11, %s7329_s0  ;;  %v6515_v55 = vpack.i.bf16 %v495_v57, %v494_v53  ;;  %v496_v11 = vld [vmem:[#allocation2 + $0x79] sm:$0xff] }
  0xef   :  { %6496 = vrot.lane.b32.xlu1 %v6495_v23, %s7329_s0  ;;  %v6520_v27 = vpack.i.bf16 %v497_v2, %v496_v11  ;;  %v507_v2 = vld [vmem:[#allocation2 + $0xf9] sm:$0xff] }
  0xf0   :  { %v8063_v63 = vpop.permute.xlu0 %6211 }
  0xf1   :  { %v8065_v0 = vpop.permute.xlu1 %6216 }
  0xf2   :  { %6501 = vrot.lane.b32.xlu0 %v6500_v8, %s7330_s9  ;;  %v501_v8 = vld [vmem:[#allocation2 + $0xb1] sm:$0xff] }
  0xf3   :  { %6506 = vrot.lane.b32.xlu1 %v6505_v15, %s7330_s9  ;;  %v502_v15 = vld [vmem:[#allocation2 + $0xc1] sm:$0xff]  ;;  %v6530_v57 = vpack.i.bf16 %v501_v8, %v500_v36  ;;  %v511_v8 = vld [vmem:[#allocation2 + $0x129] sm:$0xff] }
  0xf4   :  { %v8069_v5 = vpop.permute.xlu0 %6221  ;;  %v6535_v43 = vpack.i.bf16 %v503_v9, %v502_v15 }
  0xf5   :  { %v8071_v23 = vpop.permute.xlu1 %6226 }
  0xf6   :  { %6511 = vrot.lane.b32.xlu0 %v6510_v10, %s7330_s9  ;;  %v505_v10 = vld [vmem:[#allocation2 + $0xe1] sm:$0xff] }
  0xf7   :  { %6516 = vrot.lane.b32.xlu1 %v6515_v55, %s7330_s9  ;;  %v506_v55 = vld [vmem:[#allocation2 + $0xf1] sm:$0xff]  ;;  %v6540_v7 = vpack.i.bf16 %v505_v10, %v504_v44  ;;  %v515_v10 = vld [vmem:[#allocation2 + $0x159] sm:$0xff] }
  0xf8   :  { %v8075_v52 = vpop.permute.xlu0 %6231  ;;  %v6545_v35 = vpack.i.bf16 %v507_v2, %v506_v55 }
  0xf9   :  { %v8077_v53 = vpop.permute.xlu1 %6236 }
  0xfa   :  { %11322 = vst [vmem:[#allocation49_spill] sm:$0xff] %v8077_v53  ;;  %6521 = vrot.lane.b32.xlu0 %v6520_v27, %s7330_s9  ;;  %v509_v27 = vld [vmem:[#allocation2 + $0x111] sm:$0xff] }
  0xfb   :  { %6526 = vrot.lane.b32.xlu1 %v6525_v61, %s7330_s9  ;;  %v510_v61 = vld [vmem:[#allocation2 + $0x121] sm:$0xff]  ;;  %v6550_v9 = vpack.i.bf16 %v509_v27, %v508_v19  ;;  %v519_v27 = vld [vmem:[#allocation2 + $0x189] sm:$0xff] }
  0xfc   :  { %v8081_v11 = vpop.permute.xlu0 %6241  ;;  %v6555_v20 = vpack.i.bf16 %v511_v8, %v510_v61 }
  0xfd   :  { %11323 = vst [vmem:[#allocation50_spill] sm:$0xff] %v8081_v11  ;;  %v8083_v58 = vpop.permute.xlu1 %6246  ;;  %v556_v11 = vld [vmem:[#allocation2 + $0x4a] sm:$0xff] }
  0xfe   :  { %11324 = vst [vmem:[#allocation51_spill] sm:$0xff] %v8083_v58  ;;  %6531 = vrot.lane.b32.xlu0 %v6530_v57, %s7330_s9  ;;  %v513_v57 = vld [vmem:[#allocation2 + $0x141] sm:$0xff] }
  0xff   :  { %6536 = vrot.lane.b32.xlu1 %v6535_v43, %s7330_s9  ;;  %v514_v43 = vld [vmem:[#allocation2 + $0x151] sm:$0xff]  ;;  %v6560_v2 = vpack.i.bf16 %v513_v57, %v512_v18  ;;  %v523_v57 = vld [vmem:[#allocation2 + $0x1e9] sm:$0xff] }
 0x100   :  { %v8087_v36 = vpop.permute.xlu0 %6251  ;;  %v6565_v12 = vpack.i.bf16 %v515_v10, %v514_v43 }
 0x101   :  { %11325 = vst [vmem:[#allocation52_spill] sm:$0xff] %v8087_v36  ;;  %v8089_v15 = vpop.permute.xlu1 %6256 }
 0x102   :  { %11326 = vst [vmem:[#allocation53_spill] sm:$0xff] %v8089_v15  ;;  %6541 = vrot.lane.b32.xlu0 %v6540_v7, %s7330_s9  ;;  %v517_v7 = vld [vmem:[#allocation2 + $0x171] sm:$0xff]  ;;  %v6063_v15 = vunpack.i.l.bf16 %v7859_v21 }
 0x103   :  { %6546 = vrot.lane.b32.xlu1 %v6545_v35, %s7330_s9  ;;  %v518_v35 = vld [vmem:[#allocation2 + $0x181] sm:$0xff]  ;;  %v6570_v8 = vpack.i.bf16 %v517_v7, %v516_v62 }
 0x104   :  { %v8093_v44 = vpop.permute.xlu0 %6261  ;;  %v525_v62 = vld [vmem:[#allocation2 + $0x201] sm:$0xff] }
 0x105   :  { %11327 = vst [vmem:[#allocation54_spill] sm:$0xff] %v8093_v44  ;;  %v8095_v55 = vpop.permute.xlu1 %6266  ;;  %v520_v44 = vld [vmem:[#allocation2 + $0x1c9] sm:$0xff] }
 0x106   :  { %11328 = vst [vmem:[#allocation55_spill] sm:$0xff] %v8095_v55  ;;  %6551 = vrot.lane.b32.xlu0 %v6550_v9, %s7330_s9  ;;  %v6575_v55 = vpack.i.bf16 %v519_v27, %v518_v35  ;;  %v521_v9 = vld [vmem:[#allocation2 + $0x1d1] sm:$0xff]  ;;  %v527_v35 = vld [vmem:[#allocation2 + $0x219] sm:$0xff] }
 0x107   :  { %6556 = vrot.lane.b32.xlu1 %v6555_v20, %s7330_s9  ;;  %v522_v20 = vld [vmem:[#allocation2 + $0x1e1] sm:$0xff]  ;;  %v6580_v10 = vpack.i.bf16 %v521_v9, %v520_v44 }
 0x108   :  { %v8099_v19 = vpop.permute.xlu0 %6271 }
 0x109   :  { %11329 = vst [vmem:[#allocation56_spill] sm:$0xff] %v8099_v19  ;;  %v8101_v61 = vpop.permute.xlu1 %6276 }
 0x10a   :  { %11330 = vst [vmem:[#allocation57_spill] sm:$0xff] %v8101_v61  ;;  %6561 = vrot.lane.b32.xlu0 %v6560_v2, %s7330_s9  ;;  %v8111_v61 = vpack.i.bf16 %v523_v57, %v522_v20  ;;  %v524_v2 = vld [vmem:[#allocation2 + $0x1f9] sm:$0xff]  ;;  %v530_v20 = vld [vmem:[#allocation2 + $0x241] sm:$0xff]  ;;  %v531_v57 = vld [vmem:[#allocation2 + $0x249] sm:$0xff] }
 0x10b   :  { %6566 = vrot.lane.b32.xlu1 %v6565_v12, %s7330_s9  ;;  %v526_v12 = vld [vmem:[#allocation2 + $0x211] sm:$0xff] }
 0x10c   :  { %v8105_v18 = vpop.permute.xlu0 %6281  ;;  %11333 = vst [vmem:[#allocation60_spill] sm:$0xff] %v8111_v61  ;;  %v6595_v44 = vpack.i.bf16 %v527_v35, %v526_v12  ;;  %v534_v12 = vld [vmem:[#allocation2 + $0x271] sm:$0xff]  ;;  %v535_v35 = vld [vmem:[#allocation2 + $0x279] sm:$0xff] }
 0x10d   :  { %11331 = vst [vmem:[#allocation58_spill] sm:$0xff] %v8105_v18  ;;  %v8107_v43 = vpop.permute.xlu1 %6286  ;;  %v8118_v18 = vpack.i.bf16 %v525_v62, %v524_v2  ;;  %v532_v2 = vld [vmem:[#allocation2 + $0x259] sm:$0xff]  ;;  %v533_v62 = vld [vmem:[#allocation2 + $0x261] sm:$0xff] }
 0x10e   :  { %11332 = vst [vmem:[#allocation59_spill] sm:$0xff] %v8107_v43  ;;  %6571 = vrot.lane.b32.xlu0 %v6570_v8, %s7330_s9  ;;  %v528_v8 = vld [vmem:[#allocation2 + $0x229] sm:$0xff] }
 0x10f   :  { %6576 = vrot.lane.b32.xlu1 %v6575_v55, %s7330_s9  ;;  %11336 = vst [vmem:[#allocation63_spill] sm:$0xff] %v8118_v18  ;;  %v529_v55 = vld [vmem:[#allocation2 + $0x231] sm:$0xff] }
 0x110   :  { %v8113_v7 = vpop.permute.xlu0 %6291  ;;  %v6600_v19 = vpack.i.bf16 %v529_v55, %v528_v8  ;;  %v538_v8 = vld [vmem:[#allocation2 + $0x2a1] sm:$0xff]  ;;  %v539_v55 = vld [vmem:[#allocation2 + $0x2a9] sm:$0xff] }
 0x111   :  { %11334 = vst [vmem:[#allocation61_spill] sm:$0xff] %v8113_v7  ;;  %v8115_v27 = vpop.permute.xlu1 %6296  ;;  %v536_v7 = vld [vmem:[#allocation2 + $0x289] sm:$0xff]  ;;  %v6625_v17 = vpack.i.bf16 %v539_v55, %v538_v8  ;;  %v555_v8 = vld [vmem:[#allocation2 + $0x3a] sm:$0xff]  ;;  %v6064_v55 = vunpack.i.h.bf16 %v7859_v21 }
 0x112   :  { %11335 = vst [vmem:[#allocation62_spill] sm:$0xff] %v8115_v27  ;;  %6581 = vrot.lane.b32.xlu0 %v6580_v10, %s7330_s9  ;;  %v6605_v10 = vpack.i.bf16 %v531_v57, %v530_v20  ;;  %v8137_v20 = vld [vmem:[#allocation2 + $0x2b9] sm:$0xff]  ;;  %v541_v57 = vld [vmem:[#allocation2 + $0x2c1] sm:$0xff] }
 0x113   :  { %6586 = vrot.lane.b32.xlu1 %v8111_v61, %s7330_s9  ;;  %v6630_v58 = vpack.i.bf16 %v541_v57, %v8137_v20  ;;  %v558_v20 = vld [vmem:[#allocation2 + $0x62] sm:$0xff]  ;;  %v559_v57 = vld [vmem:[#allocation2 + $0x6a] sm:$0xff] }
 0x114   :  { %v8122_v9 = vpop.permute.xlu0 %6301 }
 0x115   :  { %11337 = vst [vmem:[#allocation64_spill] sm:$0xff] %v8122_v9  ;;  %v8124_v43 = vpop.permute.xlu1 %6306  ;;  %v6610_v9 = vpack.i.bf16 %v533_v62, %v532_v2  ;;  %v8147_v2 = vld [vmem:[#allocation2 + $0x2f1] sm:$0xff] }
 0x116   :  { %11338 = vst [vmem:[#allocation65_spill] sm:$0xff] %v8124_v43  ;;  %6591 = vrot.lane.b32.xlu0 %v8118_v18, %s7330_s9  ;;  %v6615_v43 = vpack.i.bf16 %v535_v35, %v534_v12  ;;  %v537_v18 = vld [vmem:[#allocation2 + $0x291] sm:$0xff]  ;;  %v8152_v12 = vld [vmem:[#allocation2 + $0x309] sm:$0xff]  ;;  %v8154_v35 = vld [vmem:[#allocation2 + $0x319] sm:$0xff] }
 0x117   :  { %6596 = vrot.lane.b32.xlu1 %v6595_v44, %s7330_s9  ;;  %v6620_v62 = vpack.i.bf16 %v537_v18, %v536_v7  ;;  %v6059_v18 = vunpack.i.h.bf16 %v7855_v16  ;;  %v6058_v7 = vunpack.i.l.bf16 %v7855_v16 }
 0x118   :  { %v8129_v27 = vpop.permute.xlu0 %6311 }
 0x119   :  { %11339 = vst [vmem:[#allocation66_spill] sm:$0xff] %v8129_v27  ;;  %v8131_v61 = vpop.permute.xlu1 %6316  ;;  %v8139_v27 = vld [vmem:[#allocation2 + $0x2d1] sm:$0xff]  ;;  %v8206_v53 = vsel %vm15_vm0, %v7875_v31, %v6059_v18  ;;  %v8226_v31 = vpack.i.bf16 %v559_v57, %v558_v20  ;;  %v8230_v18 = vld [vmem:[#allocation2 + $0x9a] sm:$0xff]  ;;  %v6083_v20 = vunpack.i.l.bf16 %v7889_v37 }
 0x11a   :  { %11340 = vst [vmem:[#allocation67_spill] sm:$0xff] %v8131_v61  ;;  %6601 = vrot.lane.b32.xlu0 %v6600_v19, %s7330_s9  ;;  %v8145_v19 = vld [vmem:[#allocation2 + $0x2e9] sm:$0xff]  ;;  %11351 = vst [vmem:[#allocation78_spill] sm:$0xff] %v8230_v18  ;;  %v8250_v57 = vld [vmem:[#allocation2 + $0xb2] sm:$0xff] }
 0x11b   :  { %6606 = vrot.lane.b32.xlu1 %v6605_v10, %s7330_s9  ;;  %v8149_v10 = vld [vmem:[#allocation2 + $0x301] sm:$0xff]  ;;  %v6640_v16 = vpack.i.bf16 %v8147_v2, %v8145_v19  ;;  %11349 = vst [vmem:[#allocation76_spill] sm:$0xff] %v8226_v31  ;;  %v6094_v19 = vunpack.i.h.bf16 %v7907_v45  ;;  %v8297_v18 = vld [vmem:[#allocation2 + $0x112] sm:$0xff] }
 0x11c   :  { %v8135_v44 = vpop.permute.xlu0 %6321 }
 0x11d   :  { %11341 = vst [vmem:[#allocation68_spill] sm:$0xff] %v8135_v44  ;;  %v8143_v61 = vpop.permute.xlu1 %6326  ;;  %v8156_v44 = vld [vmem:[#allocation2 + $0x321] sm:$0xff] }
 0x11e   :  { %11342 = vst [vmem:[#allocation69_spill] sm:$0xff] %v8143_v61  ;;  %6611 = vrot.lane.b32.xlu0 %v6610_v9, %s7330_s9  ;;  %v8161_v61 = vld [vmem:[#allocation2 + $0x339] sm:$0xff]  ;;  %v6053_v9 = vunpack.i.l.bf16 %v7853_v13  ;;  %v6635_v13 = vpack.i.bf16 %v8141_v14, %v8139_v27  ;;  %v6069_v14 = vunpack.i.h.bf16 %v7861_v24  ;;  %v6068_v27 = vunpack.i.l.bf16 %v7861_v24 }
 0x11f   :  { %6616 = vrot.lane.b32.xlu1 %v6615_v43, %s7330_s9  ;;  %v554_v43 = vld [vmem:[#allocation2 + $0x32] sm:$0xff]  ;;  %v8210_v24 = vsel %vm15_vm0, %v7873_v30, %v6058_v7  ;;  %v6074_v7 = vunpack.i.h.bf16 %v7871_v29 }
 0x120   :  { %v8169_v28 = vpop.permute.xlu0 %6331  ;;  %v8194_v2 = vpack.i.bf16 %v555_v8, %v554_v43  ;;  %v8202_v21 = vsel %vm15_vm0, %v7863_v25, %v6053_v9  ;;  %v560_v43 = vld [vmem:[#allocation2 + $0x7a] sm:$0xff]  ;;  %v8216_v8 = vsel %vm15_vm0, %v7881_v34, %v6064_v55  ;;  %v561_v9 = vld [vmem:[#allocation2 + $0x82] sm:$0xff]  ;;  %v8228_v30 = vld [vmem:[#allocation2 + $0x92] sm:$0xff]  ;;  %v6073_v34 = vunpack.i.l.bf16 %v7871_v29 }
 0x121   :  { %11343 = vst [vmem:[#allocation70_spill] sm:$0xff] %v8169_v28  ;;  %v8175_v36 = vpop.permute.xlu1 %6336  ;;  %11350 = vst [vmem:[#allocation77_spill] sm:$0xff] %v8228_v30  ;;  %v6079_v55 = vunpack.i.h.bf16 %v7877_v32  ;;  %v8248_v29 = vld [vmem:[#allocation2 + $0xaa] sm:$0xff]  ;;  %v6093_v28 = vunpack.i.l.bf16 %v7907_v45 }
 0x122   :  { %11344 = vst [vmem:[#allocation71_spill] sm:$0xff] %v8175_v36  ;;  %6621 = vrot.lane.b32.xlu0 %v6620_v62, %s7330_s9  ;;  %v557_v36 = vld [vmem:[#allocation2 + $0x52] sm:$0xff]  ;;  %11345 = vst [vmem:[#allocation72_spill] sm:$0xff] %v8194_v2  ;;  %v8198_v62 = vsel %vm15_vm0, %v7865_v26, %v6054_v51  ;;  %v8220_v26 = vsel %vm15_vm0, %v7879_v33, %v6063_v15  ;;  %v6078_v33 = vunpack.i.l.bf16 %v7877_v32  ;;  %v6084_v15 = vunpack.i.h.bf16 %v7889_v37  ;;  %v8262_v37 = vld [vmem:[#allocation2 + $0xca] sm:$0xff] }
 0x123   :  { %6626 = vrot.lane.b32.xlu1 %v6625_v17, %s7330_s9  ;;  %v8224_v51 = vpack.i.bf16 %v557_v36, %v556_v11  ;;  %v8239_v11 = vsel %vm15_vm0, %v7893_v39, %v6069_v14  ;;  %v8243_v36 = vsel %vm15_vm0, %v7891_v38, %v6068_v27  ;;  %v6089_v32 = vunpack.i.h.bf16 %v7895_v40  ;;  %v8260_v27 = vld [vmem:[#allocation2 + $0xc2] sm:$0xff]  ;;  %v8274_v38 = vld [vmem:[#allocation2 + $0xf2] sm:$0xff]  ;;  %v8295_v30 = vld [vmem:[#allocation2 + $0x10a] sm:$0xff] }
 0x124   :  { %v8212_v17 = vpop.permute.xlu0 %6341  ;;  %v8256_v14 = vpack.i.bf16 %v561_v9, %v560_v43  ;;  %v8272_v9 = vld [vmem:[#allocation2 + $0xe2] sm:$0xff]  ;;  %v8284_v45 = vsel %vm15_vm0, %v7897_v41, %v6073_v34  ;;  %v8303_v41 = vsel %vm15_vm0, %v7917_v50, %v6084_v15  ;;  %v8317_v34 = vld [vmem:[#allocation2 + $0x12a] sm:$0xff] }
 0x125   :  { %11346 = vst [vmem:[#allocation73_spill] sm:$0xff] %v8212_v17  ;;  %v8222_v25 = vpop.permute.xlu1 %6346  ;;  %11348 = vst [vmem:[#allocation75_spill] sm:$0xff] %v8224_v51  ;;  %v8280_v17 = vsel %vm15_vm0, %v7899_v42, %v6074_v7  ;;  %v8299_v42 = vld [vmem:[#allocation2 + $0x122] sm:$0xff]  ;;  %v8341_v7 = vld [vmem:[#allocation2 + $0x16a] sm:$0xff] }
 0x126   :  { %11347 = vst [vmem:[#allocation74_spill] sm:$0xff] %v8222_v25  ;;  %6631 = vrot.lane.b32.xlu0 %v6630_v58, %s7330_s9  ;;  %v6088_v58 = vunpack.i.l.bf16 %v7895_v40  ;;  %11353 = vst [vmem:[#allocation80_spill] sm:$0xff] %v8256_v14  ;;  %v6099_v25 = vunpack.i.h.bf16 %v7913_v48  ;;  %v6098_v40 = vunpack.i.l.bf16 %v7913_v48  ;;  %v8288_v48 = vsel %vm15_vm0, %v7911_v47, %v6079_v55  ;;  %v8319_v55 = vld [vmem:[#allocation2 + $0x13a] sm:$0xff]  ;;  %v8321_v50 = vld [vmem:[#allocation2 + $0x142] sm:$0xff] }
 0x127   :  { %6636 = vrot.lane.b32.xlu1 %v6635_v13, %s7330_s9  ;;  %v8264_v13 = vld [vmem:[#allocation2 + $0xda] sm:$0xff]  ;;  %v8307_v47 = vsel %vm15_vm0, %v7915_v49, %v6083_v20  ;;  %v8325_v49 = vsel %vm15_vm0, %v7929_v56, %v6089_v32  ;;  %v8337_v20 = vld [vmem:[#allocation2 + $0x152] sm:$0xff]  ;;  %v8345_v56 = vsel %vm15_vm0, %v7935_v60, %v6094_v19  ;;  %v8365_v60 = vld [vmem:[#allocation2 + $0x18a] sm:$0xff]  ;;  %v6214_v19 = vunpack.i.h.bf16 %v8063_v63 }
 0x128   :  { %v8254_v39 = vpop.permute.xlu0 %6351  ;;  %11357 = vst [vmem:[#allocation83_spill] sm:$0xff] %v8337_v20  ;;  %v8353_v32 = vsel %vm15_vm0, %v7947_v6, %v6099_v25  ;;  %v11360_v6 = vpack.i.bf16 %v8156_v44, %v8154_v35  ;;  %v6219_v25 = vunpack.i.h.bf16 %v8065_v0  ;;  %v6224_v35 = vunpack.i.h.bf16 %v8069_v5 }
 0x129   :  { %11352 = vst [vmem:[#allocation79_spill] sm:$0xff] %v8254_v39  ;;  %v8270_v43 = vpop.permute.xlu1 %6356  ;;  %v8276_v39 = vld [vmem:[#allocation2 + $0xfa] sm:$0xff] }
 0x12a   :  { %11354 = vst [vmem:[#allocation81_spill] sm:$0xff] %v8270_v43  ;;  %v8292_v43 = vsel %vm15_vm0, %v7909_v46, %v6078_v33  ;;  %6641 = vrot.lane.b32.xlu0 %v6640_v16, %s7330_s9  ;;  %v11355_v46 = vpack.i.bf16 %v8152_v12, %v8149_v10  ;;  %v8329_v10 = vsel %vm15_vm0, %v7927_v54, %v6088_v58  ;;  %v8361_v33 = vld [vmem:[#allocation2 + $0x172] sm:$0xff]  ;;  %v8363_v16 = vld [vmem:[#allocation2 + $0x182] sm:$0xff] }
 0x12b   :  { %v8349_v54 = vsel %vm15_vm0, %v7933_v59, %v6093_v28  ;;  %v8357_v58 = vsel %vm15_vm0, %v7945_v4, %v6098_v40  ;;  %v6213_v59 = vunpack.i.l.bf16 %v8063_v63  ;;  %v6218_v40 = vunpack.i.l.bf16 %v8065_v0 }
 0x12c   :  { %6646 = vrot.lane.b32.xlu1 %v11355_v46, %s7330_s9  ;;  %v8331_v12 = vpop.permute.xlu0 %6361  ;;  %v8339_v46 = vld [vmem:[#allocation2 + $0x15a] sm:$0xff]  ;;  %v11362_v0 = vpack.i.bf16 %v8171_v22, %v8163_v3  ;;  %v2939_v22 = vsel %vm2921_vm3, %v8216_v8, %v6224_v35  ;;  %v6233_v8 = vunpack.i.l.bf16 %v8075_v52 }
 0x12d   :  { %11356 = vst [vmem:[#allocation82_spill] sm:$0xff] %v8331_v12  ;;  %11358 = vst [vmem:[#allocation84_spill] sm:$0xff] %v8339_v46  ;;  %v8359_v15 = vpop.permute.xlu1 %6366  ;;  %v2934_v44 = vsel %vm2921_vm3, %v8202_v21, %v6213_v59 }
 0x12e   :  { %11359 = vst [vmem:[#allocation85_spill] sm:$0xff] %v8359_v15  ;;  %6651 = vrot.lane.b32.xlu0 %v11360_v6, %s7330_s9  ;;  %v11361_v15 = vpack.i.bf16 %v8161_v61, %v8159_v1  ;;  %v6223_v6 = vunpack.i.l.bf16 %v8069_v5  ;;  %v6229_v1 = vunpack.i.h.bf16 %v8071_v23  ;;  %v6228_v61 = vunpack.i.l.bf16 %v8071_v23 }
 0x12f   :  { %v2935_v5 = vsel %vm2921_vm3, %v8198_v62, %v6214_v19  ;;  %v2937_v23 = vsel %vm2921_vm3, %v8206_v53, %v6219_v25 }
 0x130   :  { %6656 = vrot.lane.b32.xlu1 %v11361_v15, %s7330_s9  ;;  %v6372_v28 = vpop.permute.xlu0 %6371  ;;  %v2938_v62 = vsel %vm2921_vm3, %v8220_v26, %v6223_v6  ;;  %v2940_v19 = vsel %vm2921_vm3, %v8243_v36, %v6228_v61  ;;  %v6234_v26 = vunpack.i.h.bf16 %v8075_v52  ;;  %v11364_v6 = vld [vmem:[#allocation50_spill] sm:$0xff] }
 0x131   :  { %v6374_v15 = vunpack.i.h.bf16 %v6372_v28  ;;  %v6373_v63 = vunpack.i.l.bf16 %v6372_v28  ;;  %v6377_v12 = vpop.permute.xlu1 %6376  ;;  %v2936_v28 = vsel %vm2921_vm3, %v8210_v24, %v6218_v40  ;;  %v6244_v52 = vunpack.i.h.bf16 %v11364_v6 }
 0x132   :  { %v6379_v20 = vunpack.i.h.bf16 %v6377_v12  ;;  %v6378_v46 = vunpack.i.l.bf16 %v6377_v12  ;;  %6661 = vrot.lane.b32.xlu0 %v11362_v0, %s7331_s10  ;;  %v2941_v12 = vsel %vm2921_vm3, %v8239_v11, %v6229_v1  ;;  %v6243_v0 = vunpack.i.l.bf16 %v11364_v6 }
 0x133   :  { %v8408_v4 = vsel %vm2986_vm4, %v2934_v44, %v6373_v63  ;;  %v8411_v21 = vsel %vm2986_vm4, %v2935_v5, %v6374_v15  ;;  %v11365_v5 = vld [vmem:[#allocation51_spill] sm:$0xff] }
 0x134   :  { %6666 = vrot.lane.b32.xlu1 %v8194_v2, %s7331_s10  ;;  %v8420_v3 = vsel %vm2986_vm4, %v2936_v28, %v6378_v46  ;;  %v8423_v53 = vsel %vm2986_vm4, %v2937_v23, %v6379_v20  ;;  %v6382_v24 = vpop.permute.xlu0 %6381  ;;  %v11363_v20 = vld [vmem:[#allocation49_spill] sm:$0xff]  ;;  %v6249_v23 = vunpack.i.h.bf16 %v11365_v5  ;;  %v6248_v28 = vunpack.i.l.bf16 %v11365_v5 }
 0x135   :  { %v6384_v59 = vunpack.i.h.bf16 %v6382_v24  ;;  %v6383_v25 = vunpack.i.l.bf16 %v6382_v24  ;;  %v6387_v40 = vpop.permute.xlu1 %6386  ;;  %v6239_v44 = vunpack.i.h.bf16 %v11363_v20  ;;  %v6238_v35 = vunpack.i.l.bf16 %v11363_v20  ;;  %v11401_v2 = vld [vmem:[#allocation29_spill] sm:$0xff] }
 0x136   :  { %v6389_v63 = vunpack.i.h.bf16 %v6387_v40  ;;  %v6388_v46 = vunpack.i.l.bf16 %v6387_v40  ;;  %6671 = vrot.lane.b32.xlu0 %v8224_v51, %s7331_s10  ;;  %v2949_v6 = vsel %vm2921_vm3, %v8325_v49, %v6249_v23  ;;  %v597_v51 = vld [vmem:[#allocation2 + $0x262] sm:$0xff] }
 0x137   :  { %v8436_v11 = vsel %vm2986_vm4, %v2938_v62, %v6383_v25  ;;  %v8439_v36 = vsel %vm2986_vm4, %v2939_v22, %v6384_v59  ;;  %v2942_v59 = vsel %vm2921_vm3, %v8284_v45, %v6233_v8  ;;  %v2943_v25 = vsel %vm2921_vm3, %v8280_v17, %v6234_v26  ;;  %v11366_v45 = vld [vmem:[#allocation78_spill] sm:$0xff]  ;;  %v11367_v17 = vld [vmem:[#allocation77_spill] sm:$0xff] }
 0x138   :  { %6676 = vrot.lane.b32.xlu1 %v8226_v31, %s7331_s10  ;;  %v8446_v1 = vsel %vm2986_vm4, %v2940_v19, %v6388_v46  ;;  %v8449_v61 = vsel %vm2986_vm4, %v2941_v12, %v6389_v63  ;;  %v6392_v15 = vpop.permute.xlu0 %6391  ;;  %v2945_v12 = vsel %vm2921_vm3, %v8288_v48, %v6239_v44  ;;  %v2944_v63 = vsel %vm2921_vm3, %v8292_v43, %v6238_v35 }
 0x139   :  { %v6394_v62 = vunpack.i.h.bf16 %v6392_v15  ;;  %v6393_v22 = vunpack.i.l.bf16 %v6392_v15  ;;  %v6397_v24 = vpop.permute.xlu1 %6396  ;;  %v11368_v26 = vpack.i.bf16 %v11366_v45, %v11367_v17  ;;  %v2946_v8 = vsel %vm2921_vm3, %v8307_v47, %v6243_v0  ;;  %v11369_v47 = vld [vmem:[#allocation52_spill] sm:$0xff] }
 0x13a   :  { %v6399_v40 = vunpack.i.h.bf16 %v6397_v24  ;;  %v6398_v19 = vunpack.i.l.bf16 %v6397_v24  ;;  %6681 = vrot.lane.b32.xlu0 %v8256_v14, %s7331_s10  ;;  %v2947_v48 = vsel %vm2921_vm3, %v8303_v41, %v6244_v52  ;;  %v2948_v15 = vsel %vm2921_vm3, %v8329_v10, %v6248_v28  ;;  %v11376_v17 = vld [vmem:[#allocation16_spill] sm:$0xff]  ;;  %v11399_v14 = vld [vmem:[#allocation30_spill] sm:$0xff] }
 0x13b   :  { %v8464_v46 = vsel %vm2986_vm4, %v2942_v59, %v6393_v22  ;;  %v8467_v20 = vsel %vm2986_vm4, %v2943_v25, %v6394_v62  ;;  %v6254_v0 = vunpack.i.h.bf16 %v11369_v47  ;;  %v6253_v41 = vunpack.i.l.bf16 %v11369_v47  ;;  %v11371_v25 = vld [vmem:[#allocation53_spill] sm:$0xff] }
 0x13c   :  { %6686 = vrot.lane.b32.xlu1 %v11368_v26, %s7331_s10  ;;  %v8478_v44 = vsel %vm2986_vm4, %v2944_v63, %v6398_v19  ;;  %v8481_v43 = vsel %vm2986_vm4, %v2945_v12, %v6399_v40  ;;  %v6402_v35 = vpop.permute.xlu0 %6401  ;;  %v11370_v59 = vpack.i.bf16 %v8250_v57, %v8248_v29  ;;  %v6259_v40 = vunpack.i.h.bf16 %v11371_v25  ;;  %v11373_v19 = vld [vmem:[#allocation15_spill] sm:$0xff]  ;;  %v8525_v47 = vld [vmem:[#allocation2 + $0x1d2] sm:$0xff] }
 0x13d   :  { %v6404_v5 = vunpack.i.h.bf16 %v6402_v35  ;;  %v6403_v62 = vunpack.i.l.bf16 %v6402_v35  ;;  %v6407_v22 = vpop.permute.xlu1 %6406  ;;  %v6258_v49 = vunpack.i.l.bf16 %v11371_v25  ;;  %v11372_v28 = vpack.i.bf16 %v8262_v37, %v8260_v27  ;;  %v8515_v27 = vld [vmem:[#allocation2 + $0x1ca] sm:$0xff] }
 0x13e   :  { %v6409_v52 = vunpack.i.h.bf16 %v6407_v22  ;;  %v6408_v24 = vunpack.i.l.bf16 %v6407_v22  ;;  %6691 = vrot.lane.b32.xlu0 %v11370_v59, %s7331_s10  ;;  %v6134_v12 = vunpack.i.h.bf16 %v11373_v19  ;;  %v6133_v29 = vunpack.i.l.bf16 %v11373_v19 }
 0x13f   :  { %v8496_v10 = vsel %vm2986_vm4, %v2946_v8, %v6403_v62  ;;  %v8499_v23 = vsel %vm2986_vm4, %v2947_v48, %v6404_v5  ;;  %v6139_v26 = vunpack.i.h.bf16 %v11376_v17  ;;  %v6138_v8 = vunpack.i.l.bf16 %v11376_v17  ;;  %v11395_v17 = vld [vmem:[#allocation26_spill] sm:$0xff] }
 0x140   :  { %6696 = vrot.lane.b32.xlu1 %v11372_v28, %s7331_s10  ;;  %v8508_v57 = vsel %vm2986_vm4, %v2948_v15, %v6408_v24  ;;  %v8511_v63 = vsel %vm2986_vm4, %v2949_v6, %v6409_v52  ;;  %v6412_v45 = vpop.permute.xlu0 %6411  ;;  %v2950_v37 = vsel %vm2921_vm3, %v8349_v54, %v6253_v41  ;;  %v2951_v15 = vsel %vm2921_vm3, %v8345_v56, %v6254_v0  ;;  %v586_v52 = vld [vmem:[#allocation2 + $0x1e2] sm:$0xff]  ;;  %v587_v24 = vld [vmem:[#allocation2 + $0x1ea] sm:$0xff] }
 0x141   :  { %11374 = vst [vmem:[#allocation49_spill] sm:$0xff] %v8508_v57  ;;  %11375 = vst [vmem:[#allocation50_spill] sm:$0xff] %v8511_v63  ;;  %v6414_v48 = vunpack.i.h.bf16 %v6412_v45  ;;  %v6413_v35 = vunpack.i.l.bf16 %v6412_v45  ;;  %v6417_v5 = vpop.permute.xlu1 %6416  ;;  %v11377_v6 = vpack.i.bf16 %v8272_v9, %v8264_v13  ;;  %v2953_v59 = vsel %vm2921_vm3, %v8353_v32, %v6259_v40  ;;  %v11381_v9 = vld [vmem:[#allocation17_spill] sm:$0xff]  ;;  %v11385_v28 = vld [vmem:[#allocation20_spill] sm:$0xff] }
 0x142   :  { %v6419_v62 = vunpack.i.h.bf16 %v6417_v5  ;;  %v6418_v22 = vunpack.i.l.bf16 %v6417_v5  ;;  %v2952_v54 = vsel %vm2921_vm3, %v8357_v58, %v6258_v49  ;;  %v11380_v13 = vpack.i.bf16 %v8276_v39, %v8274_v38  ;;  %v588_v49 = vld [vmem:[#allocation2 + $0x1fa] sm:$0xff]  ;;  %v590_v5 = vld [vmem:[#allocation2 + $0x212] sm:$0xff] }
 0x143   :  { %6701 = vrot.lane.b32.xlu0 %v11377_v6, %s7331_s10  ;;  %v8532_v41 = vsel %vm2986_vm4, %v2950_v37, %v6413_v35  ;;  %v8535_v56 = vsel %vm2986_vm4, %v2951_v15, %v6414_v48  ;;  %v6144_v0 = vunpack.i.h.bf16 %v11381_v9  ;;  %v6143_v25 = vunpack.i.l.bf16 %v11381_v9  ;;  %v11386_v45 = vld [vmem:[#allocation19_spill] sm:$0xff] }
 0x144   :  { %11378 = vst [vmem:[#allocation51_spill] sm:$0xff] %v8532_v41  ;;  %11379 = vst [vmem:[#allocation78_spill] sm:$0xff] %v8535_v56  ;;  %6706 = vrot.lane.b32.xlu1 %v11380_v13, %s7331_s10  ;;  %v8544_v32 = vsel %vm2986_vm4, %v2952_v54, %v6418_v22  ;;  %v8547_v58 = vsel %vm2986_vm4, %v2953_v59, %v6419_v62  ;;  %v8549_v40 = vpop.permute.xlu0 %6421  ;;  %v8553_v19 = vsel %vm15_vm0, %v11385_v28, %v6134_v12  ;;  %v589_v35 = vld [vmem:[#allocation2 + $0x202] sm:$0xff]  ;;  %v591_v37 = vld [vmem:[#allocation2 + $0x21a] sm:$0xff] }
 0x145   :  { %11382 = vst [vmem:[#allocation77_spill] sm:$0xff] %v8544_v32  ;;  %11383 = vst [vmem:[#allocation52_spill] sm:$0xff] %v8547_v58  ;;  %v8557_v39 = vsel %vm15_vm0, %v11386_v45, %v6133_v29  ;;  %v8559_v38 = vpop.permute.xlu1 %6426  ;;  %v8563_v48 = vpack.i.bf16 %v587_v24, %v586_v52  ;;  %v11388_v15 = vld [vmem:[#allocation23_spill] sm:$0xff]  ;;  %v11389_v12 = vld [vmem:[#allocation22_spill] sm:$0xff]  ;;  %v11391_v52 = vpack.i.bf16 %v8297_v18, %v8295_v30  ;;  %v6169_v31 = vunpack.i.h.bf16 %v11399_v14 }
 0x146   :  { %11384 = vst [vmem:[#allocation53_spill] sm:$0xff] %v8549_v40  ;;  %11387 = vst [vmem:[#allocation15_spill] sm:$0xff] %v8559_v38  ;;  %v8567_v62 = vsel %vm15_vm0, %v11388_v15, %v6139_v26  ;;  %v8571_v22 = vsel %vm15_vm0, %v11389_v12, %v6138_v8  ;;  %v11390_v29 = vld [vmem:[#allocation18_spill] sm:$0xff]  ;;  %v592_v24 = vld [vmem:[#allocation2 + $0x22a] sm:$0xff]  ;;  %v11394_v8 = vpack.i.bf16 %v8317_v34, %v8299_v42 }
 0x147   :  { %v6149_v6 = vunpack.i.h.bf16 %v11390_v29  ;;  %v6148_v59 = vunpack.i.l.bf16 %v11390_v29  ;;  %6711 = vrot.lane.b32.xlu0 %v11391_v52, %s7331_s10  ;;  %v11392_v54 = vld [vmem:[#allocation21_spill] sm:$0xff]  ;;  %v11393_v26 = vld [vmem:[#allocation24_spill] sm:$0xff]  ;;  %v8589_v30 = vsel %vm15_vm0, %v11395_v17, %v6144_v0  ;;  %v8597_v38 = vpack.i.bf16 %v589_v35, %v588_v49  ;;  %v596_v40 = vld [vmem:[#allocation2 + $0x25a] sm:$0xff] }
 0x148   :  { %v6154_v13 = vunpack.i.h.bf16 %v11392_v54  ;;  %v6153_v9 = vunpack.i.l.bf16 %v11392_v54  ;;  %v6159_v28 = vunpack.i.h.bf16 %v11393_v26  ;;  %v6158_v45 = vunpack.i.l.bf16 %v11393_v26  ;;  %6716 = vrot.lane.b32.xlu1 %v11394_v8, %s7331_s10  ;;  %v593_v15 = vld [vmem:[#allocation2 + $0x232] sm:$0xff]  ;;  %v594_v12 = vld [vmem:[#allocation2 + $0x242] sm:$0xff]  ;;  %v595_v29 = vld [vmem:[#allocation2 + $0x24a] sm:$0xff]  ;;  %v8595_v54 = vpop.permute.xlu0 %6431 }
 0x149   :  { %v11396_v18 = vld [vmem:[#allocation25_spill] sm:$0xff]  ;;  %11397 = vst [vmem:[#allocation16_spill] sm:$0xff] %v8595_v54  ;;  %v8599_v26 = vpack.i.bf16 %v591_v37, %v590_v5  ;;  %v11398_v42 = vld [vmem:[#allocation27_spill] sm:$0xff]  ;;  %v6168_v0 = vunpack.i.l.bf16 %v11399_v14  ;;  %v8605_v17 = vpop.permute.xlu1 %6436  ;;  %v2908_v49 = vsel %vm15_vm0, %v11401_v2, %v6149_v6  ;;  %v11402_v35 = vld [vmem:[#allocation28_spill] sm:$0xff]  ;;  %v11403_v37 = vpack.i.bf16 %v8321_v50, %v8319_v55 }
 0x14a   :  { %v8593_v52 = vsel %vm15_vm0, %v11396_v18, %v6143_v25  ;;  %v6164_v34 = vunpack.i.h.bf16 %v11398_v42  ;;  %v6163_v8 = vunpack.i.l.bf16 %v11398_v42  ;;  %11400 = vst [vmem:[#allocation17_spill] sm:$0xff] %v8605_v17  ;;  %v598_v25 = vld [vmem:[#allocation2 + $0x272] sm:$0xff]  ;;  %v599_v18 = vld [vmem:[#allocation2 + $0x27a] sm:$0xff]  ;;  %v2907_v5 = vsel %vm15_vm0, %v11402_v35, %v6148_v59  ;;  %v600_v14 = vld [vmem:[#allocation2 + $0x28a] sm:$0xff] }
 0x14b   :  { %6721 = vrot.lane.b32.xlu0 %v11403_v37, %s7331_s10  ;;  %v8615_v42 = vpack.i.bf16 %v593_v15, %v592_v24  ;;  %v8617_v54 = vpack.i.bf16 %v595_v29, %v594_v12  ;;  %v11405_v17 = vld [vmem:[#allocation32_spill] sm:$0xff]  ;;  %v11406_v32 = vld [vmem:[#allocation31_spill] sm:$0xff]  ;;  %v11408_v35 = vld [vmem:[#allocation34_spill] sm:$0xff]  ;;  %v8647_v37 = vpack.i.bf16 %v597_v51, %v596_v40 }
 0x14c   :  { %v8621_v58 = vsel %vm15_vm0, %v11405_v17, %v6154_v13  ;;  %v8625_v2 = vsel %vm15_vm0, %v11406_v32, %v6153_v9  ;;  %v11407_v6 = vld [vmem:[#allocation35_spill] sm:$0xff]  ;;  %v8633_v55 = vsel %vm15_vm0, %v11408_v35, %v6158_v45  ;;  %v11409_v50 = vld [vmem:[#allocation84_spill] sm:$0xff]  ;;  %v601_v12 = vld [vmem:[#allocation2 + $0x292] sm:$0xff]  ;;  %v8649_v45 = vpack.i.bf16 %v599_v18, %v598_v25 }
 0x14d   :  { %11404 = vst [vmem:[#allocation20_spill] sm:$0xff] %v8617_v54  ;;  %v8629_v59 = vsel %vm15_vm0, %v11407_v6, %v6159_v28  ;;  %v11410_v24 = vld [vmem:[#allocation83_spill] sm:$0xff]  ;;  %v8641_v29 = vld [vmem:[#allocation2 + $0x2aa] sm:$0xff]  ;;  %v8645_v28 = vpop.permute.xlu0 %6441  ;;  %11414 = vst [vmem:[#allocation23_spill] sm:$0xff] %v8647_v37  ;;  %v8667_v51 = vpop.permute.xlu1 %6446 }
 0x14e   :  { %v11411_v15 = vpack.i.bf16 %v11409_v50, %v11410_v24  ;;  %v8639_v13 = vld [vmem:[#allocation2 + $0x2a2] sm:$0xff]  ;;  %v11412_v32 = vld [vmem:[#allocation33_spill] sm:$0xff]  ;;  %11413 = vst [vmem:[#allocation19_spill] sm:$0xff] %v8645_v28  ;;  %11415 = vst [vmem:[#allocation22_spill] sm:$0xff] %v8649_v45 }
 0x14f   :  { %v6174_v9 = vunpack.i.h.bf16 %v11412_v32  ;;  %v6173_v17 = vunpack.i.l.bf16 %v11412_v32  ;;  %v11416_v6 = vld [vmem:[#allocation38_spill] sm:$0xff]  ;;  %v11417_v50 = vld [vmem:[#allocation37_spill] sm:$0xff]  ;;  %v11419_v41 = vld [vmem:[#allocation40_spill] sm:$0xff]  ;;  %11420 = vst [vmem:[#allocation18_spill] sm:$0xff] %v8667_v51 }
 0x150   :  { %6726 = vrot.lane.b32.xlu1 %v11411_v15, %s7331_s10  ;;  %v8653_v35 = vsel %vm15_vm0, %v11416_v6, %v6164_v34  ;;  %v8657_v24 = vsel %vm15_vm0, %v11417_v50, %v6163_v8  ;;  %v11418_v15 = vld [vmem:[#allocation41_spill] sm:$0xff]  ;;  %v8665_v32 = vsel %vm15_vm0, %v11419_v41, %v6168_v0  ;;  %v11422_v34 = vpack.i.bf16 %v8361_v33, %v8341_v7  ;;  %v11423_v6 = vld [vmem:[#allocation36_spill] sm:$0xff]  ;;  %v11424_v0 = vld [vmem:[#allocation62_spill] sm:$0xff] }
 0x151   :  { %v8661_v56 = vsel %vm15_vm0, %v11418_v15, %v6169_v31  ;;  %v11421_v40 = vld [vmem:[#allocation61_spill] sm:$0xff]  ;;  %v8675_v8 = vpack.i.bf16 %v601_v12, %v600_v14  ;;  %v6299_v15 = vunpack.i.h.bf16 %v11424_v0  ;;  %v6298_v51 = vunpack.i.l.bf16 %v11424_v0  ;;  %v11426_v7 = vld [vmem:[#allocation44_spill] sm:$0xff]  ;;  %v11427_v14 = vld [vmem:[#allocation43_spill] sm:$0xff]  ;;  %v6452_v50 = vpop.permute.xlu0 %6451 }
 0x152   :  { %v6294_v25 = vunpack.i.h.bf16 %v11421_v40  ;;  %v6293_v18 = vunpack.i.l.bf16 %v11421_v40  ;;  %6731 = vrot.lane.b32.xlu0 %v11422_v34, %s7331_s10  ;;  %v11425_v40 = vpack.i.bf16 %v8365_v60, %v8363_v16  ;;  %v8689_v33 = vsel %vm15_vm0, %v11426_v7, %v6174_v9  ;;  %v11428_v34 = vld [vmem:[#allocation64_spill] sm:$0xff]  ;;  %v11429_v28 = vld [vmem:[#allocation65_spill] sm:$0xff]  ;;  %v6457_v60 = vpop.permute.xlu1 %6456 }
 0x153   :  { %v8693_v12 = vsel %vm15_vm0, %v11427_v14, %v6173_v17  ;;  %v6304_v31 = vunpack.i.h.bf16 %v11428_v34  ;;  %v6303_v41 = vunpack.i.l.bf16 %v11428_v34  ;;  %v6309_v0 = vunpack.i.h.bf16 %v11429_v28 }
 0x154   :  { %6736 = vrot.lane.b32.xlu1 %v11425_v40, %s7331_s10  ;;  %v6308_v63 = vunpack.i.l.bf16 %v11429_v28  ;;  %v6454_v57 = vunpack.i.h.bf16 %v6452_v50  ;;  %v6453_v16 = vunpack.i.l.bf16 %v6452_v50  ;;  %v2966_v9 = vsel %vm2921_vm3, %v8557_v39, %v6293_v18 }
 0x155   :  { %v2967_v40 = vsel %vm2921_vm3, %v8553_v19, %v6294_v25  ;;  %v6459_v17 = vunpack.i.h.bf16 %v6457_v60  ;;  %v6458_v7 = vunpack.i.l.bf16 %v6457_v60  ;;  %v11430_v14 = vpack.i.bf16 %v8525_v47, %v8515_v27 }
 0x156   :  { %v2969_v34 = vsel %vm2921_vm3, %v8567_v62, %v6299_v15  ;;  %v2968_v28 = vsel %vm2921_vm3, %v8571_v22, %v6298_v51  ;;  %v8712_v50 = vsel %vm2986_vm4, %v2966_v9, %v6453_v16  ;;  %v8715_v39 = vsel %vm2986_vm4, %v2967_v40, %v6454_v57  ;;  %v6462_v22 = vpop.permute.xlu0 %6461  ;;  %v6467_v15 = vpop.permute.xlu1 %6466  ;;  %v11431_v16 = vld [vmem:[#allocation66_spill] sm:$0xff] }
 0x157   :  { %6741 = vrot.lane.b32.xlu0 %v11430_v14, %s7331_s10  ;;  %v2970_v19 = vsel %vm2921_vm3, %v8593_v52, %v6303_v41  ;;  %v2971_v27 = vsel %vm2921_vm3, %v8589_v30, %v6304_v31  ;;  %v8724_v47 = vsel %vm2986_vm4, %v2968_v28, %v6458_v7  ;;  %v8727_v62 = vsel %vm2986_vm4, %v2969_v34, %v6459_v17  ;;  %v11432_v31 = vld [vmem:[#allocation67_spill] sm:$0xff]  ;;  %v11434_v28 = vld [vmem:[#allocation69_spill] sm:$0xff] }
 0x158   :  { %6746 = vrot.lane.b32.xlu1 %v8563_v48, %s7331_s10  ;;  %v2973_v51 = vsel %vm2921_vm3, %v2908_v49, %v6309_v0  ;;  %v2972_v57 = vsel %vm2921_vm3, %v2907_v5, %v6308_v63  ;;  %v6464_v25 = vunpack.i.h.bf16 %v6462_v22  ;;  %v6463_v18 = vunpack.i.l.bf16 %v6462_v22  ;;  %v11433_v5 = vld [vmem:[#allocation68_spill] sm:$0xff] }
 0x159   :  { %v6314_v60 = vunpack.i.h.bf16 %v11431_v16  ;;  %v6313_v52 = vunpack.i.l.bf16 %v11431_v16  ;;  %v6469_v41 = vunpack.i.h.bf16 %v6467_v15  ;;  %v6468_v30 = vunpack.i.l.bf16 %v6467_v15 }
 0x15a   :  { %v6319_v9 = vunpack.i.h.bf16 %v11432_v31  ;;  %v6318_v40 = vunpack.i.l.bf16 %v11432_v31  ;;  %v8738_v49 = vsel %vm2986_vm4, %v2970_v19, %v6463_v18  ;;  %v8741_v63 = vsel %vm2986_vm4, %v2971_v27, %v6464_v25  ;;  %v6472_v34 = vpop.permute.xlu0 %6471  ;;  %v6477_v18 = vpop.permute.xlu1 %6476 }
 0x15b   :  { %6751 = vrot.lane.b32.xlu0 %v8597_v38, %s7331_s10  ;;  %v6324_v0 = vunpack.i.h.bf16 %v11433_v5  ;;  %v6323_v17 = vunpack.i.l.bf16 %v11433_v5  ;;  %v8748_v7 = vsel %vm2986_vm4, %v2972_v57, %v6468_v30  ;;  %v8751_v14 = vsel %vm2986_vm4, %v2973_v51, %v6469_v41 }
 0x15c   :  { %6756 = vrot.lane.b32.xlu1 %v8599_v26, %s7331_s10  ;;  %v6329_v19 = vunpack.i.h.bf16 %v11434_v28  ;;  %v6328_v22 = vunpack.i.l.bf16 %v11434_v28  ;;  %v6474_v27 = vunpack.i.h.bf16 %v6472_v34  ;;  %v6473_v25 = vunpack.i.l.bf16 %v6472_v34 }
 0x15d   :  { %v2974_v15 = vsel %vm2921_vm3, %v8625_v2, %v6313_v52  ;;  %v2975_v16 = vsel %vm2921_vm3, %v8621_v58, %v6314_v60  ;;  %v6479_v31 = vunpack.i.h.bf16 %v6477_v18  ;;  %v6478_v57 = vunpack.i.l.bf16 %v6477_v18  ;;  %v605_v18 = vld [vmem:[#allocation2 + $0x2c2] sm:$0xff] }
 0x15e   :  { %v2977_v51 = vsel %vm2921_vm3, %v8629_v59, %v6319_v9  ;;  %v2976_v41 = vsel %vm2921_vm3, %v8633_v55, %v6318_v40  ;;  %v8766_v30 = vsel %vm2986_vm4, %v2974_v15, %v6473_v25  ;;  %v8769_v5 = vsel %vm2986_vm4, %v2975_v16, %v6474_v27  ;;  %v6482_v60 = vpop.permute.xlu0 %6481  ;;  %v6487_v28 = vpop.permute.xlu1 %6486  ;;  %v606_v15 = vld [vmem:[#allocation2 + $0x2d2] sm:$0xff]  ;;  %v607_v16 = vld [vmem:[#allocation2 + $0x2da] sm:$0xff] }
 0x15f   :  { %6761 = vrot.lane.b32.xlu0 %v8615_v42, %s7331_s10  ;;  %v2978_v58 = vsel %vm2921_vm3, %v8657_v24, %v6323_v17  ;;  %v2979_v2 = vsel %vm2921_vm3, %v8653_v35, %v6324_v0  ;;  %v8778_v59 = vsel %vm2986_vm4, %v2976_v41, %v6478_v57  ;;  %v8781_v55 = vsel %vm2986_vm4, %v2977_v51, %v6479_v31  ;;  %v604_v24 = vld [vmem:[#allocation2 + $0x2ba] sm:$0xff] }
 0x160   :  { %6766 = vrot.lane.b32.xlu1 %v8617_v54, %s7331_s10  ;;  %v2981_v52 = vsel %vm2921_vm3, %v8661_v56, %v6329_v19  ;;  %v2980_v9 = vsel %vm2921_vm3, %v8665_v32, %v6328_v22  ;;  %v6484_v40 = vunpack.i.h.bf16 %v6482_v60  ;;  %v6483_v34 = vunpack.i.l.bf16 %v6482_v60  ;;  %v11435_v17 = vld [vmem:[#allocation70_spill] sm:$0xff]  ;;  %v11436_v56 = vld [vmem:[#allocation71_spill] sm:$0xff] }
 0x161   :  { %v6334_v27 = vunpack.i.h.bf16 %v11435_v17  ;;  %v6333_v35 = vunpack.i.l.bf16 %v11435_v17  ;;  %v6489_v0 = vunpack.i.h.bf16 %v6487_v28  ;;  %v6488_v25 = vunpack.i.l.bf16 %v6487_v28  ;;  %v7302_v57 = vld [vmem:[#allocation2 + $0x320] sm:$0xff]  ;;  %v7303_v60 = vld [vmem:[#allocation2 + $0x318] sm:$0xff] }
 0x162   :  { %v6339_v19 = vunpack.i.h.bf16 %v11436_v56  ;;  %v6338_v32 = vunpack.i.l.bf16 %v11436_v56  ;;  %v8794_v22 = vsel %vm2986_vm4, %v2978_v58, %v6483_v34  ;;  %v8797_v31 = vsel %vm2986_vm4, %v2979_v2, %v6484_v40  ;;  %v6492_v2 = vpop.permute.xlu0 %6491 }
 0x163   :  { %6771 = vrot.lane.b32.xlu0 %v8647_v37, %s7331_s10  ;;  %v11437_v51 = vunpack.i.h.bf16 %v11423_v6  ;;  %v11438_v28 = vunpack.i.l.bf16 %v11423_v6  ;;  %v8808_v56 = vsel %vm2986_vm4, %v2980_v9, %v6488_v25  ;;  %v8811_v58 = vsel %vm2986_vm4, %v2981_v52, %v6489_v0 }
 0x164   :  { %6776 = vrot.lane.b32.xlu1 %v8649_v45, %s7331_s10  ;;  %v6494_v40 = vunpack.i.h.bf16 %v6492_v2  ;;  %v6493_v34 = vunpack.i.l.bf16 %v6492_v2  ;;  %v6497_v45 = vpop.permute.xlu1 %6496  ;;  %v6790_v37 = vpack.i.bf16 %v605_v18, %v604_v24  ;;  %v6795_v54 = vpack.i.bf16 %v607_v16, %v606_v15  ;;  %v610_v18 = vld [vmem:[#allocation2 + $0x302] sm:$0xff]  ;;  %v611_v15 = vld [vmem:[#allocation2 + $0x30a] sm:$0xff] }
 0x165   :  { %v2920_v41 = vsel %vm15_vm0, %v7302_v57, %v11437_v51  ;;  %v2919_v17 = vsel %vm15_vm0, %v7303_v60, %v11438_v28  ;;  %v2982_v57 = vsel %vm2921_vm3, %v8693_v12, %v6333_v35  ;;  %v2983_v6 = vsel %vm2921_vm3, %v8689_v33, %v6334_v27  ;;  %v608_v33 = vld [vmem:[#allocation2 + $0x2ea] sm:$0xff]  ;;  %v614_v28 = vld [vmem:[#allocation2 + $0x332] sm:$0xff] }
 0x166   :  { %v6499_v51 = vunpack.i.h.bf16 %v6497_v45  ;;  %v6498_v60 = vunpack.i.l.bf16 %v6497_v45  ;;  %v2985_v52 = vsel %vm2921_vm3, %v2920_v41, %v6339_v19  ;;  %v2984_v9 = vsel %vm2921_vm3, %v2919_v17, %v6338_v32  ;;  %v609_v45 = vld [vmem:[#allocation2 + $0x2f2] sm:$0xff]  ;;  %v8837_v25 = vpop.permute.xlu0 %6501  ;;  %v613_v32 = vld [vmem:[#allocation2 + $0x322] sm:$0xff]  ;;  %v615_v17 = vld [vmem:[#allocation2 + $0x33a] sm:$0xff] }
 0x167   :  { %6781 = vrot.lane.b32.xlu0 %v8675_v8, %s7331_s10  ;;  %v8822_v0 = vsel %vm2986_vm4, %v2982_v57, %v6493_v34  ;;  %v8825_v24 = vsel %vm2986_vm4, %v2983_v6, %v6494_v40  ;;  %v11439_v12 = vpack.i.bf16 %v8641_v29, %v8639_v13  ;;  %11440 = vst [vmem:[#allocation21_spill] sm:$0xff] %v8837_v25  ;;  %v612_v29 = vld [vmem:[#allocation2 + $0x31a] sm:$0xff]  ;;  %v617_v57 = vld [vmem:[#allocation2 + $0x30] sm:$0xff] }
 0x168   :  { %v8832_v27 = vsel %vm2986_vm4, %v2984_v9, %v6498_v60  ;;  %v8835_v35 = vsel %vm2986_vm4, %v2985_v52, %v6499_v51  ;;  %v8839_v16 = vpop.permute.xlu1 %6506  ;;  %v6800_v19 = vpack.i.bf16 %v609_v45, %v608_v33  ;;  %v6805_v13 = vpack.i.bf16 %v611_v15, %v610_v18  ;;  %v620_v51 = vld [vmem:[#allocation2 + $0x50] sm:$0xff]  ;;  %v622_v33 = vld [vmem:[#allocation2 + $0x68] sm:$0xff]  ;;  %v623_v18 = vld [vmem:[#allocation2 + $0x78] sm:$0xff] }
 0x169   :  { %6786 = vrot.lane.b32.xlu1 %v11439_v12, %s7331_s10  ;;  %11441 = vst [vmem:[#allocation24_spill] sm:$0xff] %v8839_v16  ;;  %v6810_v40 = vpack.i.bf16 %v613_v32, %v612_v29  ;;  %v6815_v34 = vpack.i.bf16 %v615_v17, %v614_v28  ;;  %v621_v12 = vld [vmem:[#allocation2 + $0x60] sm:$0xff] }
 0x16a   :  { %v8843_v41 = vpop.permute.xlu0 %6511  ;;  %v624_v15 = vld [vmem:[#allocation2 + $0x80] sm:$0xff]  ;;  %v6830_v17 = vpack.i.bf16 %v622_v33, %v621_v12  ;;  %v650_v33 = vld [vmem:[#allocation2 + $0x1e8] sm:$0xff] }
 0x16b   :  { %6791 = vrot.lane.b32.xlu0 %v6790_v37, %s7331_s10  ;;  %11442 = vst [vmem:[#allocation26_spill] sm:$0xff] %v8843_v41  ;;  %v618_v37 = vld [vmem:[#allocation2 + $0x38] sm:$0xff] }
 0x16c   :  { %v8845_v2 = vpop.permute.xlu1 %6516  ;;  %v6820_v52 = vpack.i.bf16 %v618_v37, %v617_v57  ;;  %v6835_v57 = vpack.i.bf16 %v624_v15, %v623_v18  ;;  %v625_v37 = vld [vmem:[#allocation2 + $0x90] sm:$0xff]  ;;  %v651_v18 = vld [vmem:[#allocation2 + $0x1f8] sm:$0xff]  ;;  %v652_v15 = vld [vmem:[#allocation2 + $0x200] sm:$0xff] }
 0x16d   :  { %6796 = vrot.lane.b32.xlu1 %v6795_v54, %s7331_s10  ;;  %11443 = vst [vmem:[#allocation25_spill] sm:$0xff] %v8845_v2  ;;  %v619_v54 = vld [vmem:[#allocation2 + $0x48] sm:$0xff] }
 0x16e   :  { %v8849_v6 = vpop.permute.xlu0 %6521  ;;  %v6825_v9 = vpack.i.bf16 %v620_v51, %v619_v54  ;;  %v626_v54 = vld [vmem:[#allocation2 + $0x98] sm:$0xff] }
 0x16f   :  { %6801 = vrot.lane.b32.xlu0 %v6800_v19, %s7331_s10  ;;  %11444 = vst [vmem:[#allocation27_spill] sm:$0xff] %v8849_v6 }
 0x170   :  { %v8851_v60 = vpop.permute.xlu1 %6526 }
 0x171   :  { %6806 = vrot.lane.b32.xlu1 %v6805_v13, %s7331_s10  ;;  %11445 = vst [vmem:[#allocation30_spill] sm:$0xff] %v8851_v60  ;;  %v6850_v60 = vpack.i.bf16 %v652_v15, %v651_v18  ;;  %v7333_v18 = vmov 65535  }
 0x172   :  { %v6532_v45 = vpop.permute.xlu0 %6531  ;;  %v3529_v15 = vsel %vm3527_vm6, 4294967295, %v7333_v18 }
 0x173   :  { %6811 = vrot.lane.b32.xlu0 %v6810_v40, %s7331_s10  ;;  %v6534_v19 = vunpack.i.h.bf16 %v6532_v45  ;;  %v6533_v13 = vunpack.i.l.bf16 %v6532_v45 }
 0x174   :  { %v6537_v29 = vpop.permute.xlu1 %6536 }
 0x175   :  { %6816 = vrot.lane.b32.xlu1 %v6815_v34, %s7331_s10  ;;  %v6539_v32 = vunpack.i.h.bf16 %v6537_v29  ;;  %v6538_v28 = vunpack.i.l.bf16 %v6537_v29  ;;  %v8858_v40 = vsel %vm3051_vm5, %v8408_v4, %v6533_v13  ;;  %v8862_v34 = vsel %vm3051_vm5, %v8411_v21, %v6534_v19  ;;  %v649_v4 = vld [vmem:[#allocation2 + $0x1e0] sm:$0xff] }
 0x176   :  { %v6542_v12 = vpop.permute.xlu0 %6541 }
 0x177   :  { %6821 = vrot.lane.b32.xlu0 %v6820_v52, %s7332_s11  ;;  %v8867_v51 = vsel %vm3051_vm5, %v8420_v3, %v6538_v28  ;;  %v8871_v52 = vsel %vm3051_vm5, %v8423_v53, %v6539_v32  ;;  %v6544_v45 = vunpack.i.h.bf16 %v6542_v12  ;;  %v6543_v13 = vunpack.i.l.bf16 %v6542_v12  ;;  %v682_v12 = vld [vmem:[#allocation2 + $0x39] sm:$0xff] }
 0x178   :  { %v6547_v21 = vpop.permute.xlu1 %6546  ;;  %v6845_v32 = vpack.i.bf16 %v650_v33, %v649_v4 }
 0x179   :  { %6826 = vrot.lane.b32.xlu1 %v6825_v9, %s7332_s11  ;;  %v6549_v19 = vunpack.i.h.bf16 %v6547_v21  ;;  %v6548_v29 = vunpack.i.l.bf16 %v6547_v21  ;;  %v6840_v9 = vpack.i.bf16 %v626_v54, %v625_v37  ;;  %v8876_v3 = vsel %vm3051_vm5, %v8436_v11, %v6543_v13  ;;  %v681_v54 = vld [vmem:[#allocation2 + $0x31] sm:$0xff] }
 0x17a   :  { %v8880_v53 = vsel %vm3051_vm5, %v8439_v36, %v6544_v45  ;;  %v6552_v37 = vpop.permute.xlu0 %6551  ;;  %v7300_v36 = vld [vmem:[%s11157_s1] sm:$0xff]   ;;  %v6855_v33 = vpack.i.bf16 %v682_v12, %v681_v54  ;;  %v7301_v45 = vld [vmem:[%s11157_s1 + $0x8] sm:$0x3f]   ;;  %v3530_v12 = vsel %vm3528_vm7, %v3529_v15, 0  ;;  %s7334_s1 = smov 21  }
 0x17b   :  { %6831 = vrot.lane.b32.xlu0 %v6830_v17, %s7332_s11  ;;  %v8885_v28 = vsel %vm3051_vm5, %v8446_v1, %v6548_v29  ;;  %v8889_v17 = vsel %vm3051_vm5, %v8449_v61, %v6549_v19  ;;  %v6554_v11 = vunpack.i.h.bf16 %v6552_v37  ;;  %v6553_v13 = vunpack.i.l.bf16 %v6552_v37  ;;  %5937 = vmatprep.subr.bf16.mxu0 %v7300_v36 }
 0x17c   :  { %v6557_v21 = vpop.permute.xlu1 %6556  ;;  %5938 = vmatpush3.bf16.msra.mxu0 %v7300_v36  ;;  %6005 = vmatprep.subr.bf16.mxu1 %v7300_v36 }
 0x17d   :  { %6836 = vrot.lane.b32.xlu1 %v6835_v57, %s7332_s11  ;;  %v6559_v57 = vunpack.i.h.bf16 %v6557_v21  ;;  %v6558_v4 = vunpack.i.l.bf16 %v6557_v21  ;;  %v8897_v1 = vsel %vm3051_vm5, %v8464_v46, %v6553_v13  ;;  %v8901_v61 = vsel %vm3051_vm5, %v8467_v20, %v6554_v11  ;;  %v683_v20 = vld [vmem:[#allocation2 + $0x49] sm:$0xff]  ;;  %6007 = vmatpush3.bf16.msra.mxu1 %v7300_v36 }
 0x17e   :  { %v6562_v29 = vpop.permute.xlu0 %6561  ;;  %v3532_v13 = vand.u32 %v7301_v45, %v3530_v12  ;;  %v11451_v12 = vld [vmem:[#allocation77_spill] sm:$0xff] }
 0x17f   :  { %6841 = vrot.lane.b32.xlu0 %v6840_v9, %s7332_s11  ;;  %v8909_v19 = vsel %vm3051_vm5, %v8478_v44, %v6558_v4  ;;  %v8913_v46 = vsel %vm3051_vm5, %v8481_v43, %v6559_v57  ;;  %v684_v9 = vld [vmem:[#allocation2 + $0x51] sm:$0xff]  ;;  %v6563_v37 = vunpack.i.l.bf16 %v6562_v29 }
 0x180   :  { %v6567_v54 = vpop.permute.xlu1 %6566  ;;  %v6865_v57 = vpack.i.bf16 %v684_v9, %v683_v20  ;;  %v11446_v4 = vld [vmem:[#allocation49_spill] sm:$0xff]  ;;  %5939 = vmatprep.subr.bf16.mxu0 %v3532_v13  ;;  %6006 = vmatprep.subr.bf16.mxu1 %v3532_v13  ;;  %v11449_v20 = vld [vmem:[#allocation51_spill] sm:$0xff] }
 0x181   :  { %6846 = vrot.lane.b32.xlu1 %v6845_v32, %s7332_s11  ;;  %v6564_v32 = vunpack.i.h.bf16 %v6562_v29  ;;  %v6569_v11 = vunpack.i.h.bf16 %v6567_v54  ;;  %v6568_v44 = vunpack.i.l.bf16 %v6567_v54  ;;  %v8919_v43 = vsel %vm3051_vm5, %v8496_v10, %v6563_v37  ;;  %v11447_v29 = vld [vmem:[#allocation50_spill] sm:$0xff]  ;;  %5940 = vmatpush3.bf16.msra.mxu0 %v3532_v13 }
 0x182   :  { %v6572_v45 = vpop.permute.xlu0 %6571  ;;  %6008 = vmatpush3.bf16.msra.mxu1 %v3532_v13  ;;  %v11450_v37 = vld [vmem:[#allocation78_spill] sm:$0xff] }
 0x183   :  { %6851 = vrot.lane.b32.xlu0 %v6850_v60, %s7332_s11  ;;  %v8923_v21 = vsel %vm3051_vm5, %v8499_v23, %v6564_v32  ;;  %v8928_v36 = vsel %vm3051_vm5, %v11446_v4, %v6568_v44  ;;  %v8932_v60 = vsel %vm3051_vm5, %v11447_v29, %v6569_v11  ;;  %v6574_v10 = vunpack.i.h.bf16 %v6572_v45  ;;  %v11452_v44 = vld [vmem:[#allocation52_spill] sm:$0xff] }
 0x184   :  { %v6573_v18 = vunpack.i.l.bf16 %v6572_v45  ;;  %v6577_v15 = vpop.permute.xlu1 %6576  ;;  %v11455_v45 = vld [vmem:[#allocation63_spill] sm:$0xff] }
 0x185   :  { %6856 = vrot.lane.b32.xlu1 %v6855_v33, %s7334_s1  ;;  %v6579_v23 = vunpack.i.h.bf16 %v6577_v15  ;;  %v6578_v32 = vunpack.i.l.bf16 %v6577_v15  ;;  %v11448_v33 = vld [vmem:[#allocation60_spill] sm:$0xff]  ;;  %v8942_v54 = vsel %vm3051_vm5, %v11450_v37, %v6574_v10  ;;  %v654_v15 = vld [vmem:[#allocation2 + $0x218] sm:$0xff]  ;;  %v656_v37 = vld [vmem:[#allocation2 + $0x230] sm:$0xff] }
 0x186   :  { %v8938_v9 = vsel %vm3051_vm5, %v11449_v20, %v6573_v18  ;;  %v8953_v4 = vpop.permute.xlu0 %6581  ;;  %v11456_v10 = vld [vmem:[#allocation72_spill] sm:$0xff]  ;;  %v653_v18 = vld [vmem:[#allocation2 + $0x210] sm:$0xff] }
 0x187   :  { %6861 = vrot.lane.b32.xlu0 %v11448_v33, %s7334_s1  ;;  %v8947_v11 = vsel %vm3051_vm5, %v11451_v12, %v6578_v32  ;;  %v8951_v13 = vsel %vm3051_vm5, %v11452_v44, %v6579_v23  ;;  %11453 = vst [vmem:[#allocation29_spill] sm:$0xff] %v8953_v4  ;;  %v11459_v23 = vld [vmem:[#allocation75_spill] sm:$0xff]  ;;  %v6895_v33 = vpack.i.bf16 %v654_v15, %v653_v18  ;;  %v655_v20 = vld [vmem:[#allocation2 + $0x228] sm:$0xff] }
 0x188   :  { %v8955_v29 = vpop.permute.xlu1 %6586  ;;  %v685_v44 = vld [vmem:[#allocation2 + $0x61] sm:$0xff] }
 0x189   :  { %6866 = vrot.lane.b32.xlu1 %v6865_v57, %s7334_s1  ;;  %11454 = vst [vmem:[#allocation28_spill] sm:$0xff] %v8955_v29  ;;  %v718_v29 = vld [vmem:[#allocation2 + $0x219] sm:$0xff]  ;;  %v688_v18 = vld [vmem:[#allocation2 + $0x81] sm:$0xff] }
 0x18a   :  { %v8961_v57 = vpop.permute.xlu0 %6591 }
 0x18b   :  { %6871 = vrot.lane.b32.xlu0 %v11455_v45, %s7334_s1  ;;  %11457 = vst [vmem:[#allocation32_spill] sm:$0xff] %v8961_v57  ;;  %v686_v45 = vld [vmem:[#allocation2 + $0x69] sm:$0xff]  ;;  %v6900_v57 = vpack.i.bf16 %v656_v37, %v655_v20 }
 0x18c   :  { %v8963_v32 = vpop.permute.xlu1 %6596  ;;  %v719_v37 = vld [vmem:[#allocation2 + $0x229] sm:$0xff] }
 0x18d   :  { %6876 = vrot.lane.b32.xlu1 %v11456_v10, %s7335_s16  ;;  %11458 = vst [vmem:[#allocation31_spill] sm:$0xff] %v8963_v32  ;;  %v6905_v32 = vpack.i.bf16 %v686_v45, %v685_v44  ;;  %v720_v44 = vld [vmem:[#allocation2 + $0x231] sm:$0xff] }
 0x18e   :  { %v8969_v12 = vpop.permute.xlu0 %6601 }
 0x18f   :  { %6881 = vrot.lane.b32.xlu0 %v8563_v48, %s7335_s16  ;;  %11460 = vst [vmem:[#allocation35_spill] sm:$0xff] %v8969_v12  ;;  %v717_v48 = vld [vmem:[#allocation2 + $0x211] sm:$0xff] }
 0x190   :  { %v8971_v10 = vpop.permute.xlu1 %6606 }
 0x191   :  { %6886 = vrot.lane.b32.xlu1 %v11459_v23, %s7335_s16  ;;  %11461 = vst [vmem:[#allocation34_spill] sm:$0xff] %v8971_v10  ;;  %v687_v23 = vld [vmem:[#allocation2 + $0x79] sm:$0xff]  ;;  %v6910_v10 = vpack.i.bf16 %v718_v29, %v717_v48 }
 0x192   :  { %v6612_v4 = vpop.permute.xlu0 %6611  ;;  %v6915_v20 = vpack.i.bf16 %v688_v18, %v687_v23 }
 0x193   :  { %6891 = vrot.lane.b32.xlu0 %v8597_v38, %s7335_s16  ;;  %v6614_v15 = vunpack.i.h.bf16 %v6612_v4  ;;  %v6613_v6 = vunpack.i.l.bf16 %v6612_v4 }
 0x194   :  { %v6617_v2 = vpop.permute.xlu1 %6616 }
 0x195   :  { %6896 = vrot.lane.b32.xlu1 %v6895_v33, %s7332_s11  ;;  %v6619_v12 = vunpack.i.h.bf16 %v6617_v2  ;;  %v6618_v41 = vunpack.i.l.bf16 %v6617_v2  ;;  %v8979_v38 = vsel %vm3051_vm5, %v8712_v50, %v6613_v6  ;;  %v8983_v33 = vsel %vm3051_vm5, %v8715_v39, %v6614_v15 }
 0x196   :  { %v6622_v29 = vpop.permute.xlu0 %6621 }
 0x197   :  { %6901 = vrot.lane.b32.xlu0 %v6900_v57, %s7332_s11  ;;  %v8988_v4 = vsel %vm3051_vm5, %v8724_v47, %v6618_v41  ;;  %v8992_v2 = vsel %vm3051_vm5, %v8727_v62, %v6619_v12  ;;  %v6624_v50 = vunpack.i.h.bf16 %v6622_v29  ;;  %v6623_v6 = vunpack.i.l.bf16 %v6622_v29  ;;  %v657_v29 = vld [vmem:[#allocation2 + $0x240] sm:$0xff] }
 0x198   :  { %11462 = vst [vmem:[#allocation84_spill] sm:$0xff] %v8988_v4  ;;  %11463 = vst [vmem:[#allocation83_spill] sm:$0xff] %v8992_v2  ;;  %v6627_v57 = vpop.permute.xlu1 %6626 }
 0x199   :  { %6906 = vrot.lane.b32.xlu1 %v6905_v32, %s7334_s1  ;;  %v6629_v45 = vunpack.i.h.bf16 %v6627_v57  ;;  %v6628_v39 = vunpack.i.l.bf16 %v6627_v57  ;;  %v6920_v32 = vpack.i.bf16 %v720_v44, %v719_v37  ;;  %v8997_v48 = vsel %vm3051_vm5, %v8738_v49, %v6623_v6 }
 0x19a   :  { %11464 = vst [vmem:[#allocation33_spill] sm:$0xff] %v8997_v48  ;;  %v9001_v47 = vsel %vm3051_vm5, %v8741_v63, %v6624_v50  ;;  %v6632_v12 = vpop.permute.xlu0 %6631  ;;  %v658_v50 = vld [vmem:[#allocation2 + $0x248] sm:$0xff] }
 0x19b   :  { %6911 = vrot.lane.b32.xlu0 %v6910_v10, %s7334_s1  ;;  %11465 = vst [vmem:[#allocation38_spill] sm:$0xff] %v9001_v47  ;;  %v9006_v62 = vsel %vm3051_vm5, %v8748_v7, %v6628_v39  ;;  %v9010_v41 = vsel %vm3051_vm5, %v8751_v14, %v6629_v45  ;;  %v6634_v10 = vunpack.i.h.bf16 %v6632_v12  ;;  %v6633_v23 = vunpack.i.l.bf16 %v6632_v12  ;;  %v627_v12 = vld [vmem:[#allocation2 + $0xa8] sm:$0xff] }
 0x19c   :  { %11466 = vst [vmem:[#allocation37_spill] sm:$0xff] %v9006_v62  ;;  %11467 = vst [vmem:[#allocation41_spill] sm:$0xff] %v9010_v41  ;;  %v6637_v18 = vpop.permute.xlu1 %6636  ;;  %v7311_v62 = vld [vmem:[#allocation2 + $0x60] sm:$0xff] }
 0x19d   :  { %6916 = vrot.lane.b32.xlu1 %v6915_v20, %s7334_s1  ;;  %v6639_v49 = vunpack.i.h.bf16 %v6637_v18  ;;  %v6638_v15 = vunpack.i.l.bf16 %v6637_v18  ;;  %v9015_v63 = vsel %vm3051_vm5, %v8766_v30, %v6633_v23  ;;  %v9019_v7 = vsel %vm3051_vm5, %v8769_v5, %v6634_v10  ;;  %v11470_v20 = vld [vmem:[#allocation76_spill] sm:$0xff]  ;;  %v628_v10 = vld [vmem:[#allocation2 + $0xb0] sm:$0xff]  ;;  %v11476_v23 = vld [vmem:[#allocation3_spill] sm:$0xff] }
 0x19e   :  { %11468 = vst [vmem:[#allocation40_spill] sm:$0xff] %v9015_v63  ;;  %11469 = vst [vmem:[#allocation61_spill] sm:$0xff] %v9019_v7  ;;  %v6642_v44 = vpop.permute.xlu0 %6641  ;;  %v6024_v18 = vunpack.i.h.bf16 %v11476_v23  ;;  %v754_v7 = vld [vmem:[#allocation2 + $0x9a] sm:$0xff]  ;;  %v7310_v63 = vld [vmem:[#allocation2 + $0x68] sm:$0xff] }
 0x19f   :  { %6921 = vrot.lane.b32.xlu0 %v6920_v32, %s7334_s1  ;;  %v9025_v14 = vsel %vm3051_vm5, %v8778_v59, %v6638_v15  ;;  %v9029_v37 = vsel %vm3051_vm5, %v8781_v55, %v6639_v49  ;;  %v6644_v30 = vunpack.i.h.bf16 %v6642_v44  ;;  %v6643_v6 = vunpack.i.l.bf16 %v6642_v44  ;;  %v11475_v55 = vld [vmem:[#allocation80_spill] sm:$0xff]  ;;  %v659_v15 = vld [vmem:[#allocation2 + $0x258] sm:$0xff] }
 0x1a0   :  { %11471 = vst [vmem:[#allocation36_spill] sm:$0xff] %v9025_v14  ;;  %11472 = vst [vmem:[#allocation62_spill] sm:$0xff] %v9029_v37  ;;  %v6647_v57 = vpop.permute.xlu1 %6646  ;;  %v6945_v32 = vpack.i.bf16 %v658_v50, %v657_v29  ;;  %v11479_v44 = vld [vmem:[#allocation4_spill] sm:$0xff] }
 0x1a1   :  { %6926 = vrot.lane.b32.xlu1 %v11470_v20, %s7335_s16  ;;  %v6649_v45 = vunpack.i.h.bf16 %v6647_v57  ;;  %v6648_v5 = vunpack.i.l.bf16 %v6647_v57  ;;  %v9035_v39 = vsel %vm3051_vm5, %v8794_v22, %v6643_v6  ;;  %v9039_v59 = vsel %vm3051_vm5, %v8797_v31, %v6644_v30  ;;  %v660_v31 = vld [vmem:[#allocation2 + $0x260] sm:$0xff]  ;;  %v233_v57 = vld [vmem:[#allocation2 + $0x8] sm:$0xff] }
 0x1a2   :  { %11473 = vst [vmem:[#allocation44_spill] sm:$0xff] %v9035_v39  ;;  %11474 = vst [vmem:[#allocation43_spill] sm:$0xff] %v9039_v59  ;;  %v6652_v22 = vpop.permute.xlu0 %6651  ;;  %v6023_v20 = vunpack.i.l.bf16 %v11476_v23  ;;  %v6034_v30 = vunpack.i.h.bf16 %v11479_v44  ;;  %v7309_v59 = vld [vmem:[#allocation2 + $0x48] sm:$0xff]  ;;  %v264_v39 = vld [vmem:[#allocation2 + $0x1b0] sm:$0xff] }
 0x1a3   :  { %6931 = vrot.lane.b32.xlu0 %v8599_v26, %s7335_s16  ;;  %v9046_v49 = vsel %vm3051_vm5, %v8808_v56, %v6648_v5  ;;  %v9050_v26 = vsel %vm3051_vm5, %v8811_v58, %v6649_v45  ;;  %v6654_v29 = vunpack.i.h.bf16 %v6652_v22  ;;  %v6653_v50 = vunpack.i.l.bf16 %v6652_v22  ;;  %v232_v45 = vld [vmem:[#allocation2] sm:$0xff]  ;;  %v11480_v5 = vld [vmem:[#allocation5_spill] sm:$0xff] }
 0x1a4   :  { %11477 = vst [vmem:[#allocation64_spill] sm:$0xff] %v9046_v49  ;;  %11478 = vst [vmem:[#allocation65_spill] sm:$0xff] %v9050_v26  ;;  %v6657_v6 = vpop.permute.xlu1 %6656  ;;  %v6950_v58 = vpack.i.bf16 %v628_v10, %v627_v12  ;;  %v6029_v25 = vunpack.i.h.bf16 %v11480_v5  ;;  %v689_v26 = vld [vmem:[#allocation2 + $0x91] sm:$0xff]  ;;  %v6028_v49 = vunpack.i.l.bf16 %v11480_v5 }
 0x1a5   :  { %6936 = vrot.lane.b32.xlu1 %v11475_v55, %s7335_s16  ;;  %v6033_v55 = vunpack.i.l.bf16 %v11479_v44  ;;  %v6659_v16 = vunpack.i.h.bf16 %v6657_v6  ;;  %v6658_v56 = vunpack.i.l.bf16 %v6657_v6  ;;  %v9060_v23 = vsel %vm3051_vm5, %v8822_v0, %v6653_v50  ;;  %v690_v6 = vld [vmem:[#allocation2 + $0x99] sm:$0xff] }
 0x1a6   :  { %11481 = vst [vmem:[#allocation66_spill] sm:$0xff] %v9060_v23  ;;  %v9064_v22 = vsel %vm3051_vm5, %v8825_v24, %v6654_v29  ;;  %v6955_v44 = vpack.i.bf16 %v660_v31, %v659_v15  ;;  %v9077_v50 = vpop.permute.xlu0 %6661  ;;  %v721_v24 = vld [vmem:[#allocation2 + $0x241] sm:$0xff]  ;;  %v722_v29 = vld [vmem:[#allocation2 + $0x249] sm:$0xff]  ;;  %v9082_v15 = vsel %vm15_vm0, %v233_v57, %v6024_v18  ;;  %v9085_v31 = vsel %vm15_vm0, %v232_v45, %v6023_v20  ;;  %v7306_v20 = vld [vmem:[#allocation2 + $0x18] sm:$0xff] }
 0x1a7   :  { %6941 = vrot.lane.b32.xlu0 %v8615_v42, %s7335_s16  ;;  %11482 = vst [vmem:[#allocation67_spill] sm:$0xff] %v9064_v22  ;;  %v11483_v42 = vld [vmem:[#allocation6_spill] sm:$0xff]  ;;  %v9071_v10 = vsel %vm3051_vm5, %v8832_v27, %v6658_v56  ;;  %v9075_v0 = vsel %vm3051_vm5, %v8835_v35, %v6659_v16  ;;  %11486 = vst [vmem:[#allocation70_spill] sm:$0xff] %v9077_v50  ;;  %v6960_v27 = vpack.i.bf16 %v690_v6, %v689_v26  ;;  %v7304_v56 = vld [vmem:[#allocation2 + $0x30] sm:$0xff] }
 0x1a8   :  { %v6039_v12 = vunpack.i.h.bf16 %v11483_v42  ;;  %11484 = vst [vmem:[#allocation68_spill] sm:$0xff] %v9071_v10  ;;  %11485 = vst [vmem:[#allocation69_spill] sm:$0xff] %v9075_v0  ;;  %v9089_v5 = vsel %vm15_vm0, %v7304_v56, %v6033_v55  ;;  %v7305_v35 = vld [vmem:[#allocation2 + $0x38] sm:$0xff]  ;;  %v6038_v50 = vunpack.i.l.bf16 %v11483_v42  ;;  %v6965_v18 = vpack.i.bf16 %v722_v29, %v721_v24  ;;  %v691_v57 = vld [vmem:[#allocation2 + $0xa9] sm:$0xff] }
 0x1a9   :  { %6946 = vrot.lane.b32.xlu1 %v6945_v32, %s7332_s11  ;;  %v9079_v32 = vpop.permute.xlu1 %6666  ;;  %v9092_v16 = vsel %vm15_vm0, %v7305_v35, %v6034_v30  ;;  %v9097_v45 = vsel %vm15_vm0, %v7306_v20, %v6028_v49  ;;  %v7307_v26 = vld [vmem:[#allocation2 + $0x20] sm:$0xff]  ;;  %v7308_v55 = vld [vmem:[#allocation2 + $0x50] sm:$0xff]  ;;  %v11490_v35 = vld [vmem:[#allocation8_spill] sm:$0xff] }
 0x1aa   :  { %11487 = vst [vmem:[#allocation71_spill] sm:$0xff] %v9079_v32  ;;  %v692_v32 = vld [vmem:[#allocation2 + $0xb1] sm:$0xff]  ;;  %v9103_v6 = vsel %vm15_vm0, %v7308_v55, %v6039_v12  ;;  %v11488_v30 = vld [vmem:[#allocation7_spill] sm:$0xff]  ;;  %v9106_v42 = vpop.permute.xlu0 %6671  ;;  %v6049_v0 = vunpack.i.h.bf16 %v11490_v35  ;;  %v6048_v49 = vunpack.i.l.bf16 %v11490_v35 }
 0x1ab   :  { %6951 = vrot.lane.b32.xlu0 %v6950_v58, %s7332_s11  ;;  %v9100_v58 = vsel %vm15_vm0, %v7307_v26, %v6029_v25  ;;  %v6044_v56 = vunpack.i.h.bf16 %v11488_v30  ;;  %11489 = vst [vmem:[#allocation49_spill] sm:$0xff] %v9106_v42  ;;  %v724_v24 = vld [vmem:[#allocation2 + $0x261] sm:$0xff]  ;;  %v6043_v29 = vunpack.i.l.bf16 %v11488_v30  ;;  %v11491_v20 = vld [vmem:[#allocation9_spill] sm:$0xff]  ;;  %v265_v26 = vld [vmem:[#allocation2 + $0x1b8] sm:$0xff]  ;;  %v6970_v42 = vpack.i.bf16 %v692_v32, %v691_v57 }
 0x1ac   :  { %v6104_v10 = vunpack.i.h.bf16 %v11491_v20  ;;  %v6103_v12 = vunpack.i.l.bf16 %v11491_v20  ;;  %v11493_v55 = vld [vmem:[#allocation10_spill] sm:$0xff]  ;;  %v9119_v30 = vsel %vm15_vm0, %v7309_v59, %v6038_v50  ;;  %v11494_v35 = vld [vmem:[#allocation11_spill] sm:$0xff]  ;;  %v11496_v59 = vld [vmem:[#allocation13_spill] sm:$0xff] }
 0x1ad   :  { %6956 = vrot.lane.b32.xlu1 %v6955_v44, %s7332_s11  ;;  %v723_v44 = vld [vmem:[#allocation2 + $0x259] sm:$0xff]  ;;  %v9112_v25 = vpop.permute.xlu1 %6676  ;;  %v6109_v22 = vunpack.i.h.bf16 %v11493_v55  ;;  %v6108_v23 = vunpack.i.l.bf16 %v11493_v55  ;;  %v6114_v37 = vunpack.i.h.bf16 %v11494_v35  ;;  %v6113_v14 = vunpack.i.l.bf16 %v11494_v35 }
 0x1ae   :  { %11492 = vst [vmem:[#allocation50_spill] sm:$0xff] %v9112_v25  ;;  %v6975_v25 = vpack.i.bf16 %v724_v24, %v723_v44  ;;  %v753_v20 = vld [vmem:[#allocation2 + $0x92] sm:$0xff]  ;;  %v9125_v55 = vsel %vm15_vm0, %v7310_v63, %v6044_v56  ;;  %v6124_v50 = vunpack.i.h.bf16 %v11496_v59  ;;  %v9130_v41 = vpop.permute.xlu0 %6681  ;;  %v9133_v35 = vsel %vm15_vm0, %v7311_v62, %v6043_v29  ;;  %v7315_v29 = vld [vmem:[#allocation2 + $0x1c8] sm:$0xff] }
 0x1af   :  { %6961 = vrot.lane.b32.xlu0 %v6960_v27, %s7334_s1  ;;  %v11495_v27 = vld [vmem:[#allocation12_spill] sm:$0xff]  ;;  %11497 = vst [vmem:[#allocation60_spill] sm:$0xff] %v9130_v41  ;;  %v7313_v24 = vld [vmem:[#allocation2 + $0x78] sm:$0xff]  ;;  %v9142_v56 = vsel %vm15_vm0, %v265_v26, %v6104_v10  ;;  %v9147_v47 = vsel %vm15_vm0, %v264_v39, %v6103_v12  ;;  %v7314_v41 = vld [vmem:[#allocation2 + $0x1d0] sm:$0xff]  ;;  %v6123_v39 = vunpack.i.l.bf16 %v11496_v59 }
 0x1b0   :  { %v6119_v32 = vunpack.i.h.bf16 %v11495_v27  ;;  %v6118_v57 = vunpack.i.l.bf16 %v11495_v27  ;;  %v9139_v63 = vsel %vm15_vm0, %v7313_v24, %v6048_v49  ;;  %v9150_v62 = vsel %vm15_vm0, %v7314_v41, %v6109_v22  ;;  %v7317_v26 = vld [vmem:[#allocation2 + $0x1e0] sm:$0xff]  ;;  %v11499_v12 = vld [vmem:[#allocation14_spill] sm:$0xff]  ;;  %v755_v22 = vld [vmem:[#allocation2 + $0xaa] sm:$0xff] }
 0x1b1   :  { %6966 = vrot.lane.b32.xlu1 %v6965_v18, %s7334_s1  ;;  %v7312_v18 = vld [vmem:[#allocation2 + $0x80] sm:$0xff]  ;;  %v9144_v27 = vpop.permute.xlu1 %6686  ;;  %v6980_v49 = vpack.i.bf16 %v754_v7, %v753_v20  ;;  %v9160_v24 = vsel %vm15_vm0, %v7317_v26, %v6113_v14  ;;  %v6129_v41 = vunpack.i.h.bf16 %v11499_v12  ;;  %v7319_v7 = vld [vmem:[#allocation2 + $0x1f8] sm:$0xff]  ;;  %v6128_v59 = vunpack.i.l.bf16 %v11499_v12 }
 0x1b2   :  { %v9136_v44 = vsel %vm15_vm0, %v7312_v18, %v6049_v0  ;;  %11498 = vst [vmem:[#allocation51_spill] sm:$0xff] %v9144_v27  ;;  %v9153_v0 = vsel %vm15_vm0, %v7315_v29, %v6108_v23  ;;  %v7316_v18 = vld [vmem:[#allocation2 + $0x1e8] sm:$0xff]  ;;  %v756_v23 = vld [vmem:[#allocation2 + $0xb2] sm:$0xff]  ;;  %v7318_v29 = vld [vmem:[#allocation2 + $0x200] sm:$0xff] }
 0x1b3   :  { %6971 = vrot.lane.b32.xlu0 %v6970_v42, %s7334_s1  ;;  %v9157_v10 = vsel %vm15_vm0, %v7316_v18, %v6114_v37  ;;  %v9166_v42 = vsel %vm15_vm0, %v7318_v29, %v6119_v32  ;;  %v9169_v37 = vsel %vm15_vm0, %v7319_v7, %v6118_v57  ;;  %v7320_v20 = vld [vmem:[#allocation2 + $0x218] sm:$0xff]  ;;  %v6692_v18 = vpop.permute.xlu0 %6691  ;;  %v11500_v26 = vld [vmem:[#allocation39_spill] sm:$0xff]  ;;  %v6990_v57 = vpack.i.bf16 %v756_v23, %v755_v22  ;;  %v7321_v7 = vld [vmem:[#allocation2 + $0x210] sm:$0xff] }
 0x1b4   :  { %v9172_v14 = vsel %vm15_vm0, %v7320_v20, %v6124_v50  ;;  %v6184_v27 = vunpack.i.h.bf16 %v11500_v26  ;;  %v6694_v48 = vunpack.i.h.bf16 %v6692_v18  ;;  %v6693_v2 = vunpack.i.l.bf16 %v6692_v18  ;;  %v7322_v20 = vld [vmem:[#allocation2 + $0x230] sm:$0xff]  ;;  %v630_v22 = vld [vmem:[#allocation2 + $0xc8] sm:$0xff] }
 0x1b5   :  { %6976 = vrot.lane.b32.xlu1 %v6975_v25, %s7334_s1  ;;  %v6183_v25 = vunpack.i.l.bf16 %v11500_v26  ;;  %v6697_v4 = vpop.permute.xlu1 %6696  ;;  %v9179_v50 = vsel %vm15_vm0, %v7321_v7, %v6123_v39  ;;  %v9182_v12 = vsel %vm15_vm0, %v7322_v20, %v6129_v41  ;;  %v7323_v23 = vld [vmem:[#allocation2 + $0x228] sm:$0xff]  ;;  %v11504_v7 = vld [vmem:[#allocation42_spill] sm:$0xff] }
 0x1b6   :  { %v6699_v32 = vunpack.i.h.bf16 %v6697_v4  ;;  %v6698_v29 = vunpack.i.l.bf16 %v6697_v4  ;;  %v9186_v26 = vsel %vm3116_vm8, %v8858_v40, %v6693_v2  ;;  %v9190_v18 = vsel %vm3116_vm8, %v8862_v34, %v6694_v48  ;;  %v11503_v4 = vld [vmem:[#allocation20_spill] sm:$0xff]  ;;  %v661_v2 = vld [vmem:[#allocation2 + $0x270] sm:$0xff]  ;;  %v662_v48 = vld [vmem:[#allocation2 + $0x278] sm:$0xff] }
 0x1b7   :  { %6981 = vrot.lane.b32.xlu0 %v6980_v49, %s7335_s16  ;;  %11501 = vst [vmem:[#allocation78_spill] sm:$0xff] %v9186_v26  ;;  %11502 = vst [vmem:[#allocation77_spill] sm:$0xff] %v9190_v18  ;;  %v629_v49 = vld [vmem:[#allocation2 + $0xc0] sm:$0xff]  ;;  %v9195_v39 = vsel %vm15_vm0, %v7323_v23, %v6128_v59  ;;  %v6189_v41 = vunpack.i.h.bf16 %v11504_v7  ;;  %v6702_v34 = vpop.permute.xlu0 %6701  ;;  %v6188_v59 = vunpack.i.l.bf16 %v11504_v7  ;;  %vm5715_vm0 = vcmask 1042434  }
 0x1b8   :  { %v9200_v20 = vsel %vm3116_vm8, %v8867_v51, %v6698_v29  ;;  %v9204_v40 = vsel %vm3116_vm8, %v8871_v52, %v6699_v32  ;;  %v6704_v23 = vunpack.i.h.bf16 %v6702_v34  ;;  %v6703_v18 = vunpack.i.l.bf16 %v6702_v34  ;;  %v11507_v32 = vld [vmem:[#allocation45_spill] sm:$0xff]  ;;  %v11510_v7 = vld [vmem:[#allocation23_spill] sm:$0xff] }
 0x1b9   :  { %6986 = vrot.lane.b32.xlu1 %v11503_v4, %s7335_s16  ;;  %11505 = vst [vmem:[#allocation52_spill] sm:$0xff] %v9200_v20  ;;  %11506 = vst [vmem:[#allocation63_spill] sm:$0xff] %v9204_v40  ;;  %v9208_v4 = vsel %vm2921_vm3, %v9082_v15, %v6184_v27  ;;  %v6707_v26 = vpop.permute.xlu1 %6706  ;;  %v9213_v51 = vsel %vm2921_vm3, %v9085_v31, %v6183_v25  ;;  %v7000_v52 = vpack.i.bf16 %v630_v22, %v629_v49  ;;  %v631_v25 = vld [vmem:[#allocation2 + $0xd8] sm:$0xff]  ;;  %v632_v34 = vld [vmem:[#allocation2 + $0xe0] sm:$0xff] }
 0x1ba   :  { %v6709_v29 = vunpack.i.h.bf16 %v6707_v26  ;;  %v6708_v20 = vunpack.i.l.bf16 %v6707_v26  ;;  %v6194_v40 = vunpack.i.h.bf16 %v11507_v32  ;;  %v9219_v15 = vsel %vm3116_vm8, %v8876_v3, %v6703_v18  ;;  %v663_v18 = vld [vmem:[#allocation2 + $0x288] sm:$0xff] }
 0x1bb   :  { %6991 = vrot.lane.b32.xlu0 %v6990_v57, %s7335_s16  ;;  %11508 = vst [vmem:[#allocation72_spill] sm:$0xff] %v9219_v15  ;;  %v9223_v27 = vsel %vm3116_vm8, %v8880_v53, %v6704_v23  ;;  %v7005_v31 = vpack.i.bf16 %v662_v48, %v661_v2  ;;  %v6193_v26 = vunpack.i.l.bf16 %v11507_v32  ;;  %v11511_v57 = vld [vmem:[#allocation46_spill] sm:$0xff]  ;;  %v6712_v53 = vpop.permute.xlu0 %6711  ;;  %v664_v23 = vld [vmem:[#allocation2 + $0x290] sm:$0xff]  ;;  %v9239_v2 = vsel %vm2921_vm3, %v9097_v45, %v6188_v59 }
 0x1bc   :  { %11509 = vst [vmem:[#allocation75_spill] sm:$0xff] %v9223_v27  ;;  %v6199_v49 = vunpack.i.h.bf16 %v11511_v57  ;;  %v9231_v22 = vsel %vm3116_vm8, %v8885_v28, %v6708_v20  ;;  %v9235_v3 = vsel %vm3116_vm8, %v8889_v17, %v6709_v29  ;;  %v6198_v48 = vunpack.i.l.bf16 %v11511_v57 }
 0x1bd   :  { %6996 = vrot.lane.b32.xlu1 %v11510_v7, %s7335_s16  ;;  %11512 = vst [vmem:[#allocation76_spill] sm:$0xff] %v9231_v22  ;;  %11513 = vst [vmem:[#allocation80_spill] sm:$0xff] %v9235_v3  ;;  %v6714_v32 = vunpack.i.h.bf16 %v6712_v53  ;;  %v6713_v7 = vunpack.i.l.bf16 %v6712_v53  ;;  %v6717_v27 = vpop.permute.xlu1 %6716  ;;  %v9244_v28 = vsel %vm2921_vm3, %v9100_v58, %v6189_v41  ;;  %v7010_v17 = vpack.i.bf16 %v632_v34, %v631_v25  ;;  %v693_v41 = vld [vmem:[#allocation2 + $0xc1] sm:$0xff]  ;;  %v726_v25 = vld [vmem:[#allocation2 + $0x279] sm:$0xff] }
 0x1be   :  { %v6719_v20 = vunpack.i.h.bf16 %v6717_v27  ;;  %v6718_v22 = vunpack.i.l.bf16 %v6717_v27  ;;  %v9249_v29 = vsel %vm2921_vm3, %v9092_v16, %v6194_v40  ;;  %v7015_v58 = vpack.i.bf16 %v664_v23, %v663_v18  ;;  %v694_v27 = vld [vmem:[#allocation2 + $0xc9] sm:$0xff] }
 0x1bf   :  { %7001 = vrot.lane.b32.xlu0 %v7000_v52, %s7332_s11  ;;  %v9253_v45 = vsel %vm3116_vm8, %v8897_v1, %v6713_v7  ;;  %v9257_v59 = vsel %vm3116_vm8, %v8901_v61, %v6714_v32  ;;  %v9262_v52 = vsel %vm2921_vm3, %v9089_v5, %v6193_v26  ;;  %v9266_v16 = vsel %vm2921_vm3, %v9103_v6, %v6199_v49  ;;  %v6722_v40 = vpop.permute.xlu0 %6721  ;;  %v11518_v5 = vld [vmem:[#allocation47_spill] sm:$0xff]  ;;  %v11519_v18 = vld [vmem:[#allocation48_spill] sm:$0xff] }
 0x1c0   :  { %11514 = vst [vmem:[#allocation3_spill] sm:$0xff] %v9253_v45  ;;  %11515 = vst [vmem:[#allocation4_spill] sm:$0xff] %v9257_v59  ;;  %v9270_v1 = vsel %vm3116_vm8, %v8909_v19, %v6718_v22  ;;  %v9274_v61 = vsel %vm3116_vm8, %v8913_v46, %v6719_v20  ;;  %v9278_v34 = vsel %vm2921_vm3, %v9119_v30, %v6198_v48  ;;  %v6204_v26 = vunpack.i.h.bf16 %v11518_v5  ;;  %v695_v7 = vld [vmem:[#allocation2 + $0xd9] sm:$0xff]  ;;  %v696_v20 = vld [vmem:[#allocation2 + $0xe1] sm:$0xff] }
 0x1c1   :  { %7006 = vrot.lane.b32.xlu1 %v7005_v31, %s7332_s11  ;;  %11516 = vst [vmem:[#allocation5_spill] sm:$0xff] %v9270_v1  ;;  %11517 = vst [vmem:[#allocation6_spill] sm:$0xff] %v9274_v61  ;;  %v725_v31 = vld [vmem:[#allocation2 + $0x271] sm:$0xff]  ;;  %v6724_v57 = vunpack.i.h.bf16 %v6722_v40  ;;  %v6723_v6 = vunpack.i.l.bf16 %v6722_v40  ;;  %v6203_v53 = vunpack.i.l.bf16 %v11518_v5  ;;  %v7020_v46 = vpack.i.bf16 %v694_v27, %v693_v41  ;;  %v11562_v59 = vld [vmem:[#allocation40_spill] sm:$0xff] }
 0x1c2   :  { %v6727_v49 = vpop.permute.xlu1 %6726  ;;  %v6209_v23 = vunpack.i.h.bf16 %v11519_v18  ;;  %v7025_v48 = vpack.i.bf16 %v726_v25, %v725_v31  ;;  %v6208_v40 = vunpack.i.l.bf16 %v11519_v18  ;;  %v11522_v5 = vld [vmem:[#allocation54_spill] sm:$0xff]  ;;  %v11525_v31 = vld [vmem:[#allocation55_spill] sm:$0xff]  ;;  %v11588_v3 = vld [vmem:[#allocation68_spill] sm:$0xff] }
 0x1c3   :  { %v6729_v19 = vunpack.i.h.bf16 %v6727_v49  ;;  %v6728_v22 = vunpack.i.l.bf16 %v6727_v49  ;;  %7011 = vrot.lane.b32.xlu0 %v7010_v17, %s7332_s11  ;;  %v9286_v32 = vsel %vm3116_vm8, %v8919_v43, %v6723_v6  ;;  %v9290_v30 = vsel %vm3116_vm8, %v8923_v21, %v6724_v57  ;;  %v727_v21 = vld [vmem:[#allocation2 + $0x289] sm:$0xff]  ;;  %v728_v57 = vld [vmem:[#allocation2 + $0x291] sm:$0xff] }
 0x1c4   :  { %11520 = vst [vmem:[#allocation7_spill] sm:$0xff] %v9286_v32  ;;  %11521 = vst [vmem:[#allocation8_spill] sm:$0xff] %v9290_v30  ;;  %v6264_v17 = vunpack.i.h.bf16 %v11522_v5  ;;  %v6732_v27 = vpop.permute.xlu0 %6731  ;;  %v6269_v25 = vunpack.i.h.bf16 %v11525_v31  ;;  %v6268_v30 = vunpack.i.l.bf16 %v11525_v31  ;;  %v758_v31 = vld [vmem:[#allocation2 + $0xca] sm:$0xff]  ;;  %v764_v45 = vld [vmem:[#allocation2 + $0x112] sm:$0xff] }
 0x1c5   :  { %7016 = vrot.lane.b32.xlu1 %v7015_v58, %s7332_s11  ;;  %v9297_v41 = vsel %vm3116_vm8, %v8928_v36, %v6728_v22  ;;  %v9301_v43 = vsel %vm3116_vm8, %v8932_v60, %v6729_v19  ;;  %v6263_v58 = vunpack.i.l.bf16 %v11522_v5  ;;  %v6734_v6 = vunpack.i.h.bf16 %v6732_v27  ;;  %v11526_v22 = vld [vmem:[#allocation56_spill] sm:$0xff] }
 0x1c6   :  { %11523 = vst [vmem:[#allocation9_spill] sm:$0xff] %v9297_v41  ;;  %11524 = vst [vmem:[#allocation10_spill] sm:$0xff] %v9301_v43  ;;  %v6733_v49 = vunpack.i.l.bf16 %v6732_v27  ;;  %v6737_v18 = vpop.permute.xlu1 %6736  ;;  %v7030_v36 = vpack.i.bf16 %v696_v20, %v695_v7  ;;  %v6274_v60 = vunpack.i.h.bf16 %v11526_v22  ;;  %v7035_v27 = vpack.i.bf16 %v728_v57, %v727_v21  ;;  %v757_v41 = vld [vmem:[#allocation2 + $0xc2] sm:$0xff]  ;;  %v11529_v43 = vld [vmem:[#allocation57_spill] sm:$0xff] }
 0x1c7   :  { %v6739_v32 = vunpack.i.h.bf16 %v6737_v18  ;;  %v6738_v1 = vunpack.i.l.bf16 %v6737_v18  ;;  %7021 = vrot.lane.b32.xlu0 %v7020_v46, %s7334_s1  ;;  %v9314_v5 = vsel %vm3116_vm8, %v8942_v54, %v6734_v6  ;;  %v6273_v18 = vunpack.i.l.bf16 %v11526_v22  ;;  %v11535_v6 = vld [vmem:[#allocation74_spill] sm:$0xff] }
 0x1c8   :  { %v9310_v19 = vsel %vm3116_vm8, %v8938_v9, %v6733_v49  ;;  %11528 = vst [vmem:[#allocation12_spill] sm:$0xff] %v9314_v5  ;;  %v6279_v46 = vunpack.i.h.bf16 %v11529_v43  ;;  %v9331_v54 = vsel %vm2921_vm3, %v9133_v35, %v6203_v53  ;;  %v9339_v21 = vsel %vm2921_vm3, %v9136_v44, %v6209_v23  ;;  %v11532_v53 = vld [vmem:[#allocation58_spill] sm:$0xff] }
 0x1c9   :  { %11527 = vst [vmem:[#allocation11_spill] sm:$0xff] %v9310_v19  ;;  %7026 = vrot.lane.b32.xlu1 %v7025_v48, %s7334_s1  ;;  %v9321_v7 = vsel %vm3116_vm8, %v8947_v11, %v6738_v1  ;;  %v9325_v9 = vsel %vm3116_vm8, %v8951_v13, %v6739_v32  ;;  %v9327_v20 = vpop.permute.xlu0 %6741  ;;  %v9335_v48 = vsel %vm2921_vm3, %v9125_v55, %v6204_v26  ;;  %v6278_v11 = vunpack.i.l.bf16 %v11529_v43  ;;  %v759_v23 = vld [vmem:[#allocation2 + $0xda] sm:$0xff] }
 0x1ca   :  { %11530 = vst [vmem:[#allocation13_spill] sm:$0xff] %v9321_v7  ;;  %11531 = vst [vmem:[#allocation14_spill] sm:$0xff] %v9325_v9  ;;  %v9342_v1 = vpop.permute.xlu1 %6746  ;;  %v9346_v13 = vsel %vm2921_vm3, %v9139_v63, %v6208_v40  ;;  %v9350_v35 = vsel %vm2921_vm3, %v9147_v47, %v6263_v58  ;;  %v6283_v32 = vunpack.i.l.bf16 %v11532_v53  ;;  %v7040_v55 = vpack.i.bf16 %v758_v31, %v757_v41  ;;  %v760_v40 = vld [vmem:[#allocation2 + $0xe2] sm:$0xff]  ;;  %v11552_v7 = vld [vmem:[#allocation33_spill] sm:$0xff] }
 0x1cb   :  { %7031 = vrot.lane.b32.xlu0 %v7030_v36, %s7334_s1  ;;  %v9356_v44 = vsel %vm2921_vm3, %v9142_v56, %v6264_v17  ;;  %v9360_v26 = vsel %vm2921_vm3, %v9150_v62, %v6269_v25  ;;  %v9364_v63 = vsel %vm2921_vm3, %v9153_v0, %v6268_v30  ;;  %v6284_v47 = vunpack.i.h.bf16 %v11532_v53  ;;  %v11533_v0 = vld [vmem:[#allocation59_spill] sm:$0xff]  ;;  %v634_v53 = vld [vmem:[#allocation2 + $0xf8] sm:$0xff] }
 0x1cc   :  { %v9370_v41 = vsel %vm2921_vm3, %v9160_v24, %v6273_v18  ;;  %v9374_v56 = vsel %vm2921_vm3, %v9157_v10, %v6274_v60  ;;  %v9378_v62 = vsel %vm2921_vm3, %v9166_v42, %v6279_v46  ;;  %v6289_v30 = vunpack.i.h.bf16 %v11533_v0  ;;  %v11534_v24 = vld [vmem:[#allocation73_spill] sm:$0xff]  ;;  %v11536_v60 = vld [vmem:[#allocation79_spill] sm:$0xff] }
 0x1cd   :  { %7036 = vrot.lane.b32.xlu1 %v7035_v27, %s7334_s1  ;;  %v9381_v17 = vpop.permute.xlu0 %6751  ;;  %v9385_v43 = vsel %vm2921_vm3, %v9169_v37, %v6278_v11  ;;  %v6288_v57 = vunpack.i.l.bf16 %v11533_v0  ;;  %v6344_v58 = vunpack.i.h.bf16 %v11534_v24  ;;  %v6343_v25 = vunpack.i.l.bf16 %v11534_v24  ;;  %v11537_v18 = vld [vmem:[#allocation81_spill] sm:$0xff]  ;;  %v665_v0 = vld [vmem:[#allocation2 + $0x2a0] sm:$0xff]  ;;  %v666_v24 = vld [vmem:[#allocation2 + $0x2a8] sm:$0xff] }
 0x1ce   :  { %v9390_v10 = vpop.permute.xlu1 %6756  ;;  %v9394_v42 = vsel %vm2921_vm3, %v9179_v50, %v6283_v32  ;;  %v6349_v49 = vunpack.i.h.bf16 %v11535_v6  ;;  %v6348_v36 = vunpack.i.l.bf16 %v11535_v6  ;;  %v7050_v37 = vpack.i.bf16 %v760_v40, %v759_v23  ;;  %v11538_v50 = vld [vmem:[#allocation22_spill] sm:$0xff]  ;;  %v633_v11 = vld [vmem:[#allocation2 + $0xf0] sm:$0xff] }
 0x1cf   :  { %7041 = vrot.lane.b32.xlu0 %v7040_v55, %s7335_s16  ;;  %v9401_v22 = vsel %vm2921_vm3, %v9172_v14, %v6284_v47  ;;  %v6354_v27 = vunpack.i.h.bf16 %v11536_v60  ;;  %v6353_v31 = vunpack.i.l.bf16 %v11536_v60  ;;  %v6358_v46 = vunpack.i.l.bf16 %v11537_v18  ;;  %v11539_v23 = vld [vmem:[#allocation82_spill] sm:$0xff] }
 0x1d0   :  { %v9410_v32 = vsel %vm2921_vm3, %v9182_v12, %v6289_v30  ;;  %v6359_v55 = vunpack.i.h.bf16 %v11537_v18  ;;  %v6364_v14 = vunpack.i.h.bf16 %v11539_v23  ;;  %v6363_v47 = vunpack.i.l.bf16 %v11539_v23  ;;  %v11541_v30 = vld [vmem:[#allocation85_spill] sm:$0xff] }
 0x1d1   :  { %7046 = vrot.lane.b32.xlu1 %v11538_v50, %s7335_s16  ;;  %v9415_v40 = vpop.permute.xlu0 %6761  ;;  %v9419_v6 = vsel %vm2921_vm3, %v9195_v39, %v6288_v57  ;;  %v9423_v60 = vsel %vm2986_vm4, %v9213_v51, %v6343_v25  ;;  %v9427_v12 = vsel %vm2986_vm4, %v9208_v4, %v6344_v58  ;;  %v6368_v18 = vunpack.i.l.bf16 %v11541_v30  ;;  %v635_v25 = vld [vmem:[#allocation2 + $0x108] sm:$0xff] }
 0x1d2   :  { %11540 = vst [vmem:[#allocation39_spill] sm:$0xff] %v9415_v40  ;;  %v9430_v50 = vpop.permute.xlu1 %6766  ;;  %v9434_v23 = vsel %vm2986_vm4, %v9239_v2, %v6348_v36  ;;  %v9438_v39 = vsel %vm2986_vm4, %v9244_v28, %v6349_v49  ;;  %v6369_v57 = vunpack.i.h.bf16 %v11541_v30  ;;  %v7060_v51 = vpack.i.bf16 %v634_v53, %v633_v11  ;;  %v636_v49 = vld [vmem:[#allocation2 + $0x110] sm:$0xff] }
 0x1d3   :  { %11542 = vst [vmem:[#allocation20_spill] sm:$0xff] %v9430_v50  ;;  %7051 = vrot.lane.b32.xlu0 %v7050_v37, %s7335_s16  ;;  %v9444_v4 = vsel %vm2986_vm4, %v9262_v52, %v6353_v31  ;;  %v9448_v58 = vsel %vm2986_vm4, %v9249_v29, %v6354_v27  ;;  %v9452_v2 = vsel %vm2986_vm4, %v9278_v34, %v6358_v46  ;;  %v11543_v34 = vld [vmem:[#allocation53_spill] sm:$0xff]  ;;  %v667_v31 = vld [vmem:[#allocation2 + $0x2b8] sm:$0xff]  ;;  %v9689_v50 = vld [vmem:[#allocation2 + $0x122] sm:$0xff]  ;;  %vm5721_vm3 = vcmask 1045509  }
 0x1d4   :  { %v7065_v28 = vpack.i.bf16 %v666_v24, %v665_v0  ;;  %v9458_v36 = vsel %vm2986_vm4, %v9266_v16, %v6359_v55  ;;  %v9462_v52 = vsel %vm2986_vm4, %v9331_v54, %v6363_v47  ;;  %v9466_v29 = vsel %vm2986_vm4, %v9335_v48, %v6364_v14  ;;  %v11544_v0 = vld [vmem:[#allocation15_spill] sm:$0xff]  ;;  %v9737_v40 = vld [vmem:[#allocation2 + $0x150] sm:$0xff] }
 0x1d5   :  { %7056 = vrot.lane.b32.xlu1 %v8675_v8, %s7335_s16  ;;  %v6423_v37 = vunpack.i.l.bf16 %v11543_v34  ;;  %v6772_v27 = vpop.permute.xlu0 %6771  ;;  %v668_v8 = vld [vmem:[#allocation2 + $0x2c0] sm:$0xff]  ;;  %v9471_v46 = vsel %vm2986_vm4, %v9346_v13, %v6368_v18  ;;  %v6424_v16 = vunpack.i.h.bf16 %v11543_v34  ;;  %v9476_v54 = vsel %vm2986_vm4, %v9339_v21, %v6369_v57  ;;  %v697_v21 = vld [vmem:[#allocation2 + $0xf1] sm:$0xff] }
 0x1d6   :  { %v6774_v11 = vunpack.i.h.bf16 %v6772_v27  ;;  %v6773_v53 = vunpack.i.l.bf16 %v6772_v27  ;;  %v6777_v55 = vpop.permute.xlu1 %6776  ;;  %v7070_v47 = vpack.i.bf16 %v636_v49, %v635_v25  ;;  %v6428_v24 = vunpack.i.l.bf16 %v11544_v0  ;;  %v698_v57 = vld [vmem:[#allocation2 + $0xf9] sm:$0xff]  ;;  %v11547_v25 = vld [vmem:[#allocation84_spill] sm:$0xff] }
 0x1d7   :  { %v6779_v48 = vunpack.i.h.bf16 %v6777_v55  ;;  %v6778_v14 = vunpack.i.l.bf16 %v6777_v55  ;;  %7061 = vrot.lane.b32.xlu0 %v7060_v51, %s7332_s11  ;;  %v7075_v18 = vpack.i.bf16 %v668_v8, %v667_v31  ;;  %v9491_v34 = vsel %vm2986_vm4, %v9350_v35, %v6423_v37  ;;  %v11551_v8 = vld [vmem:[#allocation16_spill] sm:$0xff] }
 0x1d8   :  { %v9482_v13 = vsel %vm3116_vm8, %v8979_v38, %v6773_v53  ;;  %v9486_v30 = vsel %vm3116_vm8, %v8983_v33, %v6774_v11  ;;  %v6429_v51 = vunpack.i.h.bf16 %v11544_v0  ;;  %v11549_v38 = vld [vmem:[#allocation83_spill] sm:$0xff]  ;;  %v9504_v31 = vsel %vm2986_vm4, %v9356_v44, %v6424_v16  ;;  %v11554_v16 = vld [vmem:[#allocation38_spill] sm:$0xff] }
 0x1d9   :  { %11545 = vst [vmem:[#allocation42_spill] sm:$0xff] %v9482_v13  ;;  %11546 = vst [vmem:[#allocation45_spill] sm:$0xff] %v9486_v30  ;;  %7066 = vrot.lane.b32.xlu1 %v7065_v28, %s7332_s11  ;;  %v9496_v49 = vsel %vm3116_vm8, %v11547_v25, %v6778_v14  ;;  %v9500_v27 = vsel %vm3116_vm8, %v11549_v38, %v6779_v48  ;;  %v6782_v33 = vpop.permute.xlu0 %6781  ;;  %v729_v11 = vld [vmem:[#allocation2 + $0x2a1] sm:$0xff]  ;;  %v730_v28 = vld [vmem:[#allocation2 + $0x2a9] sm:$0xff]  ;;  %v6433_v35 = vunpack.i.l.bf16 %v11551_v8  ;;  %v6434_v0 = vunpack.i.h.bf16 %v11551_v8 }
 0x1da   :  { %11548 = vst [vmem:[#allocation23_spill] sm:$0xff] %v9496_v49  ;;  %11550 = vst [vmem:[#allocation46_spill] sm:$0xff] %v9500_v27  ;;  %v6784_v37 = vunpack.i.h.bf16 %v6782_v33  ;;  %v6783_v53 = vunpack.i.l.bf16 %v6782_v33  ;;  %v7080_v48 = vpack.i.bf16 %v698_v57, %v697_v21  ;;  %v9511_v38 = vsel %vm2986_vm4, %v9364_v63, %v6428_v24  ;;  %v699_v8 = vld [vmem:[#allocation2 + $0x109] sm:$0xff]  ;;  %v9666_v49 = vld [vmem:[#allocation2 + $0x139] sm:$0xff] }
 0x1db   :  { %v6787_v55 = vpop.permute.xlu1 %6786  ;;  %7071 = vrot.lane.b32.xlu0 %v7070_v47, %s7332_s11  ;;  %v7085_v33 = vpack.i.bf16 %v730_v28, %v729_v11  ;;  %v9524_v47 = vsel %vm2986_vm4, %v9360_v26, %v6429_v51  ;;  %v11556_v21 = vld [vmem:[#allocation17_spill] sm:$0xff]  ;;  %v9537_v11 = vsel %vm2986_vm4, %v9370_v41, %v6433_v35  ;;  %v9668_v30 = vld [vmem:[#allocation2 + $0x141] sm:$0xff] }
 0x1dc   :  { %v6789_v14 = vunpack.i.h.bf16 %v6787_v55  ;;  %v6788_v25 = vunpack.i.l.bf16 %v6787_v55  ;;  %v9515_v44 = vsel %vm3116_vm8, %v11552_v7, %v6783_v53  ;;  %v9519_v9 = vsel %vm3116_vm8, %v11554_v16, %v6784_v37  ;;  %v700_v55 = vld [vmem:[#allocation2 + $0x111] sm:$0xff]  ;;  %v731_v16 = vld [vmem:[#allocation2 + $0x2b9] sm:$0xff] }
 0x1dd   :  { %11553 = vst [vmem:[#allocation47_spill] sm:$0xff] %v9515_v44  ;;  %11555 = vst [vmem:[#allocation48_spill] sm:$0xff] %v9519_v9  ;;  %7076 = vrot.lane.b32.xlu1 %v7075_v18, %s7332_s11  ;;  %v6438_v63 = vunpack.i.l.bf16 %v11556_v21  ;;  %v11557_v24 = vld [vmem:[#allocation37_spill] sm:$0xff]  ;;  %v6792_v37 = vpop.permute.xlu0 %6791  ;;  %v732_v18 = vld [vmem:[#allocation2 + $0x2c1] sm:$0xff]  ;;  %v6439_v26 = vunpack.i.h.bf16 %v11556_v21 }
 0x1de   :  { %v9529_v57 = vsel %vm3116_vm8, %v11557_v24, %v6788_v25  ;;  %v11559_v7 = vld [vmem:[#allocation41_spill] sm:$0xff]  ;;  %v6794_v51 = vunpack.i.h.bf16 %v6792_v37  ;;  %v6793_v28 = vunpack.i.l.bf16 %v6792_v37  ;;  %v9542_v25 = vsel %vm2986_vm4, %v9374_v56, %v6434_v0  ;;  %v762_v0 = vld [vmem:[#allocation2 + $0xfa] sm:$0xff] }
 0x1df   :  { %11558 = vst [vmem:[#allocation54_spill] sm:$0xff] %v9529_v57  ;;  %v9533_v53 = vsel %vm3116_vm8, %v11559_v7, %v6789_v14  ;;  %v6797_v5 = vpop.permute.xlu1 %6796  ;;  %7081 = vrot.lane.b32.xlu0 %v7080_v48, %s7334_s1  ;;  %v7090_v14 = vpack.i.bf16 %v700_v55, %v699_v8  ;;  %v11561_v7 = vld [vmem:[#allocation19_spill] sm:$0xff]  ;;  %v11564_v35 = vld [vmem:[#allocation61_spill] sm:$0xff]  ;;  %v7095_v37 = vpack.i.bf16 %v732_v18, %v731_v16  ;;  %v11566_v8 = vld [vmem:[#allocation36_spill] sm:$0xff] }
 0x1e0   :  { %11560 = vst [vmem:[#allocation55_spill] sm:$0xff] %v9533_v53  ;;  %v6799_v24 = vunpack.i.h.bf16 %v6797_v5  ;;  %v6798_v19 = vunpack.i.l.bf16 %v6797_v5  ;;  %v6443_v61 = vunpack.i.l.bf16 %v11561_v7  ;;  %v9548_v41 = vsel %vm3116_vm8, %v11562_v59, %v6793_v28  ;;  %v761_v56 = vld [vmem:[#allocation2 + $0xf2] sm:$0xff]  ;;  %v795_v53 = vld [vmem:[#allocation2 + $0x2ba] sm:$0xff]  ;;  %v9655_v44 = vld [vmem:[#allocation2 + $0x129] sm:$0xff] }
 0x1e1   :  { %11563 = vst [vmem:[#allocation56_spill] sm:$0xff] %v9548_v41  ;;  %v9552_v21 = vsel %vm3116_vm8, %v11564_v35, %v6794_v51  ;;  %7086 = vrot.lane.b32.xlu1 %v7085_v33, %s7334_s1  ;;  %v9557_v5 = vsel %vm2986_vm4, %v9385_v43, %v6438_v63  ;;  %v6444_v48 = vunpack.i.h.bf16 %v11561_v7  ;;  %v11568_v59 = vld [vmem:[#allocation62_spill] sm:$0xff]  ;;  %v6802_v51 = vpop.permute.xlu0 %6801  ;;  %v793_v35 = vld [vmem:[#allocation2 + $0x2a2] sm:$0xff]  ;;  %v794_v33 = vld [vmem:[#allocation2 + $0x2aa] sm:$0xff]  ;;  %v9570_v16 = vsel %vm2986_vm4, %v9378_v62, %v6439_v26 }
 0x1e2   :  { %11565 = vst [vmem:[#allocation57_spill] sm:$0xff] %v9552_v21  ;;  %v9562_v55 = vsel %vm3116_vm8, %v11566_v8, %v6798_v19  ;;  %v9566_v28 = vsel %vm3116_vm8, %v11568_v59, %v6799_v24  ;;  %v11570_v18 = vld [vmem:[#allocation18_spill] sm:$0xff]  ;;  %v6804_v63 = vunpack.i.h.bf16 %v6802_v51  ;;  %v6803_v21 = vunpack.i.l.bf16 %v6802_v51  ;;  %v763_v41 = vld [vmem:[#allocation2 + $0x10a] sm:$0xff] }
 0x1e3   :  { %11567 = vst [vmem:[#allocation58_spill] sm:$0xff] %v9562_v55  ;;  %11569 = vst [vmem:[#allocation59_spill] sm:$0xff] %v9566_v28  ;;  %v6449_v43 = vunpack.i.h.bf16 %v11570_v18  ;;  %v6807_v7 = vpop.permute.xlu1 %6806  ;;  %v6448_v19 = vunpack.i.l.bf16 %v11570_v18  ;;  %7091 = vrot.lane.b32.xlu0 %v7090_v14, %s7334_s1  ;;  %v7100_v24 = vpack.i.bf16 %v762_v0, %v761_v56  ;;  %v9577_v59 = vsel %vm2986_vm4, %v9394_v42, %v6443_v61  ;;  %v11571_v62 = vld [vmem:[#allocation44_spill] sm:$0xff]  ;;  %v11573_v28 = vld [vmem:[#allocation43_spill] sm:$0xff] }
 0x1e4   :  { %v6809_v8 = vunpack.i.h.bf16 %v6807_v7  ;;  %v6808_v55 = vunpack.i.l.bf16 %v6807_v7  ;;  %v9581_v26 = vsel %vm3116_vm8, %v11571_v62, %v6803_v21  ;;  %v9585_v51 = vsel %vm3116_vm8, %v11573_v28, %v6804_v63  ;;  %v796_v7 = vld [vmem:[#allocation2 + $0x2c2] sm:$0xff]  ;;  %v11578_v42 = vld [vmem:[#allocation65_spill] sm:$0xff] }
 0x1e5   :  { %11572 = vst [vmem:[#allocation73_spill] sm:$0xff] %v9581_v26  ;;  %11574 = vst [vmem:[#allocation74_spill] sm:$0xff] %v9585_v51  ;;  %7096 = vrot.lane.b32.xlu1 %v7095_v37, %s7334_s1  ;;  %v7105_v18 = vpack.i.bf16 %v794_v33, %v793_v35  ;;  %v9590_v14 = vsel %vm2986_vm4, %v9401_v22, %v6444_v48  ;;  %v11576_v56 = vld [vmem:[#allocation64_spill] sm:$0xff]  ;;  %v6812_v0 = vpop.permute.xlu0 %6811  ;;  %v7110_v28 = vpack.i.bf16 %v764_v45, %v763_v41  ;;  %v11580_v63 = vld [vmem:[#allocation21_spill] sm:$0xff] }
 0x1e6   :  { %11575 = vst [vmem:[#allocation79_spill] sm:$0xff] %v9590_v14  ;;  %v9594_v61 = vsel %vm3116_vm8, %v11576_v56, %v6808_v55  ;;  %v9598_v21 = vsel %vm3116_vm8, %v11578_v42, %v6809_v8  ;;  %v6504_v62 = vunpack.i.h.bf16 %v11580_v63  ;;  %v6503_v37 = vunpack.i.l.bf16 %v11580_v63  ;;  %v11581_v26 = vld [vmem:[#allocation24_spill] sm:$0xff]  ;;  %v9604_v56 = vld [vmem:[#allocation2 + $0x120] sm:$0xff]  ;;  %v11582_v42 = vld [vmem:[#allocation26_spill] sm:$0xff] }
 0x1e7   :  { %11577 = vst [vmem:[#allocation81_spill] sm:$0xff] %v9594_v61  ;;  %11579 = vst [vmem:[#allocation22_spill] sm:$0xff] %v9598_v21  ;;  %v6814_v35 = vunpack.i.h.bf16 %v6812_v0  ;;  %v6813_v33 = vunpack.i.l.bf16 %v6812_v0  ;;  %v6817_v51 = vpop.permute.xlu1 %6816  ;;  %v6509_v22 = vunpack.i.h.bf16 %v11581_v26  ;;  %7101 = vrot.lane.b32.xlu0 %v7100_v24, %s7335_s16  ;;  %v7115_v55 = vpack.i.bf16 %v796_v7, %v795_v53  ;;  %v11583_v41 = vld [vmem:[#allocation66_spill] sm:$0xff]  ;;  %v11585_v63 = vld [vmem:[#allocation67_spill] sm:$0xff] }
 0x1e8   :  { %v6819_v48 = vunpack.i.h.bf16 %v6817_v51  ;;  %v6818_v57 = vunpack.i.l.bf16 %v6817_v51  ;;  %v6508_v8 = vunpack.i.l.bf16 %v11581_v26  ;;  %v6514_v45 = vunpack.i.h.bf16 %v11582_v42  ;;  %v638_v51 = vld [vmem:[#allocation2 + $0x128] sm:$0xff]  ;;  %v9617_v61 = vld [vmem:[#allocation2 + $0x2d0] sm:$0xff]  ;;  %v9619_v53 = vld [vmem:[#allocation2 + $0x2d8] sm:$0xff] }
 0x1e9   :  { %v9610_v21 = vsel %vm3116_vm8, %v11583_v41, %v6813_v33  ;;  %v9614_v0 = vsel %vm3116_vm8, %v11585_v63, %v6814_v35  ;;  %7106 = vrot.lane.b32.xlu1 %v7105_v18, %s7335_s16  ;;  %v6513_v24 = vunpack.i.l.bf16 %v11582_v42  ;;  %v11587_v26 = vld [vmem:[#allocation25_spill] sm:$0xff]  ;;  %v9631_v35 = vpop.permute.xlu0 %6821  ;;  %v9633_v18 = vld [vmem:[#allocation2 + $0x138] sm:$0xff]  ;;  %v9635_v63 = vld [vmem:[#allocation2 + $0x140] sm:$0xff]  ;;  %v9641_v42 = vsel %vm2986_vm4, %v9419_v6, %v6448_v19 }
 0x1ea   :  { %11584 = vst [vmem:[#allocation82_spill] sm:$0xff] %v9610_v21  ;;  %11586 = vst [vmem:[#allocation85_spill] sm:$0xff] %v9614_v0  ;;  %v6518_v7 = vunpack.i.l.bf16 %v11587_v26  ;;  %v9625_v9 = vsel %vm3116_vm8, %v11588_v3, %v6818_v57  ;;  %v11590_v33 = vld [vmem:[#allocation69_spill] sm:$0xff]  ;;  %v9637_v0 = vld [vmem:[#allocation2 + $0x2e8] sm:$0xff]  ;;  %v9645_v3 = vsel %vm2986_vm4, %v9410_v32, %v6449_v43  ;;  %v6519_v57 = vunpack.i.h.bf16 %v11587_v26 }
 0x1eb   :  { %11589 = vst [vmem:[#allocation53_spill] sm:$0xff] %v9625_v9  ;;  %v9629_v41 = vsel %vm3116_vm8, %v11590_v33, %v6819_v48  ;;  %11592 = vst [vmem:[#allocation84_spill] sm:$0xff] %v9641_v42  ;;  %v11594_v48 = vld [vmem:[#allocation27_spill] sm:$0xff]  ;;  %v9651_v9 = vld [vmem:[#allocation2 + $0x2f0] sm:$0xff]  ;;  %7111 = vrot.lane.b32.xlu0 %v7110_v28, %s7335_s16  ;;  %v7120_v32 = vpack.i.bf16 %v638_v51, %v9604_v56  ;;  %v9672_v13 = vsel %vm3051_vm5, %v9423_v60, %v6503_v37  ;;  %vm5723_vm4 = vcmask 1046534  }
 0x1ec   :  { %11591 = vst [vmem:[#allocation15_spill] sm:$0xff] %v9629_v41  ;;  %11593 = vst [vmem:[#allocation83_spill] sm:$0xff] %v9645_v3  ;;  %v6523_v33 = vunpack.i.l.bf16 %v11594_v48  ;;  %v9649_v41 = vpop.permute.xlu1 %6826  ;;  %v9653_v21 = vld [vmem:[#allocation2 + $0x121] sm:$0xff]  ;;  %v6524_v15 = vunpack.i.h.bf16 %v11594_v48  ;;  %v11595_v6 = vld [vmem:[#allocation30_spill] sm:$0xff]  ;;  %v9676_v48 = vsel %vm3051_vm5, %v9427_v12, %v6504_v62  ;;  %v9680_v28 = vsel %vm3051_vm5, %v9434_v23, %v6508_v8 }
 0x1ed   :  { %v6529_v19 = vunpack.i.h.bf16 %v11595_v6  ;;  %v6528_v27 = vunpack.i.l.bf16 %v11595_v6  ;;  %v9662_v43 = vld [vmem:[#allocation2 + $0x2d1] sm:$0xff]  ;;  %v9664_v26 = vld [vmem:[#allocation2 + $0x2d9] sm:$0xff]  ;;  %7116 = vrot.lane.b32.xlu1 %v7115_v55, %s7335_s16  ;;  %v7125_v56 = vpack.i.bf16 %v9619_v53, %v9617_v61  ;;  %v9685_v51 = vld [vmem:[#allocation2 + $0x2e9] sm:$0xff]  ;;  %v9695_v12 = vsel %vm3051_vm5, %v9438_v39, %v6509_v22  ;;  %v9709_v37 = vpop.permute.xlu0 %6831 }
 0x1ee   :  { %v9687_v6 = vld [vmem:[#allocation2 + $0x2f1] sm:$0xff]  ;;  %v9699_v23 = vsel %vm3051_vm5, %v9444_v4, %v6513_v24  ;;  %v9703_v62 = vsel %vm3051_vm5, %v9448_v58, %v6514_v45  ;;  %v9707_v61 = vsel %vm3051_vm5, %v9452_v2, %v6518_v7  ;;  %11598 = vst [vmem:[#allocation38_spill] sm:$0xff] %v9709_v37  ;;  %v9713_v8 = vld [vmem:[#allocation2 + $0x2da] sm:$0xff]  ;;  %v9717_v22 = vld [vmem:[#allocation2 + $0x142] sm:$0xff]  ;;  %v9723_v58 = vsel %vm3051_vm5, %v9458_v36, %v6519_v57 }
 0x1ef   :  { %v9691_v60 = vld [vmem:[#allocation2 + $0x12a] sm:$0xff]  ;;  %11596 = vst [vmem:[#allocation16_spill] sm:$0xff] %v9703_v62  ;;  %11597 = vst [vmem:[#allocation33_spill] sm:$0xff] %v9707_v61  ;;  %v9711_v55 = vld [vmem:[#allocation2 + $0x2d2] sm:$0xff]  ;;  %v9727_v2 = vsel %vm3051_vm5, %v9462_v52, %v6523_v33  ;;  %v7130_v53 = vpack.i.bf16 %v9635_v63, %v9633_v18  ;;  %v7135_v24 = vpack.i.bf16 %v9651_v9, %v9637_v0  ;;  %7121 = vrot.lane.b32.xlu0 %v7120_v32, %s7332_s11 }
 0x1f0   :  { %v9715_v39 = vld [vmem:[#allocation2 + $0x13a] sm:$0xff]  ;;  %v9719_v4 = vld [vmem:[#allocation2 + $0x2ea] sm:$0xff]  ;;  %11599 = vst [vmem:[#allocation17_spill] sm:$0xff] %v9723_v58  ;;  %11600 = vst [vmem:[#allocation37_spill] sm:$0xff] %v9727_v2  ;;  %v9729_v45 = vpop.permute.xlu1 %6836  ;;  %v9743_v36 = vsel %vm3051_vm5, %v9466_v29, %v6524_v15  ;;  %v9747_v52 = vsel %vm3051_vm5, %v9471_v46, %v6528_v27  ;;  %v9751_v18 = vsel %vm3051_vm5, %v9476_v54, %v6529_v19 }
 0x1f1   :  { %11601 = vst [vmem:[#allocation41_spill] sm:$0xff] %v9729_v45  ;;  %v9735_v7 = vld [vmem:[#allocation2 + $0x2f2] sm:$0xff]  ;;  %11602 = vst [vmem:[#allocation19_spill] sm:$0xff] %v9743_v36  ;;  %v7140_v9 = vpack.i.bf16 %v9655_v44, %v9653_v21  ;;  %v9756_v0 = vld [vmem:[#allocation2 + $0x300] sm:$0xff]  ;;  %7126 = vrot.lane.b32.xlu1 %v7125_v56, %s7332_s11  ;;  %v7145_v54 = vpack.i.bf16 %v9664_v26, %v9662_v43 }
 0x1f2   :  { %v9739_v3 = vld [vmem:[#allocation2 + $0x158] sm:$0xff]  ;;  %11603 = vst [vmem:[#allocation40_spill] sm:$0xff] %v9747_v52  ;;  %11604 = vst [vmem:[#allocation61_spill] sm:$0xff] %v9751_v18  ;;  %v9758_v63 = vld [vmem:[#allocation2 + $0x308] sm:$0xff]  ;;  %v9777_v52 = vpop.permute.xlu0 %6841 }
 0x1f3   :  { %v9760_v57 = vld [vmem:[#allocation2 + $0x168] sm:$0xff]  ;;  %v11605_v15 = vld [vmem:[#allocation29_spill] sm:$0xff]  ;;  %v9771_v44 = vld [vmem:[#allocation2 + $0x318] sm:$0xff]  ;;  %11607 = vst [vmem:[#allocation36_spill] sm:$0xff] %v9777_v52  ;;  %7131 = vrot.lane.b32.xlu0 %v7130_v53, %s7332_s11 }
 0x1f4   :  { %v6584_v29 = vunpack.i.h.bf16 %v11605_v15  ;;  %v6583_v46 = vunpack.i.l.bf16 %v11605_v15  ;;  %v9769_v33 = vld [vmem:[#allocation2 + $0x170] sm:$0xff]  ;;  %v9773_v21 = vld [vmem:[#allocation2 + $0x320] sm:$0xff]  ;;  %v11606_v19 = vld [vmem:[#allocation28_spill] sm:$0xff]  ;;  %v9783_v26 = vpop.permute.xlu1 %6846 }
 0x1f5   :  { %v6589_v32 = vunpack.i.h.bf16 %v11606_v19  ;;  %v6588_v18 = vunpack.i.l.bf16 %v11606_v19  ;;  %v9793_v36 = vld [vmem:[#allocation2 + $0x151] sm:$0xff]  ;;  %v11608_v56 = vld [vmem:[#allocation32_spill] sm:$0xff]  ;;  %v9803_v42 = vld [vmem:[#allocation2 + $0x159] sm:$0xff]  ;;  %7136 = vrot.lane.b32.xlu1 %v7135_v24, %s7332_s11 }
 0x1f6   :  { %v6593_v2 = vunpack.i.l.bf16 %v11608_v56  ;;  %v9805_v19 = vld [vmem:[#allocation2 + $0x301] sm:$0xff]  ;;  %v9807_v52 = vld [vmem:[#allocation2 + $0x309] sm:$0xff]  ;;  %v3084_v14 = vsel %vm3051_vm5, %v9491_v34, %v6583_v46  ;;  %v3085_v53 = vsel %vm3051_vm5, %v9504_v31, %v6584_v29  ;;  %v6594_v43 = vunpack.i.h.bf16 %v11608_v56  ;;  %v11611_v61 = vld [vmem:[#allocation70_spill] sm:$0xff]  ;;  %v9822_v34 = vpop.permute.xlu0 %6851 }
 0x1f7   :  { %11609 = vst [vmem:[#allocation62_spill] sm:$0xff] %v9805_v19  ;;  %v11610_v58 = vld [vmem:[#allocation31_spill] sm:$0xff]  ;;  %v3086_v27 = vsel %vm3051_vm5, %v9511_v38, %v6588_v18  ;;  %v3087_v15 = vsel %vm3051_vm5, %v9524_v47, %v6589_v32  ;;  %v6664_v37 = vunpack.i.h.bf16 %v11611_v61  ;;  %v6663_v62 = vunpack.i.l.bf16 %v11611_v61  ;;  %7141 = vrot.lane.b32.xlu0 %v7140_v9, %s7334_s1 }
 0x1f8   :  { %v6598_v45 = vunpack.i.l.bf16 %v11610_v58  ;;  %v11612_v29 = vld [vmem:[#allocation71_spill] sm:$0xff]  ;;  %v6857_v56 = vpop.permute.xlu1 %6856  ;;  %v9832_v47 = vsel %vm3051_vm5, %v9537_v11, %v6593_v2  ;;  %v6744_v18 = vunpack.i.h.bf16 %v9327_v20  ;;  %v6743_v32 = vunpack.i.l.bf16 %v9327_v20 }
 0x1f9   :  { %v6668_v46 = vunpack.i.l.bf16 %v11612_v29  ;;  %v6669_v61 = vunpack.i.h.bf16 %v11612_v29  ;;  %v9840_v31 = vsel %vm3051_vm5, %v9542_v25, %v6594_v43  ;;  %v6749_v38 = vunpack.i.h.bf16 %v9342_v1  ;;  %7146 = vrot.lane.b32.xlu1 %v7145_v54, %s7334_s1 }
 0x1fa   :  { %v9844_v24 = vsel %vm3051_vm5, %v9557_v5, %v6598_v45  ;;  %v6748_v11 = vunpack.i.l.bf16 %v9342_v1  ;;  %v3117_v2 = vsel %vm3116_vm8, %v9672_v13, %v6663_v62  ;;  %v3118_v20 = vsel %vm3116_vm8, %v9676_v48, %v6664_v37  ;;  %v6862_v43 = vpop.permute.xlu0 %6861 }
 0x1fb   :  { %v6824_v9 = vunpack.i.h.bf16 %v9631_v35  ;;  %v6823_v25 = vunpack.i.l.bf16 %v9631_v35  ;;  %v3119_v5 = vsel %vm3116_vm8, %v9680_v28, %v6668_v46  ;;  %v6829_v45 = vunpack.i.h.bf16 %v9649_v41 }
 0x1fc   :  { %v6828_v1 = vunpack.i.l.bf16 %v9649_v41  ;;  %v6848_v54 = vunpack.i.l.bf16 %v9783_v26  ;;  %v6867_v29 = vpop.permute.xlu1 %6866  ;;  %v3120_v13 = vsel %vm3116_vm8, %v9695_v12, %v6669_v61  ;;  %v3149_v48 = vsel %vm3116_vm8, %v3084_v14, %v6743_v32 }
 0x1fd   :  { %v3150_v62 = vsel %vm3116_vm8, %v3085_v53, %v6744_v18  ;;  %v6849_v35 = vunpack.i.h.bf16 %v9783_v26  ;;  %v11613_v28 = vpack.i.bf16 %v9668_v30, %v9666_v49  ;;  %v3151_v37 = vsel %vm3116_vm8, %v3086_v27, %v6748_v11 }
 0x1fe   :  { %v3152_v41 = vsel %vm3116_vm8, %v3087_v15, %v6749_v38  ;;  %v6859_v46 = vunpack.i.h.bf16 %v6857_v56  ;;  %v6858_v19 = vunpack.i.l.bf16 %v6857_v56  ;;  %v11614_v12 = vpack.i.bf16 %v9687_v6, %v9685_v51  ;;  %v6872_v18 = vpop.permute.xlu0 %6871 }
 0x1ff   :  { %7151 = vrot.lane.b32.xlu0 %v11613_v28, %s7334_s1  ;;  %v3182_v14 = vsel %vm3181_vm9, %v3117_v2, %v6823_v25  ;;  %v3183_v26 = vsel %vm3181_vm9, %v3118_v20, %v6824_v9  ;;  %v6864_v53 = vunpack.i.h.bf16 %v6862_v43  ;;  %v6863_v61 = vunpack.i.l.bf16 %v6862_v43  ;;  %v11618_v28 = vld [vmem:[#allocation35_spill] sm:$0xff] }
 0x200   :  { %7156 = vrot.lane.b32.xlu1 %v11614_v12, %s7334_s1  ;;  %v3184_v30 = vsel %vm3181_vm9, %v3119_v5, %v6828_v1  ;;  %v3185_v49 = vsel %vm3181_vm9, %v3120_v13, %v6829_v45  ;;  %v3214_v27 = vsel %vm3181_vm9, %v3149_v48, %v6848_v54  ;;  %v6868_v15 = vunpack.i.l.bf16 %v6867_v29  ;;  %v6877_v56 = vpop.permute.xlu1 %6876 }
 0x201   :  { %v3215_v38 = vsel %vm3181_vm9, %v3150_v62, %v6849_v35  ;;  %v6854_v51 = vunpack.i.h.bf16 %v9822_v34  ;;  %v6879_v6 = vunpack.i.h.bf16 %v6877_v56  ;;  %v6878_v32 = vunpack.i.l.bf16 %v6877_v56 }
 0x202   :  { %v11615_v11 = vpack.i.bf16 %v9691_v60, %v9689_v50  ;;  %v6853_v2 = vunpack.i.l.bf16 %v9822_v34  ;;  %v6869_v20 = vunpack.i.h.bf16 %v6867_v29  ;;  %v11616_v9 = vpack.i.bf16 %v9713_v8, %v9711_v55  ;;  %v6882_v5 = vpop.permute.xlu0 %6881 }
 0x203   :  { %v3247_v25 = vsel %vm3246_vm10, %v3182_v14, %v6858_v19  ;;  %v3248_v43 = vsel %vm3246_vm10, %v3183_v26, %v6859_v46  ;;  %v3279_v50 = vsel %vm3246_vm10, %v3214_v27, %v6863_v61  ;;  %v3280_v60 = vsel %vm3246_vm10, %v3215_v38, %v6864_v53  ;;  %v9916_v27 = vld [vmem:[#allocation2 + $0x171] sm:$0xff] }
 0x204   :  { %7161 = vrot.lane.b32.xlu0 %v11615_v11, %s7335_s16  ;;  %7166 = vrot.lane.b32.xlu1 %v11616_v9, %s7335_s16  ;;  %v3312_v45 = vsel %vm3311_vm11, %v3247_v25, %v6878_v32  ;;  %v3313_v1 = vsel %vm3311_vm11, %v3248_v43, %v6879_v6  ;;  %v3249_v34 = vsel %vm3246_vm10, %v3184_v30, %v6868_v15  ;;  %v6884_v54 = vunpack.i.h.bf16 %v6882_v5  ;;  %v6887_v13 = vpop.permute.xlu1 %6886  ;;  %v9921_v6 = vld [vmem:[#allocation2 + $0x319] sm:$0xff] }
 0x205   :  { %v6883_v29 = vunpack.i.l.bf16 %v6882_v5  ;;  %v3376_v55 = vpack.c.bf16 %v3313_v1, %v3312_v45  ;;  %v6874_v8 = vunpack.i.h.bf16 %v6872_v18  ;;  %v6873_v48 = vunpack.i.l.bf16 %v6872_v18  ;;  %v9938_v9 = vld [vmem:[#allocation2 + $0x15a] sm:$0xff]  ;;  %v9952_v5 = vld [vmem:[#allocation2 + $0x30a] sm:$0xff] }
 0x206   :  { %v6889_v19 = vunpack.i.h.bf16 %v6887_v13  ;;  %v6888_v62 = vunpack.i.l.bf16 %v6887_v13  ;;  %v11617_v35 = vpack.i.bf16 %v9717_v22, %v9715_v39  ;;  %v6603_v46 = vunpack.i.l.bf16 %v11618_v28  ;;  %v6892_v18 = vpop.permute.xlu0 %6891  ;;  %v9954_v45 = vld [vmem:[#allocation2 + $0x16a] sm:$0xff]  ;;  %v9966_v13 = vld [vmem:[#allocation2 + $0x322] sm:$0xff] }
 0x207   :  { %v3250_v12 = vsel %vm3246_vm10, %v3185_v49, %v6869_v20  ;;  %v11619_v14 = vpack.i.bf16 %v9735_v7, %v9719_v4  ;;  %5941 = vmatprep.mubr.msk.bf16.mxu0 %vm3430_vm12, %v3376_v55  ;;  %v3344_v26 = vsel %vm3311_vm11, %v3279_v50, %v6883_v29  ;;  %v3345_v53 = vsel %vm3311_vm11, %v3280_v60, %v6884_v54  ;;  %v9914_v49 = vld [vmem:[#allocation2 + $0x169] sm:$0xff]  ;;  %v9964_v29 = vld [vmem:[#allocation2 + $0x31a] sm:$0xff] }
 0x208   :  { %7171 = vrot.lane.b32.xlu0 %v11617_v35, %s7335_s16  ;;  %v3217_v61 = vsel %vm3181_vm9, %v3152_v41, %v6854_v51  ;;  %v3314_v39 = vsel %vm3311_vm11, %v3249_v34, %v6888_v62  ;;  %v3315_v22 = vsel %vm3311_vm11, %v3250_v12, %v6889_v19  ;;  %v3392_v30 = vpack.c.bf16 %v3345_v53, %v3344_v26  ;;  %v9919_v38 = vpop.permute.xlu1 %6896  ;;  %v9923_v41 = vld [vmem:[#allocation2 + $0x321] sm:$0xff]  ;;  %v11623_v1 = vld [vmem:[#allocation49_spill] sm:$0xff]  ;;  %v11625_v19 = vld [vmem:[#allocation50_spill] sm:$0xff] }
 0x209   :  { %7176 = vrot.lane.b32.xlu1 %v11619_v14, %s7335_s16  ;;  %v3216_v4 = vsel %vm3181_vm9, %v3151_v37, %v6853_v2  ;;  %v3377_v7 = vpack.c.bf16 %v3315_v22, %v3314_v39  ;;  %v6894_v15 = vunpack.i.h.bf16 %v6892_v18  ;;  %v6893_v56 = vunpack.i.l.bf16 %v6892_v18  ;;  %v9936_v2 = vld [vmem:[#allocation2 + $0x152] sm:$0xff]  ;;  %v11628_v18 = vld [vmem:[#allocation16_spill] sm:$0xff] }
 0x20a   :  { %v11620_v51 = vunpack.i.h.bf16 %v11610_v58  ;;  %v3281_v11 = vsel %vm3246_vm10, %v3216_v4, %v6873_v48  ;;  %v3282_v20 = vsel %vm3246_vm10, %v3217_v61, %v6874_v8  ;;  %v11621_v37 = vpack.i.bf16 %v9739_v3, %v9737_v40  ;;  %5973 = vmatprep.mubr.msk.bf16.mxu1 %vm3430_vm12, %v3392_v30  ;;  %v9950_v3 = vld [vmem:[#allocation2 + $0x302] sm:$0xff]  ;;  %v9958_v54 = vpop.permute.xlu0 %6901  ;;  %v11624_v8 = vld [vmem:[#allocation34_spill] sm:$0xff] }
 0x20b   :  { %v6604_v58 = vunpack.i.h.bf16 %v11618_v28  ;;  %v3346_v25 = vsel %vm3311_vm11, %v3281_v11, %v6893_v56  ;;  %v11622_v43 = vpack.i.bf16 %v9758_v63, %v9756_v0  ;;  %5942 = vmatmul.mubr.msk.bf16.vlgmr.msra.gmra.mrb[0].mxu0 %vm3430_vm12, %v3377_v7  ;;  %v7210_v40 = vpack.i.bf16 %v9916_v27, %v9914_v49  ;;  %v9962_v63 = vld [vmem:[#allocation2 + $0x172] sm:$0xff]  ;;  %v11639_v28 = vld [vmem:[#allocation83_spill] sm:$0xff] }
 0x20c   :  { %v3091_v32 = vsel %vm3051_vm5, %v9570_v16, %v11620_v51  ;;  %7181 = vrot.lane.b32.xlu0 %v11621_v37, %s7332_s11  ;;  %v3347_v16 = vsel %vm3311_vm11, %v3282_v20, %v6894_v15  ;;  %v6674_v50 = vunpack.i.h.bf16 %v11623_v1  ;;  %v6673_v60 = vunpack.i.l.bf16 %v11623_v1  ;;  %v6907_v35 = vpop.permute.xlu1 %6906  ;;  %v11629_v49 = vld [vmem:[#allocation38_spill] sm:$0xff]  ;;  %v11630_v7 = vld [vmem:[#allocation33_spill] sm:$0xff] }
 0x20d   :  { %7186 = vrot.lane.b32.xlu1 %v11622_v43, %s7332_s11  ;;  %v3393_v34 = vpack.c.bf16 %v3347_v16, %v3346_v25  ;;  %v7215_v0 = vpack.i.bf16 %v9923_v41, %v9921_v6  ;;  %v9970_v55 = vsel %vm3051_vm5, %v9577_v59, %v6603_v46  ;;  %v6609_v48 = vunpack.i.h.bf16 %v11624_v8  ;;  %v11632_v51 = vld [vmem:[#allocation17_spill] sm:$0xff] }
 0x20e   :  { %v6678_v62 = vunpack.i.l.bf16 %v11625_v19  ;;  %v7220_v12 = vpack.i.bf16 %v9938_v9, %v9936_v2  ;;  %v6679_v14 = vunpack.i.h.bf16 %v11625_v19  ;;  %v6754_v26 = vunpack.i.h.bf16 %v9381_v17  ;;  %v6912_v4 = vpop.permute.xlu0 %6911  ;;  %v678_v2 = vld [vmem:[#allocation2 + $0x338] sm:$0xff] }
 0x20f   :  { %v6753_v53 = vunpack.i.l.bf16 %v9381_v17  ;;  %v11626_v61 = vpack.i.bf16 %v9769_v33, %v9760_v57  ;;  %5974 = vmatmul.mubr.msk.bf16.vlgmr.msra.gmra.mrb[0].mxu1 %vm3430_vm12, %v3393_v34  ;;  %v7225_v59 = vpack.i.bf16 %v9952_v5, %v9950_v3  ;;  %v6759_v46 = vunpack.i.h.bf16 %v9390_v10  ;;  %v10064_v3 = vld [vmem:[#allocation2 + $0x350] sm:$0xff] }
 0x210   :  { %v6758_v39 = vunpack.i.l.bf16 %v9390_v10  ;;  %v11627_v22 = vpack.i.bf16 %v9773_v21, %v9771_v44  ;;  %v7230_v17 = vpack.i.bf16 %v9962_v63, %v9954_v45  ;;  %v7235_v57 = vpack.i.bf16 %v9966_v13, %v9964_v29  ;;  %v11631_v21 = vld [vmem:[#allocation41_spill] sm:$0xff]  ;;  %v6917_v41 = vpop.permute.xlu1 %6916 }
 0x211   :  { %7191 = vrot.lane.b32.xlu0 %v11626_v61, %s7332_s11  ;;  %v3121_v33 = vsel %vm3116_vm8, %v9699_v23, %v6673_v60  ;;  %v3122_v30 = vsel %vm3116_vm8, %v11628_v18, %v6674_v50  ;;  %v6834_v27 = vunpack.i.h.bf16 %v11629_v49  ;;  %v6833_v10 = vunpack.i.l.bf16 %v11629_v49  ;;  %v10097_v63 = vld [vmem:[#allocation2 + $0x351] sm:$0xff] }
 0x212   :  { %7196 = vrot.lane.b32.xlu1 %v11627_v22, %s7332_s11  ;;  %v3123_v44 = vsel %vm3116_vm8, %v11630_v7, %v6678_v62  ;;  %v6839_v15 = vunpack.i.h.bf16 %v11631_v21  ;;  %v6838_v56 = vunpack.i.l.bf16 %v11631_v21  ;;  %v6898_v6 = vunpack.i.l.bf16 %v9919_v38 }
 0x213   :  { %v3124_v23 = vsel %vm3116_vm8, %v11632_v51, %v6679_v14  ;;  %v3153_v11 = vsel %vm3116_vm8, %v9832_v47, %v6753_v53  ;;  %v3154_v20 = vsel %vm3116_vm8, %v9840_v31, %v6754_v26  ;;  %v6899_v37 = vunpack.i.h.bf16 %v9919_v38  ;;  %v11634_v47 = vld [vmem:[#allocation62_spill] sm:$0xff] }
 0x214   :  { %v11633_v25 = vpack.i.bf16 %v9803_v42, %v9793_v36  ;;  %v3155_v16 = vsel %vm3116_vm8, %v9844_v24, %v6758_v39  ;;  %v3156_v43 = vsel %vm3116_vm8, %v3091_v32, %v6759_v46  ;;  %v6909_v1 = vunpack.i.h.bf16 %v6907_v35  ;;  %v6922_v42 = vpop.permute.xlu0 %6921 }
 0x215   :  { %v6908_v50 = vunpack.i.l.bf16 %v6907_v35  ;;  %v11635_v60 = vpack.i.bf16 %v9807_v52, %v11634_v47  ;;  %v3186_v31 = vsel %vm3181_vm9, %v3121_v33, %v6833_v10  ;;  %v3187_v38 = vsel %vm3181_vm9, %v3122_v30, %v6834_v27  ;;  %v6927_v35 = vpop.permute.xlu1 %6926  ;;  %v10060_v47 = vld [vmem:[#allocation2 + $0x1a0] sm:$0xff] }
 0x216   :  { %7201 = vrot.lane.b32.xlu0 %v11633_v25, %s7334_s1  ;;  %v6914_v34 = vunpack.i.h.bf16 %v6912_v4  ;;  %v6913_v19 = vunpack.i.l.bf16 %v6912_v4  ;;  %v3188_v36 = vsel %vm3181_vm9, %v3123_v44, %v6838_v56  ;;  %v3189_v24 = vsel %vm3181_vm9, %v3124_v23, %v6839_v15 }
 0x217   :  { %7206 = vrot.lane.b32.xlu1 %v11635_v60, %s7334_s1  ;;  %v3218_v32 = vsel %vm3181_vm9, %v3153_v11, %v6898_v6  ;;  %v6918_v62 = vunpack.i.l.bf16 %v6917_v41  ;;  %v3219_v14 = vsel %vm3181_vm9, %v3154_v20, %v6899_v37  ;;  %v6904_v52 = vunpack.i.h.bf16 %v9958_v54  ;;  %v646_v11 = vld [vmem:[#allocation2 + $0x188] sm:$0xff]  ;;  %v677_v20 = vld [vmem:[#allocation2 + $0x330] sm:$0xff] }
 0x218   :  { %v6929_v26 = vunpack.i.h.bf16 %v6927_v35  ;;  %v6928_v53 = vunpack.i.l.bf16 %v6927_v35  ;;  %v6903_v61 = vunpack.i.l.bf16 %v9958_v54  ;;  %v3251_v46 = vsel %vm3246_vm10, %v3186_v31, %v6908_v50  ;;  %v6932_v27 = vpop.permute.xlu0 %6931  ;;  %v10058_v50 = vld [vmem:[#allocation2 + $0x198] sm:$0xff]  ;;  %v10062_v60 = vld [vmem:[#allocation2 + $0x348] sm:$0xff] }
 0x219   :  { %v3252_v39 = vsel %vm3246_vm10, %v3187_v38, %v6909_v1  ;;  %v6919_v22 = vunpack.i.h.bf16 %v6917_v41  ;;  %v3283_v33 = vsel %vm3246_vm10, %v3218_v32, %v6913_v19  ;;  %v3284_v18 = vsel %vm3246_vm10, %v3219_v14, %v6914_v34  ;;  %v6937_v7 = vpop.permute.xlu1 %6936  ;;  %v10069_v34 = vld [vmem:[#allocation2 + $0x181] sm:$0xff]  ;;  %v10071_v19 = vld [vmem:[#allocation2 + $0x189] sm:$0xff] }
 0x21a   :  { %7211 = vrot.lane.b32.xlu0 %v7210_v40, %s7334_s1  ;;  %v3316_v30 = vsel %vm3311_vm11, %v3251_v46, %v6928_v53  ;;  %v3317_v49 = vsel %vm3311_vm11, %v3252_v39, %v6929_v26  ;;  %v3253_v40 = vsel %vm3246_vm10, %v3188_v36, %v6918_v62  ;;  %v6934_v54 = vunpack.i.h.bf16 %v6932_v27  ;;  %v10075_v36 = vld [vmem:[#allocation2 + $0x339] sm:$0xff]  ;;  %v10086_v35 = vld [vmem:[#allocation2 + $0x1a1] sm:$0xff]  ;;  %v10088_v14 = vld [vmem:[#allocation2 + $0x349] sm:$0xff] }
 0x21b   :  { %7216 = vrot.lane.b32.xlu1 %v7215_v0, %s7334_s1  ;;  %v3378_v10 = vpack.c.bf16 %v3317_v49, %v3316_v30  ;;  %v6933_v4 = vunpack.i.l.bf16 %v6932_v27  ;;  %v6924_v44 = vunpack.i.h.bf16 %v6922_v42  ;;  %v6923_v21 = vunpack.i.l.bf16 %v6922_v42  ;;  %v645_v0 = vld [vmem:[#allocation2 + $0x180] sm:$0xff]  ;;  %v10073_v42 = vld [vmem:[#allocation2 + $0x331] sm:$0xff]  ;;  %v11637_v39 = vld [vmem:[#allocation84_spill] sm:$0xff] }
 0x21c   :  { %v6939_v15 = vunpack.i.h.bf16 %v6937_v7  ;;  %v6938_v56 = vunpack.i.l.bf16 %v6937_v7  ;;  %v6608_v6 = vunpack.i.l.bf16 %v11624_v8  ;;  %v3254_v41 = vsel %vm3246_vm10, %v3189_v24, %v6919_v22  ;;  %v6942_v1 = vpop.permute.xlu0 %6941  ;;  %v10084_v62 = vld [vmem:[#allocation2 + $0x199] sm:$0xff]  ;;  %v10101_v53 = vld [vmem:[#allocation2 + $0x18a] sm:$0xff] }
 0x21d   :  { %v3348_v51 = vsel %vm3311_vm11, %v3283_v33, %v6933_v4  ;;  %v3349_v23 = vsel %vm3311_vm11, %v3284_v18, %v6934_v54  ;;  %5945 = vmatprep.mubr.msk.bf16.mxu0 %vm3430_vm12, %v3378_v10  ;;  %v3221_v9 = vsel %vm3181_vm9, %v3156_v43, %v6904_v52  ;;  %v3220_v5 = vsel %vm3181_vm9, %v3155_v16, %v6903_v61  ;;  %v10067_v43 = vpop.permute.xlu1 %6946  ;;  %v11636_v61 = vld [vmem:[#allocation79_spill] sm:$0xff]  ;;  %v11638_v33 = vld [vmem:[#allocation60_spill] sm:$0xff]  ;;  %v10112_v18 = vld [vmem:[#allocation2 + $0x332] sm:$0xff] }
 0x21e   :  { %7221 = vrot.lane.b32.xlu0 %v7220_v12, %s7335_s16  ;;  %v3394_v12 = vpack.c.bf16 %v3349_v23, %v3348_v51  ;;  %v3318_v37 = vsel %vm3311_vm11, %v3253_v40, %v6938_v56  ;;  %v3319_v25 = vsel %vm3311_vm11, %v3254_v41, %v6939_v15  ;;  %v6944_v31 = vunpack.i.h.bf16 %v6942_v1  ;;  %v10114_v30 = vld [vmem:[#allocation2 + $0x33a] sm:$0xff]  ;;  %v10129_v4 = vld [vmem:[#allocation2 + $0x1a2] sm:$0xff]  ;;  %v10131_v7 = vld [vmem:[#allocation2 + $0x34a] sm:$0xff] }
 0x21f   :  { %7226 = vrot.lane.b32.xlu1 %v7225_v59, %s7335_s16  ;;  %v3379_v59 = vpack.c.bf16 %v3319_v25, %v3318_v37  ;;  %v6943_v38 = vunpack.i.l.bf16 %v6942_v1  ;;  %v3285_v24 = vsel %vm3246_vm10, %v3220_v5, %v6923_v21  ;;  %v3286_v32 = vsel %vm3246_vm10, %v3221_v9, %v6924_v44  ;;  %v10116_v49 = vld [vmem:[#allocation2 + $0x19a] sm:$0xff]  ;;  %v10133_v44 = vld [vmem:[#allocation2 + $0x352] sm:$0xff] }
 0x220   :  { %5977 = vmatprep.mubr.msk.bf16.mxu1 %vm3430_vm12, %v3394_v12  ;;  %v7240_v16 = vpack.i.bf16 %v646_v11, %v645_v0  ;;  %v3351_v26 = vsel %vm3311_vm11, %v3286_v32, %v6944_v31  ;;  %v7245_v45 = vpack.i.bf16 %v678_v2, %v677_v20  ;;  %v3093_v46 = vsel %vm3051_vm5, %v11636_v61, %v6604_v58  ;;  %v11640_v15 = vld [vmem:[#allocation51_spill] sm:$0xff]  ;;  %v11641_v51 = vld [vmem:[#allocation37_spill] sm:$0xff] }
 0x221   :  { %v3350_v52 = vsel %vm3311_vm11, %v3285_v24, %v6943_v38  ;;  %5946 = vmatmul.mubr.msk.bf16.gmra.mrb[4].mxu0 %vm3430_vm12, %v3379_v59  ;;  %v3094_v22 = vsel %vm3051_vm5, %v11637_v39, %v6608_v6  ;;  %v6683_v29 = vunpack.i.l.bf16 %v11638_v33  ;;  %v3095_v27 = vsel %vm3051_vm5, %v11639_v28, %v6609_v48  ;;  %v10123_v40 = vpop.permute.xlu1 %6956  ;;  %v11642_v12 = vld [vmem:[#allocation19_spill] sm:$0xff]  ;;  %v11645_v59 = vld [vmem:[#allocation36_spill] sm:$0xff] }
 0x222   :  { %7231 = vrot.lane.b32.xlu0 %v7230_v17, %s7335_s16  ;;  %v10099_v17 = vld [vmem:[#allocation2 + $0x182] sm:$0xff]  ;;  %v3395_v13 = vpack.c.bf16 %v3351_v26, %v3350_v52  ;;  %v6684_v58 = vunpack.i.h.bf16 %v11638_v33  ;;  %v7250_v10 = vpack.i.bf16 %v10060_v47, %v10058_v50  ;;  %v7255_v54 = vpack.i.bf16 %v10064_v3, %v10062_v60 }
 0x223   :  { %7236 = vrot.lane.b32.xlu1 %v7235_v57, %s7335_s16  ;;  %v10110_v57 = vpop.permute.xlu0 %6951  ;;  %v7260_v8 = vpack.i.bf16 %v10071_v19, %v10069_v34  ;;  %v7265_v48 = vpack.i.bf16 %v10075_v36, %v10073_v42  ;;  %v7270_v21 = vpack.i.bf16 %v10086_v35, %v10084_v62  ;;  %v6689_v56 = vunpack.i.h.bf16 %v11640_v15  ;;  %v11643_v25 = vld [vmem:[#allocation39_spill] sm:$0xff]  ;;  %v11644_v47 = vld [vmem:[#allocation20_spill] sm:$0xff]  ;;  %v11647_v36 = vld [vmem:[#allocation61_spill] sm:$0xff] }
 0x224   :  { %5978 = vmatmul.mubr.msk.bf16.gmra.mrb[4].mxu1 %vm3430_vm12, %v3395_v13  ;;  %v6688_v0 = vunpack.i.l.bf16 %v11640_v15  ;;  %v7275_v6 = vpack.i.bf16 %v10097_v63, %v10088_v14  ;;  %v7280_v41 = vpack.i.bf16 %v10101_v53, %v10099_v17  ;;  %v3125_v23 = vsel %vm3116_vm8, %v11641_v51, %v6683_v29  ;;  %v11646_v19 = vld [vmem:[#allocation40_spill] sm:$0xff] }
 0x225   :  { %v7285_v20 = vpack.i.bf16 %v10114_v30, %v10112_v18  ;;  %v7290_v2 = vpack.i.bf16 %v10129_v4, %v10116_v49  ;;  %v7295_v9 = vpack.i.bf16 %v10133_v44, %v10131_v7  ;;  %v3126_v37 = vsel %vm3116_vm8, %v11642_v12, %v6684_v58  ;;  %v6967_v3 = vpop.permute.xlu1 %6966  ;;  %v11648_v7 = vld [vmem:[#allocation78_spill] sm:$0xff] }
 0x226   :  { %7241 = vrot.lane.b32.xlu0 %v7240_v16, %s7332_s11  ;;  %v6764_v1 = vunpack.i.h.bf16 %v11643_v25  ;;  %v6763_v50 = vunpack.i.l.bf16 %v11643_v25  ;;  %v6768_v60 = vunpack.i.l.bf16 %v11644_v47  ;;  %v6769_v5 = vunpack.i.h.bf16 %v11644_v47 }
 0x227   :  { %7246 = vrot.lane.b32.xlu1 %v7245_v45, %s7332_s11  ;;  %v6962_v11 = vpop.permute.xlu0 %6961  ;;  %v6844_v31 = vunpack.i.h.bf16 %v11645_v59  ;;  %v6843_v38 = vunpack.i.l.bf16 %v11645_v59  ;;  %v6948_v34 = vunpack.i.l.bf16 %v10067_v43  ;;  %v3127_v42 = vsel %vm3116_vm8, %v11646_v19, %v6688_v0 }
 0x228   :  { %v3128_v24 = vsel %vm3116_vm8, %v11647_v36, %v6689_v56  ;;  %v6949_v32 = vunpack.i.h.bf16 %v10067_v43  ;;  %v6954_v16 = vunpack.i.h.bf16 %v10110_v57  ;;  %v6953_v62 = vunpack.i.l.bf16 %v10110_v57 }
 0x229   :  { %v6958_v35 = vunpack.i.l.bf16 %v10123_v40  ;;  %v6964_v14 = vunpack.i.h.bf16 %v6962_v11  ;;  %v6963_v52 = vunpack.i.l.bf16 %v6962_v11  ;;  %v3157_v45 = vsel %vm3116_vm8, %v9970_v55, %v6763_v50  ;;  %v6977_v43 = vpop.permute.xlu1 %6976 }
 0x22a   :  { %7251 = vrot.lane.b32.xlu0 %v7250_v10, %s7332_s11  ;;  %v3158_v63 = vsel %vm3116_vm8, %v3093_v46, %v6764_v1  ;;  %v3159_v61 = vsel %vm3116_vm8, %v3094_v22, %v6768_v60  ;;  %v6968_v39 = vunpack.i.l.bf16 %v6967_v3  ;;  %v3160_v33 = vsel %vm3116_vm8, %v3095_v27, %v6769_v5 }
 0x22b   :  { %7256 = vrot.lane.b32.xlu1 %v7255_v54, %s7332_s11  ;;  %v6972_v26 = vpop.permute.xlu0 %6971  ;;  %v3190_v29 = vsel %vm3181_vm9, %v3125_v23, %v6843_v38  ;;  %v3191_v13 = vsel %vm3181_vm9, %v3126_v37, %v6844_v31  ;;  %v3222_v57 = vsel %vm3181_vm9, %v3157_v45, %v6948_v34  ;;  %v3223_v28 = vsel %vm3181_vm9, %v3158_v63, %v6949_v32 }
 0x22c   :  { %v3193_v55 = vsel %vm3181_vm9, %v3128_v24, %v6954_v16  ;;  %v6959_v46 = vunpack.i.h.bf16 %v10123_v40  ;;  %v6969_v58 = vunpack.i.h.bf16 %v6967_v3  ;;  %v3192_v22 = vsel %vm3181_vm9, %v3127_v42, %v6953_v62 }
 0x22d   :  { %v3224_v27 = vsel %vm3181_vm9, %v3159_v61, %v6958_v35  ;;  %v3255_v10 = vsel %vm3246_vm10, %v3190_v29, %v6963_v52  ;;  %v3256_v54 = vsel %vm3246_vm10, %v3191_v13, %v6964_v14  ;;  %v6973_v56 = vunpack.i.l.bf16 %v6972_v26  ;;  %v6987_v23 = vpop.permute.xlu1 %6986 }
 0x22e   :  { %7261 = vrot.lane.b32.xlu0 %v7260_v8, %s7334_s1  ;;  %v3287_v8 = vsel %vm3246_vm10, %v3222_v57, %v6968_v39  ;;  %v6974_v11 = vunpack.i.h.bf16 %v6972_v26  ;;  %v6978_v40 = vunpack.i.l.bf16 %v6977_v43  ;;  %v6989_v12 = vunpack.i.h.bf16 %v6987_v23 }
 0x22f   :  { %7266 = vrot.lane.b32.xlu1 %v7265_v48, %s7334_s1  ;;  %v6982_v15 = vpop.permute.xlu0 %6981  ;;  %v6988_v37 = vunpack.i.l.bf16 %v6987_v23  ;;  %v3288_v48 = vsel %vm3246_vm10, %v3223_v28, %v6969_v58  ;;  %v6979_v25 = vunpack.i.h.bf16 %v6977_v43  ;;  %v3225_v47 = vsel %vm3181_vm9, %v3160_v33, %v6959_v46  ;;  %v11651_v58 = vld [vmem:[#allocation45_spill] sm:$0xff] }
 0x230   :  { %v6984_v0 = vunpack.i.h.bf16 %v6982_v15  ;;  %v6983_v51 = vunpack.i.l.bf16 %v6982_v15  ;;  %v3353_v5 = vsel %vm3311_vm11, %v3288_v48, %v6989_v12  ;;  %v3257_v31 = vsel %vm3246_vm10, %v3192_v22, %v6973_v56 }
 0x231   :  { %v3352_v3 = vsel %vm3311_vm11, %v3287_v8, %v6988_v37  ;;  %v6997_v19 = vpop.permute.xlu1 %6996  ;;  %v3258_v42 = vsel %vm3246_vm10, %v3193_v55, %v6974_v11  ;;  %v3289_v36 = vsel %vm3246_vm10, %v3224_v27, %v6978_v40  ;;  %v3290_v32 = vsel %vm3246_vm10, %v3225_v47, %v6979_v25  ;;  %v11650_v55 = vld [vmem:[#allocation42_spill] sm:$0xff]  ;;  %v11653_v8 = vld [vmem:[#allocation52_spill] sm:$0xff] }
 0x232   :  { %7271 = vrot.lane.b32.xlu0 %v7270_v21, %s7334_s1  ;;  %v3320_v1 = vsel %vm3311_vm11, %v3255_v10, %v6983_v51  ;;  %v3321_v50 = vsel %vm3311_vm11, %v3256_v54, %v6984_v0  ;;  %v3396_v21 = vpack.c.bf16 %v3353_v5, %v3352_v3  ;;  %v6999_v24 = vunpack.i.h.bf16 %v6997_v19  ;;  %v11652_v54 = vld [vmem:[#allocation63_spill] sm:$0xff] }
 0x233   :  { %7276 = vrot.lane.b32.xlu1 %v7275_v6, %s7334_s1  ;;  %v3380_v60 = vpack.c.bf16 %v3321_v50, %v3320_v1  ;;  %v6992_v59 = vpop.permute.xlu0 %6991  ;;  %v6998_v6 = vunpack.i.l.bf16 %v6997_v19  ;;  %vm5725_vm5 = vcmask 1047559  }
 0x234   :  { %v6994_v38 = vunpack.i.h.bf16 %v6992_v59  ;;  %v6993_v34 = vunpack.i.l.bf16 %v6992_v59  ;;  %5981 = vmatprep.mubr.msk.bf16.mxu1 %vm3430_vm12, %v3396_v21  ;;  %v3355_v17 = vsel %vm3311_vm11, %v3290_v32, %v6999_v24 }
 0x235   :  { %5949 = vmatprep.mubr.msk.bf16.mxu0 %vm3430_vm12, %v3380_v60  ;;  %v3354_v14 = vsel %vm3311_vm11, %v3289_v36, %v6998_v6  ;;  %v7007_v52 = vpop.permute.xlu1 %7006  ;;  %v11655_v36 = vld [vmem:[#allocation46_spill] sm:$0xff] }
 0x236   :  { %7281 = vrot.lane.b32.xlu0 %v7280_v41, %s7335_s16  ;;  %v3322_v16 = vsel %vm3311_vm11, %v3257_v31, %v6993_v34  ;;  %v3323_v62 = vsel %vm3311_vm11, %v3258_v42, %v6994_v38  ;;  %v3397_v41 = vpack.c.bf16 %v3355_v17, %v3354_v14  ;;  %v7009_v61 = vunpack.i.h.bf16 %v7007_v52  ;;  %v11654_v31 = vld [vmem:[#allocation23_spill] sm:$0xff] }
 0x237   :  { %7286 = vrot.lane.b32.xlu1 %v7285_v20, %s7335_s16  ;;  %v3381_v35 = vpack.c.bf16 %v3323_v62, %v3322_v16  ;;  %v7002_v53 = vpop.permute.xlu0 %7001  ;;  %v7008_v39 = vunpack.i.l.bf16 %v7007_v52 }
 0x238   :  { %5982 = vmatmul.mubr.msk.bf16.gmra.mrb[8].mxu1 %vm3430_vm12, %v3397_v41  ;;  %v7004_v45 = vunpack.i.h.bf16 %v7002_v53  ;;  %v7003_v63 = vunpack.i.l.bf16 %v7002_v53  ;;  %v3227_v22 = vsel %vm3181_vm9, %v11651_v58, %v7009_v61 }
 0x239   :  { %5950 = vmatmul.mubr.msk.bf16.gmra.mrb[8].mxu0 %vm3430_vm12, %v3381_v35  ;;  %v7017_v30 = vpop.permute.xlu1 %7016  ;;  %v3226_v46 = vsel %vm3181_vm9, %v11650_v55, %v7008_v39 }
 0x23a   :  { %7291 = vrot.lane.b32.xlu0 %v7290_v2, %s7335_s16  ;;  %v3194_v44 = vsel %vm3181_vm9, %v11648_v7, %v7003_v63  ;;  %v7019_v27 = vunpack.i.h.bf16 %v7017_v30  ;;  %v7018_v10 = vunpack.i.l.bf16 %v7017_v30 }
 0x23b   :  { %7296 = vrot.lane.b32.xlu1 %v7295_v9, %s7335_s16  ;;  %v7012_v18 = vpop.permute.xlu0 %7011  ;;  %v11649_v9 = vld [vmem:[#allocation77_spill] sm:$0xff] }
 0x23c   :  { %v7014_v43 = vunpack.i.h.bf16 %v7012_v18  ;;  %v7013_v49 = vunpack.i.l.bf16 %v7012_v18  ;;  %v3195_v28 = vsel %vm3181_vm9, %v11649_v9, %v7004_v45  ;;  %v3228_v21 = vsel %vm3181_vm9, %v11654_v31, %v7018_v10 }
 0x23d   :  { %v7027_v26 = vpop.permute.xlu1 %7026  ;;  %v3229_v24 = vsel %vm3181_vm9, %v11655_v36, %v7019_v27  ;;  %v11656_v27 = vld [vmem:[#allocation72_spill] sm:$0xff] }
 0x23e   :  { %v7029_v29 = vunpack.i.h.bf16 %v7027_v26  ;;  %v7028_v13 = vunpack.i.l.bf16 %v7027_v26  ;;  %v3197_v15 = vsel %vm3181_vm9, %v11652_v54, %v7014_v43  ;;  %v3196_v56 = vsel %vm3181_vm9, %v11653_v8, %v7013_v49  ;;  %v11657_v54 = vld [vmem:[#allocation75_spill] sm:$0xff] }
 0x23f   :  { %v7022_v20 = vpop.permute.xlu0 %7021  ;;  %v11658_v8 = vld [vmem:[#allocation47_spill] sm:$0xff] }
 0x240   :  { %v7024_v4 = vunpack.i.h.bf16 %v7022_v20  ;;  %v7023_v2 = vunpack.i.l.bf16 %v7022_v20  ;;  %v3291_v11 = vsel %vm3246_vm10, %v3226_v46, %v7028_v13  ;;  %v3292_v40 = vsel %vm3246_vm10, %v3227_v22, %v7029_v29 }
 0x241   :  { %v7037_v57 = vpop.permute.xlu1 %7036 }
 0x242   :  { %v3259_v0 = vsel %vm3246_vm10, %v3194_v44, %v7023_v2  ;;  %v3260_v51 = vsel %vm3246_vm10, %v3195_v28, %v7024_v4  ;;  %v7039_v60 = vunpack.i.h.bf16 %v7037_v57  ;;  %v7038_v3 = vunpack.i.l.bf16 %v7037_v57 }
 0x243   :  { %v7032_v33 = vpop.permute.xlu0 %7031 }
 0x244   :  { %v7034_v25 = vunpack.i.h.bf16 %v7032_v33  ;;  %v7033_v1 = vunpack.i.l.bf16 %v7032_v33  ;;  %v3293_v41 = vsel %vm3246_vm10, %v3228_v21, %v7038_v3  ;;  %v3294_v52 = vsel %vm3246_vm10, %v3229_v24, %v7039_v60 }
 0x245   :  { %v7047_v48 = vpop.permute.xlu1 %7046 }
 0x246   :  { %v7049_v50 = vunpack.i.h.bf16 %v7047_v48  ;;  %v7048_v47 = vunpack.i.l.bf16 %v7047_v48  ;;  %v3261_v35 = vsel %vm3246_vm10, %v3196_v56, %v7033_v1  ;;  %v3262_v14 = vsel %vm3246_vm10, %v3197_v15, %v7034_v25 }
 0x247   :  { %v7042_v23 = vpop.permute.xlu0 %7041 }
 0x248   :  { %v7044_v12 = vunpack.i.h.bf16 %v7042_v23  ;;  %v7043_v37 = vunpack.i.l.bf16 %v7042_v23  ;;  %v3356_v34 = vsel %vm3311_vm11, %v3291_v11, %v7048_v47  ;;  %v3357_v19 = vsel %vm3311_vm11, %v3292_v40, %v7049_v50  ;;  %v11660_v40 = vld [vmem:[#allocation80_spill] sm:$0xff] }
 0x249   :  { %v3398_v6 = vpack.c.bf16 %v3357_v19, %v3356_v34  ;;  %v7057_v62 = vpop.permute.xlu1 %7056 }
 0x24a   :  { %v3324_v5 = vsel %vm3311_vm11, %v3259_v0, %v7043_v37  ;;  %v3325_v59 = vsel %vm3311_vm11, %v3260_v51, %v7044_v12  ;;  %v7059_v17 = vunpack.i.h.bf16 %v7057_v62  ;;  %v7058_v53 = vunpack.i.l.bf16 %v7057_v62  ;;  %v11659_v0 = vld [vmem:[#allocation48_spill] sm:$0xff] }
 0x24b   :  { %v3382_v38 = vpack.c.bf16 %v3325_v59, %v3324_v5  ;;  %v7052_v42 = vpop.permute.xlu0 %7051  ;;  %5985 = vmatprep.mubr.msk.bf16.mxu1 %vm3430_vm12, %v3398_v6  ;;  %v11661_v37 = vld [vmem:[#allocation76_spill] sm:$0xff]  ;;  %v11662_v6 = vld [vmem:[#allocation54_spill] sm:$0xff] }
 0x24c   :  { %v7054_v32 = vunpack.i.h.bf16 %v7052_v42  ;;  %v7053_v16 = vunpack.i.l.bf16 %v7052_v42  ;;  %v3358_v26 = vsel %vm3311_vm11, %v3293_v41, %v7058_v53  ;;  %v3359_v45 = vsel %vm3311_vm11, %v3294_v52, %v7059_v17  ;;  %v11663_v17 = vld [vmem:[#allocation55_spill] sm:$0xff] }
 0x24d   :  { %5953 = vmatprep.mubr.msk.bf16.mxu0 %vm3430_vm12, %v3382_v38  ;;  %v3399_v61 = vpack.c.bf16 %v3359_v45, %v3358_v26  ;;  %v7067_v39 = vpop.permute.xlu1 %7066 }
 0x24e   :  { %v3326_v18 = vsel %vm3311_vm11, %v3261_v35, %v7053_v16  ;;  %v3327_v30 = vsel %vm3311_vm11, %v3262_v14, %v7054_v32  ;;  %v7069_v13 = vunpack.i.h.bf16 %v7067_v39  ;;  %v7068_v57 = vunpack.i.l.bf16 %v7067_v39 }
 0x24f   :  { %v3383_v20 = vpack.c.bf16 %v3327_v30, %v3326_v18  ;;  %v7062_v63 = vpop.permute.xlu0 %7061  ;;  %5986 = vmatmul.mubr.msk.bf16.gmra.mrb[12].mxu1 %vm3430_vm12, %v3399_v61 }
 0x250   :  { %v7064_v33 = vunpack.i.h.bf16 %v7062_v63  ;;  %v7063_v29 = vunpack.i.l.bf16 %v7062_v63  ;;  %v3230_v56 = vsel %vm3181_vm9, %v11658_v8, %v7068_v57  ;;  %v3231_v51 = vsel %vm3181_vm9, %v11659_v0, %v7069_v13 }
 0x251   :  { %5954 = vmatmul.mubr.msk.bf16.gmra.mrb[12].mxu0 %vm3430_vm12, %v3383_v20  ;;  %v7077_v49 = vpop.permute.xlu1 %7076 }
 0x252   :  { %v3198_v10 = vsel %vm3181_vm9, %v11656_v27, %v7063_v29  ;;  %v3199_v15 = vsel %vm3181_vm9, %v11657_v54, %v7064_v33  ;;  %v7079_v23 = vunpack.i.h.bf16 %v7077_v49  ;;  %v7078_v11 = vunpack.i.l.bf16 %v7077_v49 }
 0x253   :  { %v7072_v43 = vpop.permute.xlu0 %7071 }
 0x254   :  { %v7074_v7 = vunpack.i.h.bf16 %v7072_v43  ;;  %v7073_v44 = vunpack.i.l.bf16 %v7072_v43  ;;  %v3232_v32 = vsel %vm3181_vm9, %v11662_v6, %v7078_v11  ;;  %v3233_v53 = vsel %vm3181_vm9, %v11663_v17, %v7079_v23  ;;  %v11664_v23 = vld [vmem:[#allocation3_spill] sm:$0xff] }
 0x255   :  { %v7087_v2 = vpop.permute.xlu1 %7086 }
 0x256   :  { %v7089_v46 = vunpack.i.h.bf16 %v7087_v2  ;;  %v7088_v58 = vunpack.i.l.bf16 %v7087_v2  ;;  %v3201_v12 = vsel %vm3181_vm9, %v11660_v40, %v7074_v7  ;;  %v3200_v48 = vsel %vm3181_vm9, %v11661_v37, %v7073_v44  ;;  %v11665_v40 = vld [vmem:[#allocation4_spill] sm:$0xff] }
 0x257   :  { %v7082_v4 = vpop.permute.xlu0 %7081  ;;  %v11666_v37 = vld [vmem:[#allocation56_spill] sm:$0xff] }
 0x258   :  { %v7084_v9 = vunpack.i.h.bf16 %v7082_v4  ;;  %v7083_v28 = vunpack.i.l.bf16 %v7082_v4  ;;  %v3295_v47 = vsel %vm3246_vm10, %v3230_v56, %v7088_v58  ;;  %v3296_v60 = vsel %vm3246_vm10, %v3231_v51, %v7089_v46 }
 0x259   :  { %v7097_v22 = vpop.permute.xlu1 %7096 }
 0x25a   :  { %v3263_v25 = vsel %vm3246_vm10, %v3198_v10, %v7083_v28  ;;  %v3264_v1 = vsel %vm3246_vm10, %v3199_v15, %v7084_v9  ;;  %v7099_v19 = vunpack.i.h.bf16 %v7097_v22  ;;  %v7098_v42 = vunpack.i.l.bf16 %v7097_v22 }
 0x25b   :  { %v7092_v55 = vpop.permute.xlu0 %7091 }
 0x25c   :  { %v7094_v31 = vunpack.i.h.bf16 %v7092_v55  ;;  %v7093_v21 = vunpack.i.l.bf16 %v7092_v55  ;;  %v3297_v61 = vsel %vm3246_vm10, %v3232_v32, %v7098_v42  ;;  %v3298_v39 = vsel %vm3246_vm10, %v3233_v53, %v7099_v19 }
 0x25d   :  { %v7107_v59 = vpop.permute.xlu1 %7106 }
 0x25e   :  { %v7109_v38 = vunpack.i.h.bf16 %v7107_v59  ;;  %v7108_v34 = vunpack.i.l.bf16 %v7107_v59  ;;  %v3265_v20 = vsel %vm3246_vm10, %v3200_v48, %v7093_v21  ;;  %v3266_v26 = vsel %vm3246_vm10, %v3201_v12, %v7094_v31 }
 0x25f   :  { %v7102_v50 = vpop.permute.xlu0 %7101 }
 0x260   :  { %v7104_v3 = vunpack.i.h.bf16 %v7102_v50  ;;  %v7103_v5 = vunpack.i.l.bf16 %v7102_v50  ;;  %v3360_v62 = vsel %vm3311_vm11, %v3295_v47, %v7108_v34  ;;  %v3361_v35 = vsel %vm3311_vm11, %v3296_v60, %v7109_v38  ;;  %v11668_v60 = vld [vmem:[#allocation6_spill] sm:$0xff] }
 0x261   :  { %v3400_v41 = vpack.c.bf16 %v3361_v35, %v3360_v62  ;;  %v7117_v30 = vpop.permute.xlu1 %7116 }
 0x262   :  { %v3328_v36 = vsel %vm3311_vm11, %v3263_v25, %v7103_v5  ;;  %v3329_v24 = vsel %vm3311_vm11, %v3264_v1, %v7104_v3  ;;  %v7119_v45 = vunpack.i.h.bf16 %v7117_v30  ;;  %v7118_v63 = vunpack.i.l.bf16 %v7117_v30  ;;  %v11667_v25 = vld [vmem:[#allocation57_spill] sm:$0xff] }
 0x263   :  { %v3384_v16 = vpack.c.bf16 %v3329_v24, %v3328_v36  ;;  %v7112_v14 = vpop.permute.xlu0 %7111  ;;  %5989 = vmatprep.mubr.msk.bf16.mxu1 %vm3430_vm12, %v3400_v41  ;;  %v11669_v5 = vld [vmem:[#allocation5_spill] sm:$0xff]  ;;  %v11670_v41 = vld [vmem:[#allocation58_spill] sm:$0xff] }
 0x264   :  { %v7114_v52 = vunpack.i.h.bf16 %v7112_v14  ;;  %v7113_v18 = vunpack.i.l.bf16 %v7112_v14  ;;  %v3362_v2 = vsel %vm3311_vm11, %v3297_v61, %v7118_v63  ;;  %v3363_v33 = vsel %vm3311_vm11, %v3298_v39, %v7119_v45  ;;  %v11671_v45 = vld [vmem:[#allocation59_spill] sm:$0xff] }
 0x265   :  { %5957 = vmatprep.mubr.msk.bf16.mxu0 %vm3430_vm12, %v3384_v16  ;;  %v3401_v13 = vpack.c.bf16 %v3363_v33, %v3362_v2  ;;  %v7127_v57 = vpop.permute.xlu1 %7126 }
 0x266   :  { %v3330_v43 = vsel %vm3311_vm11, %v3265_v20, %v7113_v18  ;;  %v3331_v49 = vsel %vm3311_vm11, %v3266_v26, %v7114_v52  ;;  %v7129_v58 = vunpack.i.h.bf16 %v7127_v57  ;;  %v7128_v22 = vunpack.i.l.bf16 %v7127_v57 }
 0x267   :  { %v3385_v4 = vpack.c.bf16 %v3331_v49, %v3330_v43  ;;  %v7122_v29 = vpop.permute.xlu0 %7121  ;;  %5990 = vmatmul.mubr.msk.bf16.gmra.mrb[16].mxu1 %vm3430_vm12, %v3401_v13 }
 0x268   :  { %v7124_v55 = vunpack.i.h.bf16 %v7122_v29  ;;  %v7123_v46 = vunpack.i.l.bf16 %v7122_v29  ;;  %v3234_v48 = vsel %vm3181_vm9, %v11666_v37, %v7128_v22  ;;  %v3235_v1 = vsel %vm3181_vm9, %v11667_v25, %v7129_v58 }
 0x269   :  { %5958 = vmatmul.mubr.msk.bf16.gmra.mrb[16].mxu0 %vm3430_vm12, %v3385_v4  ;;  %v7137_v44 = vpop.permute.xlu1 %7136 }
 0x26a   :  { %v3202_v11 = vsel %vm3181_vm9, %v11664_v23, %v7123_v46  ;;  %v3203_v12 = vsel %vm3181_vm9, %v11665_v40, %v7124_v55  ;;  %v7139_v50 = vunpack.i.h.bf16 %v7137_v44  ;;  %v7138_v47 = vunpack.i.l.bf16 %v7137_v44 }
 0x26b   :  { %v7132_v7 = vpop.permute.xlu0 %7131 }
 0x26c   :  { %v7134_v27 = vunpack.i.h.bf16 %v7132_v7  ;;  %v7133_v10 = vunpack.i.l.bf16 %v7132_v7  ;;  %v3236_v52 = vsel %vm3181_vm9, %v11670_v41, %v7138_v47  ;;  %v3237_v63 = vsel %vm3181_vm9, %v11671_v45, %v7139_v50  ;;  %v11672_v50 = vld [vmem:[#allocation7_spill] sm:$0xff] }
 0x26d   :  { %v7147_v28 = vpop.permute.xlu1 %7146 }
 0x26e   :  { %v7149_v56 = vunpack.i.h.bf16 %v7147_v28  ;;  %v7148_v0 = vunpack.i.l.bf16 %v7147_v28  ;;  %v3205_v3 = vsel %vm3181_vm9, %v11668_v60, %v7134_v27  ;;  %v3204_v59 = vsel %vm3181_vm9, %v11669_v5, %v7133_v10  ;;  %v11673_v60 = vld [vmem:[#allocation8_spill] sm:$0xff]  ;;  %v11674_v5 = vld [vmem:[#allocation73_spill] sm:$0xff] }
 0x26f   :  { %v7142_v9 = vpop.permute.xlu0 %7141 }
 0x270   :  { %v7144_v54 = vunpack.i.h.bf16 %v7142_v9  ;;  %v7143_v15 = vunpack.i.l.bf16 %v7142_v9  ;;  %v3299_v34 = vsel %vm3246_vm10, %v3234_v48, %v7148_v0  ;;  %v3300_v19 = vsel %vm3246_vm10, %v3235_v1, %v7149_v56 }
 0x272   :  { %v7157_v51 = vpop.permute.xlu1 %7156  ;;  %v3267_v31 = vsel %vm3246_vm10, %v3202_v11, %v7143_v15  ;;  %v3268_v21 = vsel %vm3246_vm10, %v3203_v12, %v7144_v54 }
 0x273   :  { %v7152_v8 = vpop.permute.xlu0 %7151  ;;  %v7159_v35 = vunpack.i.h.bf16 %v7157_v51  ;;  %v7158_v14 = vunpack.i.l.bf16 %v7157_v51 }
 0x274   :  { %v7154_v6 = vunpack.i.h.bf16 %v7152_v8  ;;  %v7153_v32 = vunpack.i.l.bf16 %v7152_v8 }
 0x275   :  { %v3301_v13 = vsel %vm3246_vm10, %v3236_v52, %v7158_v14  ;;  %v3302_v57 = vsel %vm3246_vm10, %v3237_v63, %v7159_v35 }
 0x276   :  { %v7167_v24 = vpop.permute.xlu1 %7166  ;;  %v3269_v4 = vsel %vm3246_vm10, %v3204_v59, %v7153_v32  ;;  %v3270_v2 = vsel %vm3246_vm10, %v3205_v3, %v7154_v6 }
 0x277   :  { %v7162_v38 = vpop.permute.xlu0 %7161  ;;  %v7169_v16 = vunpack.i.h.bf16 %v7167_v24  ;;  %v7168_v62 = vunpack.i.l.bf16 %v7167_v24 }
 0x278   :  { %v7164_v42 = vunpack.i.h.bf16 %v7162_v38  ;;  %v7163_v36 = vunpack.i.l.bf16 %v7162_v38 }
 0x279   :  { %v3364_v30 = vsel %vm3311_vm11, %v3299_v34, %v7168_v62  ;;  %v3365_v20 = vsel %vm3311_vm11, %v3300_v19, %v7169_v16  ;;  %v11676_v19 = vld [vmem:[#allocation10_spill] sm:$0xff] }
 0x27a   :  { %v3332_v17 = vsel %vm3311_vm11, %v3267_v31, %v7163_v36  ;;  %v3333_v53 = vsel %vm3311_vm11, %v3268_v21, %v7164_v42  ;;  %v3402_v61 = vpack.c.bf16 %v3365_v20, %v3364_v30  ;;  %v11675_v31 = vld [vmem:[#allocation74_spill] sm:$0xff]  ;;  %v11677_v36 = vld [vmem:[#allocation9_spill] sm:$0xff] }
 0x27b   :  { %v3386_v18 = vpack.c.bf16 %v3333_v53, %v3332_v17  ;;  %v7172_v26 = vpop.permute.xlu0 %7171  ;;  %v7177_v49 = vpop.permute.xlu1 %7176 }
 0x27c   :  { %v7174_v39 = vunpack.i.h.bf16 %v7172_v26  ;;  %v7173_v43 = vunpack.i.l.bf16 %v7172_v26  ;;  %v7179_v33 = vunpack.i.h.bf16 %v7177_v49  ;;  %v7178_v29 = vunpack.i.l.bf16 %v7177_v49  ;;  %5993 = vmatprep.mubr.msk.bf16.mxu1 %vm3430_vm12, %v3402_v61  ;;  %v11678_v61 = vld [vmem:[#allocation81_spill] sm:$0xff] }
 0x27d   :  { %5961 = vmatprep.mubr.msk.bf16.mxu0 %vm3430_vm12, %v3386_v18 }
 0x27e   :  { %v3334_v7 = vsel %vm3311_vm11, %v3269_v4, %v7173_v43  ;;  %v3335_v44 = vsel %vm3311_vm11, %v3270_v2, %v7174_v39  ;;  %v3366_v28 = vsel %vm3311_vm11, %v3301_v13, %v7178_v29  ;;  %v3367_v55 = vsel %vm3311_vm11, %v3302_v57, %v7179_v33  ;;  %v11679_v33 = vld [vmem:[#allocation22_spill] sm:$0xff] }
 0x27f   :  { %v3387_v9 = vpack.c.bf16 %v3335_v44, %v3334_v7  ;;  %v7182_v46 = vpop.permute.xlu0 %7181  ;;  %v3403_v58 = vpack.c.bf16 %v3367_v55, %v3366_v28  ;;  %v7187_v22 = vpop.permute.xlu1 %7186 }
 0x280   :  { %v7184_v8 = vunpack.i.h.bf16 %v7182_v46  ;;  %v7183_v56 = vunpack.i.l.bf16 %v7182_v46  ;;  %v7189_v0 = vunpack.i.h.bf16 %v7187_v22  ;;  %v7188_v51 = vunpack.i.l.bf16 %v7187_v22 }
 0x281   :  { %5962 = vmatmul.mubr.msk.bf16.gmra.mrb[20].mxu0 %vm3430_vm12, %v3387_v9  ;;  %5994 = vmatmul.mubr.msk.bf16.gmra.mrb[20].mxu1 %vm3430_vm12, %v3403_v58 }
 0x282   :  { %v3206_v47 = vsel %vm3181_vm9, %v11672_v50, %v7183_v56  ;;  %v3207_v3 = vsel %vm3181_vm9, %v11673_v60, %v7184_v8  ;;  %v3238_v59 = vsel %vm3181_vm9, %v11674_v5, %v7188_v51  ;;  %v3239_v21 = vsel %vm3181_vm9, %v11675_v31, %v7189_v0 }
 0x283   :  { %v7192_v27 = vpop.permute.xlu0 %7191 }
 0x284   :  { %v7197_v10 = vpop.permute.xlu1 %7196  ;;  %v7194_v23 = vunpack.i.h.bf16 %v7192_v27  ;;  %v7193_v11 = vunpack.i.l.bf16 %v7192_v27 }
 0x285   :  { %v7199_v38 = vunpack.i.h.bf16 %v7197_v10  ;;  %v7198_v34 = vunpack.i.l.bf16 %v7197_v10 }
 0x286   :  { %v3209_v42 = vsel %vm3181_vm9, %v11676_v19, %v7194_v23  ;;  %v3208_v24 = vsel %vm3181_vm9, %v11677_v36, %v7193_v11  ;;  %v11681_v19 = vld [vmem:[#allocation12_spill] sm:$0xff]  ;;  %v11682_v36 = vld [vmem:[#allocation82_spill] sm:$0xff] }
 0x287   :  { %v3240_v39 = vsel %vm3181_vm9, %v11678_v61, %v7198_v34  ;;  %v3241_v29 = vsel %vm3181_vm9, %v11679_v33, %v7199_v38  ;;  %v11680_v38 = vld [vmem:[#allocation11_spill] sm:$0xff] }
 0x288   :  { %v7202_v54 = vpop.permute.xlu0 %7201 }
 0x289   :  { %v7207_v15 = vpop.permute.xlu1 %7206  ;;  %v7204_v40 = vunpack.i.h.bf16 %v7202_v54  ;;  %v7203_v12 = vunpack.i.l.bf16 %v7202_v54 }
 0x28a   :  { %v7209_v48 = vunpack.i.h.bf16 %v7207_v15  ;;  %v7208_v25 = vunpack.i.l.bf16 %v7207_v15 }
 0x28b   :  { %v3271_v6 = vsel %vm3246_vm10, %v3206_v47, %v7203_v12  ;;  %v3272_v32 = vsel %vm3246_vm10, %v3207_v3, %v7204_v40 }
 0x28c   :  { %v7212_v37 = vpop.permute.xlu0 %7211  ;;  %v3303_v62 = vsel %vm3246_vm10, %v3238_v59, %v7208_v25  ;;  %v3304_v35 = vsel %vm3246_vm10, %v3239_v21, %v7209_v48 }
 0x28d   :  { %v7217_v1 = vpop.permute.xlu1 %7216  ;;  %v7214_v41 = vunpack.i.h.bf16 %v7212_v37  ;;  %v7213_v52 = vunpack.i.l.bf16 %v7212_v37 }
 0x28e   :  { %v7219_v20 = vunpack.i.h.bf16 %v7217_v1  ;;  %v7218_v26 = vunpack.i.l.bf16 %v7217_v1 }
 0x28f   :  { %v3273_v9 = vsel %vm3246_vm10, %v3208_v24, %v7213_v52  ;;  %v3274_v28 = vsel %vm3246_vm10, %v3209_v42, %v7214_v41 }
 0x290   :  { %v7222_v16 = vpop.permute.xlu0 %7221  ;;  %v3305_v58 = vsel %vm3246_vm10, %v3240_v39, %v7218_v26  ;;  %v3306_v22 = vsel %vm3246_vm10, %v3241_v29, %v7219_v20 }
 0x291   :  { %v7224_v14 = vunpack.i.h.bf16 %v7222_v16  ;;  %v7223_v17 = vunpack.i.l.bf16 %v7222_v16  ;;  %v7227_v53 = vpop.permute.xlu1 %7226 }
 0x292   :  { %v7229_v18 = vunpack.i.h.bf16 %v7227_v53  ;;  %v7228_v30 = vunpack.i.l.bf16 %v7227_v53 }
 0x293   :  { %v3336_v45 = vsel %vm3311_vm11, %v3271_v6, %v7223_v17  ;;  %v3337_v63 = vsel %vm3311_vm11, %v3272_v32, %v7224_v14  ;;  %v11683_v6 = vld [vmem:[#allocation85_spill] sm:$0xff] }
 0x294   :  { %v3388_v43 = vpack.c.bf16 %v3337_v63, %v3336_v45  ;;  %v3368_v49 = vsel %vm3311_vm11, %v3303_v62, %v7228_v30  ;;  %v3369_v4 = vsel %vm3311_vm11, %v3304_v35, %v7229_v18  ;;  %v7232_v2 = vpop.permute.xlu0 %7231  ;;  %v11684_v35 = vld [vmem:[#allocation14_spill] sm:$0xff]  ;;  %v11685_v17 = vld [vmem:[#allocation13_spill] sm:$0xff] }
 0x295   :  { %v3404_v13 = vpack.c.bf16 %v3369_v4, %v3368_v49  ;;  %v7234_v57 = vunpack.i.h.bf16 %v7232_v2  ;;  %v7233_v7 = vunpack.i.l.bf16 %v7232_v2  ;;  %v7237_v44 = vpop.permute.xlu1 %7236 }
 0x296   :  { %v7239_v55 = vunpack.i.h.bf16 %v7237_v44  ;;  %v7238_v46 = vunpack.i.l.bf16 %v7237_v44  ;;  %5965 = vmatprep.mubr.msk.bf16.mxu0 %vm3430_vm12, %v3388_v43 }
 0x297   :  { %v3338_v27 = vsel %vm3311_vm11, %v3273_v9, %v7233_v7  ;;  %v3339_v10 = vsel %vm3311_vm11, %v3274_v28, %v7234_v57  ;;  %5997 = vmatprep.mubr.msk.bf16.mxu1 %vm3430_vm12, %v3404_v13  ;;  %v11686_v13 = vld [vmem:[#allocation53_spill] sm:$0xff] }
 0x298   :  { %v3389_v54 = vpack.c.bf16 %v3339_v10, %v3338_v27  ;;  %v3370_v15 = vsel %vm3311_vm11, %v3305_v58, %v7238_v46  ;;  %v3371_v8 = vsel %vm3311_vm11, %v3306_v22, %v7239_v55  ;;  %v7242_v56 = vpop.permute.xlu0 %7241  ;;  %v11687_v55 = vld [vmem:[#allocation15_spill] sm:$0xff] }
 0x299   :  { %v3405_v0 = vpack.c.bf16 %v3371_v8, %v3370_v15  ;;  %v7247_v51 = vpop.permute.xlu1 %7246  ;;  %v7244_v37 = vunpack.i.h.bf16 %v7242_v56  ;;  %v7243_v48 = vunpack.i.l.bf16 %v7242_v56 }
 0x29a   :  { %5966 = vmatmul.mubr.msk.bf16.gmra.mrb[24].mxu0 %vm3430_vm12, %v3389_v54  ;;  %v7249_v25 = vunpack.i.h.bf16 %v7247_v51  ;;  %v7248_v1 = vunpack.i.l.bf16 %v7247_v51 }
 0x29b   :  { %5998 = vmatmul.mubr.msk.bf16.gmra.mrb[24].mxu1 %vm3430_vm12, %v3405_v0  ;;  %v3210_v34 = vsel %vm3181_vm9, %v11680_v38, %v7243_v48  ;;  %v3211_v42 = vsel %vm3181_vm9, %v11681_v19, %v7244_v37 }
 0x29c   :  { %v7252_v23 = vpop.permute.xlu0 %7251  ;;  %v3242_v24 = vsel %vm3181_vm9, %v11682_v36, %v7248_v1  ;;  %v3243_v32 = vsel %vm3181_vm9, %v11683_v6, %v7249_v25  ;;  %v7336_v25 = vmov 1983009808  }
 0x29d   :  { %v7257_v11 = vpop.permute.xlu1 %7256  ;;  %v7254_v50 = vunpack.i.h.bf16 %v7252_v23  ;;  %v7253_v47 = vunpack.i.l.bf16 %v7252_v23  ;;  %v4018_v1 = vunpack.c.l.s4 %v7336_v25 }
 0x29e   :  { %v7259_v16 = vunpack.i.h.bf16 %v7257_v11  ;;  %v7258_v62 = vunpack.i.l.bf16 %v7257_v11 }
 0x29f   :  { %v3213_v14 = vsel %vm3181_vm9, %v11684_v35, %v7254_v50  ;;  %v3212_v53 = vsel %vm3181_vm9, %v11685_v17, %v7253_v47  ;;  %v4020_v50 = vlaneseq  ;;  %v10414_v47 = vld [vmem:[%s11158_s2] ss:$0 sm:$0xff] }
 0x2a0   :  { %v7262_v40 = vpop.permute.xlu0 %7261  ;;  %v3244_v57 = vsel %vm3181_vm9, %v11686_v13, %v7258_v62  ;;  %v3245_v46 = vsel %vm3181_vm9, %v11687_v55, %v7259_v16 }
 0x2a1   :  { %v7267_v12 = vpop.permute.xlu1 %7266  ;;  %v7264_v60 = vunpack.i.h.bf16 %v7262_v40  ;;  %v7263_v3 = vunpack.i.l.bf16 %v7262_v40 }
 0x2a2   :  { %v7269_v59 = vunpack.i.h.bf16 %v7267_v12  ;;  %v7268_v31 = vunpack.i.l.bf16 %v7267_v12 }
 0x2a3   :  { %v3275_v41 = vsel %vm3246_vm10, %v3210_v34, %v7263_v3  ;;  %v3276_v52 = vsel %vm3246_vm10, %v3211_v42, %v7264_v60 }
 0x2a4   :  { %v7272_v5 = vpop.permute.xlu0 %7271  ;;  %v3307_v30 = vsel %vm3246_vm10, %v3242_v24, %v7268_v31  ;;  %v3308_v20 = vsel %vm3246_vm10, %v3243_v32, %v7269_v59  ;;  %v4019_v59 = vunpack.c.0.s8 %v4018_v1  ;;  %v4021_v31 = vshrl.u32 %v4020_v50, 7 }
 0x2a5   :  { %v7277_v21 = vpop.permute.xlu1 %7276  ;;  %v7274_v61 = vunpack.i.h.bf16 %v7272_v5  ;;  %v7273_v39 = vunpack.i.l.bf16 %v7272_v5 }
 0x2a6   :  { %v7279_v4 = vunpack.i.h.bf16 %v7277_v21  ;;  %v7278_v2 = vunpack.i.l.bf16 %v7277_v21  ;;  %v10422_v35 = vsub.s32 %v4019_v59, %v4021_v31 }
 0x2a7   :  { %v3277_v54 = vsel %vm3246_vm10, %v3212_v53, %v7273_v39  ;;  %v3278_v15 = vsel %vm3246_vm10, %v3213_v14, %v7274_v61 }
 0x2a8   :  { %v7282_v18 = vpop.permute.xlu0 %7281  ;;  %v3309_v0 = vsel %vm3246_vm10, %v3244_v57, %v7278_v2  ;;  %v3310_v51 = vsel %vm3246_vm10, %v3245_v46, %v7279_v4 }
 0x2a9   :  { %v7284_v26 = vunpack.i.h.bf16 %v7282_v18  ;;  %v7283_v45 = vunpack.i.l.bf16 %v7282_v18  ;;  %v7287_v63 = vpop.permute.xlu1 %7286 }
 0x2aa   :  { %v7289_v43 = vunpack.i.h.bf16 %v7287_v63  ;;  %v7288_v49 = vunpack.i.l.bf16 %v7287_v63 }
 0x2ab   :  { %v3340_v33 = vsel %vm3311_vm11, %v3275_v41, %v7283_v45  ;;  %v3341_v29 = vsel %vm3311_vm11, %v3276_v52, %v7284_v26 }
 0x2ac   :  { %v3390_v7 = vpack.c.bf16 %v3341_v29, %v3340_v33  ;;  %v3372_v44 = vsel %vm3311_vm11, %v3307_v30, %v7288_v49  ;;  %v3373_v9 = vsel %vm3311_vm11, %v3308_v20, %v7289_v43  ;;  %v7292_v28 = vpop.permute.xlu0 %7291 }
 0x2ad   :  { %v3406_v58 = vpack.c.bf16 %v3373_v9, %v3372_v44  ;;  %v7294_v22 = vunpack.i.h.bf16 %v7292_v28  ;;  %v7293_v27 = vunpack.i.l.bf16 %v7292_v28  ;;  %v7297_v10 = vpop.permute.xlu1 %7296 }
 0x2ae   :  { %v7299_v8 = vunpack.i.h.bf16 %v7297_v10  ;;  %v7298_v56 = vunpack.i.l.bf16 %v7297_v10  ;;  %5969 = vmatprep.mubr.msk.bf16.mxu0 %vm3430_vm12, %v3390_v7 }
 0x2af   :  { %v3342_v23 = vsel %vm3311_vm11, %v3277_v54, %v7293_v27  ;;  %v3343_v11 = vsel %vm3311_vm11, %v3278_v15, %v7294_v22  ;;  %6001 = vmatprep.mubr.msk.bf16.mxu1 %vm3430_vm12, %v3406_v58 }
 0x2b0   :  { %v3391_v40 = vpack.c.bf16 %v3343_v11, %v3342_v23  ;;  %v3374_v12 = vsel %vm3311_vm11, %v3309_v0, %v7298_v56  ;;  %v3375_v37 = vsel %vm3311_vm11, %v3310_v51, %v7299_v8 }
 0x2b1   :  { %v3407_v48 = vpack.c.bf16 %v3375_v37, %v3374_v12 }
 0x2b2   :  { %5970 = vmatmul.mubr.msk.bf16.gmra.mrb[28].mxu0 %vm3430_vm12, %v3391_v40 }
 0x2b3   :  { %6002 = vmatmul.mubr.msk.bf16.gmra.mrb[28].mxu1 %vm3430_vm12, %v3407_v48 }
 0x2de   :  { %v5943_v60 = vpop.f32.mrb[0].mxu0 }
 0x2df   :  { %v3577_v3 = vadd.f32 %v5943_v60, %v10414_v47  ;;  %v3568_v5 = vpop.f32.mrb[1].mxu0 }
 0x2e0   :  { %v3569_v21 = vadd.f32 %v10414_v47, %v3568_v5  ;;  %v5944_v38 = vpop.f32.mrb[2].mxu0 }
 0x2e1   :  { %v3825_v34 = vmax.f32 %v3577_v3, 0.0  ;;  %v3580_v19 = vadd.f32 %v5944_v38, %v10414_v47  ;;  %v3571_v42 = vpop.f32.mrb[3].mxu0 }
 0x2e2   :  { %v5975_v36 = vpop.f32.mrb[0].mxu1  ;;  %v3823_v24 = vmax.f32 %v3569_v21, 0.0  ;;  %v3572_v6 = vadd.f32 %v10414_v47, %v3571_v42 }
 0x2e3   :  { %v3705_v32 = vadd.f32 %v5975_v36, %v10414_v47  ;;  %v3696_v16 = vpop.f32.mrb[1].mxu1  ;;  %v3889_v62 = vsel %vm3887_vm13, %v3825_v34, -inf  ;;  %v3826_v14 = vmax.f32 %v3580_v19, 0.0 }
 0x2e4   :  { %v3697_v17 = vadd.f32 %v10414_v47, %v3696_v16  ;;  %v5976_v53 = vpop.f32.mrb[2].mxu1  ;;  %v3888_v41 = vsel %vm3887_vm13, %v3823_v24, -inf  ;;  %v3824_v52 = vmax.f32 %v3572_v6, 0.0 }
 0x2e5   :  { %v3857_v18 = vmax.f32 %v3705_v32, 0.0  ;;  %v3708_v30 = vadd.f32 %v5976_v53, %v10414_v47  ;;  %v3699_v20 = vpop.f32.mrb[3].mxu1  ;;  %v3890_v26 = vmax.f32 %v3888_v41, %v3889_v62  ;;  %v3892_v45 = vsel %vm3887_vm13, %v3826_v14, -inf }
 0x2e6   :  { %v3855_v63 = vmax.f32 %v3697_v17, 0.0  ;;  %v10429_v61 = vadd.f32 %v10414_v47, %v3699_v20  ;;  %v3891_v39 = vsel %vm3887_vm13, %v3824_v52, -inf }
 0x2e7   :  { %v3937_v43 = vsel %vm3887_vm13, %v3857_v18, -inf  ;;  %v3858_v49 = vmax.f32 %v3708_v30, 0.0  ;;  %v4016_v4 = vcombine.high %v3890_v26, %v3890_v26  ;;  %v4023_v2 = vrot.slane %v3890_v26, %v10422_v35 }
 0x2e8   :  { %v3893_v33 = vmax.f32 %v3891_v39, %v3892_v45  ;;  %v3936_v29 = vsel %vm3887_vm13, %v3855_v63, -inf  ;;  %v3856_v7 = vmax.f32 %v10429_v61, 0.0 }
 0x2e9   :  { %v10435_v13 = vmax.f32 %v3936_v29, %v3937_v43  ;;  %v10438_v57 = vsel %vm3887_vm13, %v3858_v49, -inf  ;;  %v4030_v44 = vrot.slane %v4016_v4, %v10422_v35  ;;  %v4031_v9 = vcombine.high %v4023_v2, %v4023_v2 }
 0x2ea   :  { %v4689_v28 = vsel %vm4688_vm14, %v4023_v2, -inf  ;;  %v4033_v55 = vcombine.high %v3893_v33, %v3893_v33  ;;  %v4040_v58 = vrot.slane %v3893_v33, %v10422_v35 }
 0x2eb   :  { %v4690_v46 = vrot.slane %v4689_v28, 4  ;;  %v4288_v22 = vcombine.high %v10435_v13, %v10435_v13  ;;  %v10448_v27 = vrot.slane %v10435_v13, %v10422_v35  ;;  %v4032_v10 = vcombine.high %v4030_v44, %v4030_v44 }
 0x2ec   :  { %v4696_v54 = vsel %vm4688_vm14, %v4031_v9, -inf  ;;  %v4703_v15 = vsel %vm4688_vm14, %v4030_v44, -inf  ;;  %v4047_v8 = vrot.slane %v4033_v55, %v10422_v35  ;;  %v4048_v23 = vcombine.high %v4040_v58, %v4040_v58 }
 0x2ed   :  { %v4691_v56 = vmax.f32 %v4689_v28, %v4690_v46  ;;  %v4697_v0 = vrot.slane %v4696_v54, 4  ;;  %v4704_v51 = vrot.slane %v4703_v15, 4  ;;  %v4710_v11 = vsel %vm4688_vm14, %v4032_v10, -inf }
 0x2ee   :  { %v4049_v40 = vcombine.high %v4047_v8, %v4047_v8  ;;  %v4717_v12 = vsel %vm4688_vm14, %v4040_v58, -inf  ;;  %v4731_v37 = vsel %vm4688_vm14, %v4047_v8, -inf  ;;  %v4711_v50 = vrot.slane %v4710_v11, 4 }
 0x2ef   :  { %v4692_v48 = vrot.slane %v4691_v56, 2  ;;  %v4698_v25 = vmax.f32 %v4696_v54, %v4697_v0  ;;  %v4705_v1 = vmax.f32 %v4703_v15, %v4704_v51  ;;  %v4718_v60 = vrot.slane %v4717_v12, 4 }
 0x2f0   :  { %v4724_v3 = vsel %vm4688_vm14, %v4048_v23, -inf  ;;  %v4732_v5 = vrot.slane %v4731_v37, 4  ;;  %v4738_v59 = vsel %vm4688_vm14, %v4049_v40, -inf  ;;  %v4712_v34 = vmax.f32 %v4710_v11, %v4711_v50 }
 0x2f1   :  { %v4693_v31 = vmax.f32 %v4691_v56, %v4692_v48  ;;  %v4699_v21 = vrot.slane %v4698_v25, 2  ;;  %v4706_v38 = vrot.slane %v4705_v1, 2  ;;  %v4719_v19 = vmax.f32 %v4717_v12, %v4718_v60 }
 0x2f2   :  { %v4725_v42 = vrot.slane %v4724_v3, 4  ;;  %v4733_v36 = vmax.f32 %v4731_v37, %v4732_v5  ;;  %v4739_v24 = vrot.slane %v4738_v59, 4  ;;  %v4713_v62 = vrot.slane %v4712_v34, 2 }
 0x2f3   :  { %v4694_v6 = vrot.slane %v4693_v31, 1  ;;  %v4700_v32 = vmax.f32 %v4698_v25, %v4699_v21  ;;  %v4707_v16 = vmax.f32 %v4705_v1, %v4706_v38  ;;  %v4720_v17 = vrot.slane %v4719_v19, 2 }
 0x2f4   :  { %v5947_v14 = vpop.f32.mrb[4].mxu0  ;;  %v4726_v53 = vmax.f32 %v4724_v3, %v4725_v42  ;;  %v4734_v41 = vrot.slane %v4733_v36, 2  ;;  %v4740_v52 = vmax.f32 %v4738_v59, %v4739_v24  ;;  %v4714_v45 = vmax.f32 %v4712_v34, %v4713_v62 }
 0x2f5   :  { %v10458_v18 = vpop.f32.mrb[5].mxu0  ;;  %v4695_v30 = vmax.f32 %v4693_v31, %v4694_v6  ;;  %v4701_v20 = vrot.slane %v4700_v32, 1  ;;  %v4708_v26 = vrot.slane %v4707_v16, 1  ;;  %v4721_v39 = vmax.f32 %v4719_v19, %v4720_v17 }
 0x2f6   :  { %v10460_v63 = vpop.f32.mrb[6].mxu0  ;;  %v4727_v43 = vrot.slane %v4726_v53, 2  ;;  %v4735_v49 = vmax.f32 %v4733_v36, %v4734_v41  ;;  %v4741_v4 = vrot.slane %v4740_v52, 2  ;;  %v4715_v44 = vrot.slane %v4714_v45, 1 }
 0x2f7   :  { %v10462_v2 = vpop.f32.mrb[7].mxu0  ;;  %v10464_v33 = vpop.f32.mrb[4].mxu1  ;;  %v4702_v29 = vmax.f32 %v4700_v32, %v4701_v20  ;;  %v4709_v13 = vmax.f32 %v4707_v16, %v4708_v26  ;;  %v4302_v9 = vrot.slane %v4288_v22, %v10422_v35  ;;  %v4722_v55 = vrot.slane %v4721_v39, 1 }
 0x2f8   :  { %v10467_v28 = vpop.f32.mrb[5].mxu1  ;;  %v4728_v46 = vmax.f32 %v4726_v53, %v4727_v43  ;;  %v4736_v58 = vrot.slane %v4735_v49, 1  ;;  %v4742_v10 = vmax.f32 %v4740_v52, %v4741_v4  ;;  %v4716_v15 = vmax.f32 %v4714_v45, %v4715_v44 }
 0x2f9   :  { %v10469_v54 = vpop.f32.mrb[6].mxu1  ;;  %v5714_v8 = vsel %vm5713_vm15, %v4702_v29, %v4695_v30  ;;  %v4303_v56 = vcombine.high %v10448_v27, %v10448_v27  ;;  %v4304_v0 = vcombine.high %v4302_v9, %v4302_v9  ;;  %v4723_v22 = vmax.f32 %v4721_v39, %v4722_v55 }
 0x2fa   :  { %v10474_v51 = vpop.f32.mrb[7].mxu1  ;;  %v5716_v23 = vsel %vm5715_vm0, %v4709_v13, %v5714_v8  ;;  %v4729_v11 = vrot.slane %v4728_v46, 1  ;;  %v4737_v40 = vmax.f32 %v4735_v49, %v4736_v58  ;;  %v4743_v12 = vrot.slane %v4742_v10, 1 }
 0x2fb   :  { %v5718_v37 = vsel %vm5717_vm1, %v4716_v15, %v5716_v23  ;;  %v5137_v48 = vsel %vm4688_vm14, %v10448_v27, -inf  ;;  %v5144_v25 = vsel %vm4688_vm14, %v4303_v56, -inf  ;;  %v5151_v59 = vsel %vm4688_vm14, %v4302_v9, -inf }
 0x2fc   :  { %v4730_v1 = vmax.f32 %v4728_v46, %v4729_v11  ;;  %v5720_v50 = vsel %vm5719_vm2, %v4723_v22, %v5718_v37  ;;  %v5138_v60 = vrot.slane %v5137_v48, 4  ;;  %v5145_v3 = vrot.slane %v5144_v25, 4 }
 0x2fd   :  { %v4744_v5 = vmax.f32 %v4742_v10, %v4743_v12  ;;  %v5158_v31 = vsel %vm4688_vm14, %v4304_v0, -inf  ;;  %v3939_v21 = vsel %vm3887_vm13, %v3856_v7, -inf  ;;  %v5152_v19 = vrot.slane %v5151_v59, 4 }
 0x2fe   :  { %v5722_v38 = vsel %vm5721_vm3, %v4730_v1, %v5720_v50  ;;  %v5139_v34 = vmax.f32 %v5137_v48, %v5138_v60  ;;  %v5146_v27 = vmax.f32 %v5144_v25, %v5145_v3  ;;  %v5159_v36 = vrot.slane %v5158_v31, 4 }
 0x2ff   :  { %v5724_v42 = vsel %vm5723_vm4, %v4737_v40, %v5722_v38  ;;  %v3941_v24 = vmax.f32 %v3939_v21, %v10438_v57  ;;  %v3593_v6 = vadd.f32 %v5947_v14, %v10414_v47  ;;  %v5153_v17 = vmax.f32 %v5151_v59, %v5152_v19 }
 0x300   :  { %v5726_v32 = vsel %vm5725_vm5, %v4744_v5, %v5724_v42  ;;  %v5140_v16 = vrot.slane %v5139_v34, 2  ;;  %v5147_v62 = vrot.slane %v5146_v27, 2  ;;  %v5160_v61 = vmax.f32 %v5158_v31, %v5159_v36 }
 0x301   :  { %5848 = vst.msk [vmem:[%s11159_s3] sm:$0xff] %vm3887_vm13, %v5726_v32  ;;  %v4305_v7 = vcombine.high %v3941_v24, %v3941_v24  ;;  %v4312_v53 = vrot.slane %v3941_v24, %v10422_v35  ;;  %v3829_v41 = vmax.f32 %v3593_v6, 0.0  ;;  %v5154_v57 = vrot.slane %v5153_v17, 2 }
 0x302   :  { %v5141_v52 = vmax.f32 %v5139_v34, %v5140_v16  ;;  %v5148_v30 = vmax.f32 %v5146_v27, %v5147_v62  ;;  %v3585_v14 = vadd.f32 %v10414_v47, %v10458_v18  ;;  %v5161_v20 = vrot.slane %v5160_v61, 2 }
 0x303   :  { %v4319_v26 = vrot.slane %v4305_v7, %v10422_v35  ;;  %v4320_v45 = vcombine.high %v4312_v53, %v4312_v53  ;;  %v5165_v39 = vsel %vm4688_vm14, %v4312_v53, -inf  ;;  %v5155_v4 = vmax.f32 %v5153_v17, %v5154_v57 }
 0x304   :  { %v5142_v43 = vrot.slane %v5141_v52, 1  ;;  %v5149_v49 = vrot.slane %v5148_v30, 1  ;;  %v5166_v29 = vrot.slane %v5165_v39, 4  ;;  %v5162_v13 = vmax.f32 %v5160_v61, %v5161_v20 }
 0x305   :  { %v4321_v44 = vcombine.high %v4319_v26, %v4319_v26  ;;  %v5172_v9 = vsel %vm4688_vm14, %v4320_v45, -inf  ;;  %v5179_v55 = vsel %vm4688_vm14, %v4319_v26, -inf  ;;  %v5156_v10 = vrot.slane %v5155_v4, 1 }
 0x306   :  { %v5143_v46 = vmax.f32 %v5141_v52, %v5142_v43  ;;  %v5150_v58 = vmax.f32 %v5148_v30, %v5149_v49  ;;  %v5167_v18 = vmax.f32 %v5165_v39, %v5166_v29  ;;  %v5163_v15 = vrot.slane %v5162_v13, 1 }
 0x307   :  { %v5173_v8 = vrot.slane %v5172_v9, 4  ;;  %v5180_v56 = vrot.slane %v5179_v55, 4  ;;  %v5186_v0 = vsel %vm4688_vm14, %v4321_v44, -inf  ;;  %v5157_v23 = vmax.f32 %v5155_v4, %v5156_v10 }
 0x308   :  { %v5776_v22 = vsel %vm5713_vm15, %v5150_v58, %v5143_v46  ;;  %v5168_v11 = vrot.slane %v5167_v18, 2  ;;  %v5187_v40 = vrot.slane %v5186_v0, 4  ;;  %v5164_v12 = vmax.f32 %v5162_v13, %v5163_v15 }
 0x309   :  { %v5174_v37 = vmax.f32 %v5172_v9, %v5173_v8  ;;  %v5181_v48 = vmax.f32 %v5179_v55, %v5180_v56  ;;  %v3895_v25 = vsel %vm3887_vm13, %v3829_v41, -inf  ;;  %v5777_v1 = vsel %vm5715_vm0, %v5157_v23, %v5776_v22 }
 0x30a   :  { %v5169_v50 = vmax.f32 %v5167_v18, %v5168_v11  ;;  %v5188_v60 = vmax.f32 %v5186_v0, %v5187_v40  ;;  %v3827_v3 = vmax.f32 %v3585_v14, 0.0  ;;  %v5778_v21 = vsel %vm5717_vm1, %v5164_v12, %v5777_v1 }
 0x30b   :  { %v5175_v59 = vrot.slane %v5174_v37, 2  ;;  %v5182_v31 = vrot.slane %v5181_v48, 2  ;;  %v3596_v38 = vadd.f32 %v10460_v63, %v10414_v47  ;;  %v10514_v27 = vpop.f32.mrb[8].mxu1  ;;  %v3588_v24 = vadd.f32 %v10414_v47, %v10462_v2 }
 0x30c   :  { %v10507_v5 = vpop.f32.mrb[8].mxu0  ;;  %v5170_v19 = vrot.slane %v5169_v50, 1  ;;  %v5189_v42 = vrot.slane %v5188_v60, 2  ;;  %v3894_v36 = vsel %vm3887_vm13, %v3827_v3, -inf  ;;  %v10521_v32 = vpop.f32.mrb[9].mxu1  ;;  %v3721_v30 = vadd.f32 %v10464_v33, %v10414_v47 }
 0x30d   :  { %v10512_v34 = vpop.f32.mrb[9].mxu0  ;;  %v5176_v16 = vmax.f32 %v5174_v37, %v5175_v59  ;;  %v5183_v62 = vmax.f32 %v5181_v48, %v5182_v31  ;;  %v3896_v17 = vmax.f32 %v3894_v36, %v3895_v25  ;;  %v3830_v61 = vmax.f32 %v3596_v38, 0.0  ;;  %v10525_v7 = vpop.f32.mrb[10].mxu1 }
 0x30e   :  { %v10519_v6 = vpop.f32.mrb[10].mxu0  ;;  %v5171_v53 = vmax.f32 %v5169_v50, %v5170_v19  ;;  %v5190_v41 = vmax.f32 %v5188_v60, %v5189_v42  ;;  %v3828_v52 = vmax.f32 %v3588_v24, 0.0  ;;  %v10529_v57 = vpop.f32.mrb[11].mxu1  ;;  %v3861_v46 = vmax.f32 %v3721_v30, 0.0 }
 0x30f   :  { %v10523_v63 = vpop.f32.mrb[11].mxu0  ;;  %v5177_v2 = vrot.slane %v5176_v16, 1  ;;  %v5184_v14 = vrot.slane %v5183_v62, 1  ;;  %v4050_v20 = vcombine.high %v3896_v17, %v3896_v17  ;;  %v4057_v26 = vrot.slane %v3896_v17, %v10422_v35 }
 0x310   :  { %v5191_v45 = vrot.slane %v5190_v41, 1  ;;  %v5779_v39 = vsel %vm5719_vm2, %v5171_v53, %v5778_v21  ;;  %v3898_v43 = vsel %vm3887_vm13, %v3830_v61, -inf  ;;  %v3897_v49 = vsel %vm3887_vm13, %v3828_v52, -inf }
 0x311   :  { %v5178_v4 = vmax.f32 %v5176_v16, %v5177_v2  ;;  %v5185_v29 = vmax.f32 %v5183_v62, %v5184_v14  ;;  %v4064_v13 = vrot.slane %v4050_v20, %v10422_v35  ;;  %v4065_v44 = vcombine.high %v4057_v26, %v4057_v26 }
 0x312   :  { %v5192_v33 = vmax.f32 %v5190_v41, %v5191_v45  ;;  %v4745_v9 = vsel %vm4688_vm14, %v4057_v26, -inf  ;;  %v3899_v55 = vmax.f32 %v3897_v49, %v3898_v43  ;;  %v3943_v3 = vsel %vm3887_vm13, %v3861_v46, -inf }
 0x313   :  { %v5780_v58 = vsel %vm5721_vm3, %v5178_v4, %v5779_v39  ;;  %v4066_v10 = vcombine.high %v4064_v13, %v4064_v13  ;;  %v4746_v18 = vrot.slane %v4745_v9, 4  ;;  %v4752_v15 = vsel %vm4688_vm14, %v4065_v44, -inf }
 0x314   :  { %v5781_v8 = vsel %vm5723_vm4, %v5185_v29, %v5780_v58  ;;  %v4753_v56 = vrot.slane %v4752_v15, 4  ;;  %v4759_v0 = vsel %vm4688_vm14, %v4064_v13, -inf  ;;  %v4067_v23 = vcombine.high %v3899_v55, %v3899_v55 }
 0x315   :  { %v5782_v22 = vsel %vm5725_vm5, %v5192_v33, %v5781_v8  ;;  %v4747_v11 = vmax.f32 %v4745_v9, %v4746_v18  ;;  %v4760_v40 = vrot.slane %v4759_v0, 4  ;;  %v4766_v12 = vsel %vm4688_vm14, %v4066_v10, -inf }
 0x316   :  { %5856 = vst.msk [vmem:[%s11159_s3 + $0x40] sm:$0xff] %vm3887_vm13, %v5782_v22  ;;  %v4754_v37 = vmax.f32 %v4752_v15, %v4753_v56  ;;  %v4767_v48 = vrot.slane %v4766_v12, 4  ;;  %v4074_v25 = vrot.slane %v3899_v55, %v10422_v35  ;;  %v4081_v1 = vrot.slane %v4067_v23, %v10422_v35 }
 0x317   :  { %v4748_v50 = vrot.slane %v4747_v11, 2  ;;  %v4761_v60 = vmax.f32 %v4759_v0, %v4760_v40  ;;  %v3713_v59 = vadd.f32 %v10414_v47, %v10467_v28 }
 0x318   :  { %v4755_v31 = vrot.slane %v4754_v37, 2  ;;  %v4768_v21 = vmax.f32 %v4766_v12, %v4767_v48  ;;  %v4082_v38 = vcombine.high %v4074_v25, %v4074_v25  ;;  %v4083_v19 = vcombine.high %v4081_v1, %v4081_v1 }
 0x319   :  { %v4749_v42 = vmax.f32 %v4747_v11, %v4748_v50  ;;  %v4762_v36 = vrot.slane %v4761_v60, 2  ;;  %v4773_v24 = vsel %vm4688_vm14, %v4074_v25, -inf  ;;  %v4787_v16 = vsel %vm4688_vm14, %v4081_v1, -inf }
 0x31a   :  { %v4756_v62 = vmax.f32 %v4754_v37, %v4755_v31  ;;  %v4769_v17 = vrot.slane %v4768_v21, 2  ;;  %v4774_v61 = vrot.slane %v4773_v24, 4  ;;  %v4780_v53 = vsel %vm4688_vm14, %v4082_v38, -inf }
 0x31b   :  { %v4750_v41 = vrot.slane %v4749_v42, 1  ;;  %v4763_v52 = vmax.f32 %v4761_v60, %v4762_v36  ;;  %v4781_v30 = vrot.slane %v4780_v53, 4  ;;  %v4788_v2 = vrot.slane %v4787_v16, 4 }
 0x31c   :  { %v4757_v28 = vrot.slane %v4756_v62, 1  ;;  %v4770_v14 = vmax.f32 %v4768_v21, %v4769_v17  ;;  %v4775_v20 = vmax.f32 %v4773_v24, %v4774_v61  ;;  %v4794_v26 = vsel %vm4688_vm14, %v4083_v19, -inf }
 0x31d   :  { %v4751_v45 = vmax.f32 %v4749_v42, %v4750_v41  ;;  %v4764_v39 = vrot.slane %v4763_v52, 1  ;;  %v4782_v43 = vmax.f32 %v4780_v53, %v4781_v30  ;;  %v4789_v49 = vmax.f32 %v4787_v16, %v4788_v2 }
 0x31e   :  { %v4758_v4 = vmax.f32 %v4756_v62, %v4757_v28  ;;  %v4771_v29 = vrot.slane %v4770_v14, 1  ;;  %v4776_v13 = vrot.slane %v4775_v20, 2  ;;  %v4795_v44 = vrot.slane %v4794_v26, 4 }
 0x31f   :  { %v4765_v33 = vmax.f32 %v4763_v52, %v4764_v39  ;;  %v4783_v9 = vrot.slane %v4782_v43, 2  ;;  %v4790_v55 = vrot.slane %v4789_v49, 2  ;;  %v3859_v46 = vmax.f32 %v3713_v59, 0.0 }
 0x320   :  { %v4772_v58 = vmax.f32 %v4770_v14, %v4771_v29  ;;  %v5727_v10 = vsel %vm5713_vm15, %v4758_v4, %v4751_v45  ;;  %v4777_v18 = vmax.f32 %v4775_v20, %v4776_v13  ;;  %v4796_v15 = vmax.f32 %v4794_v26, %v4795_v44 }
 0x321   :  { %v5728_v8 = vsel %vm5715_vm0, %v4765_v33, %v5727_v10  ;;  %v4784_v56 = vmax.f32 %v4782_v43, %v4783_v9  ;;  %v4791_v0 = vmax.f32 %v4789_v49, %v4790_v55  ;;  %v3942_v23 = vsel %vm3887_vm13, %v3859_v46, -inf }
 0x322   :  { %v4778_v22 = vrot.slane %v4777_v18, 1  ;;  %v4797_v11 = vrot.slane %v4796_v15, 2  ;;  %v5729_v40 = vsel %vm5717_vm1, %v4772_v58, %v5728_v8  ;;  %v3944_v12 = vmax.f32 %v3942_v23, %v3943_v3  ;;  %v10568_v59 = vpop.f32.mrb[12].mxu1 }
 0x323   :  { %v4785_v48 = vrot.slane %v4784_v56, 1  ;;  %v4792_v25 = vrot.slane %v4791_v0, 1  ;;  %v3724_v1 = vadd.f32 %v10469_v54, %v10414_v47  ;;  %v3716_v50 = vadd.f32 %v10414_v47, %v10474_v51  ;;  %v10573_v42 = vpop.f32.mrb[13].mxu1 }
 0x324   :  { %v10560_v37 = vpop.f32.mrb[12].mxu0  ;;  %v4779_v31 = vmax.f32 %v4777_v18, %v4778_v22  ;;  %v4798_v21 = vmax.f32 %v4796_v15, %v4797_v11  ;;  %v4322_v38 = vcombine.high %v3944_v12, %v3944_v12  ;;  %v4329_v19 = vrot.slane %v3944_v12, %v10422_v35  ;;  %v10577_v51 = vpop.f32.mrb[14].mxu1 }
 0x325   :  { %v10566_v60 = vpop.f32.mrb[13].mxu0  ;;  %v4786_v36 = vmax.f32 %v4784_v56, %v4785_v48  ;;  %v4793_v24 = vmax.f32 %v4791_v0, %v4792_v25  ;;  %v3862_v16 = vmax.f32 %v3724_v1, 0.0  ;;  %v3860_v54 = vmax.f32 %v3716_v50, 0.0  ;;  %v10581_v52 = vpop.f32.mrb[15].mxu1 }
 0x326   :  { %v10571_v3 = vpop.f32.mrb[14].mxu0  ;;  %v4799_v17 = vrot.slane %v4798_v21, 1  ;;  %v5730_v61 = vsel %vm5719_vm2, %v4779_v31, %v5729_v40  ;;  %v4336_v53 = vrot.slane %v4322_v38, %v10422_v35  ;;  %v4337_v41 = vcombine.high %v4329_v19, %v4329_v19 }
 0x327   :  { %v10575_v62 = vpop.f32.mrb[15].mxu0  ;;  %v5731_v30 = vsel %vm5721_vm3, %v4786_v36, %v5730_v61  ;;  %v5193_v2 = vsel %vm4688_vm14, %v4329_v19, -inf  ;;  %v3946_v28 = vsel %vm3887_vm13, %v3862_v16, -inf  ;;  %v3945_v14 = vsel %vm3887_vm13, %v3860_v54, -inf }
 0x328   :  { %v4800_v20 = vmax.f32 %v4798_v21, %v4799_v17  ;;  %v5732_v26 = vsel %vm5723_vm4, %v4793_v24, %v5731_v30  ;;  %v4338_v45 = vcombine.high %v4336_v53, %v4336_v53  ;;  %v5194_v39 = vrot.slane %v5193_v2, 4 }
 0x329   :  { %v5200_v43 = vsel %vm4688_vm14, %v4337_v41, -inf  ;;  %v5207_v49 = vsel %vm4688_vm14, %v4336_v53, -inf  ;;  %v3947_v4 = vmax.f32 %v3945_v14, %v3946_v28  ;;  %v3609_v29 = vadd.f32 %v10507_v5, %v10414_v47 }
 0x32a   :  { %v5733_v13 = vsel %vm5725_vm5, %v4800_v20, %v5732_v26  ;;  %v5195_v44 = vmax.f32 %v5193_v2, %v5194_v39  ;;  %v5201_v33 = vrot.slane %v5200_v43, 4  ;;  %v5208_v9 = vrot.slane %v5207_v49, 4 }
 0x32b   :  { %5849 = vst.msk [vmem:[%s11159_s3 + $0x8] sm:$0xff] %vm3887_vm13, %v5733_v13  ;;  %v5214_v55 = vsel %vm4688_vm14, %v4338_v45, -inf  ;;  %v4339_v46 = vcombine.high %v3947_v4, %v3947_v4  ;;  %v4346_v58 = vrot.slane %v3947_v4, %v10422_v35  ;;  %v3833_v10 = vmax.f32 %v3609_v29, 0.0 }
 0x32c   :  { %v5196_v18 = vrot.slane %v5195_v44, 2  ;;  %v5202_v15 = vmax.f32 %v5200_v43, %v5201_v33  ;;  %v5209_v8 = vmax.f32 %v5207_v49, %v5208_v9  ;;  %v5215_v5 = vrot.slane %v5214_v55, 4 }
 0x32d   :  { %v4353_v56 = vrot.slane %v4339_v46, %v10422_v35  ;;  %v4354_v0 = vcombine.high %v4346_v58, %v4346_v58  ;;  %v5221_v23 = vsel %vm4688_vm14, %v4346_v58, -inf  ;;  %v3901_v22 = vsel %vm3887_vm13, %v3833_v10, -inf }
 0x32e   :  { %v5197_v11 = vmax.f32 %v5195_v44, %v5196_v18  ;;  %v5203_v40 = vrot.slane %v5202_v15, 2  ;;  %v5210_v12 = vrot.slane %v5209_v8, 2  ;;  %v5216_v48 = vmax.f32 %v5214_v55, %v5215_v5 }
 0x32f   :  { %v4355_v25 = vcombine.high %v4353_v56, %v4353_v56  ;;  %v5222_v1 = vrot.slane %v5221_v23, 4  ;;  %v5228_v50 = vsel %vm4688_vm14, %v4354_v0, -inf  ;;  %v5235_v31 = vsel %vm4688_vm14, %v4353_v56, -inf }
 0x330   :  { %v5198_v21 = vrot.slane %v5197_v11, 1  ;;  %v5204_v38 = vmax.f32 %v5202_v15, %v5203_v40  ;;  %v5211_v19 = vmax.f32 %v5209_v8, %v5210_v12  ;;  %v5217_v36 = vrot.slane %v5216_v48, 2 }
 0x331   :  { %v5223_v24 = vmax.f32 %v5221_v23, %v5222_v1  ;;  %v5229_v16 = vrot.slane %v5228_v50, 4  ;;  %v5236_v54 = vrot.slane %v5235_v31, 4  ;;  %v5242_v17 = vsel %vm4688_vm14, %v4355_v25, -inf }
 0x332   :  { %v5199_v61 = vmax.f32 %v5197_v11, %v5198_v21  ;;  %v5205_v53 = vrot.slane %v5204_v38, 1  ;;  %v5212_v41 = vrot.slane %v5211_v19, 1  ;;  %v5218_v30 = vmax.f32 %v5216_v48, %v5217_v36 }
 0x333   :  { %v5224_v2 = vrot.slane %v5223_v24, 2  ;;  %v5230_v28 = vmax.f32 %v5228_v50, %v5229_v16  ;;  %v5237_v14 = vmax.f32 %v5235_v31, %v5236_v54  ;;  %v5243_v20 = vrot.slane %v5242_v17, 4 }
 0x334   :  { %v5206_v26 = vmax.f32 %v5204_v38, %v5205_v53  ;;  %v5213_v45 = vmax.f32 %v5211_v19, %v5212_v41  ;;  %v5219_v39 = vrot.slane %v5218_v30, 1  ;;  %v3601_v43 = vadd.f32 %v10414_v47, %v10512_v34 }
 0x335   :  { %v5225_v49 = vmax.f32 %v5223_v24, %v5224_v2  ;;  %v5231_v4 = vrot.slane %v5230_v28, 2  ;;  %v5238_v29 = vrot.slane %v5237_v14, 2  ;;  %v5244_v13 = vmax.f32 %v5242_v17, %v5243_v20 }
 0x336   :  { %v5220_v44 = vmax.f32 %v5218_v30, %v5219_v39  ;;  %v5783_v33 = vsel %vm5713_vm15, %v5206_v26, %v5199_v61  ;;  %v3831_v9 = vmax.f32 %v3601_v43, 0.0  ;;  %v3737_v55 = vadd.f32 %v10514_v27, %v10414_v47 }
 0x337   :  { %v5784_v46 = vsel %vm5715_vm0, %v5213_v45, %v5783_v33  ;;  %v5226_v58 = vrot.slane %v5225_v49, 1  ;;  %v5232_v10 = vmax.f32 %v5230_v28, %v5231_v4  ;;  %v5239_v18 = vmax.f32 %v5237_v14, %v5238_v29 }
 0x338   :  { %v5245_v15 = vrot.slane %v5244_v13, 2  ;;  %v5785_v8 = vsel %vm5717_vm1, %v5220_v44, %v5784_v46  ;;  %v3900_v34 = vsel %vm3887_vm13, %v3831_v9, -inf  ;;  %v3865_v5 = vmax.f32 %v3737_v55, 0.0 }
 0x339   :  { %v5227_v56 = vmax.f32 %v5225_v49, %v5226_v58  ;;  %v5233_v0 = vrot.slane %v5232_v10, 1  ;;  %v5240_v23 = vrot.slane %v5239_v18, 1  ;;  %v3902_v11 = vmax.f32 %v3900_v34, %v3901_v22 }
 0x33a   :  { %v5246_v40 = vmax.f32 %v5244_v13, %v5245_v15  ;;  %v3949_v12 = vsel %vm3887_vm13, %v3865_v5, -inf  ;;  %v3612_v27 = vadd.f32 %v10519_v6, %v10414_v47  ;;  %v3729_v48 = vadd.f32 %v10414_v47, %v10521_v32  ;;  %v10623_v19 = vpop.f32.mrb[16].mxu1 }
 0x33b   :  { %v5234_v1 = vmax.f32 %v5232_v10, %v5233_v0  ;;  %v5241_v50 = vmax.f32 %v5239_v18, %v5240_v23  ;;  %v5786_v31 = vsel %vm5719_vm2, %v5227_v56, %v5785_v8  ;;  %v4084_v21 = vcombine.high %v3902_v11, %v3902_v11  ;;  %v10628_v54 = vpop.f32.mrb[17].mxu1 }
 0x33c   :  { %v10618_v25 = vpop.f32.mrb[16].mxu0  ;;  %v5247_v22 = vrot.slane %v5246_v40, 1  ;;  %v4091_v36 = vrot.slane %v3902_v11, %v10422_v35  ;;  %v3834_v24 = vmax.f32 %v3612_v27, 0.0  ;;  %v3863_v16 = vmax.f32 %v3729_v48, 0.0  ;;  %v10638_v30 = vpop.f32.mrb[18].mxu1 }
 0x33d   :  { %v10621_v38 = vpop.f32.mrb[17].mxu0  ;;  %v5787_v32 = vsel %vm5721_vm3, %v5234_v1, %v5786_v31  ;;  %v4098_v17 = vrot.slane %v4084_v21, %v10422_v35  ;;  %v3604_v61 = vadd.f32 %v10414_v47, %v10523_v63  ;;  %v3740_v53 = vadd.f32 %v10525_v7, %v10414_v47  ;;  %v10642_v26 = vpop.f32.mrb[19].mxu1 }
 0x33e   :  { %v10626_v6 = vpop.f32.mrb[18].mxu0  ;;  %v5248_v2 = vmax.f32 %v5246_v40, %v5247_v22  ;;  %v5788_v28 = vsel %vm5723_vm4, %v5241_v50, %v5787_v32  ;;  %v4099_v14 = vcombine.high %v4091_v36, %v4091_v36  ;;  %v4801_v20 = vsel %vm4688_vm14, %v4091_v36, -inf }
 0x33f   :  { %v10636_v41 = vpop.f32.mrb[19].mxu0  ;;  %v4100_v45 = vcombine.high %v4098_v17, %v4098_v17  ;;  %v4802_v39 = vrot.slane %v4801_v20, 4  ;;  %v4815_v43 = vsel %vm4688_vm14, %v4098_v17, -inf  ;;  %v3904_v63 = vsel %vm3887_vm13, %v3834_v24, -inf }
 0x340   :  { %v5789_v47 = vsel %vm5725_vm5, %v5248_v2, %v5788_v28  ;;  %v4808_v7 = vsel %vm4688_vm14, %v4099_v14, -inf  ;;  %v4816_v49 = vrot.slane %v4815_v43, 4  ;;  %v3948_v4 = vsel %vm3887_vm13, %v3863_v16, -inf }
 0x341   :  { %5857 = vst.msk [vmem:[%s11159_s3 + $0x48] sm:$0xff] %vm3887_vm13, %v5789_v47  ;;  %v4803_v29 = vmax.f32 %v4801_v20, %v4802_v39  ;;  %v4809_v13 = vrot.slane %v4808_v7, 4  ;;  %v4822_v44 = vsel %vm4688_vm14, %v4100_v45, -inf  ;;  %v3950_v33 = vmax.f32 %v3948_v4, %v3949_v12 }
 0x342   :  { %v4817_v9 = vmax.f32 %v4815_v43, %v4816_v49  ;;  %v4823_v55 = vrot.slane %v4822_v44, 4  ;;  %v3832_v46 = vmax.f32 %v3604_v61, 0.0  ;;  %v3866_v58 = vmax.f32 %v3740_v53, 0.0 }
 0x343   :  { %v4804_v10 = vrot.slane %v4803_v29, 2  ;;  %v4810_v18 = vmax.f32 %v4808_v7, %v4809_v13  ;;  %v4356_v15 = vcombine.high %v3950_v33, %v3950_v33  ;;  %v4363_v8 = vrot.slane %v3950_v33, %v10422_v35 }
 0x344   :  { %v4818_v34 = vrot.slane %v4817_v9, 2  ;;  %v4824_v5 = vmax.f32 %v4822_v44, %v4823_v55  ;;  %v3903_v56 = vsel %vm3887_vm13, %v3832_v46, -inf  ;;  %v10657_v0 = vsel %vm3887_vm13, %v3866_v58, -inf }
 0x345   :  { %v4805_v23 = vmax.f32 %v4803_v29, %v4804_v10  ;;  %v4811_v11 = vrot.slane %v4810_v18, 2  ;;  %v4370_v40 = vrot.slane %v4356_v15, %v10422_v35  ;;  %v4371_v12 = vcombine.high %v4363_v8, %v4363_v8 }
 0x346   :  { %v4819_v27 = vmax.f32 %v4817_v9, %v4818_v34  ;;  %v4825_v48 = vrot.slane %v4824_v5, 2  ;;  %v5249_v1 = vsel %vm4688_vm14, %v4363_v8, -inf  ;;  %v3905_v50 = vmax.f32 %v3903_v56, %v3904_v63 }
 0x347   :  { %v4806_v31 = vrot.slane %v4805_v23, 1  ;;  %v4812_v21 = vmax.f32 %v4810_v18, %v4811_v11  ;;  %v4372_v22 = vcombine.high %v4370_v40, %v4370_v40  ;;  %v5250_v36 = vrot.slane %v5249_v1, 4 }
 0x348   :  { %v4820_v24 = vrot.slane %v4819_v27, 1  ;;  %v4826_v16 = vmax.f32 %v4824_v5, %v4825_v48  ;;  %v5256_v32 = vsel %vm4688_vm14, %v4371_v12, -inf  ;;  %v5263_v17 = vsel %vm4688_vm14, %v4370_v40, -inf }
 0x349   :  { %v4807_v61 = vmax.f32 %v4805_v23, %v4806_v31  ;;  %v4813_v53 = vrot.slane %v4812_v21, 1  ;;  %v5251_v2 = vmax.f32 %v5249_v1, %v5250_v36  ;;  %v5257_v28 = vrot.slane %v5256_v32, 4 }
 0x34a   :  { %v4821_v14 = vmax.f32 %v4819_v27, %v4820_v24  ;;  %v4827_v20 = vrot.slane %v4826_v16, 1  ;;  %v5264_v45 = vrot.slane %v5263_v17, 4  ;;  %v5270_v39 = vsel %vm4688_vm14, %v4372_v22, -inf }
 0x34b   :  { %v4814_v43 = vmax.f32 %v4812_v21, %v4813_v53  ;;  %v5252_v63 = vrot.slane %v5251_v2, 2  ;;  %v5258_v47 = vmax.f32 %v5256_v32, %v5257_v28  ;;  %v5271_v7 = vrot.slane %v5270_v39, 4 }
 0x34c   :  { %v4828_v49 = vmax.f32 %v4826_v16, %v4827_v20  ;;  %v5265_v4 = vmax.f32 %v5263_v17, %v5264_v45  ;;  %v4101_v29 = vcombine.high %v3905_v50, %v3905_v50  ;;  %v4108_v13 = vrot.slane %v3905_v50, %v10422_v35 }
 0x34d   :  { %v5734_v44 = vsel %vm5713_vm15, %v4814_v43, %v4807_v61  ;;  %v5253_v33 = vmax.f32 %v5251_v2, %v5252_v63  ;;  %v5259_v9 = vrot.slane %v5258_v47, 2  ;;  %v5272_v55 = vmax.f32 %v5270_v39, %v5271_v7 }
 0x34e   :  { %v5735_v46 = vsel %vm5715_vm0, %v4821_v14, %v5734_v44  ;;  %v5266_v58 = vrot.slane %v5265_v4, 2  ;;  %v4115_v10 = vrot.slane %v4101_v29, %v10422_v35  ;;  %v4116_v18 = vcombine.high %v4108_v13, %v4108_v13 }
 0x34f   :  { %v5254_v15 = vrot.slane %v5253_v33, 1  ;;  %v5260_v8 = vmax.f32 %v5258_v47, %v5259_v9  ;;  %v5273_v34 = vrot.slane %v5272_v55, 2  ;;  %v4829_v5 = vsel %vm4688_vm14, %v4108_v13, -inf }
 0x350   :  { %v5267_v56 = vmax.f32 %v5265_v4, %v5266_v58  ;;  %v4117_v23 = vcombine.high %v4115_v10, %v4115_v10  ;;  %v4830_v11 = vrot.slane %v4829_v5, 4  ;;  %v4836_v40 = vsel %vm4688_vm14, %v4116_v18, -inf }
 0x351   :  { %v5255_v12 = vmax.f32 %v5253_v33, %v5254_v15  ;;  %v5261_v27 = vrot.slane %v5260_v8, 1  ;;  %v5274_v48 = vmax.f32 %v5272_v55, %v5273_v34  ;;  %v4837_v1 = vrot.slane %v4836_v40, 4 }
 0x352   :  { %v5268_v50 = vrot.slane %v5267_v56, 1  ;;  %v4831_v31 = vmax.f32 %v4829_v5, %v4830_v11  ;;  %v4843_v21 = vsel %vm4688_vm14, %v4115_v10, -inf  ;;  %v4850_v22 = vsel %vm4688_vm14, %v4117_v23, -inf }
 0x353   :  { %v5262_v24 = vmax.f32 %v5260_v8, %v5261_v27  ;;  %v5275_v16 = vrot.slane %v5274_v48, 1  ;;  %v4838_v32 = vmax.f32 %v4836_v40, %v4837_v1  ;;  %v4844_v17 = vrot.slane %v4843_v21, 4 }
 0x354   :  { %v10672_v36 = vpop.f32.mrb[20].mxu0  ;;  %v10676_v53 = vpop.f32.mrb[20].mxu1  ;;  %v5269_v2 = vmax.f32 %v5267_v56, %v5268_v50  ;;  %v4832_v28 = vrot.slane %v4831_v31, 2  ;;  %v4851_v14 = vrot.slane %v4850_v22, 4  ;;  %v5736_v20 = vsel %vm5717_vm1, %v4828_v49, %v5735_v46  ;;  %v10692_v49 = vld [vmem:[%s11158_s2] ss:$0 sm:$0xff] }
 0x355   :  { %v10674_v61 = vpop.f32.mrb[21].mxu0  ;;  %v10681_v39 = vpop.f32.mrb[21].mxu1  ;;  %v5276_v43 = vmax.f32 %v5274_v48, %v5275_v16  ;;  %v5790_v63 = vsel %vm5713_vm15, %v5262_v24, %v5255_v12  ;;  %v4839_v47 = vrot.slane %v4838_v32, 2  ;;  %v4845_v7 = vmax.f32 %v4843_v21, %v4844_v17 }
 0x356   :  { %v10679_v45 = vpop.f32.mrb[22].mxu0  ;;  %v10686_v29 = vpop.f32.mrb[22].mxu1  ;;  %v5791_v13 = vsel %vm5715_vm0, %v5269_v2, %v5790_v63  ;;  %v4833_v44 = vmax.f32 %v4831_v31, %v4832_v28  ;;  %v4852_v33 = vmax.f32 %v4850_v22, %v4851_v14  ;;  %v3732_v9 = vadd.f32 %v10692_v49, %v10529_v57 }
 0x357   :  { %v10684_v4 = vpop.f32.mrb[23].mxu0  ;;  %v10696_v55 = vpop.f32.mrb[23].mxu1  ;;  %v4840_v46 = vmax.f32 %v4838_v32, %v4839_v47  ;;  %v4846_v58 = vrot.slane %v4845_v7, 2  ;;  %v10699_v10 = vsel %vm5717_vm1, %v5276_v43, %v5791_v13  ;;  %v3625_v18 = vadd.f32 %v10692_v49, %v10560_v37 }
 0x358   :  { %v4834_v15 = vrot.slane %v4833_v44, 1  ;;  %v4853_v8 = vrot.slane %v4852_v33, 2  ;;  %v3864_v34 = vmax.f32 %v3732_v9, 0.0  ;;  %v3617_v5 = vadd.f32 %v10692_v49, %v10566_v60 }
 0x359   :  { %v4841_v56 = vrot.slane %v4840_v46, 1  ;;  %v4847_v23 = vmax.f32 %v4845_v7, %v4846_v58  ;;  %v3837_v11 = vmax.f32 %v3625_v18, 0.0  ;;  %v3753_v57 = vadd.f32 %v10692_v49, %v10568_v59 }
 0x35a   :  { %v4835_v40 = vmax.f32 %v4833_v44, %v4834_v15  ;;  %v4854_v12 = vmax.f32 %v4852_v33, %v4853_v8  ;;  %v3951_v27 = vsel %vm3887_vm13, %v3864_v34, -inf  ;;  %v3835_v48 = vmax.f32 %v3617_v5, 0.0 }
 0x35b   :  { %v4842_v1 = vmax.f32 %v4840_v46, %v4841_v56  ;;  %v4848_v50 = vrot.slane %v4847_v23, 1  ;;  %v3953_v37 = vmax.f32 %v3951_v27, %v10657_v0  ;;  %v3907_v31 = vsel %vm3887_vm13, %v3837_v11, -inf }
 0x35c   :  { %v4855_v21 = vrot.slane %v4854_v12, 1  ;;  %v5737_v60 = vsel %vm5719_vm2, %v4835_v40, %v5736_v20  ;;  %v3906_v22 = vsel %vm3887_vm13, %v3835_v48, -inf  ;;  %v3869_v24 = vmax.f32 %v3753_v57, 0.0 }
 0x35d   :  { %v4849_v16 = vmax.f32 %v4847_v23, %v4848_v50  ;;  %v5738_v59 = vsel %vm5721_vm3, %v4842_v1, %v5737_v60  ;;  %v4373_v32 = vcombine.high %v3953_v37, %v3953_v37  ;;  %v4380_v17 = vrot.slane %v3953_v37, %v10422_v35 }
 0x35e   :  { %v4856_v2 = vmax.f32 %v4854_v12, %v4855_v21  ;;  %v3908_v28 = vmax.f32 %v3906_v22, %v3907_v31  ;;  %v10715_v14 = vsel %vm3887_vm13, %v3869_v24, -inf  ;;  %v3628_v0 = vadd.f32 %v10692_v49, %v10571_v3 }
 0x35f   :  { %v5739_v43 = vsel %vm5723_vm4, %v4849_v16, %v5738_v59  ;;  %v4387_v20 = vrot.slane %v4373_v32, %v10422_v35  ;;  %v4388_v63 = vcombine.high %v4380_v17, %v4380_v17  ;;  %v5277_v47 = vsel %vm4688_vm14, %v4380_v17, -inf }
 0x360   :  { %v5740_v7 = vsel %vm5725_vm5, %v4856_v2, %v5739_v43  ;;  %v5278_v13 = vrot.slane %v5277_v47, 4  ;;  %v4118_v44 = vcombine.high %v3908_v28, %v3908_v28  ;;  %v4125_v33 = vrot.slane %v3908_v28, %v10422_v35 }
 0x361   :  { %5850 = vst.msk [vmem:[%s11159_s3 + $0x10] sm:$0xff] %vm3887_vm13, %v5740_v7  ;;  %v4389_v9 = vcombine.high %v4387_v20, %v4387_v20  ;;  %v5284_v3 = vsel %vm4688_vm14, %v4388_v63, -inf  ;;  %v5291_v46 = vsel %vm4688_vm14, %v4387_v20, -inf  ;;  %v3838_v58 = vmax.f32 %v3628_v0, 0.0 }
 0x362   :  { %v5279_v18 = vmax.f32 %v5277_v47, %v5278_v13  ;;  %v5285_v15 = vrot.slane %v5284_v3, 4  ;;  %v5292_v8 = vrot.slane %v5291_v46, 4  ;;  %v4132_v34 = vrot.slane %v4118_v44, %v10422_v35 }
 0x363   :  { %v5298_v5 = vsel %vm4688_vm14, %v4389_v9, -inf  ;;  %v4133_v56 = vcombine.high %v4125_v33, %v4125_v33  ;;  %v4857_v23 = vsel %vm4688_vm14, %v4125_v33, -inf  ;;  %v10734_v11 = vsel %vm3887_vm13, %v3838_v58, -inf }
 0x364   :  { %v5280_v57 = vrot.slane %v5279_v18, 2  ;;  %v5286_v40 = vmax.f32 %v5284_v3, %v5285_v15  ;;  %v5293_v12 = vmax.f32 %v5291_v46, %v5292_v8  ;;  %v5299_v27 = vrot.slane %v5298_v5, 4 }
 0x365   :  { %v4134_v48 = vcombine.high %v4132_v34, %v4132_v34  ;;  %v4858_v1 = vrot.slane %v4857_v23, 4  ;;  %v4864_v50 = vsel %vm4688_vm14, %v4133_v56, -inf  ;;  %v4871_v37 = vsel %vm4688_vm14, %v4132_v34, -inf }
 0x366   :  { %v5281_v31 = vmax.f32 %v5279_v18, %v5280_v57  ;;  %v5287_v21 = vrot.slane %v5286_v40, 2  ;;  %v5294_v60 = vrot.slane %v5293_v12, 2  ;;  %v5300_v22 = vmax.f32 %v5298_v5, %v5299_v27 }
 0x367   :  { %v4859_v24 = vmax.f32 %v4857_v23, %v4858_v1  ;;  %v4865_v16 = vrot.slane %v4864_v50, 4  ;;  %v4872_v59 = vrot.slane %v4871_v37, 4  ;;  %v4878_v32 = vsel %vm4688_vm14, %v4134_v48, -inf }
 0x368   :  { %v5282_v17 = vrot.slane %v5281_v31, 1  ;;  %v5288_v2 = vmax.f32 %v5286_v40, %v5287_v21  ;;  %v5295_v28 = vmax.f32 %v5293_v12, %v5294_v60  ;;  %v5301_v0 = vrot.slane %v5300_v22, 2 }
 0x369   :  { %v4860_v43 = vrot.slane %v4859_v24, 2  ;;  %v4866_v20 = vmax.f32 %v4864_v50, %v4865_v16  ;;  %v4873_v63 = vmax.f32 %v4871_v37, %v4872_v59  ;;  %v4879_v47 = vrot.slane %v4878_v32, 4 }
 0x36a   :  { %v5283_v7 = vmax.f32 %v5281_v31, %v5282_v17  ;;  %v5289_v13 = vrot.slane %v5288_v2, 1  ;;  %v5296_v44 = vrot.slane %v5295_v28, 1  ;;  %v5302_v33 = vmax.f32 %v5300_v22, %v5301_v0 }
 0x36b   :  { %v4861_v3 = vmax.f32 %v4859_v24, %v4860_v43  ;;  %v4867_v46 = vrot.slane %v4866_v20, 2  ;;  %v4874_v58 = vrot.slane %v4873_v63, 2  ;;  %v4880_v18 = vmax.f32 %v4878_v32, %v4879_v47 }
 0x36c   :  { %v5290_v34 = vmax.f32 %v5288_v2, %v5289_v13  ;;  %v5297_v5 = vmax.f32 %v5295_v28, %v5296_v44  ;;  %v5303_v56 = vrot.slane %v5302_v33, 1  ;;  %v5793_v23 = vsel %vm5719_vm2, %v5283_v7, %v10699_v10 }
 0x36d   :  { %v10739_v9 = vpop.f32.mrb[24].mxu0  ;;  %v4862_v12 = vrot.slane %v4861_v3, 1  ;;  %v4868_v27 = vmax.f32 %v4866_v20, %v4867_v46  ;;  %v4875_v48 = vmax.f32 %v4873_v63, %v4874_v58  ;;  %v4881_v1 = vrot.slane %v4880_v18, 2 }
 0x36e   :  { %v10741_v15 = vpop.f32.mrb[25].mxu0  ;;  %v10743_v8 = vpop.f32.mrb[24].mxu1  ;;  %v5304_v37 = vmax.f32 %v5302_v33, %v5303_v56  ;;  %v5794_v31 = vsel %vm5721_vm3, %v5290_v34, %v5793_v23  ;;  %v3745_v21 = vadd.f32 %v10692_v49, %v10573_v42  ;;  %v3620_v60 = vadd.f32 %v10692_v49, %v10575_v62 }
 0x36f   :  { %v10747_v57 = vpop.f32.mrb[26].mxu0  ;;  %v10749_v40 = vpop.f32.mrb[25].mxu1  ;;  %v5795_v10 = vsel %vm5723_vm4, %v5297_v5, %v5794_v31  ;;  %v4863_v22 = vmax.f32 %v4861_v3, %v4862_v12  ;;  %v4869_v24 = vrot.slane %v4868_v27, 1  ;;  %v4876_v16 = vrot.slane %v4875_v48, 1 }
 0x370   :  { %v10751_v50 = vpop.f32.mrb[27].mxu0  ;;  %v5796_v59 = vsel %vm5725_vm5, %v5304_v37, %v5795_v10  ;;  %v4882_v32 = vmax.f32 %v4880_v18, %v4881_v1  ;;  %v3867_v17 = vmax.f32 %v3745_v21, 0.0  ;;  %v3836_v2 = vmax.f32 %v3620_v60, 0.0  ;;  %v10776_v58 = vpop.f32.mrb[26].mxu1 }
 0x371   :  { %5858 = vst.msk [vmem:[%s11159_s3 + $0x50] sm:$0xff] %vm3887_vm13, %v5796_v59  ;;  %v4870_v28 = vmax.f32 %v4868_v27, %v4869_v24  ;;  %v4877_v42 = vmax.f32 %v4875_v48, %v4876_v16  ;;  %v3756_v62 = vadd.f32 %v10692_v49, %v10577_v51  ;;  %v3748_v0 = vadd.f32 %v10692_v49, %v10581_v52 }
 0x372   :  { %v4883_v43 = vrot.slane %v4882_v32, 1  ;;  %v3954_v20 = vsel %vm3887_vm13, %v3867_v17, -inf  ;;  %v3909_v63 = vsel %vm3887_vm13, %v3836_v2, -inf  ;;  %v3641_v47 = vadd.f32 %v10692_v49, %v10618_v25 }
 0x373   :  { %v5741_v7 = vsel %vm5713_vm15, %v4870_v28, %v4863_v22  ;;  %v3956_v13 = vmax.f32 %v3954_v20, %v10715_v14  ;;  %v3911_v44 = vmax.f32 %v3909_v63, %v10734_v11  ;;  %v3870_v33 = vmax.f32 %v3756_v62, 0.0 }
 0x374   :  { %v4884_v3 = vmax.f32 %v4882_v32, %v4883_v43  ;;  %v5742_v51 = vsel %vm5715_vm0, %v4877_v42, %v5741_v7  ;;  %v3868_v46 = vmax.f32 %v3748_v0, 0.0  ;;  %v3841_v52 = vmax.f32 %v3641_v47, 0.0 }
 0x375   :  { %v4390_v18 = vcombine.high %v3956_v13, %v3956_v13  ;;  %v4397_v34 = vrot.slane %v3956_v13, %v10422_v35  ;;  %v4135_v5 = vcombine.high %v3911_v44, %v3911_v44  ;;  %v4142_v25 = vrot.slane %v3911_v44, %v10422_v35 }
 0x376   :  { %v10781_v56 = vsel %vm5717_vm1, %v4884_v3, %v5742_v51  ;;  %v3958_v14 = vsel %vm3887_vm13, %v3870_v33, -inf  ;;  %v3957_v11 = vsel %vm3887_vm13, %v3868_v46, -inf  ;;  %v10786_v23 = vsel %vm3887_vm13, %v3841_v52, -inf }
 0x377   :  { %v4404_v12 = vrot.slane %v4390_v18, %v10422_v35  ;;  %v4405_v27 = vcombine.high %v4397_v34, %v4397_v34  ;;  %v5305_v48 = vsel %vm4688_vm14, %v4397_v34, -inf  ;;  %v4149_v1 = vrot.slane %v4135_v5, %v10422_v35 }
 0x378   :  { %v5306_v37 = vrot.slane %v5305_v48, 4  ;;  %v4150_v31 = vcombine.high %v4142_v25, %v4142_v25  ;;  %v4885_v21 = vsel %vm4688_vm14, %v4142_v25, -inf  ;;  %v3959_v60 = vmax.f32 %v3957_v11, %v3958_v14 }
 0x379   :  { %v4406_v10 = vcombine.high %v4404_v12, %v4404_v12  ;;  %v5312_v22 = vsel %vm4688_vm14, %v4405_v27, -inf  ;;  %v5319_v24 = vsel %vm4688_vm14, %v4404_v12, -inf  ;;  %v4151_v16 = vcombine.high %v4149_v1, %v4149_v1 }
 0x37a   :  { %v5307_v59 = vmax.f32 %v5305_v48, %v5306_v37  ;;  %v5313_v32 = vrot.slane %v5312_v22, 4  ;;  %v5320_v17 = vrot.slane %v5319_v24, 4  ;;  %v4886_v2 = vrot.slane %v4885_v21, 4 }
 0x37b   :  { %v5326_v28 = vsel %vm4688_vm14, %v4406_v10, -inf  ;;  %v4892_v42 = vsel %vm4688_vm14, %v4150_v31, -inf  ;;  %v4899_v62 = vsel %vm4688_vm14, %v4149_v1, -inf  ;;  %v4906_v0 = vsel %vm4688_vm14, %v4151_v16, -inf }
 0x37c   :  { %v5308_v43 = vrot.slane %v5307_v59, 2  ;;  %v5314_v20 = vmax.f32 %v5312_v22, %v5313_v32  ;;  %v5321_v63 = vmax.f32 %v5319_v24, %v5320_v17  ;;  %v5327_v47 = vrot.slane %v5326_v28, 4 }
 0x37d   :  { %v4887_v7 = vmax.f32 %v4885_v21, %v4886_v2  ;;  %v4893_v13 = vrot.slane %v4892_v42, 4  ;;  %v4900_v44 = vrot.slane %v4899_v62, 4  ;;  %v4907_v33 = vrot.slane %v4906_v0, 4  ;;  %v10798_v2 = vpop.f32.mrb[27].mxu1 }
 0x37e   :  { %v5309_v3 = vmax.f32 %v5307_v59, %v5308_v43  ;;  %v5315_v51 = vrot.slane %v5314_v20, 2  ;;  %v5322_v46 = vrot.slane %v5321_v63, 2  ;;  %v5328_v52 = vmax.f32 %v5326_v28, %v5327_v47 }
 0x37f   :  { %v4888_v18 = vrot.slane %v4887_v7, 2  ;;  %v4894_v34 = vmax.f32 %v4892_v42, %v4893_v13  ;;  %v4901_v5 = vmax.f32 %v4899_v62, %v4900_v44  ;;  %v4908_v25 = vmax.f32 %v4906_v0, %v4907_v33 }
 0x380   :  { %v5310_v14 = vrot.slane %v5309_v3, 1  ;;  %v5316_v11 = vmax.f32 %v5314_v20, %v5315_v51  ;;  %v5323_v12 = vmax.f32 %v5321_v63, %v5322_v46  ;;  %v5329_v27 = vrot.slane %v5328_v52, 2 }
 0x381   :  { %v4889_v48 = vmax.f32 %v4887_v7, %v4888_v18  ;;  %v4895_v1 = vrot.slane %v4894_v34, 2  ;;  %v4902_v37 = vrot.slane %v4901_v5, 2  ;;  %v4909_v31 = vrot.slane %v4908_v25, 2 }
 0x382   :  { %v5311_v21 = vmax.f32 %v5309_v3, %v5310_v14  ;;  %v5317_v10 = vrot.slane %v5316_v11, 1  ;;  %v5324_v22 = vrot.slane %v5323_v12, 1  ;;  %v5330_v24 = vmax.f32 %v5328_v52, %v5329_v27 }
 0x383   :  { %v4890_v16 = vrot.slane %v4889_v48, 1  ;;  %v4896_v59 = vmax.f32 %v4894_v34, %v4895_v1  ;;  %v4903_v32 = vmax.f32 %v4901_v5, %v4902_v37  ;;  %v4910_v17 = vmax.f32 %v4908_v25, %v4909_v31 }
 0x384   :  { %v5318_v28 = vmax.f32 %v5316_v11, %v5317_v10  ;;  %v5325_v42 = vmax.f32 %v5323_v12, %v5324_v22  ;;  %v5331_v62 = vrot.slane %v5330_v24, 1  ;;  %v4407_v0 = vcombine.high %v3959_v60, %v3959_v60 }
 0x385   :  { %v4891_v43 = vmax.f32 %v4889_v48, %v4890_v16  ;;  %v4897_v20 = vrot.slane %v4896_v59, 1  ;;  %v4904_v63 = vrot.slane %v4903_v32, 1  ;;  %v4911_v47 = vrot.slane %v4910_v17, 1 }
 0x386   :  { %v5332_v7 = vmax.f32 %v5330_v24, %v5331_v62  ;;  %v5797_v13 = vsel %vm5713_vm15, %v5318_v28, %v5311_v21  ;;  %v4414_v44 = vrot.slane %v3959_v60, %v10422_v35  ;;  %v4421_v33 = vrot.slane %v4407_v0, %v10422_v35 }
 0x387   :  { %v5798_v3 = vsel %vm5715_vm0, %v5325_v42, %v5797_v13  ;;  %v4898_v51 = vmax.f32 %v4896_v59, %v4897_v20  ;;  %v4905_v46 = vmax.f32 %v4903_v32, %v4904_v63  ;;  %v4912_v52 = vmax.f32 %v4910_v17, %v4911_v47 }
 0x388   :  { %v5744_v18 = vsel %vm5719_vm2, %v4891_v43, %v10781_v56  ;;  %v4422_v34 = vcombine.high %v4414_v44, %v4414_v44  ;;  %v4423_v5 = vcombine.high %v4421_v33, %v4421_v33  ;;  %v5333_v25 = vsel %vm4688_vm14, %v4414_v44, -inf }
 0x389   :  { %v5745_v14 = vsel %vm5721_vm3, %v4898_v51, %v5744_v18  ;;  %v5334_v11 = vrot.slane %v5333_v25, 4  ;;  %v5347_v12 = vsel %vm4688_vm14, %v4421_v33, -inf  ;;  %v5799_v60 = vsel %vm5717_vm1, %v5332_v7, %v5798_v3 }
 0x38a   :  { %v5746_v27 = vsel %vm5723_vm4, %v4905_v46, %v5745_v14  ;;  %v5340_v48 = vsel %vm4688_vm14, %v4422_v34, -inf  ;;  %v5348_v1 = vrot.slane %v5347_v12, 4  ;;  %v5354_v37 = vsel %vm4688_vm14, %v4423_v5, -inf }
 0x38b   :  { %v5747_v56 = vsel %vm5725_vm5, %v4912_v52, %v5746_v27  ;;  %v5335_v31 = vmax.f32 %v5333_v25, %v5334_v11  ;;  %v5341_v21 = vrot.slane %v5340_v48, 4  ;;  %v5355_v10 = vrot.slane %v5354_v37, 4 }
 0x38c   :  { %5851 = vst.msk [vmem:[%s11159_s3 + $0x18] sm:$0xff] %vm3887_vm13, %v5747_v56  ;;  %v5349_v22 = vmax.f32 %v5347_v12, %v5348_v1  ;;  %v3633_v24 = vadd.f32 %v10692_v49, %v10621_v38  ;;  %v3769_v16 = vadd.f32 %v10692_v49, %v10623_v19  ;;  %v3644_v59 = vadd.f32 %v10692_v49, %v10626_v6 }
 0x38d   :  { %v5336_v32 = vrot.slane %v5335_v31, 2  ;;  %v5342_v17 = vmax.f32 %v5340_v48, %v5341_v21  ;;  %v5356_v28 = vmax.f32 %v5354_v37, %v5355_v10  ;;  %v3761_v42 = vadd.f32 %v10692_v49, %v10628_v54 }
 0x38e   :  { %v5350_v62 = vrot.slane %v5349_v22, 2  ;;  %v3839_v0 = vmax.f32 %v3633_v24, 0.0  ;;  %v3873_v43 = vmax.f32 %v3769_v16, 0.0  ;;  %v3842_v20 = vmax.f32 %v3644_v59, 0.0 }
 0x38f   :  { %v5337_v63 = vmax.f32 %v5335_v31, %v5336_v32  ;;  %v5343_v47 = vrot.slane %v5342_v17, 2  ;;  %v5357_v7 = vrot.slane %v5356_v28, 2  ;;  %v3871_v38 = vmax.f32 %v3761_v42, 0.0  ;;  %v10849_v32 = vpop.f32.mrb[28].mxu0 }
 0x390   :  { %v5351_v13 = vmax.f32 %v5349_v22, %v5350_v62  ;;  %v3912_v19 = vsel %vm3887_vm13, %v3839_v0, -inf  ;;  %v3961_v44 = vsel %vm3887_vm13, %v3873_v43, -inf  ;;  %v10829_v6 = vsel %vm3887_vm13, %v3842_v20, -inf  ;;  %v10854_v62 = vpop.f32.mrb[29].mxu0  ;;  %v10856_v0 = vpop.f32.mrb[28].mxu1 }
 0x391   :  { %v5338_v33 = vrot.slane %v5337_v63, 1  ;;  %v5344_v3 = vmax.f32 %v5342_v17, %v5343_v47  ;;  %v5358_v51 = vmax.f32 %v5356_v28, %v5357_v7  ;;  %v3914_v54 = vmax.f32 %v3912_v19, %v10786_v23  ;;  %v10860_v7 = vpop.f32.mrb[30].mxu0 }
 0x392   :  { %v5352_v46 = vrot.slane %v5351_v13, 1  ;;  %v3960_v52 = vsel %vm3887_vm13, %v3871_v38, -inf  ;;  %v10835_v18 = vadd.f32 %v10692_v49, %v10636_v41  ;;  %v10839_v34 = vadd.f32 %v10692_v49, %v10638_v30  ;;  %v10862_v38 = vpop.f32.mrb[29].mxu1 }
 0x393   :  { %v5339_v5 = vmax.f32 %v5337_v63, %v5338_v33  ;;  %v5345_v25 = vrot.slane %v5344_v3, 1  ;;  %v5359_v14 = vrot.slane %v5358_v51, 1  ;;  %v4152_v11 = vcombine.high %v3914_v54, %v3914_v54 }
 0x394   :  { %v5353_v12 = vmax.f32 %v5351_v13, %v5352_v46  ;;  %v4159_v27 = vrot.slane %v3914_v54, %v10422_v35  ;;  %v3962_v48 = vmax.f32 %v3960_v52, %v3961_v44  ;;  %v3840_v23 = vmax.f32 %v10835_v18, 0.0 }
 0x395   :  { %v5346_v1 = vmax.f32 %v5344_v3, %v5345_v25  ;;  %v5360_v37 = vmax.f32 %v5358_v51, %v5359_v14  ;;  %v5800_v56 = vsel %vm5719_vm2, %v5339_v5, %v5799_v60  ;;  %v4166_v41 = vrot.slane %v4152_v11, %v10422_v35  ;;  %v10871_v11 = vpop.f32.mrb[31].mxu0 }
 0x396   :  { %v4167_v31 = vcombine.high %v4159_v27, %v4159_v27  ;;  %v4913_v30 = vsel %vm4688_vm14, %v4159_v27, -inf  ;;  %v4424_v21 = vcombine.high %v3962_v48, %v3962_v48  ;;  %v4431_v10 = vrot.slane %v3962_v48, %v10422_v35 }
 0x397   :  { %v5801_v22 = vsel %vm5721_vm3, %v5346_v1, %v5800_v56  ;;  %v4168_v24 = vcombine.high %v4166_v41, %v4166_v41  ;;  %v4914_v16 = vrot.slane %v4913_v30, 4  ;;  %v4927_v59 = vsel %vm4688_vm14, %v4166_v41, -inf }
 0x398   :  { %v5802_v17 = vsel %vm5723_vm4, %v5353_v12, %v5801_v22  ;;  %v4920_v60 = vsel %vm4688_vm14, %v4167_v31, -inf  ;;  %v4928_v28 = vrot.slane %v4927_v59, 4  ;;  %v4438_v42 = vrot.slane %v4424_v21, %v10422_v35 }
 0x399   :  { %v5803_v43 = vsel %vm5725_vm5, %v5360_v37, %v5802_v17  ;;  %v4915_v20 = vmax.f32 %v4913_v30, %v4914_v16  ;;  %v4921_v63 = vrot.slane %v4920_v60, 4  ;;  %v4934_v47 = vsel %vm4688_vm14, %v4168_v24, -inf  ;;  %v10874_v30 = vpop.f32.mrb[30].mxu1 }
 0x39a   :  { %5859 = vst.msk [vmem:[%s11159_s3 + $0x58] sm:$0xff] %vm3887_vm13, %v5803_v43  ;;  %v4929_v13 = vmax.f32 %v4927_v59, %v4928_v28  ;;  %v4935_v19 = vrot.slane %v4934_v47, 4  ;;  %v4439_v44 = vcombine.high %v4431_v10, %v4431_v10  ;;  %v4440_v33 = vcombine.high %v4438_v42, %v4438_v42  ;;  %v10876_v28 = vpop.f32.mrb[31].mxu1 }
 0x39b   :  { %v4916_v3 = vrot.slane %v4915_v20, 2  ;;  %v4922_v51 = vmax.f32 %v4920_v60, %v4921_v63  ;;  %v5361_v54 = vsel %vm4688_vm14, %v4431_v10, -inf  ;;  %v5375_v46 = vsel %vm4688_vm14, %v4438_v42, -inf }
 0x39c   :  { %v4930_v52 = vrot.slane %v4929_v13, 2  ;;  %v4936_v5 = vmax.f32 %v4934_v47, %v4935_v19  ;;  %v5362_v25 = vrot.slane %v5361_v54, 4  ;;  %v5368_v14 = vsel %vm4688_vm14, %v4439_v44, -inf }
 0x39d   :  { %v4917_v12 = vmax.f32 %v4915_v20, %v4916_v3  ;;  %v4923_v27 = vrot.slane %v4922_v51, 2  ;;  %v5369_v48 = vrot.slane %v5368_v14, 4  ;;  %v5376_v1 = vrot.slane %v5375_v46, 4 }
 0x39e   :  { %v4931_v37 = vmax.f32 %v4929_v13, %v4930_v52  ;;  %v4937_v56 = vrot.slane %v4936_v5, 2  ;;  %v5363_v41 = vmax.f32 %v5361_v54, %v5362_v25  ;;  %v5382_v31 = vsel %vm4688_vm14, %v4440_v33, -inf }
 0x39f   :  { %v4918_v21 = vrot.slane %v4917_v12, 1  ;;  %v4924_v10 = vmax.f32 %v4922_v51, %v4923_v27  ;;  %v5370_v22 = vmax.f32 %v5368_v14, %v5369_v48  ;;  %v5377_v24 = vmax.f32 %v5375_v46, %v5376_v1 }
 0x3a0   :  { %v4932_v16 = vrot.slane %v4931_v37, 1  ;;  %v4938_v59 = vmax.f32 %v4936_v5, %v4937_v56  ;;  %v5364_v17 = vrot.slane %v5363_v41, 2  ;;  %v5383_v60 = vrot.slane %v5382_v31, 4 }
 0x3a1   :  { %v4919_v42 = vmax.f32 %v4917_v12, %v4918_v21  ;;  %v4925_v43 = vrot.slane %v4924_v10, 1  ;;  %v5371_v20 = vrot.slane %v5370_v22, 2  ;;  %v5378_v63 = vrot.slane %v5377_v24, 2 }
 0x3a2   :  { %v4933_v47 = vmax.f32 %v4931_v37, %v4932_v16  ;;  %v4939_v13 = vrot.slane %v4938_v59, 1  ;;  %v5365_v19 = vmax.f32 %v5363_v41, %v5364_v17  ;;  %v5384_v44 = vmax.f32 %v5382_v31, %v5383_v60 }
 0x3a3   :  { %v4926_v33 = vmax.f32 %v4924_v10, %v4925_v43  ;;  %v5372_v3 = vmax.f32 %v5370_v22, %v5371_v20  ;;  %v5379_v54 = vmax.f32 %v5377_v24, %v5378_v63  ;;  %v3915_v51 = vsel %vm3887_vm13, %v3840_v23, -inf }
 0x3a4   :  { %v4940_v46 = vmax.f32 %v4938_v59, %v4939_v13  ;;  %v5366_v52 = vrot.slane %v5365_v19, 1  ;;  %v5385_v5 = vrot.slane %v5384_v44, 2  ;;  %v3917_v25 = vmax.f32 %v3915_v51, %v10829_v6 }
 0x3a5   :  { %v5748_v14 = vsel %vm5713_vm15, %v4926_v33, %v4919_v42  ;;  %v5373_v12 = vrot.slane %v5372_v3, 1  ;;  %v5380_v27 = vrot.slane %v5379_v54, 1  ;;  %v3874_v48 = vmax.f32 %v10839_v34, 0.0 }
 0x3a6   :  { %v5749_v1 = vsel %vm5715_vm0, %v4933_v47, %v5748_v14  ;;  %v5367_v37 = vmax.f32 %v5365_v19, %v5366_v52  ;;  %v5386_v56 = vmax.f32 %v5384_v44, %v5385_v5  ;;  %v4169_v41 = vcombine.high %v3917_v25, %v3917_v25 }
 0x3a7   :  { %v5374_v31 = vmax.f32 %v5372_v3, %v5373_v12  ;;  %v5381_v18 = vmax.f32 %v5379_v54, %v5380_v27  ;;  %v4176_v23 = vrot.slane %v3917_v25, %v10422_v35  ;;  %v5750_v21 = vsel %vm5717_vm1, %v4940_v46, %v5749_v1 }
 0x3a8   :  { %v5387_v10 = vrot.slane %v5386_v56, 1  ;;  %v4183_v6 = vrot.slane %v4169_v41, %v10422_v35  ;;  %v3964_v22 = vsel %vm3887_vm13, %v3874_v48, -inf  ;;  %v3764_v24 = vadd.f32 %v10692_v49, %v10642_v26 }
 0x3a9   :  { %v5804_v34 = vsel %vm5713_vm15, %v5374_v31, %v5367_v37  ;;  %v4184_v16 = vcombine.high %v4176_v23, %v4176_v23  ;;  %v4941_v59 = vsel %vm4688_vm14, %v4176_v23, -inf  ;;  %v3657_v17 = vadd.f32 %v10692_v49, %v10672_v36 }
 0x3aa   :  { %v5388_v60 = vmax.f32 %v5386_v56, %v5387_v10  ;;  %v5805_v42 = vsel %vm5715_vm0, %v5381_v18, %v5804_v34  ;;  %v4185_v43 = vcombine.high %v4183_v6, %v4183_v6  ;;  %v4942_v20 = vrot.slane %v4941_v59, 4 }
 0x3ab   :  { %v4948_v63 = vsel %vm4688_vm14, %v4184_v16, -inf  ;;  %v4955_v47 = vsel %vm4688_vm14, %v4183_v6, -inf  ;;  %v3872_v13 = vmax.f32 %v3764_v24, 0.0  ;;  %v3845_v19 = vmax.f32 %v3657_v17, 0.0 }
 0x3ac   :  { %v4943_v26 = vmax.f32 %v4941_v59, %v4942_v20  ;;  %v4949_v44 = vrot.slane %v4948_v63, 4  ;;  %v4956_v33 = vrot.slane %v4955_v47, 4  ;;  %v4962_v3 = vsel %vm4688_vm14, %v4185_v43, -inf }
 0x3ad   :  { %v4963_v54 = vrot.slane %v4962_v3, 4  ;;  %v3963_v51 = vsel %vm3887_vm13, %v3872_v13, -inf  ;;  %v10901_v36 = vsel %vm5717_vm1, %v5388_v60, %v5805_v42  ;;  %v3919_v46 = vsel %vm3887_vm13, %v3845_v19, -inf }
 0x3ae   :  { %v4944_v52 = vrot.slane %v4943_v26, 2  ;;  %v4950_v5 = vmax.f32 %v4948_v63, %v4949_v44  ;;  %v4957_v25 = vmax.f32 %v4955_v47, %v4956_v33  ;;  %v3965_v14 = vmax.f32 %v3963_v51, %v3964_v22 }
 0x3af   :  { %v4964_v12 = vmax.f32 %v4962_v3, %v4963_v54  ;;  %v3649_v27 = vadd.f32 %v10692_v49, %v10674_v61  ;;  %v3785_v48 = vadd.f32 %v10692_v49, %v10676_v53  ;;  %v10910_v1 = vadd.f32 %v10692_v49, %v10679_v45 }
 0x3b0   :  { %v4945_v37 = vmax.f32 %v4943_v26, %v4944_v52  ;;  %v4951_v56 = vrot.slane %v4950_v5, 2  ;;  %v4958_v41 = vrot.slane %v4957_v25, 2  ;;  %v4441_v31 = vcombine.high %v3965_v14, %v3965_v14 }
 0x3b1   :  { %v4965_v18 = vrot.slane %v4964_v12, 2  ;;  %v4448_v23 = vrot.slane %v3965_v14, %v10422_v35  ;;  %v3843_v10 = vmax.f32 %v3649_v27, 0.0  ;;  %v3877_v6 = vmax.f32 %v3785_v48, 0.0 }
 0x3b2   :  { %v4946_v22 = vrot.slane %v4945_v37, 1  ;;  %v4952_v24 = vmax.f32 %v4950_v5, %v4951_v56  ;;  %v4959_v34 = vmax.f32 %v4957_v25, %v4958_v41  ;;  %v4455_v61 = vrot.slane %v4441_v31, %v10422_v35 }
 0x3b3   :  { %v4966_v16 = vmax.f32 %v4964_v12, %v4965_v18  ;;  %v4456_v53 = vcombine.high %v4448_v23, %v4448_v23  ;;  %v5389_v59 = vsel %vm4688_vm14, %v4448_v23, -inf  ;;  %v3918_v45 = vsel %vm3887_vm13, %v3843_v10, -inf }
 0x3b4   :  { %v4947_v17 = vmax.f32 %v4945_v37, %v4946_v22  ;;  %v4953_v60 = vrot.slane %v4952_v24, 1  ;;  %v4960_v42 = vrot.slane %v4959_v34, 1  ;;  %v4457_v43 = vcombine.high %v4455_v61, %v4455_v61 }
 0x3b5   :  { %v4967_v20 = vrot.slane %v4966_v16, 1  ;;  %v5390_v63 = vrot.slane %v5389_v59, 4  ;;  %v5396_v47 = vsel %vm4688_vm14, %v4456_v53, -inf  ;;  %v5403_v13 = vsel %vm4688_vm14, %v4455_v61, -inf }
 0x3b6   :  { %v4954_v19 = vmax.f32 %v4952_v24, %v4953_v60  ;;  %v4961_v26 = vmax.f32 %v4959_v34, %v4960_v42  ;;  %v5751_v44 = vsel %vm5719_vm2, %v4947_v17, %v5750_v21  ;;  %v5397_v33 = vrot.slane %v5396_v47, 4 }
 0x3b7   :  { %v4968_v3 = vmax.f32 %v4966_v16, %v4967_v20  ;;  %v5391_v54 = vmax.f32 %v5389_v59, %v5390_v63  ;;  %v5404_v51 = vrot.slane %v5403_v13, 4  ;;  %v5410_v52 = vsel %vm4688_vm14, %v4457_v43, -inf }
 0x3b8   :  { %v5752_v5 = vsel %vm5721_vm3, %v4954_v19, %v5751_v44  ;;  %v5398_v25 = vmax.f32 %v5396_v47, %v5397_v33  ;;  %v5411_v14 = vrot.slane %v5410_v52, 4  ;;  %v3920_v12 = vmax.f32 %v3918_v45, %v3919_v46 }
 0x3b9   :  { %v5753_v27 = vsel %vm5723_vm4, %v4961_v26, %v5752_v5  ;;  %v5392_v48 = vrot.slane %v5391_v54, 2  ;;  %v5405_v37 = vmax.f32 %v5403_v13, %v5404_v51  ;;  %v3967_v56 = vsel %vm3887_vm13, %v3877_v6, -inf }
 0x3ba   :  { %v5754_v41 = vsel %vm5725_vm5, %v4968_v3, %v5753_v27  ;;  %v5399_v21 = vrot.slane %v5398_v25, 2  ;;  %v5412_v31 = vmax.f32 %v5410_v52, %v5411_v14  ;;  %v4186_v18 = vcombine.high %v3920_v12, %v3920_v12 }
 0x3bb   :  { %5852 = vst.msk [vmem:[%s11159_s3 + $0x20] sm:$0xff] %vm3887_vm13, %v5754_v41  ;;  %v5393_v23 = vmax.f32 %v5391_v54, %v5392_v48  ;;  %v5406_v10 = vrot.slane %v5405_v37, 2  ;;  %v4193_v46 = vrot.slane %v3920_v12, %v10422_v35  ;;  %v3846_v22 = vmax.f32 %v10910_v1, 0.0 }
 0x3bc   :  { %v5400_v24 = vmax.f32 %v5398_v25, %v5399_v21  ;;  %v5413_v34 = vrot.slane %v5412_v31, 2  ;;  %v4200_v6 = vrot.slane %v4186_v18, %v10422_v35  ;;  %v3777_v61 = vadd.f32 %v10692_v49, %v10681_v39 }
 0x3bd   :  { %v5394_v16 = vrot.slane %v5393_v23, 1  ;;  %v5407_v53 = vmax.f32 %v5405_v37, %v5406_v10  ;;  %v4201_v59 = vcombine.high %v4193_v46, %v4193_v46  ;;  %v4969_v45 = vsel %vm4688_vm14, %v4193_v46, -inf }
 0x3be   :  { %v5401_v17 = vrot.slane %v5400_v24, 1  ;;  %v5414_v60 = vmax.f32 %v5412_v31, %v5413_v34  ;;  %v4202_v42 = vcombine.high %v4200_v6, %v4200_v6  ;;  %v4970_v43 = vrot.slane %v4969_v45, 4 }
 0x3bf   :  { %v5395_v20 = vmax.f32 %v5393_v23, %v5394_v16  ;;  %v5408_v63 = vrot.slane %v5407_v53, 1  ;;  %v4976_v1 = vsel %vm4688_vm14, %v4201_v59, -inf  ;;  %v4983_v47 = vsel %vm4688_vm14, %v4200_v6, -inf }
 0x3c0   :  { %v5402_v13 = vmax.f32 %v5400_v24, %v5401_v17  ;;  %v5415_v19 = vrot.slane %v5414_v60, 1  ;;  %v4971_v26 = vmax.f32 %v4969_v45, %v4970_v43  ;;  %v4977_v44 = vrot.slane %v4976_v1, 4 }
 0x3c1   :  { %v5409_v39 = vmax.f32 %v5407_v53, %v5408_v63  ;;  %v5807_v33 = vsel %vm5719_vm2, %v5395_v20, %v10901_v36  ;;  %v4984_v3 = vrot.slane %v4983_v47, 4  ;;  %v4990_v54 = vsel %vm4688_vm14, %v4202_v42, -inf }
 0x3c2   :  { %v5416_v51 = vmax.f32 %v5414_v60, %v5415_v19  ;;  %v5808_v52 = vsel %vm5721_vm3, %v5402_v13, %v5807_v33  ;;  %v4972_v5 = vrot.slane %v4971_v26, 2  ;;  %v4978_v25 = vmax.f32 %v4976_v1, %v4977_v44 }
 0x3c3   :  { %v5809_v14 = vsel %vm5723_vm4, %v5409_v39, %v5808_v52  ;;  %v4985_v12 = vmax.f32 %v4983_v47, %v4984_v3  ;;  %v4991_v27 = vrot.slane %v4990_v54, 4  ;;  %v3922_v48 = vsel %vm3887_vm13, %v3846_v22, -inf }
 0x3c4   :  { %v5810_v37 = vsel %vm5725_vm5, %v5416_v51, %v5809_v14  ;;  %v4973_v41 = vmax.f32 %v4971_v26, %v4972_v5  ;;  %v4979_v21 = vrot.slane %v4978_v25, 2  ;;  %v3875_v31 = vmax.f32 %v3777_v61, 0.0 }
 0x3c5   :  { %5860 = vst.msk [vmem:[%s11159_s3 + $0x60] sm:$0xff] %vm3887_vm13, %v5810_v37  ;;  %v4986_v36 = vrot.slane %v4985_v12, 2  ;;  %v4992_v18 = vmax.f32 %v4990_v54, %v4991_v27  ;;  %v3652_v23 = vadd.f32 %v10692_v49, %v10684_v4  ;;  %v3788_v10 = vadd.f32 %v10692_v49, %v10686_v29 }
 0x3c6   :  { %v4974_v46 = vrot.slane %v4973_v41, 1  ;;  %v4980_v22 = vmax.f32 %v4978_v25, %v4979_v21  ;;  %v3966_v24 = vsel %vm3887_vm13, %v3875_v31, -inf  ;;  %v3780_v34 = vadd.f32 %v10692_v49, %v10696_v55 }
 0x3c7   :  { %v4987_v6 = vmax.f32 %v4985_v12, %v4986_v36  ;;  %v4993_v61 = vrot.slane %v4992_v18, 2  ;;  %v3968_v16 = vmax.f32 %v3966_v24, %v3967_v56  ;;  %v3844_v53 = vmax.f32 %v3652_v23, 0.0 }
 0x3c8   :  { %v4975_v59 = vmax.f32 %v4973_v41, %v4974_v46  ;;  %v4981_v45 = vrot.slane %v4980_v22, 1  ;;  %v3878_v17 = vmax.f32 %v3788_v10, 0.0  ;;  %v3876_v60 = vmax.f32 %v3780_v34, 0.0 }
 0x3c9   :  { %v4988_v42 = vrot.slane %v4987_v6, 1  ;;  %v4994_v4 = vmax.f32 %v4992_v18, %v4993_v61  ;;  %v4458_v43 = vcombine.high %v3968_v16, %v3968_v16  ;;  %v4465_v29 = vrot.slane %v3968_v16, %v10422_v35 }
 0x3ca   :  { %v4982_v20 = vmax.f32 %v4980_v22, %v4981_v45  ;;  %v3921_v63 = vsel %vm3887_vm13, %v3844_v53, -inf  ;;  %v3970_v1 = vsel %vm3887_vm13, %v3878_v17, -inf  ;;  %v3969_v49 = vsel %vm3887_vm13, %v3876_v60, -inf }
 0x3cb   :  { %v4989_v55 = vmax.f32 %v4987_v6, %v4988_v42  ;;  %v4995_v47 = vrot.slane %v4994_v4, 1  ;;  %v4472_v56 = vrot.slane %v4458_v43, %v10422_v35  ;;  %v4473_v13 = vcombine.high %v4465_v29, %v4465_v29 }
 0x3cc   :  { %v5755_v19 = vsel %vm5713_vm15, %v4982_v20, %v4975_v59  ;;  %v5417_v26 = vsel %vm4688_vm14, %v4465_v29, -inf  ;;  %v3923_v44 = vmax.f32 %v3921_v63, %v3922_v48  ;;  %v10961_v39 = vmax.f32 %v3969_v49, %v3970_v1 }
 0x3cd   :  { %v4996_v33 = vmax.f32 %v4994_v4, %v4995_v47  ;;  %v5756_v3 = vsel %vm5715_vm0, %v4989_v55, %v5755_v19  ;;  %v4474_v54 = vcombine.high %v4472_v56, %v4472_v56  ;;  %v5418_v51 = vrot.slane %v5417_v26, 4 }
 0x3ce   :  { %v5424_v52 = vsel %vm4688_vm14, %v4473_v13, -inf  ;;  %v5431_v5 = vsel %vm4688_vm14, %v4472_v56, -inf  ;;  %v4203_v25 = vcombine.high %v3923_v44, %v3923_v44  ;;  %v4210_v14 = vrot.slane %v3923_v44, %v10422_v35 }
 0x3cf   :  { %v5419_v12 = vmax.f32 %v5417_v26, %v5418_v51  ;;  %v5425_v27 = vrot.slane %v5424_v52, 4  ;;  %v5432_v37 = vrot.slane %v5431_v5, 4  ;;  %v5438_v41 = vsel %vm4688_vm14, %v4474_v54, -inf }
 0x3d0   :  { %v5439_v48 = vrot.slane %v5438_v41, 4  ;;  %v4217_v21 = vrot.slane %v4203_v25, %v10422_v35  ;;  %v4218_v31 = vcombine.high %v4210_v14, %v4210_v14  ;;  %v4997_v36 = vsel %vm4688_vm14, %v4210_v14, -inf }
 0x3d1   :  { %v5420_v18 = vrot.slane %v5419_v12, 2  ;;  %v5426_v23 = vmax.f32 %v5424_v52, %v5425_v27  ;;  %v5433_v10 = vmax.f32 %v5431_v5, %v5432_v37  ;;  %v4998_v46 = vrot.slane %v4997_v36, 4 }
 0x3d2   :  { %v5440_v22 = vmax.f32 %v5438_v41, %v5439_v48  ;;  %v4219_v24 = vcombine.high %v4217_v21, %v4217_v21  ;;  %v5004_v34 = vsel %vm4688_vm14, %v4218_v31, -inf  ;;  %v5011_v6 = vsel %vm4688_vm14, %v4217_v21, -inf }
 0x3d3   :  { %v5421_v61 = vmax.f32 %v5419_v12, %v5420_v18  ;;  %v5427_v16 = vrot.slane %v5426_v23, 2  ;;  %v5434_v53 = vrot.slane %v5433_v10, 2  ;;  %v4999_v59 = vmax.f32 %v4997_v36, %v4998_v46 }
 0x3d4   :  { %v5441_v45 = vrot.slane %v5440_v22, 2  ;;  %v5005_v17 = vrot.slane %v5004_v34, 4  ;;  %v5012_v60 = vrot.slane %v5011_v6, 4  ;;  %v5018_v42 = vsel %vm4688_vm14, %v4219_v24, -inf }
 0x3d5   :  { %v5422_v4 = vrot.slane %v5421_v61, 1  ;;  %v5428_v43 = vmax.f32 %v5426_v23, %v5427_v16  ;;  %v5435_v29 = vmax.f32 %v5433_v10, %v5434_v53  ;;  %v5000_v20 = vrot.slane %v4999_v59, 2 }
 0x3d6   :  { %v5442_v63 = vmax.f32 %v5440_v22, %v5441_v45  ;;  %v5006_v1 = vmax.f32 %v5004_v34, %v5005_v17  ;;  %v5013_v49 = vmax.f32 %v5011_v6, %v5012_v60  ;;  %v5019_v55 = vrot.slane %v5018_v42, 4 }
 0x3d7   :  { %v5423_v47 = vmax.f32 %v5421_v61, %v5422_v4  ;;  %v5429_v56 = vrot.slane %v5428_v43, 1  ;;  %v5436_v13 = vrot.slane %v5435_v29, 1  ;;  %v5001_v19 = vmax.f32 %v4999_v59, %v5000_v20 }
 0x3d8   :  { %v5443_v26 = vrot.slane %v5442_v63, 1  ;;  %v5007_v44 = vrot.slane %v5006_v1, 2  ;;  %v5014_v54 = vrot.slane %v5013_v49, 2  ;;  %v5020_v51 = vmax.f32 %v5018_v42, %v5019_v55 }
 0x3d9   :  { %v5430_v52 = vmax.f32 %v5428_v43, %v5429_v56  ;;  %v5437_v5 = vmax.f32 %v5435_v29, %v5436_v13  ;;  %v5002_v25 = vrot.slane %v5001_v19, 1  ;;  %v5757_v14 = vsel %vm5717_vm1, %v4996_v33, %v5756_v3 }
 0x3da   :  { %v5444_v12 = vmax.f32 %v5442_v63, %v5443_v26  ;;  %v5008_v27 = vmax.f32 %v5006_v1, %v5007_v44  ;;  %v5015_v37 = vmax.f32 %v5013_v49, %v5014_v54  ;;  %v5021_v41 = vrot.slane %v5020_v51, 2  ;;  %v10992_v63 = vld [vmem:[%s11158_s2] ss:$0 sm:$0xff] }
 0x3db   :  { %v5811_v48 = vsel %vm5713_vm15, %v5430_v52, %v5423_v47  ;;  %v5003_v21 = vmax.f32 %v5001_v19, %v5002_v25  ;;  %v4475_v31 = vcombine.high %v10961_v39, %v10961_v39  ;;  %v4482_v36 = vrot.slane %v10961_v39, %v10422_v35 }
 0x3dc   :  { %v5812_v18 = vsel %vm5715_vm0, %v5437_v5, %v5811_v48  ;;  %v5009_v23 = vrot.slane %v5008_v27, 1  ;;  %v5016_v10 = vrot.slane %v5015_v37, 1  ;;  %v5022_v46 = vmax.f32 %v5020_v51, %v5021_v41 }
 0x3dd   :  { %v5758_v33 = vsel %vm5719_vm2, %v5003_v21, %v5757_v14  ;;  %v4489_v3 = vrot.slane %v4475_v31, %v10422_v35  ;;  %v4490_v22 = vcombine.high %v4482_v36, %v4482_v36  ;;  %v5445_v24 = vsel %vm4688_vm14, %v4482_v36, -inf }
 0x3de   :  { %v5010_v34 = vmax.f32 %v5008_v27, %v5009_v23  ;;  %v5017_v6 = vmax.f32 %v5015_v37, %v5016_v10  ;;  %v5023_v61 = vrot.slane %v5022_v46, 1  ;;  %v5446_v16 = vrot.slane %v5445_v24, 4 }
 0x3df   :  { %v4491_v53 = vcombine.high %v4489_v3, %v4489_v3  ;;  %v5452_v59 = vsel %vm4688_vm14, %v4490_v22, -inf  ;;  %v5459_v39 = vsel %vm4688_vm14, %v4489_v3, -inf  ;;  %v5813_v45 = vsel %vm5717_vm1, %v5444_v12, %v5812_v18 }
 0x3e0   :  { %v5024_v17 = vmax.f32 %v5022_v46, %v5023_v61  ;;  %v5759_v60 = vsel %vm5721_vm3, %v5010_v34, %v5758_v33  ;;  %v5447_v42 = vmax.f32 %v5445_v24, %v5446_v16  ;;  %v5453_v4 = vrot.slane %v5452_v59, 4 }
 0x3e1   :  { %v5760_v43 = vsel %vm5723_vm4, %v5017_v6, %v5759_v60  ;;  %v5460_v29 = vrot.slane %v5459_v39, 4  ;;  %v5466_v20 = vsel %vm4688_vm14, %v4491_v53, -inf  ;;  %v3673_v1 = vadd.f32 %v10992_v63, %v10739_v9 }
 0x3e2   :  { %v5761_v49 = vsel %vm5725_vm5, %v5024_v17, %v5760_v43  ;;  %v5448_v55 = vrot.slane %v5447_v42, 2  ;;  %v5454_v47 = vmax.f32 %v5452_v59, %v5453_v4  ;;  %v5467_v56 = vrot.slane %v5466_v20, 4 }
 0x3e3   :  { %5853 = vst.msk [vmem:[%s11159_s3 + $0x28] sm:$0xff] %vm3887_vm13, %v5761_v49  ;;  %v5461_v13 = vmax.f32 %v5459_v39, %v5460_v29  ;;  %v3849_v19 = vmax.f32 %v3673_v1, 0.0  ;;  %v3665_v26 = vadd.f32 %v10992_v63, %v10741_v15  ;;  %v3801_v44 = vadd.f32 %v10992_v63, %v10743_v8 }
 0x3e4   :  { %v5449_v54 = vmax.f32 %v5447_v42, %v5448_v55  ;;  %v5455_v9 = vrot.slane %v5454_v47, 2  ;;  %v5468_v51 = vmax.f32 %v5466_v20, %v5467_v56  ;;  %v3676_v52 = vadd.f32 %v10992_v63, %v10747_v57 }
 0x3e5   :  { %v5462_v5 = vrot.slane %v5461_v13, 2  ;;  %v3925_v25 = vsel %vm3887_vm13, %v3849_v19, -inf  ;;  %v3847_v14 = vmax.f32 %v3665_v26, 0.0  ;;  %v3881_v12 = vmax.f32 %v3801_v44, 0.0 }
 0x3e6   :  { %v5450_v27 = vrot.slane %v5449_v54, 1  ;;  %v5456_v37 = vmax.f32 %v5454_v47, %v5455_v9  ;;  %v5469_v41 = vrot.slane %v5468_v51, 2  ;;  %v3850_v48 = vmax.f32 %v3676_v52, 0.0 }
 0x3e7   :  { %v5463_v21 = vmax.f32 %v5461_v13, %v5462_v5  ;;  %v3924_v15 = vsel %vm3887_vm13, %v3847_v14, -inf  ;;  %v3973_v8 = vsel %vm3887_vm13, %v3881_v12, -inf  ;;  %v3793_v31 = vadd.f32 %v10992_v63, %v10749_v40 }
 0x3e8   :  { %v5451_v36 = vmax.f32 %v5449_v54, %v5450_v27  ;;  %v5457_v18 = vrot.slane %v5456_v37, 1  ;;  %v5470_v57 = vmax.f32 %v5468_v51, %v5469_v41  ;;  %v3926_v23 = vmax.f32 %v3924_v15, %v3925_v25 }
 0x3e9   :  { %v5464_v10 = vrot.slane %v5463_v21, 1  ;;  %v3928_v46 = vsel %vm3887_vm13, %v3850_v48, -inf  ;;  %v3879_v33 = vmax.f32 %v3793_v31, 0.0  ;;  %v3668_v3 = vadd.f32 %v10992_v63, %v10751_v50 }
 0x3ea   :  { %v5458_v22 = vmax.f32 %v5456_v37, %v5457_v18  ;;  %v5471_v24 = vrot.slane %v5470_v57, 1  ;;  %v5814_v34 = vsel %vm5719_vm2, %v5451_v36, %v5813_v45  ;;  %v4220_v6 = vcombine.high %v3926_v23, %v3926_v23 }
 0x3eb   :  { %v5465_v61 = vmax.f32 %v5463_v21, %v5464_v10  ;;  %v4227_v16 = vrot.slane %v3926_v23, %v10422_v35  ;;  %v3972_v40 = vsel %vm3887_vm13, %v3879_v33, -inf  ;;  %v3848_v53 = vmax.f32 %v3668_v3, 0.0 }
 0x3ec   :  { %v5472_v59 = vmax.f32 %v5470_v57, %v5471_v24  ;;  %v5815_v39 = vsel %vm5721_vm3, %v5458_v22, %v5814_v34  ;;  %v4234_v17 = vrot.slane %v4220_v6, %v10422_v35  ;;  %v3974_v60 = vmax.f32 %v3972_v40, %v3973_v8 }
 0x3ed   :  { %v5816_v42 = vsel %vm5723_vm4, %v5465_v61, %v5815_v39  ;;  %v4235_v50 = vcombine.high %v4227_v16, %v4227_v16  ;;  %v5025_v4 = vsel %vm4688_vm14, %v4227_v16, -inf  ;;  %v3927_v45 = vsel %vm3887_vm13, %v3848_v53, -inf }
 0x3ee   :  { %v5817_v43 = vsel %vm5725_vm5, %v5472_v59, %v5816_v42  ;;  %v4236_v29 = vcombine.high %v4234_v17, %v4234_v17  ;;  %v5026_v20 = vrot.slane %v5025_v4, 4  ;;  %v5039_v1 = vsel %vm4688_vm14, %v4234_v17, -inf }
 0x3ef   :  { %5861 = vst.msk [vmem:[%s11159_s3 + $0x68] sm:$0xff] %vm3887_vm13, %v5817_v43  ;;  %v5032_v49 = vsel %vm4688_vm14, %v4235_v50, -inf  ;;  %v5040_v55 = vrot.slane %v5039_v1, 4  ;;  %v4492_v47 = vcombine.high %v3974_v60, %v3974_v60  ;;  %v4499_v56 = vrot.slane %v3974_v60, %v10422_v35 }
 0x3f0   :  { %v5027_v13 = vmax.f32 %v5025_v4, %v5026_v20  ;;  %v5033_v19 = vrot.slane %v5032_v49, 4  ;;  %v5046_v26 = vsel %vm4688_vm14, %v4236_v29, -inf  ;;  %v3929_v44 = vmax.f32 %v3927_v45, %v3928_v46 }
 0x3f1   :  { %v5041_v54 = vmax.f32 %v5039_v1, %v5040_v55  ;;  %v5047_v9 = vrot.slane %v5046_v26, 4  ;;  %v4506_v51 = vrot.slane %v4492_v47, %v10422_v35  ;;  %v4507_v52 = vcombine.high %v4499_v56, %v4499_v56 }
 0x3f2   :  { %v5028_v5 = vrot.slane %v5027_v13, 2  ;;  %v5034_v25 = vmax.f32 %v5032_v49, %v5033_v19  ;;  %v5473_v14 = vsel %vm4688_vm14, %v4499_v56, -inf  ;;  %v4237_v12 = vcombine.high %v3929_v44, %v3929_v44 }
 0x3f3   :  { %v5042_v27 = vrot.slane %v5041_v54, 2  ;;  %v5048_v37 = vmax.f32 %v5046_v26, %v5047_v9  ;;  %v4508_v41 = vcombine.high %v4506_v51, %v4506_v51  ;;  %v5474_v48 = vrot.slane %v5473_v14, 4 }
 0x3f4   :  { %v5029_v21 = vmax.f32 %v5027_v13, %v5028_v5  ;;  %v5035_v15 = vrot.slane %v5034_v25, 2  ;;  %v5480_v8 = vsel %vm4688_vm14, %v4507_v52, -inf  ;;  %v5487_v31 = vsel %vm4688_vm14, %v4506_v51, -inf }
 0x3f5   :  { %v5043_v36 = vmax.f32 %v5041_v54, %v5042_v27  ;;  %v5049_v18 = vrot.slane %v5048_v37, 2  ;;  %v5475_v57 = vmax.f32 %v5473_v14, %v5474_v48  ;;  %v5481_v23 = vrot.slane %v5480_v8, 4 }
 0x3f6   :  { %v5030_v10 = vrot.slane %v5029_v21, 1  ;;  %v5036_v46 = vmax.f32 %v5034_v25, %v5035_v15  ;;  %v5488_v33 = vrot.slane %v5487_v31, 4  ;;  %v5494_v3 = vsel %vm4688_vm14, %v4508_v41, -inf }
 0x3f7   :  { %v5044_v22 = vrot.slane %v5043_v36, 1  ;;  %v5050_v24 = vmax.f32 %v5048_v37, %v5049_v18  ;;  %v5476_v34 = vrot.slane %v5475_v57, 2  ;;  %v5482_v6 = vmax.f32 %v5480_v8, %v5481_v23 }
 0x3f8   :  { %v5031_v61 = vmax.f32 %v5029_v21, %v5030_v10  ;;  %v5037_v16 = vrot.slane %v5036_v46, 1  ;;  %v5489_v40 = vmax.f32 %v5487_v31, %v5488_v33  ;;  %v5495_v53 = vrot.slane %v5494_v3, 4 }
 0x3f9   :  { %v5045_v59 = vmax.f32 %v5043_v36, %v5044_v22  ;;  %v5051_v39 = vrot.slane %v5050_v24, 1  ;;  %v5477_v17 = vmax.f32 %v5475_v57, %v5476_v34  ;;  %v5483_v60 = vrot.slane %v5482_v6, 2 }
 0x3fa   :  { %v5038_v42 = vmax.f32 %v5036_v46, %v5037_v16  ;;  %v5490_v50 = vrot.slane %v5489_v40, 2  ;;  %v5496_v4 = vmax.f32 %v5494_v3, %v5495_v53  ;;  %v4244_v45 = vrot.slane %v3929_v44, %v10422_v35 }
 0x3fb   :  { %v5052_v43 = vmax.f32 %v5050_v24, %v5051_v39  ;;  %v5478_v29 = vrot.slane %v5477_v17, 1  ;;  %v5484_v20 = vmax.f32 %v5482_v6, %v5483_v60  ;;  %v4251_v1 = vrot.slane %v4237_v12, %v10422_v35 }
 0x3fc   :  { %v5762_v49 = vsel %vm5713_vm15, %v5038_v42, %v5031_v61  ;;  %v5491_v55 = vmax.f32 %v5489_v40, %v5490_v50  ;;  %v5497_v47 = vrot.slane %v5496_v4, 2  ;;  %v4252_v56 = vcombine.high %v4244_v45, %v4244_v45 }
 0x3fd   :  { %v5763_v13 = vsel %vm5715_vm0, %v5045_v59, %v5762_v49  ;;  %v5479_v19 = vmax.f32 %v5477_v17, %v5478_v29  ;;  %v5485_v26 = vrot.slane %v5484_v20, 1  ;;  %v4253_v54 = vcombine.high %v4251_v1, %v4251_v1 }
 0x3fe   :  { %v5492_v9 = vrot.slane %v5491_v55, 1  ;;  %v5498_v51 = vmax.f32 %v5496_v4, %v5497_v47  ;;  %v5053_v52 = vsel %vm4688_vm14, %v4244_v45, -inf  ;;  %v5060_v44 = vsel %vm4688_vm14, %v4252_v56, -inf }
 0x3ff   :  { %v5486_v5 = vmax.f32 %v5484_v20, %v5485_v26  ;;  %v5054_v25 = vrot.slane %v5053_v52, 4  ;;  %v5061_v14 = vrot.slane %v5060_v44, 4  ;;  %v5067_v12 = vsel %vm4688_vm14, %v4251_v1, -inf }
 0x400   :  { %v5493_v27 = vmax.f32 %v5491_v55, %v5492_v9  ;;  %v5499_v37 = vrot.slane %v5498_v51, 1  ;;  %v5068_v41 = vrot.slane %v5067_v12, 4  ;;  %v5074_v48 = vsel %vm4688_vm14, %v4253_v54, -inf }
 0x401   :  { %v5818_v21 = vsel %vm5713_vm15, %v5486_v5, %v5479_v19  ;;  %v5055_v15 = vmax.f32 %v5053_v52, %v5054_v25  ;;  %v5062_v8 = vmax.f32 %v5060_v44, %v5061_v14  ;;  %v5075_v31 = vrot.slane %v5074_v48, 4 }
 0x402   :  { %v5500_v36 = vmax.f32 %v5498_v51, %v5499_v37  ;;  %v5819_v18 = vsel %vm5715_vm0, %v5493_v27, %v5818_v21  ;;  %v5069_v57 = vmax.f32 %v5067_v12, %v5068_v41  ;;  %v3804_v33 = vadd.f32 %v10992_v63, %v10776_v58 }
 0x403   :  { %v5056_v23 = vrot.slane %v5055_v15, 2  ;;  %v5063_v10 = vrot.slane %v5062_v8, 2  ;;  %v5076_v46 = vmax.f32 %v5074_v48, %v5075_v31  ;;  %v5764_v22 = vsel %vm5717_vm1, %v5052_v43, %v5763_v13 }
 0x404   :  { %v5070_v3 = vrot.slane %v5069_v57, 2  ;;  %v3796_v24 = vadd.f32 %v10992_v63, %v10798_v2  ;;  %v3689_v34 = vadd.f32 %v10992_v63, %v10849_v32  ;;  %v3882_v40 = vmax.f32 %v3804_v33, 0.0 }
 0x405   :  { %v5057_v6 = vmax.f32 %v5055_v15, %v5056_v23  ;;  %v5064_v61 = vmax.f32 %v5062_v8, %v5063_v10  ;;  %v5077_v16 = vrot.slane %v5076_v46, 2  ;;  %v3681_v17 = vadd.f32 %v10992_v63, %v10854_v62 }
 0x406   :  { %v5071_v53 = vmax.f32 %v5069_v57, %v5070_v3  ;;  %v3880_v59 = vmax.f32 %v3796_v24, 0.0  ;;  %v3853_v39 = vmax.f32 %v3689_v34, 0.0  ;;  %v3976_v50 = vsel %vm3887_vm13, %v3882_v40, -inf }
 0x407   :  { %v5058_v58 = vrot.slane %v5057_v6, 1  ;;  %v5065_v60 = vrot.slane %v5064_v61, 1  ;;  %v5078_v42 = vmax.f32 %v5076_v46, %v5077_v16  ;;  %v11059_v32 = vsel %vm5717_vm1, %v5500_v36, %v5819_v18 }
 0x408   :  { %v5072_v4 = vrot.slane %v5071_v53, 1  ;;  %v3975_v2 = vsel %vm3887_vm13, %v3880_v59, -inf  ;;  %v3851_v45 = vmax.f32 %v3681_v17, 0.0  ;;  %v3931_v1 = vsel %vm3887_vm13, %v3853_v39, -inf }
 0x409   :  { %v5059_v43 = vmax.f32 %v5057_v6, %v5058_v58  ;;  %v5079_v29 = vrot.slane %v5078_v42, 1  ;;  %v3977_v20 = vmax.f32 %v3975_v2, %v3976_v50  ;;  %v5066_v49 = vmax.f32 %v5064_v61, %v5065_v60 }
 0x40a   :  { %v5073_v55 = vmax.f32 %v5071_v53, %v5072_v4  ;;  %v3930_v62 = vsel %vm3887_vm13, %v3851_v45, -inf  ;;  %v3817_v47 = vadd.f32 %v10992_v63, %v10856_v0  ;;  %v11069_v26 = vadd.f32 %v10992_v63, %v10860_v7 }
 0x40b   :  { %v5765_v56 = vsel %vm5719_vm2, %v5059_v43, %v5764_v22  ;;  %v4509_v13 = vcombine.high %v3977_v20, %v3977_v20  ;;  %v4516_v19 = vrot.slane %v3977_v20, %v10422_v35  ;;  %v5080_v54 = vmax.f32 %v5078_v42, %v5079_v29 }
 0x40c   :  { %v5766_v9 = vsel %vm5721_vm3, %v5066_v49, %v5765_v56  ;;  %v3932_v51 = vmax.f32 %v3930_v62, %v3931_v1  ;;  %v3885_v52 = vmax.f32 %v3817_v47, 0.0  ;;  %v3854_v21 = vmax.f32 %v11069_v26, 0.0 }
 0x40d   :  { %v5767_v44 = vsel %vm5723_vm4, %v5073_v55, %v5766_v9  ;;  %v4523_v5 = vrot.slane %v4509_v13, %v10422_v35  ;;  %v4524_v25 = vcombine.high %v4516_v19, %v4516_v19  ;;  %v5501_v0 = vsel %vm4688_vm14, %v4516_v19, -inf }
 0x40e   :  { %v5768_v14 = vsel %vm5725_vm5, %v5080_v54, %v5767_v44  ;;  %v5502_v12 = vrot.slane %v5501_v0, 4  ;;  %v4254_v27 = vcombine.high %v3932_v51, %v3932_v51  ;;  %v4261_v37 = vrot.slane %v3932_v51, %v10422_v35 }
 0x40f   :  { %5854 = vst.msk [vmem:[%s11159_s3 + $0x30] sm:$0xff] %vm3887_vm13, %v5768_v14  ;;  %v4525_v7 = vcombine.high %v4523_v5, %v4523_v5  ;;  %v5508_v41 = vsel %vm4688_vm14, %v4524_v25, -inf  ;;  %v5515_v48 = vsel %vm4688_vm14, %v4523_v5, -inf  ;;  %v11088_v10 = vsel %vm3887_vm13, %v3885_v52, -inf }
 0x410   :  { %v5503_v15 = vmax.f32 %v5501_v0, %v5502_v12  ;;  %v5509_v8 = vrot.slane %v5508_v41, 4  ;;  %v5516_v31 = vrot.slane %v5515_v48, 4  ;;  %v4268_v36 = vrot.slane %v4254_v27, %v10422_v35 }
 0x411   :  { %v5522_v18 = vsel %vm4688_vm14, %v4525_v7, -inf  ;;  %v4269_v57 = vcombine.high %v4261_v37, %v4261_v37  ;;  %v5081_v23 = vsel %vm4688_vm14, %v4261_v37, -inf  ;;  %v3809_v12 = vadd.f32 %v10992_v63, %v10862_v38 }
 0x412   :  { %v5504_v46 = vrot.slane %v5503_v15, 2  ;;  %v5510_v33 = vmax.f32 %v5508_v41, %v5509_v8  ;;  %v5517_v3 = vmax.f32 %v5515_v48, %v5516_v31  ;;  %v5523_v22 = vrot.slane %v5522_v18, 4 }
 0x413   :  { %v4270_v24 = vcombine.high %v4268_v36, %v4268_v36  ;;  %v5082_v34 = vrot.slane %v5081_v23, 4  ;;  %v5088_v6 = vsel %vm4688_vm14, %v4269_v57, -inf  ;;  %v5095_v61 = vsel %vm4688_vm14, %v4268_v36, -inf }
 0x414   :  { %v5505_v16 = vmax.f32 %v5503_v15, %v5504_v46  ;;  %v5511_v40 = vrot.slane %v5510_v33, 2  ;;  %v5518_v53 = vrot.slane %v5517_v3, 2  ;;  %v5524_v59 = vmax.f32 %v5522_v18, %v5523_v22 }
 0x415   :  { %v5083_v39 = vmax.f32 %v5081_v23, %v5082_v34  ;;  %v5089_v17 = vrot.slane %v5088_v6, 4  ;;  %v5096_v58 = vrot.slane %v5095_v61, 4  ;;  %v5102_v60 = vsel %vm4688_vm14, %v4270_v24, -inf }
 0x416   :  { %v5506_v42 = vrot.slane %v5505_v16, 1  ;;  %v5512_v50 = vmax.f32 %v5510_v33, %v5511_v40  ;;  %v5519_v4 = vmax.f32 %v5517_v3, %v5518_v53  ;;  %v5525_v2 = vrot.slane %v5524_v59, 2 }
 0x417   :  { %v5084_v45 = vrot.slane %v5083_v39, 2  ;;  %v5090_v43 = vmax.f32 %v5088_v6, %v5089_v17  ;;  %v5097_v29 = vmax.f32 %v5095_v61, %v5096_v58  ;;  %v5103_v20 = vrot.slane %v5102_v60, 4 }
 0x418   :  { %v5507_v1 = vmax.f32 %v5505_v16, %v5506_v42  ;;  %v5513_v49 = vrot.slane %v5512_v50, 1  ;;  %v5520_v55 = vrot.slane %v5519_v4, 1  ;;  %v5526_v62 = vmax.f32 %v5524_v59, %v5525_v2 }
 0x419   :  { %v5085_v47 = vmax.f32 %v5083_v39, %v5084_v45  ;;  %v5091_v56 = vrot.slane %v5090_v43, 2  ;;  %v5098_v13 = vrot.slane %v5097_v29, 2  ;;  %v5104_v19 = vmax.f32 %v5102_v60, %v5103_v20 }
 0x41a   :  { %v5514_v26 = vmax.f32 %v5512_v50, %v5513_v49  ;;  %v5521_v54 = vmax.f32 %v5519_v4, %v5520_v55  ;;  %v5527_v9 = vrot.slane %v5526_v62, 1  ;;  %v5821_v51 = vsel %vm5719_vm2, %v5507_v1, %v11059_v32 }
 0x41b   :  { %v5086_v52 = vrot.slane %v5085_v47, 1  ;;  %v5092_v44 = vmax.f32 %v5090_v43, %v5091_v56  ;;  %v5099_v5 = vmax.f32 %v5097_v29, %v5098_v13  ;;  %v5105_v25 = vrot.slane %v5104_v19, 2 }
 0x41c   :  { %v5528_v0 = vmax.f32 %v5526_v62, %v5527_v9  ;;  %v5822_v14 = vsel %vm5721_vm3, %v5514_v26, %v5821_v51  ;;  %v3684_v27 = vadd.f32 %v10992_v63, %v10871_v11  ;;  %v3934_v48 = vsel %vm3887_vm13, %v3854_v21, -inf }
 0x41d   :  { %v5823_v37 = vsel %vm5723_vm4, %v5521_v54, %v5822_v14  ;;  %v5093_v7 = vrot.slane %v5092_v44, 1  ;;  %v5100_v41 = vrot.slane %v5099_v5, 1  ;;  %v5106_v15 = vmax.f32 %v5104_v19, %v5105_v25 }
 0x41e   :  { %v5824_v32 = vsel %vm5725_vm5, %v5528_v0, %v5823_v37  ;;  %v3883_v8 = vmax.f32 %v3809_v12, 0.0  ;;  %v3852_v31 = vmax.f32 %v3684_v27, 0.0  ;;  %v5087_v38 = vmax.f32 %v5085_v47, %v5086_v52 }
 0x41f   :  { %5862 = vst.msk [vmem:[%s11159_s3 + $0x70] sm:$0xff] %vm3887_vm13, %v5824_v32  ;;  %v5094_v36 = vmax.f32 %v5092_v44, %v5093_v7  ;;  %v3820_v11 = vadd.f32 %v10992_v63, %v10874_v30  ;;  %v3812_v18 = vadd.f32 %v10992_v63, %v10876_v28  ;;  %v5101_v57 = vmax.f32 %v5099_v5, %v5100_v41 }
 0x420   :  { %v5107_v21 = vrot.slane %v5106_v15, 1  ;;  %v3978_v23 = vsel %vm3887_vm13, %v3883_v8, -inf  ;;  %v3933_v46 = vsel %vm3887_vm13, %v3852_v31, -inf }
 0x421   :  { %v5769_v33 = vsel %vm5713_vm15, %v5094_v36, %v5087_v38  ;;  %v3980_v3 = vmax.f32 %v3978_v23, %v11088_v10  ;;  %v3935_v22 = vmax.f32 %v3933_v46, %v3934_v48  ;;  %v3886_v24 = vmax.f32 %v3820_v11, 0.0 }
 0x422   :  { %v3884_v34 = vmax.f32 %v3812_v18, 0.0  ;;  %v5108_v28 = vmax.f32 %v5106_v15, %v5107_v21  ;;  %v5770_v63 = vsel %vm5715_vm0, %v5101_v57, %v5769_v33 }
 0x423   :  { %v4526_v6 = vcombine.high %v3980_v3, %v3980_v3  ;;  %v4533_v61 = vrot.slane %v3980_v3, %v10422_v35  ;;  %v4271_v30 = vcombine.high %v3935_v22, %v3935_v22  ;;  %v4278_v16 = vrot.slane %v3935_v22, %v10422_v35 }
 0x424   :  { %v3982_v40 = vsel %vm3887_vm13, %v3886_v24, -inf  ;;  %v3981_v53 = vsel %vm3887_vm13, %v3884_v34, -inf  ;;  %v5771_v3 = vsel %vm5717_vm1, %v5108_v28, %v5770_v63 }
 0x425   :  { %v4540_v59 = vrot.slane %v4526_v6, %v10422_v35  ;;  %v4541_v39 = vcombine.high %v4533_v61, %v4533_v61  ;;  %v5529_v10 = vsel %vm4688_vm14, %v4533_v61, -inf  ;;  %v4285_v17 = vrot.slane %v4271_v30, %v10422_v35 }
 0x426   :  { %v5530_v58 = vrot.slane %v5529_v10, 4  ;;  %v4286_v60 = vcombine.high %v4278_v16, %v4278_v16  ;;  %v5109_v42 = vsel %vm4688_vm14, %v4278_v16, -inf  ;;  %v3983_v50 = vmax.f32 %v3981_v53, %v3982_v40 }
 0x427   :  { %v4542_v4 = vcombine.high %v4540_v59, %v4540_v59  ;;  %v5536_v2 = vsel %vm4688_vm14, %v4541_v39, -inf  ;;  %v5543_v45 = vsel %vm4688_vm14, %v4540_v59, -inf  ;;  %v4287_v43 = vcombine.high %v4285_v17, %v4285_v17 }
 0x428   :  { %v5531_v29 = vmax.f32 %v5529_v10, %v5530_v58  ;;  %v5537_v20 = vrot.slane %v5536_v2, 4  ;;  %v5544_v1 = vrot.slane %v5543_v45, 4  ;;  %v5110_v49 = vrot.slane %v5109_v42, 4 }
 0x429   :  { %v5550_v55 = vsel %vm4688_vm14, %v4542_v4, -inf  ;;  %v5116_v62 = vsel %vm4688_vm14, %v4286_v60, -inf  ;;  %v5123_v47 = vsel %vm4688_vm14, %v4285_v17, -inf  ;;  %v5130_v56 = vsel %vm4688_vm14, %v4287_v43, -inf }
 0x42a   :  { %v5532_v13 = vrot.slane %v5531_v29, 2  ;;  %v5538_v19 = vmax.f32 %v5536_v2, %v5537_v20  ;;  %v5545_v26 = vmax.f32 %v5543_v45, %v5544_v1  ;;  %v5551_v54 = vrot.slane %v5550_v55, 4 }
 0x42b   :  { %v5111_v9 = vmax.f32 %v5109_v42, %v5110_v49  ;;  %v5117_v51 = vrot.slane %v5116_v62, 4  ;;  %v5124_v52 = vrot.slane %v5123_v47, 4  ;;  %v5131_v44 = vrot.slane %v5130_v56, 4 }
 0x42c   :  { %v5533_v5 = vmax.f32 %v5531_v29, %v5532_v13  ;;  %v5539_v25 = vrot.slane %v5538_v19, 2  ;;  %v5546_v0 = vrot.slane %v5545_v26, 2  ;;  %v5552_v14 = vmax.f32 %v5550_v55, %v5551_v54 }
 0x42d   :  { %v5112_v12 = vrot.slane %v5111_v9, 2  ;;  %v5118_v27 = vmax.f32 %v5116_v62, %v5117_v51  ;;  %v5125_v37 = vmax.f32 %v5123_v47, %v5124_v52  ;;  %v5132_v7 = vmax.f32 %v5130_v56, %v5131_v44 }
 0x42e   :  { %v5534_v41 = vrot.slane %v5533_v5, 1  ;;  %v5540_v48 = vmax.f32 %v5538_v19, %v5539_v25  ;;  %v5547_v32 = vmax.f32 %v5545_v26, %v5546_v0  ;;  %v5553_v15 = vrot.slane %v5552_v14, 2 }
 0x42f   :  { %v5113_v8 = vmax.f32 %v5111_v9, %v5112_v12  ;;  %v5119_v31 = vrot.slane %v5118_v27, 2  ;;  %v5126_v38 = vrot.slane %v5125_v37, 2  ;;  %v5133_v36 = vrot.slane %v5132_v7, 2 }
 0x430   :  { %v5541_v11 = vrot.slane %v5540_v48, 1  ;;  %v5548_v18 = vrot.slane %v5547_v32, 1  ;;  %v5554_v57 = vmax.f32 %v5552_v14, %v5553_v15  ;;  %v4543_v22 = vcombine.high %v3983_v50, %v3983_v50 }
 0x431   :  { %v5114_v21 = vrot.slane %v5113_v8, 1  ;;  %v5120_v23 = vmax.f32 %v5118_v27, %v5119_v31  ;;  %v5127_v46 = vmax.f32 %v5125_v37, %v5126_v38  ;;  %v5134_v33 = vmax.f32 %v5132_v7, %v5133_v36 }
 0x432   :  { %v5535_v24 = vmax.f32 %v5533_v5, %v5534_v41  ;;  %v5542_v30 = vmax.f32 %v5540_v48, %v5541_v11  ;;  %v4550_v40 = vrot.slane %v3983_v50, %v10422_v35  ;;  %v4557_v53 = vrot.slane %v4543_v22, %v10422_v35 }
 0x433   :  { %v5121_v34 = vrot.slane %v5120_v23, 1  ;;  %v5128_v6 = vrot.slane %v5127_v46, 1  ;;  %v5135_v61 = vrot.slane %v5134_v33, 1  ;;  %v5115_v16 = vmax.f32 %v5113_v8, %v5114_v21 }
 0x434   :  { %v5549_v59 = vmax.f32 %v5547_v32, %v5548_v18  ;;  %v5555_v39 = vrot.slane %v5554_v57, 1  ;;  %v4558_v60 = vcombine.high %v4550_v40, %v4550_v40  ;;  %v4559_v42 = vcombine.high %v4557_v53, %v4557_v53 }
 0x435   :  { %v5122_v10 = vmax.f32 %v5120_v23, %v5121_v34  ;;  %v5129_v17 = vmax.f32 %v5127_v46, %v5128_v6  ;;  %v5772_v58 = vsel %vm5719_vm2, %v5115_v16, %v5771_v3  ;;  %v5557_v28 = vsel %vm4688_vm14, %v4550_v40, -inf }
 0x436   :  { %v5136_v63 = vmax.f32 %v5134_v33, %v5135_v61  ;;  %v5558_v2 = vrot.slane %v5557_v28, 4  ;;  %v5571_v45 = vsel %vm4688_vm14, %v4557_v53, -inf  ;;  %v5564_v35 = vsel %vm4688_vm14, %v4558_v60, -inf }
 0x437   :  { %v5773_v4 = vsel %vm5721_vm3, %v5122_v10, %v5772_v58  ;;  %v5572_v43 = vrot.slane %v5571_v45, 4  ;;  %v5578_v29 = vsel %vm4688_vm14, %v4559_v42, -inf  ;;  %v5565_v49 = vrot.slane %v5564_v35, 4 }
 0x438   :  { %v5774_v50 = vsel %vm5723_vm4, %v5129_v17, %v5773_v4  ;;  %v5559_v1 = vmax.f32 %v5557_v28, %v5558_v2  ;;  %v5579_v55 = vrot.slane %v5578_v29, 4  ;;  %v5825_v62 = vsel %vm5713_vm15, %v5542_v30, %v5535_v24 }
 0x439   :  { %v5775_v20 = vsel %vm5725_vm5, %v5136_v63, %v5774_v50  ;;  %v5573_v47 = vmax.f32 %v5571_v45, %v5572_v43  ;;  %v5566_v13 = vmax.f32 %v5564_v35, %v5565_v49  ;;  %v5556_v26 = vmax.f32 %v5554_v57, %v5555_v39 }
 0x43a   :  { %5855 = vst.msk [vmem:[%s11159_s3 + $0x38] sm:$0xff] %vm3887_vm13, %v5775_v20  ;;  %v5560_v56 = vrot.slane %v5559_v1, 2  ;;  %v5580_v19 = vmax.f32 %v5578_v29, %v5579_v55  ;;  %v5826_v9 = vsel %vm5715_vm0, %v5549_v59, %v5825_v62 }
 0x43b   :  { %v5574_v54 = vrot.slane %v5573_v47, 2  ;;  %v5567_v52 = vrot.slane %v5566_v13, 2  ;;  %v5827_v27 = vsel %vm5717_vm1, %v5556_v26, %v5826_v9 }
 0x43c   :  { %v5561_v51 = vmax.f32 %v5559_v1, %v5560_v56  ;;  %v5581_v44 = vrot.slane %v5580_v19, 2 }
 0x43d   :  { %v5575_v5 = vmax.f32 %v5573_v47, %v5574_v54  ;;  %v5568_v0 = vmax.f32 %v5566_v13, %v5567_v52 }
 0x43e   :  { %v5562_v25 = vrot.slane %v5561_v51, 1  ;;  %v5582_v14 = vmax.f32 %v5580_v19, %v5581_v44 }
 0x43f   :  { %v5576_v12 = vrot.slane %v5575_v5, 1  ;;  %v5569_v7 = vrot.slane %v5568_v0, 1 }
 0x440   :  { %v5563_v37 = vmax.f32 %v5561_v51, %v5562_v25  ;;  %v5583_v41 = vrot.slane %v5582_v14, 1 }
 0x441   :  { %v5570_v48 = vmax.f32 %v5568_v0, %v5569_v7  ;;  %v5577_v15 = vmax.f32 %v5575_v5, %v5576_v12 }
 0x442   :  { %v5828_v32 = vsel %vm5719_vm2, %v5563_v37, %v5827_v27  ;;  %v5584_v8 = vmax.f32 %v5582_v14, %v5583_v41 }
 0x443   :  { %v5829_v31 = vsel %vm5721_vm3, %v5570_v48, %v5828_v32 }
 0x444   :  { %v5830_v38 = vsel %vm5723_vm4, %v5577_v15, %v5829_v31 }
 0x445   :  { %v5831_v36 = vsel %vm5725_vm5, %v5584_v8, %v5830_v38 }
 0x446   :  { %5863 = vst.msk [vmem:[%s11159_s3 + $0x78] sm:$0xff] %vm3887_vm13, %v5831_v36 }

</bundles_post_ra>
